<compile_context>
chip_gen: v5e
topology: v5e:2x2
jax: 0.10.0
libtpu: 0.0.40
codegen_flags: <defaults>
</compile_context>

<pallas_src>
import functools

import jax
import jax.numpy as jnp
from jax import lax
from jax.experimental import pallas as pl
from jax.experimental.pallas import tpu as pltpu

BN_EPS = 1e-5
VMEM_LIMIT = 32 * 1024 * 1024  # explicit, safe on v5e/v6e/v7x


# ----------------------------------------------------------------------------
# Kernels
# ----------------------------------------------------------------------------
def _encoder_kernel(x_ref, wp_ref, sp_ref, bp_ref,
                    wag_ref, sag_ref, bag_ref,
                    feat_ref, low_ref, *, c_feat):
    """Packed 1x1 projections (feat||low) + aggregate(64->48), one image."""
    y = jnp.dot(x_ref[0], wp_ref[...], preferred_element_type=jnp.float32)
    y = jnp.maximum(y * sp_ref[...] + bp_ref[...], 0.0)        # (R, 256+64)
    feat = y[:, :c_feat]                                       # (R, 256)
    low = y[:, c_feat:]                                        # (R, 64)
    agg = jnp.dot(low.astype(jnp.bfloat16), wag_ref[...],
                  preferred_element_type=jnp.float32)
    low48 = jnp.maximum(agg * sag_ref[...] + bag_ref[...], 0.0)
    feat_ref[0] = feat.astype(feat_ref.dtype)
    low_ref[0] = low48.astype(low_ref.dtype)


def _layer5_kernel(x_ref, w1_ref, w2_ref, w3_ref,
                   s1_ref, b1_ref, s2_ref, b2_ref, s3_ref, b3_ref,
                   o_ref, scr, *, R, w8, d, n_blocks):
    """3x Bottleneck_custom (1x1 -> 3x3 dil=d -> 1x1 + residual), one image."""
    pad = d * w8 + d
    scr[...] = jnp.zeros_like(scr)
    row = lax.broadcasted_iota(jnp.int32, (R, 1), 0)
    col = row % w8
    m_neg = (col >= d).astype(jnp.float32)           # source col j-d valid
    m_pos = (col < (w8 - d)).astype(jnp.float32)     # source col j+d valid

    cur = x_ref[0].astype(jnp.float32)                               # (R, 256)
    for blk in range(n_blocks):
        # conv1 1x1: 256 -> 64, BN, ReLU
        h = jnp.dot(cur.astype(jnp.bfloat16), w1_ref[blk],
                    preferred_element_type=jnp.float32)
        h = jnp.maximum(h * s1_ref[blk] + b1_ref[blk], 0.0)          # (R, 64)
        # conv2 3x3 dilated: 64 -> 64 (padding = dilation), BN, ReLU
        scr[pl.ds(pad, R), :] = h
        acc = jnp.zeros_like(h)
        for ki in range(3):
            for kj in range(3):
                di, dj = (ki - 1) * d, (kj - 1) * d
                xt = scr[pl.ds(pad + di * w8 + dj, R), :]
                part = jnp.dot(xt.astype(jnp.bfloat16),
                               w2_ref[blk, ki * 3 + kj],
                               preferred_element_type=jnp.float32)
                if dj < 0:
                    part = part * m_neg
                elif dj > 0:
                    part = part * m_pos
                acc = acc + part
        h2 = jnp.maximum(acc * s2_ref[blk] + b2_ref[blk], 0.0)       # (R, 64)
        # conv3 1x1: 64 -> 256, BN, + identity residual, ReLU
        a3 = jnp.dot(h2.astype(jnp.bfloat16), w3_ref[blk],
                     preferred_element_type=jnp.float32)
        cur = jnp.maximum(a3 * s3_ref[blk] + b3_ref[blk] + cur, 0.0)
    o_ref[0] = cur.astype(o_ref.dtype)


def _head_kernel(feat_ref, low_ref,
                 wa_ref, sa_ref, ba_ref,
                 w1l_ref, w1a_ref, s1_ref, b1_ref,
                 w2_ref, s2_ref, b2_ref,
                 w3_ref, b3_ref,
                 o_ref, s_low, s_mid, *, R, w8):
    """ASPP stand-in + aggregate-concat + last_conv -> low-res logits."""
    pad = w8 + 1
    s_low[...] = jnp.zeros_like(s_low)
    s_mid[...] = jnp.zeros_like(s_mid)
    row = lax.broadcasted_iota(jnp.int32, (R, 1), 0)
    col = row % w8
    m_neg = (col >= 1).astype(jnp.float32)
    m_pos = (col < (w8 - 1)).astype(jnp.float32)

    def conv3x3(srcs, cout):
        acc = jnp.zeros((R, cout), jnp.float32)
        for ki in range(3):
            for kj in range(3):
                di, dj = ki - 1, kj - 1
                off = pad + di * w8 + dj
                part = jnp.zeros((R, cout), jnp.float32)
                for scr, w_ref in srcs:
                    xt = scr[pl.ds(off, R), :]
                    part = part + jnp.dot(xt.astype(jnp.bfloat16),
                                          w_ref[ki * 3 + kj],
                                          preferred_element_type=jnp.float32)
                if dj < 0:
                    part = part * m_neg
                elif dj > 0:
                    part = part * m_pos
                acc = acc + part
        return acc

    # TODO(synk): ASPP_Bottleneck source not provided; stand-in = 1x1 conv
    # 256 -> 64 + BN + ReLU at the same resolution.
    aspp = jnp.dot(feat_ref[0], wa_ref[...], preferred_element_type=jnp.float32)
    aspp = jnp.maximum(aspp * sa_ref[...] + ba_ref[...], 0.0)        # (R, 64)

    # torch.cat([low_level_features, aspp], 1) folded into split per-tap
    # weights: cat @ W  ==  low48 @ W_low + aspp @ W_aspp
    s_low[pl.ds(pad, R), :] = low_ref[0].astype(jnp.float32)
    s_mid[pl.ds(pad, R), :] = aspp

    h = conv3x3([(s_low, w1l_ref), (s_mid, w1a_ref)], w1a_ref.shape[-1])
    h = jnp.maximum(h * s1_ref[...] + b1_ref[...], 0.0)              # (R, 64)
    # Dropout(0.2) is identity in eval mode.
    s_mid[pl.ds(pad, R), :] = h
    h = conv3x3([(s_mid, w2_ref)], w2_ref.shape[-1])
    h = jnp.maximum(h * s2_ref[...] + b2_ref[...], 0.0)              # (R, 64)
    logits = jnp.dot(h.astype(jnp.bfloat16), w3_ref[...],
                     preferred_element_type=jnp.float32) + b3_ref[...]
    o_ref[0] = logits.astype(o_ref.dtype)


def _upsample_softmax_kernel(l_ref, ah_ref, awt_ref, o_ref, *, nc):
    """Bilinear upsample via interpolation-matrix matmuls + channel softmax.

    Channels live on the major axis -> softmax is an unrolled elementwise
    reduce over `nc` lane-dense (TH, W) planes; output is written NCHW.
    """
    ah = ah_ref[...]                       # (TH, h8) f32
    awt = awt_ref[...]                     # (w8, W)  f32
    ups = []
    for ch in range(nc):
        mid = jnp.dot(l_ref[0, ch], awt, preferred_element_type=jnp.float32)
        ups.append(jnp.dot(ah, mid, preferred_element_type=jnp.float32))
    m = ups[0]
    for u in ups[1:]:
        m = jnp.maximum(m, u)
    es = [jnp.exp(u - m) for u in ups]
    tot = es[0]
    for e in es[1:]:
        tot = tot + e
    inv = 1.0 / tot
    for ch in range(nc):
        o_ref[0, ch] = es[ch] * inv


# ----------------------------------------------------------------------------
# Wrappers
# ----------------------------------------------------------------------------
def _cparams(n_par):
    return pltpu.CompilerParams(
        dimension_semantics=("parallel",) * n_par,
        vmem_limit_bytes=VMEM_LIMIT)


def _const_spec(arr):
    nd = arr.ndim
    return pl.BlockSpec(arr.shape, lambda *_: (0,) * nd)


def _batch_spec(R, C):
    return pl.BlockSpec((1, R, C), lambda n: (n, 0, 0))


def encoder_project(x2d, p):
    N, R, Cin = x2d.shape
    c_feat = 256
    c_agg = p["agg_w"].shape[1]
    args = (x2d, p["enc_pack_w"], p["enc_pack_s"], p["enc_pack_b"],
            p["agg_w"], p["agg_s"], p["agg_b"])
    return pl.pallas_call(
        functools.partial(_encoder_kernel, c_feat=c_feat),
        grid=(N,),
        in_specs=[_batch_spec(R, Cin)] + [_const_spec(a) for a in args[1:]],
        out_specs=[_batch_spec(R, c_feat), _batch_spec(R, c_agg)],
        out_shape=[jax.ShapeDtypeStruct((N, R, c_feat), jnp.bfloat16),
                   jax.ShapeDtypeStruct((N, R, c_agg), jnp.bfloat16)],
        compiler_params=_cparams(1),
    )(*args)


def layer5(feat, p, *, w8, dilation=2):
    N, R, C = feat.shape
    ch = p["l5_w1"].shape[2]
    pad = dilation * w8 + dilation
    args = (feat, p["l5_w1"], p["l5_w2"], p["l5_w3"],
            p["l5_s1"], p["l5_b1"], p["l5_s2"], p["l5_b2"],
            p["l5_s3"], p["l5_b3"])
    return pl.pallas_call(
        functools.partial(_layer5_kernel, R=R, w8=w8, d=dilation,
                          n_blocks=p["l5_w1"].shape[0]),
        grid=(N,),
        in_specs=[_batch_spec(R, C)] + [_const_spec(a) for a in args[1:]],
        out_specs=_batch_spec(R, C),
        out_shape=jax.ShapeDtypeStruct((N, R, C), jnp.bfloat16),
        scratch_shapes=[pltpu.VMEM((R + 2 * pad, ch), jnp.float32)],
        compiler_params=_cparams(1),
    )(*args)


def decoder_head(feat, low48, p, *, w8, num_classes):
    N, R, C = feat.shape
    c_low = low48.shape[2]
    c_mid = p["lc1_w_aspp"].shape[2]
    pad = w8 + 1
    args = (feat, low48, p["aspp_w"], p["aspp_s"], p["aspp_b"],
            p["lc1_w_low"], p["lc1_w_aspp"], p["lc1_s"], p["lc1_b"],
            p["lc2_w"], p["lc2_s"], p["lc2_b"], p["lc3_w"], p["lc3_b"])
    return pl.pallas_call(
        functools.partial(_head_kernel, R=R, w8=w8),
        grid=(N,),
        in_specs=[_batch_spec(R, C), _batch_spec(R, c_low)]
                 + [_const_spec(a) for a in args[2:]],
        out_specs=_batch_spec(R, num_classes),
        out_shape=jax.ShapeDtypeStruct((N, R, num_classes), jnp.float32),
        scratch_shapes=[pltpu.VMEM((R + 2 * pad, c_low), jnp.float32),
                        pltpu.VMEM((R + 2 * pad, c_mid), jnp.float32)],
        compiler_params=_cparams(1),
    )(*args)


def _interp_matrix(out_size, in_size):
    """PyTorch F.interpolate(bilinear, align_corners=False) as (out,in) matrix."""
    d = jnp.arange(out_size, dtype=jnp.float32)
    s = (d + 0.5) * (in_size / out_size) - 0.5
    s = jnp.clip(s, 0.0, float(in_size - 1))
    i0 = jnp.floor(s).astype(jnp.int32)
    i1 = jnp.minimum(i0 + 1, in_size - 1)
    f = s - i0.astype(jnp.float32)
    oh0 = jax.nn.one_hot(i0, in_size, dtype=jnp.float32)
    oh1 = jax.nn.one_hot(i1, in_size, dtype=jnp.float32)
    return (1.0 - f)[:, None] * oh0 + f[:, None] * oh1


def _row_tile(H, cap=128):
    best = 8
    for t in range(8, min(H, cap) + 1, 8):
        if H % t == 0:
            best = t
    return best


def upsample_softmax(logits_cm, H, W):
    N, nc, h8, w8 = logits_cm.shape
    TH = _row_tile(H)
    ah = _interp_matrix(H, h8)          # (H, h8)
    awt = _interp_matrix(W, w8).T       # (w8, W)
    return pl.pallas_call(
        functools.partial(_upsample_softmax_kernel, nc=nc),
        grid=(N, H // TH),
        in_specs=[pl.BlockSpec((1, nc, h8, w8), lambda n, t: (n, 0, 0, 0)),
                  pl.BlockSpec((TH, h8), lambda n, t: (t, 0)),
                  pl.BlockSpec((w8, W), lambda n, t: (0, 0))],
        out_specs=pl.BlockSpec((1, nc, TH, W), lambda n, t: (n, 0, t, 0)),
        out_shape=jax.ShapeDtypeStruct((N, nc, H, W), jnp.float32),
        compiler_params=pltpu.CompilerParams(
            dimension_semantics=("parallel", "parallel"),
            vmem_limit_bytes=VMEM_LIMIT),
    )(logits_cm, ah, awt)


# ----------------------------------------------------------------------------
# Deterministic parameter construction (BN folded to scale/bias, bf16 weights)
# ----------------------------------------------------------------------------
def _bn_fold(key, c):
    k1, k2, k3, k4 = jax.random.split(key, 4)
    gamma = 1.0 + 0.1 * jax.random.normal(k1, (c,), jnp.float32)
    beta = 0.1 * jax.random.normal(k2, (c,), jnp.float32)
    mean = 0.1 * jax.random.normal(k3, (c,), jnp.float32)
    var = 1.0 + 0.5 * jax.random.uniform(k4, (c,), jnp.float32)
    scale = gamma / jnp.sqrt(var + BN_EPS)
    bias = beta - mean * scale
    return scale.reshape(1, c), bias.reshape(1, c)


def _w1x1(key, cin, cout):
    w = jax.random.normal(key, (cin, cout), jnp.float32) / jnp.sqrt(cin)
    return w.astype(jnp.bfloat16)


def _w3x3(key, cin, cout):
    w = jax.random.normal(key, (9, cin, cout), jnp.float32) / jnp.sqrt(9 * cin)
    return w.astype(jnp.bfloat16)


def init_params(key, num_classes, in_ch=3):
    keys = iter(jax.random.split(key, 40))
    nxt = lambda: next(keys)
    p = {}
    # TODO(synk): resnet34 encoder stand-in: packed 1x1 projections
    # (3->256 feature_map || 3->64 low_level_features), BN folded.
    wf, wl = _w1x1(nxt(), in_ch, 256), _w1x1(nxt(), in_ch, 64)
    sf, bf = _bn_fold(nxt(), 256)
    sl, bl = _bn_fold(nxt(), 64)
    p["enc_pack_w"] = jnp.concatenate([wf, wl], axis=1)
    p["enc_pack_s"] = jnp.concatenate([sf, sl], axis=1)
    p["enc_pack_b"] = jnp.concatenate([bf, bl], axis=1)
    # aggregate: Conv2d(64, 48, 1, bias=False) + BN
    p["agg_w"] = _w1x1(nxt(), 64, 48)
    p["agg_s"], p["agg_b"] = _bn_fold(nxt(), 48)
    # layer5: 3x Bottleneck_custom(in=256, channels=64, stride=1, dilation=2)
    w1s, w2s, w3s = [], [], []
    s1s, b1s, s2s, b2s, s3s, b3s = [], [], [], [], [], []
    for _ in range(3):
        w1s.append(_w1x1(nxt(), 256, 64))
        w2s.append(_w3x3(nxt(), 64, 64))
        w3s.append(_w1x1(nxt(), 64, 256))
        s, b = _bn_fold(nxt(), 64); s1s.append(s); b1s.append(b)
        s, b = _bn_fold(nxt(), 64); s2s.append(s); b2s.append(b)
        s, b = _bn_fold(nxt(), 256); s3s.append(s); b3s.append(b)
    p["l5_w1"], p["l5_w2"], p["l5_w3"] = map(jnp.stack, (w1s, w2s, w3s))
    p["l5_s1"], p["l5_b1"] = jnp.stack(s1s), jnp.stack(b1s)
    p["l5_s2"], p["l5_b2"] = jnp.stack(s2s), jnp.stack(b2s)
    p["l5_s3"], p["l5_b3"] = jnp.stack(s3s), jnp.stack(b3s)
    # TODO(synk): ASPP_Bottleneck stand-in = 1x1 conv 256->64 + BN + ReLU.
    p["aspp_w"] = _w1x1(nxt(), 256, 64)
    p["aspp_s"], p["aspp_b"] = _bn_fold(nxt(), 64)
    # last_conv
    p["lc1_w_low"] = _w3x3(nxt(), 48, 64)    # rows 0..47 of the 112-ch conv
    p["lc1_w_aspp"] = _w3x3(nxt(), 64, 64)   # rows 48..111
    p["lc1_s"], p["lc1_b"] = _bn_fold(nxt(), 64)
    p["lc2_w"] = _w3x3(nxt(), 64, 64)
    p["lc2_s"], p["lc2_b"] = _bn_fold(nxt(), 64)
    p["lc3_w"] = _w1x1(nxt(), 64, num_classes)     # Conv2d(..., bias=True)
    p["lc3_b"] = 0.1 * jax.random.normal(nxt(), (1, num_classes), jnp.float32)
    return p


# ----------------------------------------------------------------------------
# Forward pass (mirrors DeepLabV3.forward, eval mode)
# ----------------------------------------------------------------------------
def deeplabv3_forward(params, x_nchw, num_classes):
    N, Cin, H, W = x_nchw.shape
    assert H % 8 == 0 and W % 8 == 0
    h8, w8 = H // 8, W // 8
    R = h8 * w8

    # TODO(synk): resnet34 encoder requires a .pth checkpoint; deterministic
    # avgpool-8 + fused 1x1 projections stand-in at the required resolution.
    x = jnp.transpose(x_nchw, (0, 2, 3, 1)).astype(jnp.float32)     # NHWC
    xp = x.reshape(N, h8, 8, w8, 8, Cin).mean(axis=(2, 4))          # (N,h8,w8,Cin)
    x2d = xp.reshape(N, R, Cin).astype(jnp.bfloat16)

    feat, low48 = encoder_project(x2d, params)          # (N,R,256),(N,R,48)
    feat = layer5(feat, params, w8=w8)                  # (N,R,256)
    logits = decoder_head(feat, low48, params, w8=w8,
                          num_classes=num_classes)      # (N,R,nc) f32

    # tiny low-res transpose so the upsample kernel is channel-major
    logits_cm = jnp.transpose(logits.reshape(N, h8, w8, num_classes),
                              (0, 3, 1, 2))             # (N,nc,h8,w8)
    probs = upsample_softmax(logits_cm, H, W)           # (N,nc,H,W) == NCHW
    return probs


# ----------------------------------------------------------------------------
if __name__ == "__main__":
    num_classes = 5
    key = jax.random.PRNGKey(0)
    k_in, k_par = jax.random.split(key)

    x = jax.random.normal(k_in, (2, 3, 64, 64), jnp.float32)   # NCHW like PyTorch
    params = init_params(k_par, num_classes)

    fwd = jax.jit(functools.partial(deeplabv3_forward, num_classes=num_classes))
    out = fwd(params, x)
    out = jax.block_until_ready(out)

    assert out.shape == (2, num_classes, 64, 64), out.shape
    assert bool(jnp.all(jnp.isfinite(out)))
    sums = jnp.sum(out, axis=1)                 # softmax over channels sums to 1
    assert bool(jnp.allclose(sums, 1.0, atol=1e-4))

    print("KERNEL_OK")
</pallas_src>

<mosaic_0001>
module attributes {stable_mosaic.version = 11 : i64} {
  func.func @_encoder_kernel(%arg0: i32, %arg1: memref<1x64x3xbf16, #tpu.memory_space<vmem>>, %arg2: memref<3x320xbf16, #tpu.memory_space<vmem>>, %arg3: memref<1x320xf32, #tpu.memory_space<vmem>>, %arg4: memref<1x320xf32, #tpu.memory_space<vmem>>, %arg5: memref<64x48xbf16, #tpu.memory_space<vmem>>, %arg6: memref<1x48xf32, #tpu.memory_space<vmem>>, %arg7: memref<1x48xf32, #tpu.memory_space<vmem>>, %arg8: memref<1x64x256xbf16, #tpu.memory_space<vmem>>, %arg9: memref<1x64x48xbf16, #tpu.memory_space<vmem>>) attributes {dimension_semantics = [#tpu.dimension_semantics<parallel>], iteration_bounds = array<i64: 2>, scalar_prefetch = 0 : i64, scratch_operands = 0 : i64, tpu.core_type = #tpu.core_type<tc>, window_params = [{transform_indices = @transform_0, window_bounds = array<i64: 1, 64, 3>}, {pipeline_mode = #tpu.pipeline_mode<synchronous>, transform_indices = @transform_1, window_bounds = array<i64: 3, 320>}, {pipeline_mode = #tpu.pipeline_mode<synchronous>, transform_indices = @transform_2, window_bounds = array<i64: 1, 320>}, {pipeline_mode = #tpu.pipeline_mode<synchronous>, transform_indices = @transform_3, window_bounds = array<i64: 1, 320>}, {pipeline_mode = #tpu.pipeline_mode<synchronous>, transform_indices = @transform_4, window_bounds = array<i64: 64, 48>}, {pipeline_mode = #tpu.pipeline_mode<synchronous>, transform_indices = @transform_5, window_bounds = array<i64: 1, 48>}, {pipeline_mode = #tpu.pipeline_mode<synchronous>, transform_indices = @transform_6, window_bounds = array<i64: 1, 48>}, {transform_indices = @transform_7, window_bounds = array<i64: 1, 64, 256>}, {transform_indices = @transform_8, window_bounds = array<i64: 1, 64, 48>}]} {
    %c0 = arith.constant 0 : index
    %c0_0 = arith.constant 0 : index
    %c0_1 = arith.constant 0 : index
    %0 = vector.load %arg1[%c0, %c0_0, %c0_1] : memref<1x64x3xbf16, #tpu.memory_space<vmem>>, vector<1x64x3xbf16>
    %1 = vector.shape_cast %0 : vector<1x64x3xbf16> to vector<64x3xbf16>
    %c0_2 = arith.constant 0 : index
    %c0_3 = arith.constant 0 : index
    %2 = vector.load %arg2[%c0_2, %c0_3] : memref<3x320xbf16, #tpu.memory_space<vmem>>, vector<3x320xbf16>
    %cst = arith.constant dense<0.000000e+00> : vector<64x320xf32>
    %3 = tpu.matmul %1, %2, %cst {dimension_numbers = #tpu.dot_dimension_numbers<[1], [0], [0], [1], [0, 0, 1, 1], [], []>} : vector<64x3xbf16>, vector<3x320xbf16>, vector<64x320xf32> -> vector<64x320xf32>
    %c0_4 = arith.constant 0 : index
    %c0_5 = arith.constant 0 : index
    %4 = vector.load %arg3[%c0_4, %c0_5] : memref<1x320xf32, #tpu.memory_space<vmem>>, vector<1x320xf32>
    %5 = vector.broadcast %4 : vector<1x320xf32> to vector<64x320xf32>
    %6 = arith.mulf %3, %5 : vector<64x320xf32>
    %c0_6 = arith.constant 0 : index
    %c0_7 = arith.constant 0 : index
    %7 = vector.load %arg4[%c0_6, %c0_7] : memref<1x320xf32, #tpu.memory_space<vmem>>, vector<1x320xf32>
    %8 = vector.broadcast %7 : vector<1x320xf32> to vector<64x320xf32>
    %9 = arith.addf %6, %8 : vector<64x320xf32>
    %cst_8 = arith.constant 0.000000e+00 : f32
    %10 = vector.broadcast %cst_8 : f32 to vector<64x320xf32>
    %11 = arith.maximumf %9, %10 : vector<64x320xf32>
    %12 = vector.extract_strided_slice %11 {offsets = [0, 0], sizes = [64, 256], strides = [1, 1]} : vector<64x320xf32> to vector<64x256xf32>
    %13 = vector.extract_strided_slice %11 {offsets = [0, 256], sizes = [64, 64], strides = [1, 1]} : vector<64x320xf32> to vector<64x64xf32>
    %14 = arith.truncf %13 : vector<64x64xf32> to vector<64x64xbf16>
    %c0_9 = arith.constant 0 : index
    %c0_10 = arith.constant 0 : index
    %15 = vector.load %arg5[%c0_9, %c0_10] : memref<64x48xbf16, #tpu.memory_space<vmem>>, vector<64x48xbf16>
    %cst_11 = arith.constant dense<0.000000e+00> : vector<64x48xf32>
    %16 = tpu.matmul %14, %15, %cst_11 {dimension_numbers = #tpu.dot_dimension_numbers<[1], [0], [0], [1], [0, 0, 1, 1], [], []>} : vector<64x64xbf16>, vector<64x48xbf16>, vector<64x48xf32> -> vector<64x48xf32>
    %c0_12 = arith.constant 0 : index
    %c0_13 = arith.constant 0 : index
    %17 = vector.load %arg6[%c0_12, %c0_13] : memref<1x48xf32, #tpu.memory_space<vmem>>, vector<1x48xf32>
    %18 = vector.broadcast %17 : vector<1x48xf32> to vector<64x48xf32>
    %19 = arith.mulf %16, %18 : vector<64x48xf32>
    %c0_14 = arith.constant 0 : index
    %c0_15 = arith.constant 0 : index
    %20 = vector.load %arg7[%c0_14, %c0_15] : memref<1x48xf32, #tpu.memory_space<vmem>>, vector<1x48xf32>
    %21 = vector.broadcast %20 : vector<1x48xf32> to vector<64x48xf32>
    %22 = arith.addf %19, %21 : vector<64x48xf32>
    %cst_16 = arith.constant 0.000000e+00 : f32
    %23 = vector.broadcast %cst_16 : f32 to vector<64x48xf32>
    %24 = arith.maximumf %22, %23 : vector<64x48xf32>
    %25 = arith.truncf %12 : vector<64x256xf32> to vector<64x256xbf16>
    %c0_17 = arith.constant 0 : index
    %c0_18 = arith.constant 0 : index
    %c0_19 = arith.constant 0 : index
    %26 = vector.load %arg8[%c0_17, %c0_18, %c0_19] : memref<1x64x256xbf16, #tpu.memory_space<vmem>>, vector<1x64x256xbf16>
    %27 = vector.shape_cast %26 : vector<1x64x256xbf16> to vector<64x256xbf16>
    %28 = vector.shape_cast %25 : vector<64x256xbf16> to vector<1x64x256xbf16>
    tpu.vector_store %arg8[%c0_17, %c0_18, %c0_19], %28 {strides = array<i32>} : memref<1x64x256xbf16, #tpu.memory_space<vmem>>, vector<1x64x256xbf16>,
    %29 = arith.truncf %24 : vector<64x48xf32> to vector<64x48xbf16>
    %c0_20 = arith.constant 0 : index
    %c0_21 = arith.constant 0 : index
    %c0_22 = arith.constant 0 : index
    %30 = vector.load %arg9[%c0_20, %c0_21, %c0_22] : memref<1x64x48xbf16, #tpu.memory_space<vmem>>, vector<1x64x48xbf16>
    %31 = vector.shape_cast %30 : vector<1x64x48xbf16> to vector<64x48xbf16>
    %32 = vector.shape_cast %29 : vector<64x48xbf16> to vector<1x64x48xbf16>
    tpu.vector_store %arg9[%c0_20, %c0_21, %c0_22], %32 {strides = array<i32>} : memref<1x64x48xbf16, #tpu.memory_space<vmem>>, vector<1x64x48xbf16>,
    return
  }
  func.func @transform_0(%arg0: i32) -> (i32, i32, i32) {
    %c0_i32 = arith.constant 0 : i32
    %c0_i32_0 = arith.constant 0 : i32
    %c0_i32_1 = arith.constant 0 : i32
    return %arg0, %c0_i32, %c0_i32_0 : i32, i32, i32
  }
  func.func @transform_1(%arg0: i32) -> (i32, i32) {
    %c0_i32 = arith.constant 0 : i32
    %c0_i32_0 = arith.constant 0 : i32
    %c0_i32_1 = arith.constant 0 : i32
    return %c0_i32, %c0_i32_0 : i32, i32
  }
  func.func @transform_2(%arg0: i32) -> (i32, i32) {
    %c0_i32 = arith.constant 0 : i32
    %c0_i32_0 = arith.constant 0 : i32
    %c0_i32_1 = arith.constant 0 : i32
    return %c0_i32, %c0_i32_0 : i32, i32
  }
  func.func @transform_3(%arg0: i32) -> (i32, i32) {
    %c0_i32 = arith.constant 0 : i32
    %c0_i32_0 = arith.constant 0 : i32
    %c0_i32_1 = arith.constant 0 : i32
    return %c0_i32, %c0_i32_0 : i32, i32
  }
  func.func @transform_4(%arg0: i32) -> (i32, i32) {
    %c0_i32 = arith.constant 0 : i32
    %c0_i32_0 = arith.constant 0 : i32
    %c0_i32_1 = arith.constant 0 : i32
    return %c0_i32, %c0_i32_0 : i32, i32
  }
  func.func @transform_5(%arg0: i32) -> (i32, i32) {
    %c0_i32 = arith.constant 0 : i32
    %c0_i32_0 = arith.constant 0 : i32
    %c0_i32_1 = arith.constant 0 : i32
    return %c0_i32, %c0_i32_0 : i32, i32
  }
  func.func @transform_6(%arg0: i32) -> (i32, i32) {
    %c0_i32 = arith.constant 0 : i32
    %c0_i32_0 = arith.constant 0 : i32
    %c0_i32_1 = arith.constant 0 : i32
    return %c0_i32, %c0_i32_0 : i32, i32
  }
  func.func @transform_7(%arg0: i32) -> (i32, i32, i32) {
    %c0_i32 = arith.constant 0 : i32
    %c0_i32_0 = arith.constant 0 : i32
    %c0_i32_1 = arith.constant 0 : i32
    return %arg0, %c0_i32, %c0_i32_0 : i32, i32, i32
  }
  func.func @transform_8(%arg0: i32) -> (i32, i32, i32) {
    %c0_i32 = arith.constant 0 : i32
    %c0_i32_0 = arith.constant 0 : i32
    %c0_i32_1 = arith.constant 0 : i32
    return %arg0, %c0_i32, %c0_i32_0 : i32, i32, i32
  }
}

module attributes {stable_mosaic.version = 11 : i64} {
  func.func @_layer5_kernel(%arg0: i32, %arg1: memref<1x64x256xbf16, #tpu.memory_space<vmem>>, %arg2: memref<3x256x64xbf16, #tpu.memory_space<vmem>>, %arg3: memref<3x9x64x64xbf16, #tpu.memory_space<vmem>>, %arg4: memref<3x64x256xbf16, #tpu.memory_space<vmem>>, %arg5: memref<3x1x64xf32, #tpu.memory_space<vmem>>, %arg6: memref<3x1x64xf32, #tpu.memory_space<vmem>>, %arg7: memref<3x1x64xf32, #tpu.memory_space<vmem>>, %arg8: memref<3x1x64xf32, #tpu.memory_space<vmem>>, %arg9: memref<3x1x256xf32, #tpu.memory_space<vmem>>, %arg10: memref<3x1x256xf32, #tpu.memory_space<vmem>>, %arg11: memref<1x64x256xbf16, #tpu.memory_space<vmem>>, %arg12: memref<100x64xf32, #tpu.memory_space<vmem>>) attributes {dimension_semantics = [#tpu.dimension_semantics<parallel>], iteration_bounds = array<i64: 2>, scalar_prefetch = 0 : i64, scratch_operands = 1 : i64, tpu.core_type = #tpu.core_type<tc>, window_params = [{transform_indices = @transform_0, window_bounds = array<i64: 1, 64, 256>}, {pipeline_mode = #tpu.pipeline_mode<synchronous>, transform_indices = @transform_1, window_bounds = array<i64: 3, 256, 64>}, {pipeline_mode = #tpu.pipeline_mode<synchronous>, transform_indices = @transform_2, window_bounds = array<i64: 3, 9, 64, 64>}, {pipeline_mode = #tpu.pipeline_mode<synchronous>, transform_indices = @transform_3, window_bounds = array<i64: 3, 64, 256>}, {pipeline_mode = #tpu.pipeline_mode<synchronous>, transform_indices = @transform_4, window_bounds = array<i64: 3, 1, 64>}, {pipeline_mode = #tpu.pipeline_mode<synchronous>, transform_indices = @transform_5, window_bounds = array<i64: 3, 1, 64>}, {pipeline_mode = #tpu.pipeline_mode<synchronous>, transform_indices = @transform_6, window_bounds = array<i64: 3, 1, 64>}, {pipeline_mode = #tpu.pipeline_mode<synchronous>, transform_indices = @transform_7, window_bounds = array<i64: 3, 1, 64>}, {pipeline_mode = #tpu.pipeline_mode<synchronous>, transform_indices = @transform_8, window_bounds = array<i64: 3, 1, 256>}, {pipeline_mode = #tpu.pipeline_mode<synchronous>, transform_indices = @transform_9, window_bounds = array<i64: 3, 1, 256>}, {transform_indices = @transform_10, window_bounds = array<i64: 1, 64, 256>}]} {
    %cst = arith.constant 0.000000e+00 : f32
    %0 = vector.broadcast %cst : f32 to vector<100x64xf32>
    %c0 = arith.constant 0 : index
    %c0_0 = arith.constant 0 : index
    %1 = vector.load %arg12[%c0, %c0_0] : memref<100x64xf32, #tpu.memory_space<vmem>>, vector<100x64xf32>
    tpu.vector_store %arg12[%c0, %c0_0], %0 {strides = array<i32>} : memref<100x64xf32, #tpu.memory_space<vmem>>, vector<100x64xf32>,
    %2 = tpu.iota {dimensions = array<i32: 0>} : vector<64x1xi32>
    %c8_i32 = arith.constant 8 : i32
    %c0_i32 = arith.constant 0 : i32
    %3 = arith.cmpi eq, %c8_i32, %c0_i32 : i32
    %c1_i32 = arith.constant 1 : i32
    %4 = arith.select %3, %c1_i32, %c8_i32 : i32
    %5 = vector.broadcast %4 : i32 to vector<64x1xi32>
    %6 = arith.remsi %2, %5 : vector<64x1xi32>
    %c0_i32_1 = arith.constant 0 : i32
    %7 = vector.broadcast %c0_i32_1 : i32 to vector<64x1xi32>
    %8 = arith.cmpi ne, %6, %7 : vector<64x1xi32>
    %c0_i32_2 = arith.constant 0 : i32
    %9 = vector.broadcast %c0_i32_2 : i32 to vector<64x1xi32>
    %10 = arith.cmpi slt, %6, %9 : vector<64x1xi32>
    %c0_i32_3 = arith.constant 0 : i32
    %11 = arith.cmpi slt, %4, %c0_i32_3 : i32
    %12 = vector.broadcast %11 : i1 to vector<64x1xi1>
    %13 = vector.broadcast %12 : vector<64x1xi1> to vector<64x1xi1>
    %14 = arith.xori %10, %13 : vector<64x1xi1>
    %15 = arith.andi %14, %8 : vector<64x1xi1>
    %16 = vector.broadcast %4 : i32 to vector<64x1xi32>
    %17 = arith.addi %6, %16 : vector<64x1xi32>
    %18 = arith.select %15, %17, %6 : vector<64x1xi1>, vector<64x1xi32>
    %c2_i32 = arith.constant 2 : i32
    %19 = vector.broadcast %c2_i32 : i32 to vector<64x1xi32>
    %20 = arith.cmpi sge, %18, %19 : vector<64x1xi32>
    %21 = arith.extui %20 : vector<64x1xi1> to vector<64x1xi32>
    %22 = arith.sitofp %21 : vector<64x1xi32> to vector<64x1xf32>
    %c6_i32 = arith.constant 6 : i32
    %23 = vector.broadcast %c6_i32 : i32 to vector<64x1xi32>
    %24 = arith.cmpi slt, %18, %23 : vector<64x1xi32>
    %25 = arith.extui %24 : vector<64x1xi1> to vector<64x1xi32>
    %26 = arith.sitofp %25 : vector<64x1xi32> to vector<64x1xf32>
    %c0_4 = arith.constant 0 : index
    %c0_5 = arith.constant 0 : index
    %c0_6 = arith.constant 0 : index
    %27 = vector.load %arg1[%c0_4, %c0_5, %c0_6] : memref<1x64x256xbf16, #tpu.memory_space<vmem>>, vector<1x64x256xbf16>
    %28 = vector.shape_cast %27 : vector<1x64x256xbf16> to vector<64x256xbf16>
    %29 = arith.extf %28 : vector<64x256xbf16> to vector<64x256xf32>
    %30 = arith.truncf %29 : vector<64x256xf32> to vector<64x256xbf16>
    %c0_7 = arith.constant 0 : index
    %c0_8 = arith.constant 0 : index
    %c0_9 = arith.constant 0 : index
    %31 = vector.load %arg2[%c0_7, %c0_8, %c0_9] : memref<3x256x64xbf16, #tpu.memory_space<vmem>>, vector<1x256x64xbf16>
    %32 = vector.shape_cast %31 : vector<1x256x64xbf16> to vector<256x64xbf16>
    %cst_10 = arith.constant dense<0.000000e+00> : vector<64x64xf32>
    %33 = tpu.matmul %30, %32, %cst_10 {dimension_numbers = #tpu.dot_dimension_numbers<[1], [0], [0], [1], [0, 0, 1, 1], [], []>} : vector<64x256xbf16>, vector<256x64xbf16>, vector<64x64xf32> -> vector<64x64xf32>
    %c0_11 = arith.constant 0 : index
    %c0_12 = arith.constant 0 : index
    %c0_13 = arith.constant 0 : index
    %34 = vector.load %arg5[%c0_11, %c0_12, %c0_13] : memref<3x1x64xf32, #tpu.memory_space<vmem>>, vector<1x1x64xf32>
    %35 = vector.shape_cast %34 : vector<1x1x64xf32> to vector<1x64xf32>
    %36 = vector.broadcast %35 : vector<1x64xf32> to vector<64x64xf32>
    %37 = arith.mulf %33, %36 : vector<64x64xf32>
    %c0_14 = arith.constant 0 : index
    %c0_15 = arith.constant 0 : index
    %c0_16 = arith.constant 0 : index
    %38 = vector.load %arg6[%c0_14, %c0_15, %c0_16] : memref<3x1x64xf32, #tpu.memory_space<vmem>>, vector<1x1x64xf32>
    %39 = vector.shape_cast %38 : vector<1x1x64xf32> to vector<1x64xf32>
    %40 = vector.broadcast %39 : vector<1x64xf32> to vector<64x64xf32>
    %41 = arith.addf %37, %40 : vector<64x64xf32>
    %cst_17 = arith.constant 0.000000e+00 : f32
    %42 = vector.broadcast %cst_17 : f32 to vector<64x64xf32>
    %43 = arith.maximumf %41, %42 : vector<64x64xf32>
    %c18 = arith.constant 18 : index
    %c0_18 = arith.constant 0 : index
    %44 = vector.load %arg12[%c18, %c0_18] : memref<100x64xf32, #tpu.memory_space<vmem>>, vector<64x64xf32>
    tpu.vector_store %arg12[%c18, %c0_18], %43 {strides = array<i32>} : memref<100x64xf32, #tpu.memory_space<vmem>>, vector<64x64xf32>,
    %cst_19 = arith.constant 0.000000e+00 : f32
    %45 = vector.broadcast %cst_19 : f32 to vector<64x64xf32>
    %c0_20 = arith.constant 0 : index
    %c0_21 = arith.constant 0 : index
    %46 = vector.load %arg12[%c0_20, %c0_21] : memref<100x64xf32, #tpu.memory_space<vmem>>, vector<64x64xf32>
    %47 = arith.truncf %46 : vector<64x64xf32> to vector<64x64xbf16>
    %c0_22 = arith.constant 0 : index
    %c0_23 = arith.constant 0 : index
    %c0_24 = arith.constant 0 : index
    %c0_25 = arith.constant 0 : index
    %48 = vector.load %arg3[%c0_22, %c0_23, %c0_24, %c0_25] : memref<3x9x64x64xbf16, #tpu.memory_space<vmem>>, vector<1x1x64x64xbf16>
    %49 = vector.shape_cast %48 : vector<1x1x64x64xbf16> to vector<64x64xbf16>
    %cst_26 = arith.constant dense<0.000000e+00> : vector<64x64xf32>
    %50 = tpu.matmul %47, %49, %cst_26 {dimension_numbers = #tpu.dot_dimension_numbers<[1], [0], [0], [1], [0, 0, 1, 1], [], []>} : vector<64x64xbf16>, vector<64x64xbf16>, vector<64x64xf32> -> vector<64x64xf32>
    %51 = vector.broadcast %22 : vector<64x1xf32> to vector<64x64xf32>
    %52 = arith.mulf %50, %51 : vector<64x64xf32>
    %53 = arith.addf %45, %52 : vector<64x64xf32>
    %c2 = arith.constant 2 : index
    %c0_27 = arith.constant 0 : index
    %54 = vector.load %arg12[%c2, %c0_27] : memref<100x64xf32, #tpu.memory_space<vmem>>, vector<64x64xf32>
    %55 = arith.truncf %54 : vector<64x64xf32> to vector<64x64xbf16>
    %c0_28 = arith.constant 0 : index
    %c1 = arith.constant 1 : index
    %c0_29 = arith.constant 0 : index
    %c0_30 = arith.constant 0 : index
    %56 = vector.load %arg3[%c0_28, %c1, %c0_29, %c0_30] : memref<3x9x64x64xbf16, #tpu.memory_space<vmem>>, vector<1x1x64x64xbf16>
    %57 = vector.shape_cast %56 : vector<1x1x64x64xbf16> to vector<64x64xbf16>
    %cst_31 = arith.constant dense<0.000000e+00> : vector<64x64xf32>
    %58 = tpu.matmul %55, %57, %cst_31 {dimension_numbers = #tpu.dot_dimension_numbers<[1], [0], [0], [1], [0, 0, 1, 1], [], []>} : vector<64x64xbf16>, vector<64x64xbf16>, vector<64x64xf32> -> vector<64x64xf32>
    %59 = arith.addf %53, %58 : vector<64x64xf32>
    %c4 = arith.constant 4 : index
    %c0_32 = arith.constant 0 : index
    %60 = vector.load %arg12[%c4, %c0_32] : memref<100x64xf32, #tpu.memory_space<vmem>>, vector<64x64xf32>
    %61 = arith.truncf %60 : vector<64x64xf32> to vector<64x64xbf16>
    %c0_33 = arith.constant 0 : index
    %c2_34 = arith.constant 2 : index
    %c0_35 = arith.constant 0 : index
    %c0_36 = arith.constant 0 : index
    %62 = vector.load %arg3[%c0_33, %c2_34, %c0_35, %c0_36] : memref<3x9x64x64xbf16, #tpu.memory_space<vmem>>, vector<1x1x64x64xbf16>
    %63 = vector.shape_cast %62 : vector<1x1x64x64xbf16> to vector<64x64xbf16>
    %cst_37 = arith.constant dense<0.000000e+00> : vector<64x64xf32>
    %64 = tpu.matmul %61, %63, %cst_37 {dimension_numbers = #tpu.dot_dimension_numbers<[1], [0], [0], [1], [0, 0, 1, 1], [], []>} : vector<64x64xbf16>, vector<64x64xbf16>, vector<64x64xf32> -> vector<64x64xf32>
    %65 = vector.broadcast %26 : vector<64x1xf32> to vector<64x64xf32>
    %66 = arith.mulf %64, %65 : vector<64x64xf32>
    %67 = arith.addf %59, %66 : vector<64x64xf32>
    %c16 = arith.constant 16 : index
    %c0_38 = arith.constant 0 : index
    %68 = vector.load %arg12[%c16, %c0_38] : memref<100x64xf32, #tpu.memory_space<vmem>>, vector<64x64xf32>
    %69 = arith.truncf %68 : vector<64x64xf32> to vector<64x64xbf16>
    %c0_39 = arith.constant 0 : index
    %c3 = arith.constant 3 : index
    %c0_40 = arith.constant 0 : index
    %c0_41 = arith.constant 0 : index
    %70 = vector.load %arg3[%c0_39, %c3, %c0_40, %c0_41] : memref<3x9x64x64xbf16, #tpu.memory_space<vmem>>, vector<1x1x64x64xbf16>
    %71 = vector.shape_cast %70 : vector<1x1x64x64xbf16> to vector<64x64xbf16>
    %cst_42 = arith.constant dense<0.000000e+00> : vector<64x64xf32>
    %72 = tpu.matmul %69, %71, %cst_42 {dimension_numbers = #tpu.dot_dimension_numbers<[1], [0], [0], [1], [0, 0, 1, 1], [], []>} : vector<64x64xbf16>, vector<64x64xbf16>, vector<64x64xf32> -> vector<64x64xf32>
    %73 = vector.broadcast %22 : vector<64x1xf32> to vector<64x64xf32>
    %74 = arith.mulf %72, %73 : vector<64x64xf32>
    %75 = arith.addf %67, %74 : vector<64x64xf32>
    %c18_43 = arith.constant 18 : index
    %c0_44 = arith.constant 0 : index
    %76 = vector.load %arg12[%c18_43, %c0_44] : memref<100x64xf32, #tpu.memory_space<vmem>>, vector<64x64xf32>
    %77 = arith.truncf %76 : vector<64x64xf32> to vector<64x64xbf16>
    %c0_45 = arith.constant 0 : index
    %c4_46 = arith.constant 4 : index
    %c0_47 = arith.constant 0 : index
    %c0_48 = arith.constant 0 : index
    %78 = vector.load %arg3[%c0_45, %c4_46, %c0_47, %c0_48] : memref<3x9x64x64xbf16, #tpu.memory_space<vmem>>, vector<1x1x64x64xbf16>
    %79 = vector.shape_cast %78 : vector<1x1x64x64xbf16> to vector<64x64xbf16>
    %cst_49 = arith.constant dense<0.000000e+00> : vector<64x64xf32>
    %80 = tpu.matmul %77, %79, %cst_49 {dimension_numbers = #tpu.dot_dimension_numbers<[1], [0], [0], [1], [0, 0, 1, 1], [], []>} : vector<64x64xbf16>, vector<64x64xbf16>, vector<64x64xf32> -> vector<64x64xf32>
    %81 = arith.addf %75, %80 : vector<64x64xf32>
    %c20 = arith.constant 20 : index
    %c0_50 = arith.constant 0 : index
    %82 = vector.load %arg12[%c20, %c0_50] : memref<100x64xf32, #tpu.memory_space<vmem>>, vector<64x64xf32>
    %83 = arith.truncf %82 : vector<64x64xf32> to vector<64x64xbf16>
    %c0_51 = arith.constant 0 : index
    %c5 = arith.constant 5 : index
    %c0_52 = arith.constant 0 : index
    %c0_53 = arith.constant 0 : index
    %84 = vector.load %arg3[%c0_51, %c5, %c0_52, %c0_53] : memref<3x9x64x64xbf16, #tpu.memory_space<vmem>>, vector<1x1x64x64xbf16>
    %85 = vector.shape_cast %84 : vector<1x1x64x64xbf16> to vector<64x64xbf16>
    %cst_54 = arith.constant dense<0.000000e+00> : vector<64x64xf32>
    %86 = tpu.matmul %83, %85, %cst_54 {dimension_numbers = #tpu.dot_dimension_numbers<[1], [0], [0], [1], [0, 0, 1, 1], [], []>} : vector<64x64xbf16>, vector<64x64xbf16>, vector<64x64xf32> -> vector<64x64xf32>
    %87 = vector.broadcast %26 : vector<64x1xf32> to vector<64x64xf32>
    %88 = arith.mulf %86, %87 : vector<64x64xf32>
    %89 = arith.addf %81, %88 : vector<64x64xf32>
    %c32 = arith.constant 32 : index
    %c0_55 = arith.constant 0 : index
    %90 = vector.load %arg12[%c32, %c0_55] : memref<100x64xf32, #tpu.memory_space<vmem>>, vector<64x64xf32>
    %91 = arith.truncf %90 : vector<64x64xf32> to vector<64x64xbf16>
    %c0_56 = arith.constant 0 : index
    %c6 = arith.constant 6 : index
    %c0_57 = arith.constant 0 : index
    %c0_58 = arith.constant 0 : index
    %92 = vector.load %arg3[%c0_56, %c6, %c0_57, %c0_58] : memref<3x9x64x64xbf16, #tpu.memory_space<vmem>>, vector<1x1x64x64xbf16>
    %93 = vector.shape_cast %92 : vector<1x1x64x64xbf16> to vector<64x64xbf16>
    %cst_59 = arith.constant dense<0.000000e+00> : vector<64x64xf32>
    %94 = tpu.matmul %91, %93, %cst_59 {dimension_numbers = #tpu.dot_dimension_numbers<[1], [0], [0], [1], [0, 0, 1, 1], [], []>} : vector<64x64xbf16>, vector<64x64xbf16>, vector<64x64xf32> -> vector<64x64xf32>
    %95 = vector.broadcast %22 : vector<64x1xf32> to vector<64x64xf32>
    %96 = arith.mulf %94, %95 : vector<64x64xf32>
    %97 = arith.addf %89, %96 : vector<64x64xf32>
    %c34 = arith.constant 34 : index
    %c0_60 = arith.constant 0 : index
    %98 = vector.load %arg12[%c34, %c0_60] : memref<100x64xf32, #tpu.memory_space<vmem>>, vector<64x64xf32>
    %99 = arith.truncf %98 : vector<64x64xf32> to vector<64x64xbf16>
    %c0_61 = arith.constant 0 : index
    %c7 = arith.constant 7 : index
    %c0_62 = arith.constant 0 : index
    %c0_63 = arith.constant 0 : index
    %100 = vector.load %arg3[%c0_61, %c7, %c0_62, %c0_63] : memref<3x9x64x64xbf16, #tpu.memory_space<vmem>>, vector<1x1x64x64xbf16>
    %101 = vector.shape_cast %100 : vector<1x1x64x64xbf16> to vector<64x64xbf16>
    %cst_64 = arith.constant dense<0.000000e+00> : vector<64x64xf32>
    %102 = tpu.matmul %99, %101, %cst_64 {dimension_numbers = #tpu.dot_dimension_numbers<[1], [0], [0], [1], [0, 0, 1, 1], [], []>} : vector<64x64xbf16>, vector<64x64xbf16>, vector<64x64xf32> -> vector<64x64xf32>
    %103 = arith.addf %97, %102 : vector<64x64xf32>
    %c36 = arith.constant 36 : index
    %c0_65 = arith.constant 0 : index
    %104 = vector.load %arg12[%c36, %c0_65] : memref<100x64xf32, #tpu.memory_space<vmem>>, vector<64x64xf32>
    %105 = arith.truncf %104 : vector<64x64xf32> to vector<64x64xbf16>
    %c0_66 = arith.constant 0 : index
    %c8 = arith.constant 8 : index
    %c0_67 = arith.constant 0 : index
    %c0_68 = arith.constant 0 : index
    %106 = vector.load %arg3[%c0_66, %c8, %c0_67, %c0_68] : memref<3x9x64x64xbf16, #tpu.memory_space<vmem>>, vector<1x1x64x64xbf16>
    %107 = vector.shape_cast %106 : vector<1x1x64x64xbf16> to vector<64x64xbf16>
    %cst_69 = arith.constant dense<0.000000e+00> : vector<64x64xf32>
    %108 = tpu.matmul %105, %107, %cst_69 {dimension_numbers = #tpu.dot_dimension_numbers<[1], [0], [0], [1], [0, 0, 1, 1], [], []>} : vector<64x64xbf16>, vector<64x64xbf16>, vector<64x64xf32> -> vector<64x64xf32>
    %109 = vector.broadcast %26 : vector<64x1xf32> to vector<64x64xf32>
    %110 = arith.mulf %108, %109 : vector<64x64xf32>
    %111 = arith.addf %103, %110 : vector<64x64xf32>
    %c0_70 = arith.constant 0 : index
    %c0_71 = arith.constant 0 : index
    %c0_72 = arith.constant 0 : index
    %112 = vector.load %arg7[%c0_70, %c0_71, %c0_72] : memref<3x1x64xf32, #tpu.memory_space<vmem>>, vector<1x1x64xf32>
    %113 = vector.shape_cast %112 : vector<1x1x64xf32> to vector<1x64xf32>
    %114 = vector.broadcast %113 : vector<1x64xf32> to vector<64x64xf32>
    %115 = arith.mulf %111, %114 : vector<64x64xf32>
    %c0_73 = arith.constant 0 : index
    %c0_74 = arith.constant 0 : index
    %c0_75 = arith.constant 0 : index
    %116 = vector.load %arg8[%c0_73, %c0_74, %c0_75] : memref<3x1x64xf32, #tpu.memory_space<vmem>>, vector<1x1x64xf32>
    %117 = vector.shape_cast %116 : vector<1x1x64xf32> to vector<1x64xf32>
    %118 = vector.broadcast %117 : vector<1x64xf32> to vector<64x64xf32>
    %119 = arith.addf %115, %118 : vector<64x64xf32>
    %cst_76 = arith.constant 0.000000e+00 : f32
    %120 = vector.broadcast %cst_76 : f32 to vector<64x64xf32>
    %121 = arith.maximumf %119, %120 : vector<64x64xf32>
    %122 = arith.truncf %121 : vector<64x64xf32> to vector<64x64xbf16>
    %c0_77 = arith.constant 0 : index
    %c0_78 = arith.constant 0 : index
    %c0_79 = arith.constant 0 : index
    %123 = vector.load %arg4[%c0_77, %c0_78, %c0_79] : memref<3x64x256xbf16, #tpu.memory_space<vmem>>, vector<1x64x256xbf16>
    %124 = vector.shape_cast %123 : vector<1x64x256xbf16> to vector<64x256xbf16>
    %cst_80 = arith.constant dense<0.000000e+00> : vector<64x256xf32>
    %125 = tpu.matmul %122, %124, %cst_80 {dimension_numbers = #tpu.dot_dimension_numbers<[1], [0], [0], [1], [0, 0, 1, 1], [], []>} : vector<64x64xbf16>, vector<64x256xbf16>, vector<64x256xf32> -> vector<64x256xf32>
    %c0_81 = arith.constant 0 : index
    %c0_82 = arith.constant 0 : index
    %c0_83 = arith.constant 0 : index
    %126 = vector.load %arg9[%c0_81, %c0_82, %c0_83] : memref<3x1x256xf32, #tpu.memory_space<vmem>>, vector<1x1x256xf32>
    %127 = vector.shape_cast %126 : vector<1x1x256xf32> to vector<1x256xf32>
    %128 = vector.broadcast %127 : vector<1x256xf32> to vector<64x256xf32>
    %129 = arith.mulf %125, %128 : vector<64x256xf32>
    %c0_84 = arith.constant 0 : index
    %c0_85 = arith.constant 0 : index
    %c0_86 = arith.constant 0 : index
    %130 = vector.load %arg10[%c0_84, %c0_85, %c0_86] : memref<3x1x256xf32, #tpu.memory_space<vmem>>, vector<1x1x256xf32>
    %131 = vector.shape_cast %130 : vector<1x1x256xf32> to vector<1x256xf32>
    %132 = vector.broadcast %131 : vector<1x256xf32> to vector<64x256xf32>
    %133 = arith.addf %129, %132 : vector<64x256xf32>
    %134 = arith.addf %133, %29 : vector<64x256xf32>
    %cst_87 = arith.constant 0.000000e+00 : f32
    %135 = vector.broadcast %cst_87 : f32 to vector<64x256xf32>
    %136 = arith.maximumf %134, %135 : vector<64x256xf32>
    %137 = arith.truncf %136 : vector<64x256xf32> to vector<64x256xbf16>
    %c1_88 = arith.constant 1 : index
    %c0_89 = arith.constant 0 : index
    %c0_90 = arith.constant 0 : index
    %138 = vector.load %arg2[%c1_88, %c0_89, %c0_90] : memref<3x256x64xbf16, #tpu.memory_space<vmem>>, vector<1x256x64xbf16>
    %139 = vector.shape_cast %138 : vector<1x256x64xbf16> to vector<256x64xbf16>
    %cst_91 = arith.constant dense<0.000000e+00> : vector<64x64xf32>
    %140 = tpu.matmul %137, %139, %cst_91 {dimension_numbers = #tpu.dot_dimension_numbers<[1], [0], [0], [1], [0, 0, 1, 1], [], []>} : vector<64x256xbf16>, vector<256x64xbf16>, vector<64x64xf32> -> vector<64x64xf32>
    %c1_92 = arith.constant 1 : index
    %c0_93 = arith.constant 0 : index
    %c0_94 = arith.constant 0 : index
    %141 = vector.load %arg5[%c1_92, %c0_93, %c0_94] : memref<3x1x64xf32, #tpu.memory_space<vmem>>, vector<1x1x64xf32>
    %142 = vector.shape_cast %141 : vector<1x1x64xf32> to vector<1x64xf32>
    %143 = vector.broadcast %142 : vector<1x64xf32> to vector<64x64xf32>
    %144 = arith.mulf %140, %143 : vector<64x64xf32>
    %c1_95 = arith.constant 1 : index
    %c0_96 = arith.constant 0 : index
    %c0_97 = arith.constant 0 : index
    %145 = vector.load %arg6[%c1_95, %c0_96, %c0_97] : memref<3x1x64xf32, #tpu.memory_space<vmem>>, vector<1x1x64xf32>
    %146 = vector.shape_cast %145 : vector<1x1x64xf32> to vector<1x64xf32>
    %147 = vector.broadcast %146 : vector<1x64xf32> to vector<64x64xf32>
    %148 = arith.addf %144, %147 : vector<64x64xf32>
    %cst_98 = arith.constant 0.000000e+00 : f32
    %149 = vector.broadcast %cst_98 : f32 to vector<64x64xf32>
    %150 = arith.maximumf %148, %149 : vector<64x64xf32>
    %c18_99 = arith.constant 18 : index
    %c0_100 = arith.constant 0 : index
    %151 = vector.load %arg12[%c18_99, %c0_100] : memref<100x64xf32, #tpu.memory_space<vmem>>, vector<64x64xf32>
    tpu.vector_store %arg12[%c18_99, %c0_100], %150 {strides = array<i32>} : memref<100x64xf32, #tpu.memory_space<vmem>>, vector<64x64xf32>,
    %cst_101 = arith.constant 0.000000e+00 : f32
    %152 = vector.broadcast %cst_101 : f32 to vector<64x64xf32>
    %c0_102 = arith.constant 0 : index
    %c0_103 = arith.constant 0 : index
    %153 = vector.load %arg12[%c0_102, %c0_103] : memref<100x64xf32, #tpu.memory_space<vmem>>, vector<64x64xf32>
    %154 = arith.truncf %153 : vector<64x64xf32> to vector<64x64xbf16>
    %c1_104 = arith.constant 1 : index
    %c0_105 = arith.constant 0 : index
    %c0_106 = arith.constant 0 : index
    %c0_107 = arith.constant 0 : index
    %155 = vector.load %arg3[%c1_104, %c0_105, %c0_106, %c0_107] : memref<3x9x64x64xbf16, #tpu.memory_space<vmem>>, vector<1x1x64x64xbf16>
    %156 = vector.shape_cast %155 : vector<1x1x64x64xbf16> to vector<64x64xbf16>
    %cst_108 = arith.constant dense<0.000000e+00> : vector<64x64xf32>
    %157 = tpu.matmul %154, %156, %cst_108 {dimension_numbers = #tpu.dot_dimension_numbers<[1], [0], [0], [1], [0, 0, 1, 1], [], []>} : vector<64x64xbf16>, vector<64x64xbf16>, vector<64x64xf32> -> vector<64x64xf32>
    %158 = vector.broadcast %22 : vector<64x1xf32> to vector<64x64xf32>
    %159 = arith.mulf %157, %158 : vector<64x64xf32>
    %160 = arith.addf %152, %159 : vector<64x64xf32>
    %c2_109 = arith.constant 2 : index
    %c0_110 = arith.constant 0 : index
    %161 = vector.load %arg12[%c2_109, %c0_110] : memref<100x64xf32, #tpu.memory_space<vmem>>, vector<64x64xf32>
    %162 = arith.truncf %161 : vector<64x64xf32> to vector<64x64xbf16>
    %c1_111 = arith.constant 1 : index
    %c1_112 = arith.constant 1 : index
    %c0_113 = arith.constant 0 : index
    %c0_114 = arith.constant 0 : index
    %163 = vector.load %arg3[%c1_111, %c1_112, %c0_113, %c0_114] : memref<3x9x64x64xbf16, #tpu.memory_space<vmem>>, vector<1x1x64x64xbf16>
    %164 = vector.shape_cast %163 : vector<1x1x64x64xbf16> to vector<64x64xbf16>
    %cst_115 = arith.constant dense<0.000000e+00> : vector<64x64xf32>
    %165 = tpu.matmul %162, %164, %cst_115 {dimension_numbers = #tpu.dot_dimension_numbers<[1], [0], [0], [1], [0, 0, 1, 1], [], []>} : vector<64x64xbf16>, vector<64x64xbf16>, vector<64x64xf32> -> vector<64x64xf32>
    %166 = arith.addf %160, %165 : vector<64x64xf32>
    %c4_116 = arith.constant 4 : index
    %c0_117 = arith.constant 0 : index
    %167 = vector.load %arg12[%c4_116, %c0_117] : memref<100x64xf32, #tpu.memory_space<vmem>>, vector<64x64xf32>
    %168 = arith.truncf %167 : vector<64x64xf32> to vector<64x64xbf16>
    %c1_118 = arith.constant 1 : index
    %c2_119 = arith.constant 2 : index
    %c0_120 = arith.constant 0 : index
    %c0_121 = arith.constant 0 : index
    %169 = vector.load %arg3[%c1_118, %c2_119, %c0_120, %c0_121] : memref<3x9x64x64xbf16, #tpu.memory_space<vmem>>, vector<1x1x64x64xbf16>
    %170 = vector.shape_cast %169 : vector<1x1x64x64xbf16> to vector<64x64xbf16>
    %cst_122 = arith.constant dense<0.000000e+00> : vector<64x64xf32>
    %171 = tpu.matmul %168, %170, %cst_122 {dimension_numbers = #tpu.dot_dimension_numbers<[1], [0], [0], [1], [0, 0, 1, 1], [], []>} : vector<64x64xbf16>, vector<64x64xbf16>, vector<64x64xf32> -> vector<64x64xf32>
    %172 = vector.broadcast %26 : vector<64x1xf32> to vector<64x64xf32>
    %173 = arith.mulf %171, %172 : vector<64x64xf32>
    %174 = arith.addf %166, %173 : vector<64x64xf32>
    %c16_123 = arith.constant 16 : index
    %c0_124 = arith.constant 0 : index
    %175 = vector.load %arg12[%c16_123, %c0_124] : memref<100x64xf32, #tpu.memory_space<vmem>>, vector<64x64xf32>
    %176 = arith.truncf %175 : vector<64x64xf32> to vector<64x64xbf16>
    %c1_125 = arith.constant 1 : index
    %c3_126 = arith.constant 3 : index
    %c0_127 = arith.constant 0 : index
    %c0_128 = arith.constant 0 : index
    %177 = vector.load %arg3[%c1_125, %c3_126, %c0_127, %c0_128] : memref<3x9x64x64xbf16, #tpu.memory_space<vmem>>, vector<1x1x64x64xbf16>
    %178 = vector.shape_cast %177 : vector<1x1x64x64xbf16> to vector<64x64xbf16>
    %cst_129 = arith.constant dense<0.000000e+00> : vector<64x64xf32>
    %179 = tpu.matmul %176, %178, %cst_129 {dimension_numbers = #tpu.dot_dimension_numbers<[1], [0], [0], [1], [0, 0, 1, 1], [], []>} : vector<64x64xbf16>, vector<64x64xbf16>, vector<64x64xf32> -> vector<64x64xf32>
    %180 = vector.broadcast %22 : vector<64x1xf32> to vector<64x64xf32>
    %181 = arith.mulf %179, %180 : vector<64x64xf32>
    %182 = arith.addf %174, %181 : vector<64x64xf32>
    %c18_130 = arith.constant 18 : index
    %c0_131 = arith.constant 0 : index
    %183 = vector.load %arg12[%c18_130, %c0_131] : memref<100x64xf32, #tpu.memory_space<vmem>>, vector<64x64xf32>
    %184 = arith.truncf %183 : vector<64x64xf32> to vector<64x64xbf16>
    %c1_132 = arith.constant 1 : index
    %c4_133 = arith.constant 4 : index
    %c0_134 = arith.constant 0 : index
    %c0_135 = arith.constant 0 : index
    %185 = vector.load %arg3[%c1_132, %c4_133, %c0_134, %c0_135] : memref<3x9x64x64xbf16, #tpu.memory_space<vmem>>, vector<1x1x64x64xbf16>
    %186 = vector.shape_cast %185 : vector<1x1x64x64xbf16> to vector<64x64xbf16>
    %cst_136 = arith.constant dense<0.000000e+00> : vector<64x64xf32>
    %187 = tpu.matmul %184, %186, %cst_136 {dimension_numbers = #tpu.dot_dimension_numbers<[1], [0], [0], [1], [0, 0, 1, 1], [], []>} : vector<64x64xbf16>, vector<64x64xbf16>, vector<64x64xf32> -> vector<64x64xf32>
    %188 = arith.addf %182, %187 : vector<64x64xf32>
    %c20_137 = arith.constant 20 : index
    %c0_138 = arith.constant 0 : index
    %189 = vector.load %arg12[%c20_137, %c0_138] : memref<100x64xf32, #tpu.memory_space<vmem>>, vector<64x64xf32>
    %190 = arith.truncf %189 : vector<64x64xf32> to vector<64x64xbf16>
    %c1_139 = arith.constant 1 : index
    %c5_140 = arith.constant 5 : index
    %c0_141 = arith.constant 0 : index
    %c0_142 = arith.constant 0 : index
    %191 = vector.load %arg3[%c1_139, %c5_140, %c0_141, %c0_142] : memref<3x9x64x64xbf16, #tpu.memory_space<vmem>>, vector<1x1x64x64xbf16>
    %192 = vector.shape_cast %191 : vector<1x1x64x64xbf16> to vector<64x64xbf16>
    %cst_143 = arith.constant dense<0.000000e+00> : vector<64x64xf32>
    %193 = tpu.matmul %190, %192, %cst_143 {dimension_numbers = #tpu.dot_dimension_numbers<[1], [0], [0], [1], [0, 0, 1, 1], [], []>} : vector<64x64xbf16>, vector<64x64xbf16>, vector<64x64xf32> -> vector<64x64xf32>
    %194 = vector.broadcast %26 : vector<64x1xf32> to vector<64x64xf32>
    %195 = arith.mulf %193, %194 : vector<64x64xf32>
    %196 = arith.addf %188, %195 : vector<64x64xf32>
    %c32_144 = arith.constant 32 : index
    %c0_145 = arith.constant 0 : index
    %197 = vector.load %arg12[%c32_144, %c0_145] : memref<100x64xf32, #tpu.memory_space<vmem>>, vector<64x64xf32>
    %198 = arith.truncf %197 : vector<64x64xf32> to vector<64x64xbf16>
    %c1_146 = arith.constant 1 : index
    %c6_147 = arith.constant 6 : index
    %c0_148 = arith.constant 0 : index
    %c0_149 = arith.constant 0 : index
    %199 = vector.load %arg3[%c1_146, %c6_147, %c0_148, %c0_149] : memref<3x9x64x64xbf16, #tpu.memory_space<vmem>>, vector<1x1x64x64xbf16>
    %200 = vector.shape_cast %199 : vector<1x1x64x64xbf16> to vector<64x64xbf16>
    %cst_150 = arith.constant dense<0.000000e+00> : vector<64x64xf32>
    %201 = tpu.matmul %198, %200, %cst_150 {dimension_numbers = #tpu.dot_dimension_numbers<[1], [0], [0], [1], [0, 0, 1, 1], [], []>} : vector<64x64xbf16>, vector<64x64xbf16>, vector<64x64xf32> -> vector<64x64xf32>
    %202 = vector.broadcast %22 : vector<64x1xf32> to vector<64x64xf32>
    %203 = arith.mulf %201, %202 : vector<64x64xf32>
    %204 = arith.addf %196, %203 : vector<64x64xf32>
    %c34_151 = arith.constant 34 : index
    %c0_152 = arith.constant 0 : index
    %205 = vector.load %arg12[%c34_151, %c0_152] : memref<100x64xf32, #tpu.memory_space<vmem>>, vector<64x64xf32>
    %206 = arith.truncf %205 : vector<64x64xf32> to vector<64x64xbf16>
    %c1_153 = arith.constant 1 : index
    %c7_154 = arith.constant 7 : index
    %c0_155 = arith.constant 0 : index
    %c0_156 = arith.constant 0 : index
    %207 = vector.load %arg3[%c1_153, %c7_154, %c0_155, %c0_156] : memref<3x9x64x64xbf16, #tpu.memory_space<vmem>>, vector<1x1x64x64xbf16>
    %208 = vector.shape_cast %207 : vector<1x1x64x64xbf16> to vector<64x64xbf16>
    %cst_157 = arith.constant dense<0.000000e+00> : vector<64x64xf32>
    %209 = tpu.matmul %206, %208, %cst_157 {dimension_numbers = #tpu.dot_dimension_numbers<[1], [0], [0], [1], [0, 0, 1, 1], [], []>} : vector<64x64xbf16>, vector<64x64xbf16>, vector<64x64xf32> -> vector<64x64xf32>
    %210 = arith.addf %204, %209 : vector<64x64xf32>
    %c36_158 = arith.constant 36 : index
    %c0_159 = arith.constant 0 : index
    %211 = vector.load %arg12[%c36_158, %c0_159] : memref<100x64xf32, #tpu.memory_space<vmem>>, vector<64x64xf32>
    %212 = arith.truncf %211 : vector<64x64xf32> to vector<64x64xbf16>
    %c1_160 = arith.constant 1 : index
    %c8_161 = arith.constant 8 : index
    %c0_162 = arith.constant 0 : index
    %c0_163 = arith.constant 0 : index
    %213 = vector.load %arg3[%c1_160, %c8_161, %c0_162, %c0_163] : memref<3x9x64x64xbf16, #tpu.memory_space<vmem>>, vector<1x1x64x64xbf16>
    %214 = vector.shape_cast %213 : vector<1x1x64x64xbf16> to vector<64x64xbf16>
    %cst_164 = arith.constant dense<0.000000e+00> : vector<64x64xf32>
    %215 = tpu.matmul %212, %214, %cst_164 {dimension_numbers = #tpu.dot_dimension_numbers<[1], [0], [0], [1], [0, 0, 1, 1], [], []>} : vector<64x64xbf16>, vector<64x64xbf16>, vector<64x64xf32> -> vector<64x64xf32>
    %216 = vector.broadcast %26 : vector<64x1xf32> to vector<64x64xf32>
    %217 = arith.mulf %215, %216 : vector<64x64xf32>
    %218 = arith.addf %210, %217 : vector<64x64xf32>
    %c1_165 = arith.constant 1 : index
    %c0_166 = arith.constant 0 : index
    %c0_167 = arith.constant 0 : index
    %219 = vector.load %arg7[%c1_165, %c0_166, %c0_167] : memref<3x1x64xf32, #tpu.memory_space<vmem>>, vector<1x1x64xf32>
    %220 = vector.shape_cast %219 : vector<1x1x64xf32> to vector<1x64xf32>
    %221 = vector.broadcast %220 : vector<1x64xf32> to vector<64x64xf32>
    %222 = arith.mulf %218, %221 : vector<64x64xf32>
    %c1_168 = arith.constant 1 : index
    %c0_169 = arith.constant 0 : index
    %c0_170 = arith.constant 0 : index
    %223 = vector.load %arg8[%c1_168, %c0_169, %c0_170] : memref<3x1x64xf32, #tpu.memory_space<vmem>>, vector<1x1x64xf32>
    %224 = vector.shape_cast %223 : vector<1x1x64xf32> to vector<1x64xf32>
    %225 = vector.broadcast %224 : vector<1x64xf32> to vector<64x64xf32>
    %226 = arith.addf %222, %225 : vector<64x64xf32>
    %cst_171 = arith.constant 0.000000e+00 : f32
    %227 = vector.broadcast %cst_171 : f32 to vector<64x64xf32>
    %228 = arith.maximumf %226, %227 : vector<64x64xf32>
    %229 = arith.truncf %228 : vector<64x64xf32> to vector<64x64xbf16>
    %c1_172 = arith.constant 1 : index
    %c0_173 = arith.constant 0 : index
    %c0_174 = arith.constant 0 : index
    %230 = vector.load %arg4[%c1_172, %c0_173, %c0_174] : memref<3x64x256xbf16, #tpu.memory_space<vmem>>, vector<1x64x256xbf16>
    %231 = vector.shape_cast %230 : vector<1x64x256xbf16> to vector<64x256xbf16>
    %cst_175 = arith.constant dense<0.000000e+00> : vector<64x256xf32>
    %232 = tpu.matmul %229, %231, %cst_175 {dimension_numbers = #tpu.dot_dimension_numbers<[1], [0], [0], [1], [0, 0, 1, 1], [], []>} : vector<64x64xbf16>, vector<64x256xbf16>, vector<64x256xf32> -> vector<64x256xf32>
    %c1_176 = arith.constant 1 : index
    %c0_177 = arith.constant 0 : index
    %c0_178 = arith.constant 0 : index
    %233 = vector.load %arg9[%c1_176, %c0_177, %c0_178] : memref<3x1x256xf32, #tpu.memory_space<vmem>>, vector<1x1x256xf32>
    %234 = vector.shape_cast %233 : vector<1x1x256xf32> to vector<1x256xf32>
    %235 = vector.broadcast %234 : vector<1x256xf32> to vector<64x256xf32>
    %236 = arith.mulf %232, %235 : vector<64x256xf32>
    %c1_179 = arith.constant 1 : index
    %c0_180 = arith.constant 0 : index
    %c0_181 = arith.constant 0 : index
    %237 = vector.load %arg10[%c1_179, %c0_180, %c0_181] : memref<3x1x256xf32, #tpu.memory_space<vmem>>, vector<1x1x256xf32>
    %238 = vector.shape_cast %237 : vector<1x1x256xf32> to vector<1x256xf32>
    %239 = vector.broadcast %238 : vector<1x256xf32> to vector<64x256xf32>
    %240 = arith.addf %236, %239 : vector<64x256xf32>
    %241 = arith.addf %240, %136 : vector<64x256xf32>
    %cst_182 = arith.constant 0.000000e+00 : f32
    %242 = vector.broadcast %cst_182 : f32 to vector<64x256xf32>
    %243 = arith.maximumf %241, %242 : vector<64x256xf32>
    %244 = arith.truncf %243 : vector<64x256xf32> to vector<64x256xbf16>
    %c2_183 = arith.constant 2 : index
    %c0_184 = arith.constant 0 : index
    %c0_185 = arith.constant 0 : index
    %245 = vector.load %arg2[%c2_183, %c0_184, %c0_185] : memref<3x256x64xbf16, #tpu.memory_space<vmem>>, vector<1x256x64xbf16>
    %246 = vector.shape_cast %245 : vector<1x256x64xbf16> to vector<256x64xbf16>
    %cst_186 = arith.constant dense<0.000000e+00> : vector<64x64xf32>
    %247 = tpu.matmul %244, %246, %cst_186 {dimension_numbers = #tpu.dot_dimension_numbers<[1], [0], [0], [1], [0, 0, 1, 1], [], []>} : vector<64x256xbf16>, vector<256x64xbf16>, vector<64x64xf32> -> vector<64x64xf32>
    %c2_187 = arith.constant 2 : index
    %c0_188 = arith.constant 0 : index
    %c0_189 = arith.constant 0 : index
    %248 = vector.load %arg5[%c2_187, %c0_188, %c0_189] : memref<3x1x64xf32, #tpu.memory_space<vmem>>, vector<1x1x64xf32>
    %249 = vector.shape_cast %248 : vector<1x1x64xf32> to vector<1x64xf32>
    %250 = vector.broadcast %249 : vector<1x64xf32> to vector<64x64xf32>
    %251 = arith.mulf %247, %250 : vector<64x64xf32>
    %c2_190 = arith.constant 2 : index
    %c0_191 = arith.constant 0 : index
    %c0_192 = arith.constant 0 : index
    %252 = vector.load %arg6[%c2_190, %c0_191, %c0_192] : memref<3x1x64xf32, #tpu.memory_space<vmem>>, vector<1x1x64xf32>
    %253 = vector.shape_cast %252 : vector<1x1x64xf32> to vector<1x64xf32>
    %254 = vector.broadcast %253 : vector<1x64xf32> to vector<64x64xf32>
    %255 = arith.addf %251, %254 : vector<64x64xf32>
    %cst_193 = arith.constant 0.000000e+00 : f32
    %256 = vector.broadcast %cst_193 : f32 to vector<64x64xf32>
    %257 = arith.maximumf %255, %256 : vector<64x64xf32>
    %c18_194 = arith.constant 18 : index
    %c0_195 = arith.constant 0 : index
    %258 = vector.load %arg12[%c18_194, %c0_195] : memref<100x64xf32, #tpu.memory_space<vmem>>, vector<64x64xf32>
    tpu.vector_store %arg12[%c18_194, %c0_195], %257 {strides = array<i32>} : memref<100x64xf32, #tpu.memory_space<vmem>>, vector<64x64xf32>,
    %cst_196 = arith.constant 0.000000e+00 : f32
    %259 = vector.broadcast %cst_196 : f32 to vector<64x64xf32>
    %c0_197 = arith.constant 0 : index
    %c0_198 = arith.constant 0 : index
    %260 = vector.load %arg12[%c0_197, %c0_198] : memref<100x64xf32, #tpu.memory_space<vmem>>, vector<64x64xf32>
    %261 = arith.truncf %260 : vector<64x64xf32> to vector<64x64xbf16>
    %c2_199 = arith.constant 2 : index
    %c0_200 = arith.constant 0 : index
    %c0_201 = arith.constant 0 : index
    %c0_202 = arith.constant 0 : index
    %262 = vector.load %arg3[%c2_199, %c0_200, %c0_201, %c0_202] : memref<3x9x64x64xbf16, #tpu.memory_space<vmem>>, vector<1x1x64x64xbf16>
    %263 = vector.shape_cast %262 : vector<1x1x64x64xbf16> to vector<64x64xbf16>
    %cst_203 = arith.constant dense<0.000000e+00> : vector<64x64xf32>
    %264 = tpu.matmul %261, %263, %cst_203 {dimension_numbers = #tpu.dot_dimension_numbers<[1], [0], [0], [1], [0, 0, 1, 1], [], []>} : vector<64x64xbf16>, vector<64x64xbf16>, vector<64x64xf32> -> vector<64x64xf32>
    %265 = vector.broadcast %22 : vector<64x1xf32> to vector<64x64xf32>
    %266 = arith.mulf %264, %265 : vector<64x64xf32>
    %267 = arith.addf %259, %266 : vector<64x64xf32>
    %c2_204 = arith.constant 2 : index
    %c0_205 = arith.constant 0 : index
    %268 = vector.load %arg12[%c2_204, %c0_205] : memref<100x64xf32, #tpu.memory_space<vmem>>, vector<64x64xf32>
    %269 = arith.truncf %268 : vector<64x64xf32> to vector<64x64xbf16>
    %c2_206 = arith.constant 2 : index
    %c1_207 = arith.constant 1 : index
    %c0_208 = arith.constant 0 : index
    %c0_209 = arith.constant 0 : index
    %270 = vector.load %arg3[%c2_206, %c1_207, %c0_208, %c0_209] : memref<3x9x64x64xbf16, #tpu.memory_space<vmem>>, vector<1x1x64x64xbf16>
    %271 = vector.shape_cast %270 : vector<1x1x64x64xbf16> to vector<64x64xbf16>
    %cst_210 = arith.constant dense<0.000000e+00> : vector<64x64xf32>
    %272 = tpu.matmul %269, %271, %cst_210 {dimension_numbers = #tpu.dot_dimension_numbers<[1], [0], [0], [1], [0, 0, 1, 1], [], []>} : vector<64x64xbf16>, vector<64x64xbf16>, vector<64x64xf32> -> vector<64x64xf32>
    %273 = arith.addf %267, %272 : vector<64x64xf32>
    %c4_211 = arith.constant 4 : index
    %c0_212 = arith.constant 0 : index
    %274 = vector.load %arg12[%c4_211, %c0_212] : memref<100x64xf32, #tpu.memory_space<vmem>>, vector<64x64xf32>
    %275 = arith.truncf %274 : vector<64x64xf32> to vector<64x64xbf16>
    %c2_213 = arith.constant 2 : index
    %c2_214 = arith.constant 2 : index
    %c0_215 = arith.constant 0 : index
    %c0_216 = arith.constant 0 : index
    %276 = vector.load %arg3[%c2_213, %c2_214, %c0_215, %c0_216] : memref<3x9x64x64xbf16, #tpu.memory_space<vmem>>, vector<1x1x64x64xbf16>
    %277 = vector.shape_cast %276 : vector<1x1x64x64xbf16> to vector<64x64xbf16>
    %cst_217 = arith.constant dense<0.000000e+00> : vector<64x64xf32>
    %278 = tpu.matmul %275, %277, %cst_217 {dimension_numbers = #tpu.dot_dimension_numbers<[1], [0], [0], [1], [0, 0, 1, 1], [], []>} : vector<64x64xbf16>, vector<64x64xbf16>, vector<64x64xf32> -> vector<64x64xf32>
    %279 = vector.broadcast %26 : vector<64x1xf32> to vector<64x64xf32>
    %280 = arith.mulf %278, %279 : vector<64x64xf32>
    %281 = arith.addf %273, %280 : vector<64x64xf32>
    %c16_218 = arith.constant 16 : index
    %c0_219 = arith.constant 0 : index
    %282 = vector.load %arg12[%c16_218, %c0_219] : memref<100x64xf32, #tpu.memory_space<vmem>>, vector<64x64xf32>
    %283 = arith.truncf %282 : vector<64x64xf32> to vector<64x64xbf16>
    %c2_220 = arith.constant 2 : index
    %c3_221 = arith.constant 3 : index
    %c0_222 = arith.constant 0 : index
    %c0_223 = arith.constant 0 : index
    %284 = vector.load %arg3[%c2_220, %c3_221, %c0_222, %c0_223] : memref<3x9x64x64xbf16, #tpu.memory_space<vmem>>, vector<1x1x64x64xbf16>
    %285 = vector.shape_cast %284 : vector<1x1x64x64xbf16> to vector<64x64xbf16>
    %cst_224 = arith.constant dense<0.000000e+00> : vector<64x64xf32>
    %286 = tpu.matmul %283, %285, %cst_224 {dimension_numbers = #tpu.dot_dimension_numbers<[1], [0], [0], [1], [0, 0, 1, 1], [], []>} : vector<64x64xbf16>, vector<64x64xbf16>, vector<64x64xf32> -> vector<64x64xf32>
    %287 = vector.broadcast %22 : vector<64x1xf32> to vector<64x64xf32>
    %288 = arith.mulf %286, %287 : vector<64x64xf32>
    %289 = arith.addf %281, %288 : vector<64x64xf32>
    %c18_225 = arith.constant 18 : index
    %c0_226 = arith.constant 0 : index
    %290 = vector.load %arg12[%c18_225, %c0_226] : memref<100x64xf32, #tpu.memory_space<vmem>>, vector<64x64xf32>
    %291 = arith.truncf %290 : vector<64x64xf32> to vector<64x64xbf16>
    %c2_227 = arith.constant 2 : index
    %c4_228 = arith.constant 4 : index
    %c0_229 = arith.constant 0 : index
    %c0_230 = arith.constant 0 : index
    %292 = vector.load %arg3[%c2_227, %c4_228, %c0_229, %c0_230] : memref<3x9x64x64xbf16, #tpu.memory_space<vmem>>, vector<1x1x64x64xbf16>
    %293 = vector.shape_cast %292 : vector<1x1x64x64xbf16> to vector<64x64xbf16>
    %cst_231 = arith.constant dense<0.000000e+00> : vector<64x64xf32>
    %294 = tpu.matmul %291, %293, %cst_231 {dimension_numbers = #tpu.dot_dimension_numbers<[1], [0], [0], [1], [0, 0, 1, 1], [], []>} : vector<64x64xbf16>, vector<64x64xbf16>, vector<64x64xf32> -> vector<64x64xf32>
    %295 = arith.addf %289, %294 : vector<64x64xf32>
    %c20_232 = arith.constant 20 : index
    %c0_233 = arith.constant 0 : index
    %296 = vector.load %arg12[%c20_232, %c0_233] : memref<100x64xf32, #tpu.memory_space<vmem>>, vector<64x64xf32>
    %297 = arith.truncf %296 : vector<64x64xf32> to vector<64x64xbf16>
    %c2_234 = arith.constant 2 : index
    %c5_235 = arith.constant 5 : index
    %c0_236 = arith.constant 0 : index
    %c0_237 = arith.constant 0 : index
    %298 = vector.load %arg3[%c2_234, %c5_235, %c0_236, %c0_237] : memref<3x9x64x64xbf16, #tpu.memory_space<vmem>>, vector<1x1x64x64xbf16>
    %299 = vector.shape_cast %298 : vector<1x1x64x64xbf16> to vector<64x64xbf16>
    %cst_238 = arith.constant dense<0.000000e+00> : vector<64x64xf32>
    %300 = tpu.matmul %297, %299, %cst_238 {dimension_numbers = #tpu.dot_dimension_numbers<[1], [0], [0], [1], [0, 0, 1, 1], [], []>} : vector<64x64xbf16>, vector<64x64xbf16>, vector<64x64xf32> -> vector<64x64xf32>
    %301 = vector.broadcast %26 : vector<64x1xf32> to vector<64x64xf32>
    %302 = arith.mulf %300, %301 : vector<64x64xf32>
    %303 = arith.addf %295, %302 : vector<64x64xf32>
    %c32_239 = arith.constant 32 : index
    %c0_240 = arith.constant 0 : index
    %304 = vector.load %arg12[%c32_239, %c0_240] : memref<100x64xf32, #tpu.memory_space<vmem>>, vector<64x64xf32>
    %305 = arith.truncf %304 : vector<64x64xf32> to vector<64x64xbf16>
    %c2_241 = arith.constant 2 : index
    %c6_242 = arith.constant 6 : index
    %c0_243 = arith.constant 0 : index
    %c0_244 = arith.constant 0 : index
    %306 = vector.load %arg3[%c2_241, %c6_242, %c0_243, %c0_244] : memref<3x9x64x64xbf16, #tpu.memory_space<vmem>>, vector<1x1x64x64xbf16>
    %307 = vector.shape_cast %306 : vector<1x1x64x64xbf16> to vector<64x64xbf16>
    %cst_245 = arith.constant dense<0.000000e+00> : vector<64x64xf32>
    %308 = tpu.matmul %305, %307, %cst_245 {dimension_numbers = #tpu.dot_dimension_numbers<[1], [0], [0], [1], [0, 0, 1, 1], [], []>} : vector<64x64xbf16>, vector<64x64xbf16>, vector<64x64xf32> -> vector<64x64xf32>
    %309 = vector.broadcast %22 : vector<64x1xf32> to vector<64x64xf32>
    %310 = arith.mulf %308, %309 : vector<64x64xf32>
    %311 = arith.addf %303, %310 : vector<64x64xf32>
    %c34_246 = arith.constant 34 : index
    %c0_247 = arith.constant 0 : index
    %312 = vector.load %arg12[%c34_246, %c0_247] : memref<100x64xf32, #tpu.memory_space<vmem>>, vector<64x64xf32>
    %313 = arith.truncf %312 : vector<64x64xf32> to vector<64x64xbf16>
    %c2_248 = arith.constant 2 : index
    %c7_249 = arith.constant 7 : index
    %c0_250 = arith.constant 0 : index
    %c0_251 = arith.constant 0 : index
    %314 = vector.load %arg3[%c2_248, %c7_249, %c0_250, %c0_251] : memref<3x9x64x64xbf16, #tpu.memory_space<vmem>>, vector<1x1x64x64xbf16>
    %315 = vector.shape_cast %314 : vector<1x1x64x64xbf16> to vector<64x64xbf16>
    %cst_252 = arith.constant dense<0.000000e+00> : vector<64x64xf32>
    %316 = tpu.matmul %313, %315, %cst_252 {dimension_numbers = #tpu.dot_dimension_numbers<[1], [0], [0], [1], [0, 0, 1, 1], [], []>} : vector<64x64xbf16>, vector<64x64xbf16>, vector<64x64xf32> -> vector<64x64xf32>
    %317 = arith.addf %311, %316 : vector<64x64xf32>
    %c36_253 = arith.constant 36 : index
    %c0_254 = arith.constant 0 : index
    %318 = vector.load %arg12[%c36_253, %c0_254] : memref<100x64xf32, #tpu.memory_space<vmem>>, vector<64x64xf32>
    %319 = arith.truncf %318 : vector<64x64xf32> to vector<64x64xbf16>
    %c2_255 = arith.constant 2 : index
    %c8_256 = arith.constant 8 : index
    %c0_257 = arith.constant 0 : index
    %c0_258 = arith.constant 0 : index
    %320 = vector.load %arg3[%c2_255, %c8_256, %c0_257, %c0_258] : memref<3x9x64x64xbf16, #tpu.memory_space<vmem>>, vector<1x1x64x64xbf16>
    %321 = vector.shape_cast %320 : vector<1x1x64x64xbf16> to vector<64x64xbf16>
    %cst_259 = arith.constant dense<0.000000e+00> : vector<64x64xf32>
    %322 = tpu.matmul %319, %321, %cst_259 {dimension_numbers = #tpu.dot_dimension_numbers<[1], [0], [0], [1], [0, 0, 1, 1], [], []>} : vector<64x64xbf16>, vector<64x64xbf16>, vector<64x64xf32> -> vector<64x64xf32>
    %323 = vector.broadcast %26 : vector<64x1xf32> to vector<64x64xf32>
    %324 = arith.mulf %322, %323 : vector<64x64xf32>
    %325 = arith.addf %317, %324 : vector<64x64xf32>
    %c2_260 = arith.constant 2 : index
    %c0_261 = arith.constant 0 : index
    %c0_262 = arith.constant 0 : index
    %326 = vector.load %arg7[%c2_260, %c0_261, %c0_262] : memref<3x1x64xf32, #tpu.memory_space<vmem>>, vector<1x1x64xf32>
    %327 = vector.shape_cast %326 : vector<1x1x64xf32> to vector<1x64xf32>
    %328 = vector.broadcast %327 : vector<1x64xf32> to vector<64x64xf32>
    %329 = arith.mulf %325, %328 : vector<64x64xf32>
    %c2_263 = arith.constant 2 : index
    %c0_264 = arith.constant 0 : index
    %c0_265 = arith.constant 0 : index
    %330 = vector.load %arg8[%c2_263, %c0_264, %c0_265] : memref<3x1x64xf32, #tpu.memory_space<vmem>>, vector<1x1x64xf32>
    %331 = vector.shape_cast %330 : vector<1x1x64xf32> to vector<1x64xf32>
    %332 = vector.broadcast %331 : vector<1x64xf32> to vector<64x64xf32>
    %333 = arith.addf %329, %332 : vector<64x64xf32>
    %cst_266 = arith.constant 0.000000e+00 : f32
    %334 = vector.broadcast %cst_266 : f32 to vector<64x64xf32>
    %335 = arith.maximumf %333, %334 : vector<64x64xf32>
    %336 = arith.truncf %335 : vector<64x64xf32> to vector<64x64xbf16>
    %c2_267 = arith.constant 2 : index
    %c0_268 = arith.constant 0 : index
    %c0_269 = arith.constant 0 : index
    %337 = vector.load %arg4[%c2_267, %c0_268, %c0_269] : memref<3x64x256xbf16, #tpu.memory_space<vmem>>, vector<1x64x256xbf16>
    %338 = vector.shape_cast %337 : vector<1x64x256xbf16> to vector<64x256xbf16>
    %cst_270 = arith.constant dense<0.000000e+00> : vector<64x256xf32>
    %339 = tpu.matmul %336, %338, %cst_270 {dimension_numbers = #tpu.dot_dimension_numbers<[1], [0], [0], [1], [0, 0, 1, 1], [], []>} : vector<64x64xbf16>, vector<64x256xbf16>, vector<64x256xf32> -> vector<64x256xf32>
    %c2_271 = arith.constant 2 : index
    %c0_272 = arith.constant 0 : index
    %c0_273 = arith.constant 0 : index
    %340 = vector.load %arg9[%c2_271, %c0_272, %c0_273] : memref<3x1x256xf32, #tpu.memory_space<vmem>>, vector<1x1x256xf32>
    %341 = vector.shape_cast %340 : vector<1x1x256xf32> to vector<1x256xf32>
    %342 = vector.broadcast %341 : vector<1x256xf32> to vector<64x256xf32>
    %343 = arith.mulf %339, %342 : vector<64x256xf32>
    %c2_274 = arith.constant 2 : index
    %c0_275 = arith.constant 0 : index
    %c0_276 = arith.constant 0 : index
    %344 = vector.load %arg10[%c2_274, %c0_275, %c0_276] : memref<3x1x256xf32, #tpu.memory_space<vmem>>, vector<1x1x256xf32>
    %345 = vector.shape_cast %344 : vector<1x1x256xf32> to vector<1x256xf32>
    %346 = vector.broadcast %345 : vector<1x256xf32> to vector<64x256xf32>
    %347 = arith.addf %343, %346 : vector<64x256xf32>
    %348 = arith.addf %347, %243 : vector<64x256xf32>
    %cst_277 = arith.constant 0.000000e+00 : f32
    %349 = vector.broadcast %cst_277 : f32 to vector<64x256xf32>
    %350 = arith.maximumf %348, %349 : vector<64x256xf32>
    %351 = arith.truncf %350 : vector<64x256xf32> to vector<64x256xbf16>
    %c0_278 = arith.constant 0 : index
    %c0_279 = arith.constant 0 : index
    %c0_280 = arith.constant 0 : index
    %352 = vector.load %arg11[%c0_278, %c0_279, %c0_280] : memref<1x64x256xbf16, #tpu.memory_space<vmem>>, vector<1x64x256xbf16>
    %353 = vector.shape_cast %352 : vector<1x64x256xbf16> to vector<64x256xbf16>
    %354 = vector.shape_cast %351 : vector<64x256xbf16> to vector<1x64x256xbf16>
    tpu.vector_store %arg11[%c0_278, %c0_279, %c0_280], %354 {strides = array<i32>} : memref<1x64x256xbf16, #tpu.memory_space<vmem>>, vector<1x64x256xbf16>,
    return
  }
  func.func @transform_0(%arg0: i32) -> (i32, i32, i32) {
    %c0_i32 = arith.constant 0 : i32
    %c0_i32_0 = arith.constant 0 : i32
    %c0_i32_1 = arith.constant 0 : i32
    return %arg0, %c0_i32, %c0_i32_0 : i32, i32, i32
  }
  func.func @transform_1(%arg0: i32) -> (i32, i32, i32) {
    %c0_i32 = arith.constant 0 : i32
    %c0_i32_0 = arith.constant 0 : i32
    %c0_i32_1 = arith.constant 0 : i32
    %c0_i32_2 = arith.constant 0 : i32
    return %c0_i32, %c0_i32_0, %c0_i32_1 : i32, i32, i32
  }
  func.func @transform_2(%arg0: i32) -> (i32, i32, i32, i32) {
    %c0_i32 = arith.constant 0 : i32
    %c0_i32_0 = arith.constant 0 : i32
    %c0_i32_1 = arith.constant 0 : i32
    %c0_i32_2 = arith.constant 0 : i32
    %c0_i32_3 = arith.constant 0 : i32
    return %c0_i32, %c0_i32_0, %c0_i32_1, %c0_i32_2 : i32, i32, i32, i32
  }
  func.func @transform_3(%arg0: i32) -> (i32, i32, i32) {
    %c0_i32 = arith.constant 0 : i32
    %c0_i32_0 = arith.constant 0 : i32
    %c0_i32_1 = arith.constant 0 : i32
    %c0_i32_2 = arith.constant 0 : i32
    return %c0_i32, %c0_i32_0, %c0_i32_1 : i32, i32, i32
  }
  func.func @transform_4(%arg0: i32) -> (i32, i32, i32) {
    %c0_i32 = arith.constant 0 : i32
    %c0_i32_0 = arith.constant 0 : i32
    %c0_i32_1 = arith.constant 0 : i32
    %c0_i32_2 = arith.constant 0 : i32
    return %c0_i32, %c0_i32_0, %c0_i32_1 : i32, i32, i32
  }
  func.func @transform_5(%arg0: i32) -> (i32, i32, i32) {
    %c0_i32 = arith.constant 0 : i32
    %c0_i32_0 = arith.constant 0 : i32
    %c0_i32_1 = arith.constant 0 : i32
    %c0_i32_2 = arith.constant 0 : i32
    return %c0_i32, %c0_i32_0, %c0_i32_1 : i32, i32, i32
  }
  func.func @transform_6(%arg0: i32) -> (i32, i32, i32) {
    %c0_i32 = arith.constant 0 : i32
    %c0_i32_0 = arith.constant 0 : i32
    %c0_i32_1 = arith.constant 0 : i32
    %c0_i32_2 = arith.constant 0 : i32
    return %c0_i32, %c0_i32_0, %c0_i32_1 : i32, i32, i32
  }
  func.func @transform_7(%arg0: i32) -> (i32, i32, i32) {
    %c0_i32 = arith.constant 0 : i32
    %c0_i32_0 = arith.constant 0 : i32
    %c0_i32_1 = arith.constant 0 : i32
    %c0_i32_2 = arith.constant 0 : i32
    return %c0_i32, %c0_i32_0, %c0_i32_1 : i32, i32, i32
  }
  func.func @transform_8(%arg0: i32) -> (i32, i32, i32) {
    %c0_i32 = arith.constant 0 : i32
    %c0_i32_0 = arith.constant 0 : i32
    %c0_i32_1 = arith.constant 0 : i32
    %c0_i32_2 = arith.constant 0 : i32
    return %c0_i32, %c0_i32_0, %c0_i32_1 : i32, i32, i32
  }
  func.func @transform_9(%arg0: i32) -> (i32, i32, i32) {
    %c0_i32 = arith.constant 0 : i32
    %c0_i32_0 = arith.constant 0 : i32
    %c0_i32_1 = arith.constant 0 : i32
    %c0_i32_2 = arith.constant 0 : i32
    return %c0_i32, %c0_i32_0, %c0_i32_1 : i32, i32, i32
  }
  func.func @transform_10(%arg0: i32) -> (i32, i32, i32) {
    %c0_i32 = arith.constant 0 : i32
    %c0_i32_0 = arith.constant 0 : i32
    %c0_i32_1 = arith.constant 0 : i32
    return %arg0, %c0_i32, %c0_i32_0 : i32, i32, i32
  }
}

module attributes {stable_mosaic.version = 11 : i64} {
  func.func @_head_kernel(%arg0: i32, %arg1: memref<1x64x256xbf16, #tpu.memory_space<vmem>>, %arg2: memref<1x64x48xbf16, #tpu.memory_space<vmem>>, %arg3: memref<256x64xbf16, #tpu.memory_space<vmem>>, %arg4: memref<1x64xf32, #tpu.memory_space<vmem>>, %arg5: memref<1x64xf32, #tpu.memory_space<vmem>>, %arg6: memref<9x48x64xbf16, #tpu.memory_space<vmem>>, %arg7: memref<9x64x64xbf16, #tpu.memory_space<vmem>>, %arg8: memref<1x64xf32, #tpu.memory_space<vmem>>, %arg9: memref<1x64xf32, #tpu.memory_space<vmem>>, %arg10: memref<9x64x64xbf16, #tpu.memory_space<vmem>>, %arg11: memref<1x64xf32, #tpu.memory_space<vmem>>, %arg12: memref<1x64xf32, #tpu.memory_space<vmem>>, %arg13: memref<64x5xbf16, #tpu.memory_space<vmem>>, %arg14: memref<1x5xf32, #tpu.memory_space<vmem>>, %arg15: memref<1x64x5xf32, #tpu.memory_space<vmem>>, %arg16: memref<82x48xf32, #tpu.memory_space<vmem>>, %arg17: memref<82x64xf32, #tpu.memory_space<vmem>>) attributes {dimension_semantics = [#tpu.dimension_semantics<parallel>], iteration_bounds = array<i64: 2>, scalar_prefetch = 0 : i64, scratch_operands = 2 : i64, tpu.core_type = #tpu.core_type<tc>, window_params = [{transform_indices = @transform_0, window_bounds = array<i64: 1, 64, 256>}, {transform_indices = @transform_1, window_bounds = array<i64: 1, 64, 48>}, {pipeline_mode = #tpu.pipeline_mode<synchronous>, transform_indices = @transform_2, window_bounds = array<i64: 256, 64>}, {pipeline_mode = #tpu.pipeline_mode<synchronous>, transform_indices = @transform_3, window_bounds = array<i64: 1, 64>}, {pipeline_mode = #tpu.pipeline_mode<synchronous>, transform_indices = @transform_4, window_bounds = array<i64: 1, 64>}, {pipeline_mode = #tpu.pipeline_mode<synchronous>, transform_indices = @transform_5, window_bounds = array<i64: 9, 48, 64>}, {pipeline_mode = #tpu.pipeline_mode<synchronous>, transform_indices = @transform_6, window_bounds = array<i64: 9, 64, 64>}, {pipeline_mode = #tpu.pipeline_mode<synchronous>, transform_indices = @transform_7, window_bounds = array<i64: 1, 64>}, {pipeline_mode = #tpu.pipeline_mode<synchronous>, transform_indices = @transform_8, window_bounds = array<i64: 1, 64>}, {pipeline_mode = #tpu.pipeline_mode<synchronous>, transform_indices = @transform_9, window_bounds = array<i64: 9, 64, 64>}, {pipeline_mode = #tpu.pipeline_mode<synchronous>, transform_indices = @transform_10, window_bounds = array<i64: 1, 64>}, {pipeline_mode = #tpu.pipeline_mode<synchronous>, transform_indices = @transform_11, window_bounds = array<i64: 1, 64>}, {pipeline_mode = #tpu.pipeline_mode<synchronous>, transform_indices = @transform_12, window_bounds = array<i64: 64, 5>}, {pipeline_mode = #tpu.pipeline_mode<synchronous>, transform_indices = @transform_13, window_bounds = array<i64: 1, 5>}, {transform_indices = @transform_14, window_bounds = array<i64: 1, 64, 5>}]} {
    %cst = arith.constant 0.000000e+00 : f32
    %0 = vector.broadcast %cst : f32 to vector<82x48xf32>
    %c0 = arith.constant 0 : index
    %c0_0 = arith.constant 0 : index
    %1 = vector.load %arg16[%c0, %c0_0] : memref<82x48xf32, #tpu.memory_space<vmem>>, vector<82x48xf32>
    tpu.vector_store %arg16[%c0, %c0_0], %0 {strides = array<i32>} : memref<82x48xf32, #tpu.memory_space<vmem>>, vector<82x48xf32>,
    %cst_1 = arith.constant 0.000000e+00 : f32
    %2 = vector.broadcast %cst_1 : f32 to vector<82x64xf32>
    %c0_2 = arith.constant 0 : index
    %c0_3 = arith.constant 0 : index
    %3 = vector.load %arg17[%c0_2, %c0_3] : memref<82x64xf32, #tpu.memory_space<vmem>>, vector<82x64xf32>
    tpu.vector_store %arg17[%c0_2, %c0_3], %2 {strides = array<i32>} : memref<82x64xf32, #tpu.memory_space<vmem>>, vector<82x64xf32>,
    %4 = tpu.iota {dimensions = array<i32: 0>} : vector<64x1xi32>
    %c8_i32 = arith.constant 8 : i32
    %c0_i32 = arith.constant 0 : i32
    %5 = arith.cmpi eq, %c8_i32, %c0_i32 : i32
    %c1_i32 = arith.constant 1 : i32
    %6 = arith.select %5, %c1_i32, %c8_i32 : i32
    %7 = vector.broadcast %6 : i32 to vector<64x1xi32>
    %8 = arith.remsi %4, %7 : vector<64x1xi32>
    %c0_i32_4 = arith.constant 0 : i32
    %9 = vector.broadcast %c0_i32_4 : i32 to vector<64x1xi32>
    %10 = arith.cmpi ne, %8, %9 : vector<64x1xi32>
    %c0_i32_5 = arith.constant 0 : i32
    %11 = vector.broadcast %c0_i32_5 : i32 to vector<64x1xi32>
    %12 = arith.cmpi slt, %8, %11 : vector<64x1xi32>
    %c0_i32_6 = arith.constant 0 : i32
    %13 = arith.cmpi slt, %6, %c0_i32_6 : i32
    %14 = vector.broadcast %13 : i1 to vector<64x1xi1>
    %15 = vector.broadcast %14 : vector<64x1xi1> to vector<64x1xi1>
    %16 = arith.xori %12, %15 : vector<64x1xi1>
    %17 = arith.andi %16, %10 : vector<64x1xi1>
    %18 = vector.broadcast %6 : i32 to vector<64x1xi32>
    %19 = arith.addi %8, %18 : vector<64x1xi32>
    %20 = arith.select %17, %19, %8 : vector<64x1xi1>, vector<64x1xi32>
    %c1_i32_7 = arith.constant 1 : i32
    %21 = vector.broadcast %c1_i32_7 : i32 to vector<64x1xi32>
    %22 = arith.cmpi sge, %20, %21 : vector<64x1xi32>
    %23 = arith.extui %22 : vector<64x1xi1> to vector<64x1xi32>
    %24 = arith.sitofp %23 : vector<64x1xi32> to vector<64x1xf32>
    %c7_i32 = arith.constant 7 : i32
    %25 = vector.broadcast %c7_i32 : i32 to vector<64x1xi32>
    %26 = arith.cmpi slt, %20, %25 : vector<64x1xi32>
    %27 = arith.extui %26 : vector<64x1xi1> to vector<64x1xi32>
    %28 = arith.sitofp %27 : vector<64x1xi32> to vector<64x1xf32>
    %c0_8 = arith.constant 0 : index
    %c0_9 = arith.constant 0 : index
    %c0_10 = arith.constant 0 : index
    %29 = vector.load %arg1[%c0_8, %c0_9, %c0_10] : memref<1x64x256xbf16, #tpu.memory_space<vmem>>, vector<1x64x256xbf16>
    %30 = vector.shape_cast %29 : vector<1x64x256xbf16> to vector<64x256xbf16>
    %c0_11 = arith.constant 0 : index
    %c0_12 = arith.constant 0 : index
    %31 = vector.load %arg3[%c0_11, %c0_12] : memref<256x64xbf16, #tpu.memory_space<vmem>>, vector<256x64xbf16>
    %cst_13 = arith.constant dense<0.000000e+00> : vector<64x64xf32>
    %32 = tpu.matmul %30, %31, %cst_13 {dimension_numbers = #tpu.dot_dimension_numbers<[1], [0], [0], [1], [0, 0, 1, 1], [], []>} : vector<64x256xbf16>, vector<256x64xbf16>, vector<64x64xf32> -> vector<64x64xf32>
    %c0_14 = arith.constant 0 : index
    %c0_15 = arith.constant 0 : index
    %33 = vector.load %arg4[%c0_14, %c0_15] : memref<1x64xf32, #tpu.memory_space<vmem>>, vector<1x64xf32>
    %34 = vector.broadcast %33 : vector<1x64xf32> to vector<64x64xf32>
    %35 = arith.mulf %32, %34 : vector<64x64xf32>
    %c0_16 = arith.constant 0 : index
    %c0_17 = arith.constant 0 : index
    %36 = vector.load %arg5[%c0_16, %c0_17] : memref<1x64xf32, #tpu.memory_space<vmem>>, vector<1x64xf32>
    %37 = vector.broadcast %36 : vector<1x64xf32> to vector<64x64xf32>
    %38 = arith.addf %35, %37 : vector<64x64xf32>
    %cst_18 = arith.constant 0.000000e+00 : f32
    %39 = vector.broadcast %cst_18 : f32 to vector<64x64xf32>
    %40 = arith.maximumf %38, %39 : vector<64x64xf32>
    %c0_19 = arith.constant 0 : index
    %c0_20 = arith.constant 0 : index
    %c0_21 = arith.constant 0 : index
    %41 = vector.load %arg2[%c0_19, %c0_20, %c0_21] : memref<1x64x48xbf16, #tpu.memory_space<vmem>>, vector<1x64x48xbf16>
    %42 = vector.shape_cast %41 : vector<1x64x48xbf16> to vector<64x48xbf16>
    %43 = arith.extf %42 : vector<64x48xbf16> to vector<64x48xf32>
    %c9 = arith.constant 9 : index
    %c0_22 = arith.constant 0 : index
    %44 = vector.load %arg16[%c9, %c0_22] : memref<82x48xf32, #tpu.memory_space<vmem>>, vector<64x48xf32>
    tpu.vector_store %arg16[%c9, %c0_22], %43 {strides = array<i32>} : memref<82x48xf32, #tpu.memory_space<vmem>>, vector<64x48xf32>,
    %c9_23 = arith.constant 9 : index
    %c0_24 = arith.constant 0 : index
    %45 = vector.load %arg17[%c9_23, %c0_24] : memref<82x64xf32, #tpu.memory_space<vmem>>, vector<64x64xf32>
    tpu.vector_store %arg17[%c9_23, %c0_24], %40 {strides = array<i32>} : memref<82x64xf32, #tpu.memory_space<vmem>>, vector<64x64xf32>,
    %cst_25 = arith.constant 0.000000e+00 : f32
    %46 = vector.broadcast %cst_25 : f32 to vector<64x64xf32>
    %cst_26 = arith.constant 0.000000e+00 : f32
    %47 = vector.broadcast %cst_26 : f32 to vector<64x64xf32>
    %c0_27 = arith.constant 0 : index
    %c0_28 = arith.constant 0 : index
    %48 = vector.load %arg16[%c0_27, %c0_28] : memref<82x48xf32, #tpu.memory_space<vmem>>, vector<64x48xf32>
    %49 = arith.truncf %48 : vector<64x48xf32> to vector<64x48xbf16>
    %c0_29 = arith.constant 0 : index
    %c0_30 = arith.constant 0 : index
    %c0_31 = arith.constant 0 : index
    %50 = vector.load %arg6[%c0_29, %c0_30, %c0_31] : memref<9x48x64xbf16, #tpu.memory_space<vmem>>, vector<1x48x64xbf16>
    %51 = vector.shape_cast %50 : vector<1x48x64xbf16> to vector<48x64xbf16>
    %cst_32 = arith.constant dense<0.000000e+00> : vector<64x64xf32>
    %52 = tpu.matmul %49, %51, %cst_32 {dimension_numbers = #tpu.dot_dimension_numbers<[1], [0], [0], [1], [0, 0, 1, 1], [], []>} : vector<64x48xbf16>, vector<48x64xbf16>, vector<64x64xf32> -> vector<64x64xf32>
    %53 = arith.addf %47, %52 : vector<64x64xf32>
    %c0_33 = arith.constant 0 : index
    %c0_34 = arith.constant 0 : index
    %54 = vector.load %arg17[%c0_33, %c0_34] : memref<82x64xf32, #tpu.memory_space<vmem>>, vector<64x64xf32>
    %55 = arith.truncf %54 : vector<64x64xf32> to vector<64x64xbf16>
    %c0_35 = arith.constant 0 : index
    %c0_36 = arith.constant 0 : index
    %c0_37 = arith.constant 0 : index
    %56 = vector.load %arg7[%c0_35, %c0_36, %c0_37] : memref<9x64x64xbf16, #tpu.memory_space<vmem>>, vector<1x64x64xbf16>
    %57 = vector.shape_cast %56 : vector<1x64x64xbf16> to vector<64x64xbf16>
    %cst_38 = arith.constant dense<0.000000e+00> : vector<64x64xf32>
    %58 = tpu.matmul %55, %57, %cst_38 {dimension_numbers = #tpu.dot_dimension_numbers<[1], [0], [0], [1], [0, 0, 1, 1], [], []>} : vector<64x64xbf16>, vector<64x64xbf16>, vector<64x64xf32> -> vector<64x64xf32>
    %59 = arith.addf %53, %58 : vector<64x64xf32>
    %60 = vector.broadcast %24 : vector<64x1xf32> to vector<64x64xf32>
    %61 = arith.mulf %59, %60 : vector<64x64xf32>
    %62 = arith.addf %46, %61 : vector<64x64xf32>
    %cst_39 = arith.constant 0.000000e+00 : f32
    %63 = vector.broadcast %cst_39 : f32 to vector<64x64xf32>
    %c1 = arith.constant 1 : index
    %c0_40 = arith.constant 0 : index
    %64 = vector.load %arg16[%c1, %c0_40] : memref<82x48xf32, #tpu.memory_space<vmem>>, vector<64x48xf32>
    %65 = arith.truncf %64 : vector<64x48xf32> to vector<64x48xbf16>
    %c1_41 = arith.constant 1 : index
    %c0_42 = arith.constant 0 : index
    %c0_43 = arith.constant 0 : index
    %66 = vector.load %arg6[%c1_41, %c0_42, %c0_43] : memref<9x48x64xbf16, #tpu.memory_space<vmem>>, vector<1x48x64xbf16>
    %67 = vector.shape_cast %66 : vector<1x48x64xbf16> to vector<48x64xbf16>
    %cst_44 = arith.constant dense<0.000000e+00> : vector<64x64xf32>
    %68 = tpu.matmul %65, %67, %cst_44 {dimension_numbers = #tpu.dot_dimension_numbers<[1], [0], [0], [1], [0, 0, 1, 1], [], []>} : vector<64x48xbf16>, vector<48x64xbf16>, vector<64x64xf32> -> vector<64x64xf32>
    %69 = arith.addf %63, %68 : vector<64x64xf32>
    %c1_45 = arith.constant 1 : index
    %c0_46 = arith.constant 0 : index
    %70 = vector.load %arg17[%c1_45, %c0_46] : memref<82x64xf32, #tpu.memory_space<vmem>>, vector<64x64xf32>
    %71 = arith.truncf %70 : vector<64x64xf32> to vector<64x64xbf16>
    %c1_47 = arith.constant 1 : index
    %c0_48 = arith.constant 0 : index
    %c0_49 = arith.constant 0 : index
    %72 = vector.load %arg7[%c1_47, %c0_48, %c0_49] : memref<9x64x64xbf16, #tpu.memory_space<vmem>>, vector<1x64x64xbf16>
    %73 = vector.shape_cast %72 : vector<1x64x64xbf16> to vector<64x64xbf16>
    %cst_50 = arith.constant dense<0.000000e+00> : vector<64x64xf32>
    %74 = tpu.matmul %71, %73, %cst_50 {dimension_numbers = #tpu.dot_dimension_numbers<[1], [0], [0], [1], [0, 0, 1, 1], [], []>} : vector<64x64xbf16>, vector<64x64xbf16>, vector<64x64xf32> -> vector<64x64xf32>
    %75 = arith.addf %69, %74 : vector<64x64xf32>
    %76 = arith.addf %62, %75 : vector<64x64xf32>
    %cst_51 = arith.constant 0.000000e+00 : f32
    %77 = vector.broadcast %cst_51 : f32 to vector<64x64xf32>
    %c2 = arith.constant 2 : index
    %c0_52 = arith.constant 0 : index
    %78 = vector.load %arg16[%c2, %c0_52] : memref<82x48xf32, #tpu.memory_space<vmem>>, vector<64x48xf32>
    %79 = arith.truncf %78 : vector<64x48xf32> to vector<64x48xbf16>
    %c2_53 = arith.constant 2 : index
    %c0_54 = arith.constant 0 : index
    %c0_55 = arith.constant 0 : index
    %80 = vector.load %arg6[%c2_53, %c0_54, %c0_55] : memref<9x48x64xbf16, #tpu.memory_space<vmem>>, vector<1x48x64xbf16>
    %81 = vector.shape_cast %80 : vector<1x48x64xbf16> to vector<48x64xbf16>
    %cst_56 = arith.constant dense<0.000000e+00> : vector<64x64xf32>
    %82 = tpu.matmul %79, %81, %cst_56 {dimension_numbers = #tpu.dot_dimension_numbers<[1], [0], [0], [1], [0, 0, 1, 1], [], []>} : vector<64x48xbf16>, vector<48x64xbf16>, vector<64x64xf32> -> vector<64x64xf32>
    %83 = arith.addf %77, %82 : vector<64x64xf32>
    %c2_57 = arith.constant 2 : index
    %c0_58 = arith.constant 0 : index
    %84 = vector.load %arg17[%c2_57, %c0_58] : memref<82x64xf32, #tpu.memory_space<vmem>>, vector<64x64xf32>
    %85 = arith.truncf %84 : vector<64x64xf32> to vector<64x64xbf16>
    %c2_59 = arith.constant 2 : index
    %c0_60 = arith.constant 0 : index
    %c0_61 = arith.constant 0 : index
    %86 = vector.load %arg7[%c2_59, %c0_60, %c0_61] : memref<9x64x64xbf16, #tpu.memory_space<vmem>>, vector<1x64x64xbf16>
    %87 = vector.shape_cast %86 : vector<1x64x64xbf16> to vector<64x64xbf16>
    %cst_62 = arith.constant dense<0.000000e+00> : vector<64x64xf32>
    %88 = tpu.matmul %85, %87, %cst_62 {dimension_numbers = #tpu.dot_dimension_numbers<[1], [0], [0], [1], [0, 0, 1, 1], [], []>} : vector<64x64xbf16>, vector<64x64xbf16>, vector<64x64xf32> -> vector<64x64xf32>
    %89 = arith.addf %83, %88 : vector<64x64xf32>
    %90 = vector.broadcast %28 : vector<64x1xf32> to vector<64x64xf32>
    %91 = arith.mulf %89, %90 : vector<64x64xf32>
    %92 = arith.addf %76, %91 : vector<64x64xf32>
    %cst_63 = arith.constant 0.000000e+00 : f32
    %93 = vector.broadcast %cst_63 : f32 to vector<64x64xf32>
    %c8 = arith.constant 8 : index
    %c0_64 = arith.constant 0 : index
    %94 = vector.load %arg16[%c8, %c0_64] : memref<82x48xf32, #tpu.memory_space<vmem>>, vector<64x48xf32>
    %95 = arith.truncf %94 : vector<64x48xf32> to vector<64x48xbf16>
    %c3 = arith.constant 3 : index
    %c0_65 = arith.constant 0 : index
    %c0_66 = arith.constant 0 : index
    %96 = vector.load %arg6[%c3, %c0_65, %c0_66] : memref<9x48x64xbf16, #tpu.memory_space<vmem>>, vector<1x48x64xbf16>
    %97 = vector.shape_cast %96 : vector<1x48x64xbf16> to vector<48x64xbf16>
    %cst_67 = arith.constant dense<0.000000e+00> : vector<64x64xf32>
    %98 = tpu.matmul %95, %97, %cst_67 {dimension_numbers = #tpu.dot_dimension_numbers<[1], [0], [0], [1], [0, 0, 1, 1], [], []>} : vector<64x48xbf16>, vector<48x64xbf16>, vector<64x64xf32> -> vector<64x64xf32>
    %99 = arith.addf %93, %98 : vector<64x64xf32>
    %c8_68 = arith.constant 8 : index
    %c0_69 = arith.constant 0 : index
    %100 = vector.load %arg17[%c8_68, %c0_69] : memref<82x64xf32, #tpu.memory_space<vmem>>, vector<64x64xf32>
    %101 = arith.truncf %100 : vector<64x64xf32> to vector<64x64xbf16>
    %c3_70 = arith.constant 3 : index
    %c0_71 = arith.constant 0 : index
    %c0_72 = arith.constant 0 : index
    %102 = vector.load %arg7[%c3_70, %c0_71, %c0_72] : memref<9x64x64xbf16, #tpu.memory_space<vmem>>, vector<1x64x64xbf16>
    %103 = vector.shape_cast %102 : vector<1x64x64xbf16> to vector<64x64xbf16>
    %cst_73 = arith.constant dense<0.000000e+00> : vector<64x64xf32>
    %104 = tpu.matmul %101, %103, %cst_73 {dimension_numbers = #tpu.dot_dimension_numbers<[1], [0], [0], [1], [0, 0, 1, 1], [], []>} : vector<64x64xbf16>, vector<64x64xbf16>, vector<64x64xf32> -> vector<64x64xf32>
    %105 = arith.addf %99, %104 : vector<64x64xf32>
    %106 = vector.broadcast %24 : vector<64x1xf32> to vector<64x64xf32>
    %107 = arith.mulf %105, %106 : vector<64x64xf32>
    %108 = arith.addf %92, %107 : vector<64x64xf32>
    %cst_74 = arith.constant 0.000000e+00 : f32
    %109 = vector.broadcast %cst_74 : f32 to vector<64x64xf32>
    %c9_75 = arith.constant 9 : index
    %c0_76 = arith.constant 0 : index
    %110 = vector.load %arg16[%c9_75, %c0_76] : memref<82x48xf32, #tpu.memory_space<vmem>>, vector<64x48xf32>
    %111 = arith.truncf %110 : vector<64x48xf32> to vector<64x48xbf16>
    %c4 = arith.constant 4 : index
    %c0_77 = arith.constant 0 : index
    %c0_78 = arith.constant 0 : index
    %112 = vector.load %arg6[%c4, %c0_77, %c0_78] : memref<9x48x64xbf16, #tpu.memory_space<vmem>>, vector<1x48x64xbf16>
    %113 = vector.shape_cast %112 : vector<1x48x64xbf16> to vector<48x64xbf16>
    %cst_79 = arith.constant dense<0.000000e+00> : vector<64x64xf32>
    %114 = tpu.matmul %111, %113, %cst_79 {dimension_numbers = #tpu.dot_dimension_numbers<[1], [0], [0], [1], [0, 0, 1, 1], [], []>} : vector<64x48xbf16>, vector<48x64xbf16>, vector<64x64xf32> -> vector<64x64xf32>
    %115 = arith.addf %109, %114 : vector<64x64xf32>
    %c9_80 = arith.constant 9 : index
    %c0_81 = arith.constant 0 : index
    %116 = vector.load %arg17[%c9_80, %c0_81] : memref<82x64xf32, #tpu.memory_space<vmem>>, vector<64x64xf32>
    %117 = arith.truncf %116 : vector<64x64xf32> to vector<64x64xbf16>
    %c4_82 = arith.constant 4 : index
    %c0_83 = arith.constant 0 : index
    %c0_84 = arith.constant 0 : index
    %118 = vector.load %arg7[%c4_82, %c0_83, %c0_84] : memref<9x64x64xbf16, #tpu.memory_space<vmem>>, vector<1x64x64xbf16>
    %119 = vector.shape_cast %118 : vector<1x64x64xbf16> to vector<64x64xbf16>
    %cst_85 = arith.constant dense<0.000000e+00> : vector<64x64xf32>
    %120 = tpu.matmul %117, %119, %cst_85 {dimension_numbers = #tpu.dot_dimension_numbers<[1], [0], [0], [1], [0, 0, 1, 1], [], []>} : vector<64x64xbf16>, vector<64x64xbf16>, vector<64x64xf32> -> vector<64x64xf32>
    %121 = arith.addf %115, %120 : vector<64x64xf32>
    %122 = arith.addf %108, %121 : vector<64x64xf32>
    %cst_86 = arith.constant 0.000000e+00 : f32
    %123 = vector.broadcast %cst_86 : f32 to vector<64x64xf32>
    %c10 = arith.constant 10 : index
    %c0_87 = arith.constant 0 : index
    %124 = vector.load %arg16[%c10, %c0_87] : memref<82x48xf32, #tpu.memory_space<vmem>>, vector<64x48xf32>
    %125 = arith.truncf %124 : vector<64x48xf32> to vector<64x48xbf16>
    %c5 = arith.constant 5 : index
    %c0_88 = arith.constant 0 : index
    %c0_89 = arith.constant 0 : index
    %126 = vector.load %arg6[%c5, %c0_88, %c0_89] : memref<9x48x64xbf16, #tpu.memory_space<vmem>>, vector<1x48x64xbf16>
    %127 = vector.shape_cast %126 : vector<1x48x64xbf16> to vector<48x64xbf16>
    %cst_90 = arith.constant dense<0.000000e+00> : vector<64x64xf32>
    %128 = tpu.matmul %125, %127, %cst_90 {dimension_numbers = #tpu.dot_dimension_numbers<[1], [0], [0], [1], [0, 0, 1, 1], [], []>} : vector<64x48xbf16>, vector<48x64xbf16>, vector<64x64xf32> -> vector<64x64xf32>
    %129 = arith.addf %123, %128 : vector<64x64xf32>
    %c10_91 = arith.constant 10 : index
    %c0_92 = arith.constant 0 : index
    %130 = vector.load %arg17[%c10_91, %c0_92] : memref<82x64xf32, #tpu.memory_space<vmem>>, vector<64x64xf32>
    %131 = arith.truncf %130 : vector<64x64xf32> to vector<64x64xbf16>
    %c5_93 = arith.constant 5 : index
    %c0_94 = arith.constant 0 : index
    %c0_95 = arith.constant 0 : index
    %132 = vector.load %arg7[%c5_93, %c0_94, %c0_95] : memref<9x64x64xbf16, #tpu.memory_space<vmem>>, vector<1x64x64xbf16>
    %133 = vector.shape_cast %132 : vector<1x64x64xbf16> to vector<64x64xbf16>
    %cst_96 = arith.constant dense<0.000000e+00> : vector<64x64xf32>
    %134 = tpu.matmul %131, %133, %cst_96 {dimension_numbers = #tpu.dot_dimension_numbers<[1], [0], [0], [1], [0, 0, 1, 1], [], []>} : vector<64x64xbf16>, vector<64x64xbf16>, vector<64x64xf32> -> vector<64x64xf32>
    %135 = arith.addf %129, %134 : vector<64x64xf32>
    %136 = vector.broadcast %28 : vector<64x1xf32> to vector<64x64xf32>
    %137 = arith.mulf %135, %136 : vector<64x64xf32>
    %138 = arith.addf %122, %137 : vector<64x64xf32>
    %cst_97 = arith.constant 0.000000e+00 : f32
    %139 = vector.broadcast %cst_97 : f32 to vector<64x64xf32>
    %c16 = arith.constant 16 : index
    %c0_98 = arith.constant 0 : index
    %140 = vector.load %arg16[%c16, %c0_98] : memref<82x48xf32, #tpu.memory_space<vmem>>, vector<64x48xf32>
    %141 = arith.truncf %140 : vector<64x48xf32> to vector<64x48xbf16>
    %c6 = arith.constant 6 : index
    %c0_99 = arith.constant 0 : index
    %c0_100 = arith.constant 0 : index
    %142 = vector.load %arg6[%c6, %c0_99, %c0_100] : memref<9x48x64xbf16, #tpu.memory_space<vmem>>, vector<1x48x64xbf16>
    %143 = vector.shape_cast %142 : vector<1x48x64xbf16> to vector<48x64xbf16>
    %cst_101 = arith.constant dense<0.000000e+00> : vector<64x64xf32>
    %144 = tpu.matmul %141, %143, %cst_101 {dimension_numbers = #tpu.dot_dimension_numbers<[1], [0], [0], [1], [0, 0, 1, 1], [], []>} : vector<64x48xbf16>, vector<48x64xbf16>, vector<64x64xf32> -> vector<64x64xf32>
    %145 = arith.addf %139, %144 : vector<64x64xf32>
    %c16_102 = arith.constant 16 : index
    %c0_103 = arith.constant 0 : index
    %146 = vector.load %arg17[%c16_102, %c0_103] : memref<82x64xf32, #tpu.memory_space<vmem>>, vector<64x64xf32>
    %147 = arith.truncf %146 : vector<64x64xf32> to vector<64x64xbf16>
    %c6_104 = arith.constant 6 : index
    %c0_105 = arith.constant 0 : index
    %c0_106 = arith.constant 0 : index
    %148 = vector.load %arg7[%c6_104, %c0_105, %c0_106] : memref<9x64x64xbf16, #tpu.memory_space<vmem>>, vector<1x64x64xbf16>
    %149 = vector.shape_cast %148 : vector<1x64x64xbf16> to vector<64x64xbf16>
    %cst_107 = arith.constant dense<0.000000e+00> : vector<64x64xf32>
    %150 = tpu.matmul %147, %149, %cst_107 {dimension_numbers = #tpu.dot_dimension_numbers<[1], [0], [0], [1], [0, 0, 1, 1], [], []>} : vector<64x64xbf16>, vector<64x64xbf16>, vector<64x64xf32> -> vector<64x64xf32>
    %151 = arith.addf %145, %150 : vector<64x64xf32>
    %152 = vector.broadcast %24 : vector<64x1xf32> to vector<64x64xf32>
    %153 = arith.mulf %151, %152 : vector<64x64xf32>
    %154 = arith.addf %138, %153 : vector<64x64xf32>
    %cst_108 = arith.constant 0.000000e+00 : f32
    %155 = vector.broadcast %cst_108 : f32 to vector<64x64xf32>
    %c17 = arith.constant 17 : index
    %c0_109 = arith.constant 0 : index
    %156 = vector.load %arg16[%c17, %c0_109] : memref<82x48xf32, #tpu.memory_space<vmem>>, vector<64x48xf32>
    %157 = arith.truncf %156 : vector<64x48xf32> to vector<64x48xbf16>
    %c7 = arith.constant 7 : index
    %c0_110 = arith.constant 0 : index
    %c0_111 = arith.constant 0 : index
    %158 = vector.load %arg6[%c7, %c0_110, %c0_111] : memref<9x48x64xbf16, #tpu.memory_space<vmem>>, vector<1x48x64xbf16>
    %159 = vector.shape_cast %158 : vector<1x48x64xbf16> to vector<48x64xbf16>
    %cst_112 = arith.constant dense<0.000000e+00> : vector<64x64xf32>
    %160 = tpu.matmul %157, %159, %cst_112 {dimension_numbers = #tpu.dot_dimension_numbers<[1], [0], [0], [1], [0, 0, 1, 1], [], []>} : vector<64x48xbf16>, vector<48x64xbf16>, vector<64x64xf32> -> vector<64x64xf32>
    %161 = arith.addf %155, %160 : vector<64x64xf32>
    %c17_113 = arith.constant 17 : index
    %c0_114 = arith.constant 0 : index
    %162 = vector.load %arg17[%c17_113, %c0_114] : memref<82x64xf32, #tpu.memory_space<vmem>>, vector<64x64xf32>
    %163 = arith.truncf %162 : vector<64x64xf32> to vector<64x64xbf16>
    %c7_115 = arith.constant 7 : index
    %c0_116 = arith.constant 0 : index
    %c0_117 = arith.constant 0 : index
    %164 = vector.load %arg7[%c7_115, %c0_116, %c0_117] : memref<9x64x64xbf16, #tpu.memory_space<vmem>>, vector<1x64x64xbf16>
    %165 = vector.shape_cast %164 : vector<1x64x64xbf16> to vector<64x64xbf16>
    %cst_118 = arith.constant dense<0.000000e+00> : vector<64x64xf32>
    %166 = tpu.matmul %163, %165, %cst_118 {dimension_numbers = #tpu.dot_dimension_numbers<[1], [0], [0], [1], [0, 0, 1, 1], [], []>} : vector<64x64xbf16>, vector<64x64xbf16>, vector<64x64xf32> -> vector<64x64xf32>
    %167 = arith.addf %161, %166 : vector<64x64xf32>
    %168 = arith.addf %154, %167 : vector<64x64xf32>
    %cst_119 = arith.constant 0.000000e+00 : f32
    %169 = vector.broadcast %cst_119 : f32 to vector<64x64xf32>
    %c18 = arith.constant 18 : index
    %c0_120 = arith.constant 0 : index
    %170 = vector.load %arg16[%c18, %c0_120] : memref<82x48xf32, #tpu.memory_space<vmem>>, vector<64x48xf32>
    %171 = arith.truncf %170 : vector<64x48xf32> to vector<64x48xbf16>
    %c8_121 = arith.constant 8 : index
    %c0_122 = arith.constant 0 : index
    %c0_123 = arith.constant 0 : index
    %172 = vector.load %arg6[%c8_121, %c0_122, %c0_123] : memref<9x48x64xbf16, #tpu.memory_space<vmem>>, vector<1x48x64xbf16>
    %173 = vector.shape_cast %172 : vector<1x48x64xbf16> to vector<48x64xbf16>
    %cst_124 = arith.constant dense<0.000000e+00> : vector<64x64xf32>
    %174 = tpu.matmul %171, %173, %cst_124 {dimension_numbers = #tpu.dot_dimension_numbers<[1], [0], [0], [1], [0, 0, 1, 1], [], []>} : vector<64x48xbf16>, vector<48x64xbf16>, vector<64x64xf32> -> vector<64x64xf32>
    %175 = arith.addf %169, %174 : vector<64x64xf32>
    %c18_125 = arith.constant 18 : index
    %c0_126 = arith.constant 0 : index
    %176 = vector.load %arg17[%c18_125, %c0_126] : memref<82x64xf32, #tpu.memory_space<vmem>>, vector<64x64xf32>
    %177 = arith.truncf %176 : vector<64x64xf32> to vector<64x64xbf16>
    %c8_127 = arith.constant 8 : index
    %c0_128 = arith.constant 0 : index
    %c0_129 = arith.constant 0 : index
    %178 = vector.load %arg7[%c8_127, %c0_128, %c0_129] : memref<9x64x64xbf16, #tpu.memory_space<vmem>>, vector<1x64x64xbf16>
    %179 = vector.shape_cast %178 : vector<1x64x64xbf16> to vector<64x64xbf16>
    %cst_130 = arith.constant dense<0.000000e+00> : vector<64x64xf32>
    %180 = tpu.matmul %177, %179, %cst_130 {dimension_numbers = #tpu.dot_dimension_numbers<[1], [0], [0], [1], [0, 0, 1, 1], [], []>} : vector<64x64xbf16>, vector<64x64xbf16>, vector<64x64xf32> -> vector<64x64xf32>
    %181 = arith.addf %175, %180 : vector<64x64xf32>
    %182 = vector.broadcast %28 : vector<64x1xf32> to vector<64x64xf32>
    %183 = arith.mulf %181, %182 : vector<64x64xf32>
    %184 = arith.addf %168, %183 : vector<64x64xf32>
    %c0_131 = arith.constant 0 : index
    %c0_132 = arith.constant 0 : index
    %185 = vector.load %arg8[%c0_131, %c0_132] : memref<1x64xf32, #tpu.memory_space<vmem>>, vector<1x64xf32>
    %186 = vector.broadcast %185 : vector<1x64xf32> to vector<64x64xf32>
    %187 = arith.mulf %184, %186 : vector<64x64xf32>
    %c0_133 = arith.constant 0 : index
    %c0_134 = arith.constant 0 : index
    %188 = vector.load %arg9[%c0_133, %c0_134] : memref<1x64xf32, #tpu.memory_space<vmem>>, vector<1x64xf32>
    %189 = vector.broadcast %188 : vector<1x64xf32> to vector<64x64xf32>
    %190 = arith.addf %187, %189 : vector<64x64xf32>
    %cst_135 = arith.constant 0.000000e+00 : f32
    %191 = vector.broadcast %cst_135 : f32 to vector<64x64xf32>
    %192 = arith.maximumf %190, %191 : vector<64x64xf32>
    %c9_136 = arith.constant 9 : index
    %c0_137 = arith.constant 0 : index
    %193 = vector.load %arg17[%c9_136, %c0_137] : memref<82x64xf32, #tpu.memory_space<vmem>>, vector<64x64xf32>
    tpu.vector_store %arg17[%c9_136, %c0_137], %192 {strides = array<i32>} : memref<82x64xf32, #tpu.memory_space<vmem>>, vector<64x64xf32>,
    %cst_138 = arith.constant 0.000000e+00 : f32
    %194 = vector.broadcast %cst_138 : f32 to vector<64x64xf32>
    %cst_139 = arith.constant 0.000000e+00 : f32
    %195 = vector.broadcast %cst_139 : f32 to vector<64x64xf32>
    %c0_140 = arith.constant 0 : index
    %c0_141 = arith.constant 0 : index
    %196 = vector.load %arg17[%c0_140, %c0_141] : memref<82x64xf32, #tpu.memory_space<vmem>>, vector<64x64xf32>
    %197 = arith.truncf %196 : vector<64x64xf32> to vector<64x64xbf16>
    %c0_142 = arith.constant 0 : index
    %c0_143 = arith.constant 0 : index
    %c0_144 = arith.constant 0 : index
    %198 = vector.load %arg10[%c0_142, %c0_143, %c0_144] : memref<9x64x64xbf16, #tpu.memory_space<vmem>>, vector<1x64x64xbf16>
    %199 = vector.shape_cast %198 : vector<1x64x64xbf16> to vector<64x64xbf16>
    %cst_145 = arith.constant dense<0.000000e+00> : vector<64x64xf32>
    %200 = tpu.matmul %197, %199, %cst_145 {dimension_numbers = #tpu.dot_dimension_numbers<[1], [0], [0], [1], [0, 0, 1, 1], [], []>} : vector<64x64xbf16>, vector<64x64xbf16>, vector<64x64xf32> -> vector<64x64xf32>
    %201 = arith.addf %195, %200 : vector<64x64xf32>
    %202 = vector.broadcast %24 : vector<64x1xf32> to vector<64x64xf32>
    %203 = arith.mulf %201, %202 : vector<64x64xf32>
    %204 = arith.addf %194, %203 : vector<64x64xf32>
    %cst_146 = arith.constant 0.000000e+00 : f32
    %205 = vector.broadcast %cst_146 : f32 to vector<64x64xf32>
    %c1_147 = arith.constant 1 : index
    %c0_148 = arith.constant 0 : index
    %206 = vector.load %arg17[%c1_147, %c0_148] : memref<82x64xf32, #tpu.memory_space<vmem>>, vector<64x64xf32>
    %207 = arith.truncf %206 : vector<64x64xf32> to vector<64x64xbf16>
    %c1_149 = arith.constant 1 : index
    %c0_150 = arith.constant 0 : index
    %c0_151 = arith.constant 0 : index
    %208 = vector.load %arg10[%c1_149, %c0_150, %c0_151] : memref<9x64x64xbf16, #tpu.memory_space<vmem>>, vector<1x64x64xbf16>
    %209 = vector.shape_cast %208 : vector<1x64x64xbf16> to vector<64x64xbf16>
    %cst_152 = arith.constant dense<0.000000e+00> : vector<64x64xf32>
    %210 = tpu.matmul %207, %209, %cst_152 {dimension_numbers = #tpu.dot_dimension_numbers<[1], [0], [0], [1], [0, 0, 1, 1], [], []>} : vector<64x64xbf16>, vector<64x64xbf16>, vector<64x64xf32> -> vector<64x64xf32>
    %211 = arith.addf %205, %210 : vector<64x64xf32>
    %212 = arith.addf %204, %211 : vector<64x64xf32>
    %cst_153 = arith.constant 0.000000e+00 : f32
    %213 = vector.broadcast %cst_153 : f32 to vector<64x64xf32>
    %c2_154 = arith.constant 2 : index
    %c0_155 = arith.constant 0 : index
    %214 = vector.load %arg17[%c2_154, %c0_155] : memref<82x64xf32, #tpu.memory_space<vmem>>, vector<64x64xf32>
    %215 = arith.truncf %214 : vector<64x64xf32> to vector<64x64xbf16>
    %c2_156 = arith.constant 2 : index
    %c0_157 = arith.constant 0 : index
    %c0_158 = arith.constant 0 : index
    %216 = vector.load %arg10[%c2_156, %c0_157, %c0_158] : memref<9x64x64xbf16, #tpu.memory_space<vmem>>, vector<1x64x64xbf16>
    %217 = vector.shape_cast %216 : vector<1x64x64xbf16> to vector<64x64xbf16>
    %cst_159 = arith.constant dense<0.000000e+00> : vector<64x64xf32>
    %218 = tpu.matmul %215, %217, %cst_159 {dimension_numbers = #tpu.dot_dimension_numbers<[1], [0], [0], [1], [0, 0, 1, 1], [], []>} : vector<64x64xbf16>, vector<64x64xbf16>, vector<64x64xf32> -> vector<64x64xf32>
    %219 = arith.addf %213, %218 : vector<64x64xf32>
    %220 = vector.broadcast %28 : vector<64x1xf32> to vector<64x64xf32>
    %221 = arith.mulf %219, %220 : vector<64x64xf32>
    %222 = arith.addf %212, %221 : vector<64x64xf32>
    %cst_160 = arith.constant 0.000000e+00 : f32
    %223 = vector.broadcast %cst_160 : f32 to vector<64x64xf32>
    %c8_161 = arith.constant 8 : index
    %c0_162 = arith.constant 0 : index
    %224 = vector.load %arg17[%c8_161, %c0_162] : memref<82x64xf32, #tpu.memory_space<vmem>>, vector<64x64xf32>
    %225 = arith.truncf %224 : vector<64x64xf32> to vector<64x64xbf16>
    %c3_163 = arith.constant 3 : index
    %c0_164 = arith.constant 0 : index
    %c0_165 = arith.constant 0 : index
    %226 = vector.load %arg10[%c3_163, %c0_164, %c0_165] : memref<9x64x64xbf16, #tpu.memory_space<vmem>>, vector<1x64x64xbf16>
    %227 = vector.shape_cast %226 : vector<1x64x64xbf16> to vector<64x64xbf16>
    %cst_166 = arith.constant dense<0.000000e+00> : vector<64x64xf32>
    %228 = tpu.matmul %225, %227, %cst_166 {dimension_numbers = #tpu.dot_dimension_numbers<[1], [0], [0], [1], [0, 0, 1, 1], [], []>} : vector<64x64xbf16>, vector<64x64xbf16>, vector<64x64xf32> -> vector<64x64xf32>
    %229 = arith.addf %223, %228 : vector<64x64xf32>
    %230 = vector.broadcast %24 : vector<64x1xf32> to vector<64x64xf32>
    %231 = arith.mulf %229, %230 : vector<64x64xf32>
    %232 = arith.addf %222, %231 : vector<64x64xf32>
    %cst_167 = arith.constant 0.000000e+00 : f32
    %233 = vector.broadcast %cst_167 : f32 to vector<64x64xf32>
    %c9_168 = arith.constant 9 : index
    %c0_169 = arith.constant 0 : index
    %234 = vector.load %arg17[%c9_168, %c0_169] : memref<82x64xf32, #tpu.memory_space<vmem>>, vector<64x64xf32>
    %235 = arith.truncf %234 : vector<64x64xf32> to vector<64x64xbf16>
    %c4_170 = arith.constant 4 : index
    %c0_171 = arith.constant 0 : index
    %c0_172 = arith.constant 0 : index
    %236 = vector.load %arg10[%c4_170, %c0_171, %c0_172] : memref<9x64x64xbf16, #tpu.memory_space<vmem>>, vector<1x64x64xbf16>
    %237 = vector.shape_cast %236 : vector<1x64x64xbf16> to vector<64x64xbf16>
    %cst_173 = arith.constant dense<0.000000e+00> : vector<64x64xf32>
    %238 = tpu.matmul %235, %237, %cst_173 {dimension_numbers = #tpu.dot_dimension_numbers<[1], [0], [0], [1], [0, 0, 1, 1], [], []>} : vector<64x64xbf16>, vector<64x64xbf16>, vector<64x64xf32> -> vector<64x64xf32>
    %239 = arith.addf %233, %238 : vector<64x64xf32>
    %240 = arith.addf %232, %239 : vector<64x64xf32>
    %cst_174 = arith.constant 0.000000e+00 : f32
    %241 = vector.broadcast %cst_174 : f32 to vector<64x64xf32>
    %c10_175 = arith.constant 10 : index
    %c0_176 = arith.constant 0 : index
    %242 = vector.load %arg17[%c10_175, %c0_176] : memref<82x64xf32, #tpu.memory_space<vmem>>, vector<64x64xf32>
    %243 = arith.truncf %242 : vector<64x64xf32> to vector<64x64xbf16>
    %c5_177 = arith.constant 5 : index
    %c0_178 = arith.constant 0 : index
    %c0_179 = arith.constant 0 : index
    %244 = vector.load %arg10[%c5_177, %c0_178, %c0_179] : memref<9x64x64xbf16, #tpu.memory_space<vmem>>, vector<1x64x64xbf16>
    %245 = vector.shape_cast %244 : vector<1x64x64xbf16> to vector<64x64xbf16>
    %cst_180 = arith.constant dense<0.000000e+00> : vector<64x64xf32>
    %246 = tpu.matmul %243, %245, %cst_180 {dimension_numbers = #tpu.dot_dimension_numbers<[1], [0], [0], [1], [0, 0, 1, 1], [], []>} : vector<64x64xbf16>, vector<64x64xbf16>, vector<64x64xf32> -> vector<64x64xf32>
    %247 = arith.addf %241, %246 : vector<64x64xf32>
    %248 = vector.broadcast %28 : vector<64x1xf32> to vector<64x64xf32>
    %249 = arith.mulf %247, %248 : vector<64x64xf32>
    %250 = arith.addf %240, %249 : vector<64x64xf32>
    %cst_181 = arith.constant 0.000000e+00 : f32
    %251 = vector.broadcast %cst_181 : f32 to vector<64x64xf32>
    %c16_182 = arith.constant 16 : index
    %c0_183 = arith.constant 0 : index
    %252 = vector.load %arg17[%c16_182, %c0_183] : memref<82x64xf32, #tpu.memory_space<vmem>>, vector<64x64xf32>
    %253 = arith.truncf %252 : vector<64x64xf32> to vector<64x64xbf16>
    %c6_184 = arith.constant 6 : index
    %c0_185 = arith.constant 0 : index
    %c0_186 = arith.constant 0 : index
    %254 = vector.load %arg10[%c6_184, %c0_185, %c0_186] : memref<9x64x64xbf16, #tpu.memory_space<vmem>>, vector<1x64x64xbf16>
    %255 = vector.shape_cast %254 : vector<1x64x64xbf16> to vector<64x64xbf16>
    %cst_187 = arith.constant dense<0.000000e+00> : vector<64x64xf32>
    %256 = tpu.matmul %253, %255, %cst_187 {dimension_numbers = #tpu.dot_dimension_numbers<[1], [0], [0], [1], [0, 0, 1, 1], [], []>} : vector<64x64xbf16>, vector<64x64xbf16>, vector<64x64xf32> -> vector<64x64xf32>
    %257 = arith.addf %251, %256 : vector<64x64xf32>
    %258 = vector.broadcast %24 : vector<64x1xf32> to vector<64x64xf32>
    %259 = arith.mulf %257, %258 : vector<64x64xf32>
    %260 = arith.addf %250, %259 : vector<64x64xf32>
    %cst_188 = arith.constant 0.000000e+00 : f32
    %261 = vector.broadcast %cst_188 : f32 to vector<64x64xf32>
    %c17_189 = arith.constant 17 : index
    %c0_190 = arith.constant 0 : index
    %262 = vector.load %arg17[%c17_189, %c0_190] : memref<82x64xf32, #tpu.memory_space<vmem>>, vector<64x64xf32>
    %263 = arith.truncf %262 : vector<64x64xf32> to vector<64x64xbf16>
    %c7_191 = arith.constant 7 : index
    %c0_192 = arith.constant 0 : index
    %c0_193 = arith.constant 0 : index
    %264 = vector.load %arg10[%c7_191, %c0_192, %c0_193] : memref<9x64x64xbf16, #tpu.memory_space<vmem>>, vector<1x64x64xbf16>
    %265 = vector.shape_cast %264 : vector<1x64x64xbf16> to vector<64x64xbf16>
    %cst_194 = arith.constant dense<0.000000e+00> : vector<64x64xf32>
    %266 = tpu.matmul %263, %265, %cst_194 {dimension_numbers = #tpu.dot_dimension_numbers<[1], [0], [0], [1], [0, 0, 1, 1], [], []>} : vector<64x64xbf16>, vector<64x64xbf16>, vector<64x64xf32> -> vector<64x64xf32>
    %267 = arith.addf %261, %266 : vector<64x64xf32>
    %268 = arith.addf %260, %267 : vector<64x64xf32>
    %cst_195 = arith.constant 0.000000e+00 : f32
    %269 = vector.broadcast %cst_195 : f32 to vector<64x64xf32>
    %c18_196 = arith.constant 18 : index
    %c0_197 = arith.constant 0 : index
    %270 = vector.load %arg17[%c18_196, %c0_197] : memref<82x64xf32, #tpu.memory_space<vmem>>, vector<64x64xf32>
    %271 = arith.truncf %270 : vector<64x64xf32> to vector<64x64xbf16>
    %c8_198 = arith.constant 8 : index
    %c0_199 = arith.constant 0 : index
    %c0_200 = arith.constant 0 : index
    %272 = vector.load %arg10[%c8_198, %c0_199, %c0_200] : memref<9x64x64xbf16, #tpu.memory_space<vmem>>, vector<1x64x64xbf16>
    %273 = vector.shape_cast %272 : vector<1x64x64xbf16> to vector<64x64xbf16>
    %cst_201 = arith.constant dense<0.000000e+00> : vector<64x64xf32>
    %274 = tpu.matmul %271, %273, %cst_201 {dimension_numbers = #tpu.dot_dimension_numbers<[1], [0], [0], [1], [0, 0, 1, 1], [], []>} : vector<64x64xbf16>, vector<64x64xbf16>, vector<64x64xf32> -> vector<64x64xf32>
    %275 = arith.addf %269, %274 : vector<64x64xf32>
    %276 = vector.broadcast %28 : vector<64x1xf32> to vector<64x64xf32>
    %277 = arith.mulf %275, %276 : vector<64x64xf32>
    %278 = arith.addf %268, %277 : vector<64x64xf32>
    %c0_202 = arith.constant 0 : index
    %c0_203 = arith.constant 0 : index
    %279 = vector.load %arg11[%c0_202, %c0_203] : memref<1x64xf32, #tpu.memory_space<vmem>>, vector<1x64xf32>
    %280 = vector.broadcast %279 : vector<1x64xf32> to vector<64x64xf32>
    %281 = arith.mulf %278, %280 : vector<64x64xf32>
    %c0_204 = arith.constant 0 : index
    %c0_205 = arith.constant 0 : index
    %282 = vector.load %arg12[%c0_204, %c0_205] : memref<1x64xf32, #tpu.memory_space<vmem>>, vector<1x64xf32>
    %283 = vector.broadcast %282 : vector<1x64xf32> to vector<64x64xf32>
    %284 = arith.addf %281, %283 : vector<64x64xf32>
    %cst_206 = arith.constant 0.000000e+00 : f32
    %285 = vector.broadcast %cst_206 : f32 to vector<64x64xf32>
    %286 = arith.maximumf %284, %285 : vector<64x64xf32>
    %287 = arith.truncf %286 : vector<64x64xf32> to vector<64x64xbf16>
    %c0_207 = arith.constant 0 : index
    %c0_208 = arith.constant 0 : index
    %288 = vector.load %arg13[%c0_207, %c0_208] : memref<64x5xbf16, #tpu.memory_space<vmem>>, vector<64x5xbf16>
    %cst_209 = arith.constant dense<0.000000e+00> : vector<64x5xf32>
    %289 = tpu.matmul %287, %288, %cst_209 {dimension_numbers = #tpu.dot_dimension_numbers<[1], [0], [0], [1], [0, 0, 1, 1], [], []>} : vector<64x64xbf16>, vector<64x5xbf16>, vector<64x5xf32> -> vector<64x5xf32>
    %c0_210 = arith.constant 0 : index
    %c0_211 = arith.constant 0 : index
    %290 = vector.load %arg14[%c0_210, %c0_211] : memref<1x5xf32, #tpu.memory_space<vmem>>, vector<1x5xf32>
    %291 = vector.broadcast %290 : vector<1x5xf32> to vector<64x5xf32>
    %292 = arith.addf %289, %291 : vector<64x5xf32>
    %c0_212 = arith.constant 0 : index
    %c0_213 = arith.constant 0 : index
    %c0_214 = arith.constant 0 : index
    %293 = vector.load %arg15[%c0_212, %c0_213, %c0_214] : memref<1x64x5xf32, #tpu.memory_space<vmem>>, vector<1x64x5xf32>
    %294 = vector.shape_cast %293 : vector<1x64x5xf32> to vector<64x5xf32>
    %295 = vector.shape_cast %292 : vector<64x5xf32> to vector<1x64x5xf32>
    tpu.vector_store %arg15[%c0_212, %c0_213, %c0_214], %295 {strides = array<i32>} : memref<1x64x5xf32, #tpu.memory_space<vmem>>, vector<1x64x5xf32>,
    return
  }
  func.func @transform_0(%arg0: i32) -> (i32, i32, i32) {
    %c0_i32 = arith.constant 0 : i32
    %c0_i32_0 = arith.constant 0 : i32
    %c0_i32_1 = arith.constant 0 : i32
    return %arg0, %c0_i32, %c0_i32_0 : i32, i32, i32
  }
  func.func @transform_1(%arg0: i32) -> (i32, i32, i32) {
    %c0_i32 = arith.constant 0 : i32
    %c0_i32_0 = arith.constant 0 : i32
    %c0_i32_1 = arith.constant 0 : i32
    return %arg0, %c0_i32, %c0_i32_0 : i32, i32, i32
  }
  func.func @transform_2(%arg0: i32) -> (i32, i32) {
    %c0_i32 = arith.constant 0 : i32
    %c0_i32_0 = arith.constant 0 : i32
    %c0_i32_1 = arith.constant 0 : i32
    return %c0_i32, %c0_i32_0 : i32, i32
  }
  func.func @transform_3(%arg0: i32) -> (i32, i32) {
    %c0_i32 = arith.constant 0 : i32
    %c0_i32_0 = arith.constant 0 : i32
    %c0_i32_1 = arith.constant 0 : i32
    return %c0_i32, %c0_i32_0 : i32, i32
  }
  func.func @transform_4(%arg0: i32) -> (i32, i32) {
    %c0_i32 = arith.constant 0 : i32
    %c0_i32_0 = arith.constant 0 : i32
    %c0_i32_1 = arith.constant 0 : i32
    return %c0_i32, %c0_i32_0 : i32, i32
  }
  func.func @transform_5(%arg0: i32) -> (i32, i32, i32) {
    %c0_i32 = arith.constant 0 : i32
    %c0_i32_0 = arith.constant 0 : i32
    %c0_i32_1 = arith.constant 0 : i32
    %c0_i32_2 = arith.constant 0 : i32
    return %c0_i32, %c0_i32_0, %c0_i32_1 : i32, i32, i32
  }
  func.func @transform_6(%arg0: i32) -> (i32, i32, i32) {
    %c0_i32 = arith.constant 0 : i32
    %c0_i32_0 = arith.constant 0 : i32
    %c0_i32_1 = arith.constant 0 : i32
    %c0_i32_2 = arith.constant 0 : i32
    return %c0_i32, %c0_i32_0, %c0_i32_1 : i32, i32, i32
  }
  func.func @transform_7(%arg0: i32) -> (i32, i32) {
    %c0_i32 = arith.constant 0 : i32
    %c0_i32_0 = arith.constant 0 : i32
    %c0_i32_1 = arith.constant 0 : i32
    return %c0_i32, %c0_i32_0 : i32, i32
  }
  func.func @transform_8(%arg0: i32) -> (i32, i32) {
    %c0_i32 = arith.constant 0 : i32
    %c0_i32_0 = arith.constant 0 : i32
    %c0_i32_1 = arith.constant 0 : i32
    return %c0_i32, %c0_i32_0 : i32, i32
  }
  func.func @transform_9(%arg0: i32) -> (i32, i32, i32) {
    %c0_i32 = arith.constant 0 : i32
    %c0_i32_0 = arith.constant 0 : i32
    %c0_i32_1 = arith.constant 0 : i32
    %c0_i32_2 = arith.constant 0 : i32
    return %c0_i32, %c0_i32_0, %c0_i32_1 : i32, i32, i32
  }
  func.func @transform_10(%arg0: i32) -> (i32, i32) {
    %c0_i32 = arith.constant 0 : i32
    %c0_i32_0 = arith.constant 0 : i32
    %c0_i32_1 = arith.constant 0 : i32
    return %c0_i32, %c0_i32_0 : i32, i32
  }
  func.func @transform_11(%arg0: i32) -> (i32, i32) {
    %c0_i32 = arith.constant 0 : i32
    %c0_i32_0 = arith.constant 0 : i32
    %c0_i32_1 = arith.constant 0 : i32
    return %c0_i32, %c0_i32_0 : i32, i32
  }
  func.func @transform_12(%arg0: i32) -> (i32, i32) {
    %c0_i32 = arith.constant 0 : i32
    %c0_i32_0 = arith.constant 0 : i32
    %c0_i32_1 = arith.constant 0 : i32
    return %c0_i32, %c0_i32_0 : i32, i32
  }
  func.func @transform_13(%arg0: i32) -> (i32, i32) {
    %c0_i32 = arith.constant 0 : i32
    %c0_i32_0 = arith.constant 0 : i32
    %c0_i32_1 = arith.constant 0 : i32
    return %c0_i32, %c0_i32_0 : i32, i32
  }
  func.func @transform_14(%arg0: i32) -> (i32, i32, i32) {
    %c0_i32 = arith.constant 0 : i32
    %c0_i32_0 = arith.constant 0 : i32
    %c0_i32_1 = arith.constant 0 : i32
    return %arg0, %c0_i32, %c0_i32_0 : i32, i32, i32
  }
}

module attributes {stable_mosaic.version = 11 : i64} {
  func.func @_upsample_softmax_kernel(%arg0: i32, %arg1: i32, %arg2: memref<1x5x8x8xf32, #tpu.memory_space<vmem>>, %arg3: memref<64x8xf32, #tpu.memory_space<vmem>>, %arg4: memref<8x64xf32, #tpu.memory_space<vmem>>, %arg5: memref<1x5x64x64xf32, #tpu.memory_space<vmem>>) attributes {dimension_semantics = [#tpu.dimension_semantics<parallel>, #tpu.dimension_semantics<parallel>], iteration_bounds = array<i64: 2, 1>, scalar_prefetch = 0 : i64, scratch_operands = 0 : i64, tpu.core_type = #tpu.core_type<tc>, window_params = [{transform_indices = @transform_0, window_bounds = array<i64: 1, 5, 8, 8>}, {transform_indices = @transform_1, window_bounds = array<i64: 64, 8>}, {pipeline_mode = #tpu.pipeline_mode<synchronous>, transform_indices = @transform_2, window_bounds = array<i64: 8, 64>}, {transform_indices = @transform_3, window_bounds = array<i64: 1, 5, 64, 64>}]} {
    %c0 = arith.constant 0 : index
    %c0_0 = arith.constant 0 : index
    %0 = vector.load %arg3[%c0, %c0_0] : memref<64x8xf32, #tpu.memory_space<vmem>>, vector<64x8xf32>
    %c0_1 = arith.constant 0 : index
    %c0_2 = arith.constant 0 : index
    %1 = vector.load %arg4[%c0_1, %c0_2] : memref<8x64xf32, #tpu.memory_space<vmem>>, vector<8x64xf32>
    %c0_3 = arith.constant 0 : index
    %c0_4 = arith.constant 0 : index
    %c0_5 = arith.constant 0 : index
    %c0_6 = arith.constant 0 : index
    %2 = vector.load %arg2[%c0_3, %c0_4, %c0_5, %c0_6] : memref<1x5x8x8xf32, #tpu.memory_space<vmem>>, vector<1x1x8x8xf32>
    %3 = vector.shape_cast %2 : vector<1x1x8x8xf32> to vector<8x8xf32>
    %cst = arith.constant dense<0.000000e+00> : vector<8x64xf32>
    %4 = tpu.matmul %3, %1, %cst {dimension_numbers = #tpu.dot_dimension_numbers<[1], [0], [0], [1], [0, 0, 1, 1], [], []>} : vector<8x8xf32>, vector<8x64xf32>, vector<8x64xf32> -> vector<8x64xf32>
    %cst_7 = arith.constant dense<0.000000e+00> : vector<64x64xf32>
    %5 = tpu.matmul %0, %4, %cst_7 {dimension_numbers = #tpu.dot_dimension_numbers<[1], [0], [0], [1], [0, 0, 1, 1], [], []>} : vector<64x8xf32>, vector<8x64xf32>, vector<64x64xf32> -> vector<64x64xf32>
    %c0_8 = arith.constant 0 : index
    %c1 = arith.constant 1 : index
    %c0_9 = arith.constant 0 : index
    %c0_10 = arith.constant 0 : index
    %6 = vector.load %arg2[%c0_8, %c1, %c0_9, %c0_10] : memref<1x5x8x8xf32, #tpu.memory_space<vmem>>, vector<1x1x8x8xf32>
    %7 = vector.shape_cast %6 : vector<1x1x8x8xf32> to vector<8x8xf32>
    %cst_11 = arith.constant dense<0.000000e+00> : vector<8x64xf32>
    %8 = tpu.matmul %7, %1, %cst_11 {dimension_numbers = #tpu.dot_dimension_numbers<[1], [0], [0], [1], [0, 0, 1, 1], [], []>} : vector<8x8xf32>, vector<8x64xf32>, vector<8x64xf32> -> vector<8x64xf32>
    %cst_12 = arith.constant dense<0.000000e+00> : vector<64x64xf32>
    %9 = tpu.matmul %0, %8, %cst_12 {dimension_numbers = #tpu.dot_dimension_numbers<[1], [0], [0], [1], [0, 0, 1, 1], [], []>} : vector<64x8xf32>, vector<8x64xf32>, vector<64x64xf32> -> vector<64x64xf32>
    %c0_13 = arith.constant 0 : index
    %c2 = arith.constant 2 : index
    %c0_14 = arith.constant 0 : index
    %c0_15 = arith.constant 0 : index
    %10 = vector.load %arg2[%c0_13, %c2, %c0_14, %c0_15] : memref<1x5x8x8xf32, #tpu.memory_space<vmem>>, vector<1x1x8x8xf32>
    %11 = vector.shape_cast %10 : vector<1x1x8x8xf32> to vector<8x8xf32>
    %cst_16 = arith.constant dense<0.000000e+00> : vector<8x64xf32>
    %12 = tpu.matmul %11, %1, %cst_16 {dimension_numbers = #tpu.dot_dimension_numbers<[1], [0], [0], [1], [0, 0, 1, 1], [], []>} : vector<8x8xf32>, vector<8x64xf32>, vector<8x64xf32> -> vector<8x64xf32>
    %cst_17 = arith.constant dense<0.000000e+00> : vector<64x64xf32>
    %13 = tpu.matmul %0, %12, %cst_17 {dimension_numbers = #tpu.dot_dimension_numbers<[1], [0], [0], [1], [0, 0, 1, 1], [], []>} : vector<64x8xf32>, vector<8x64xf32>, vector<64x64xf32> -> vector<64x64xf32>
    %c0_18 = arith.constant 0 : index
    %c3 = arith.constant 3 : index
    %c0_19 = arith.constant 0 : index
    %c0_20 = arith.constant 0 : index
    %14 = vector.load %arg2[%c0_18, %c3, %c0_19, %c0_20] : memref<1x5x8x8xf32, #tpu.memory_space<vmem>>, vector<1x1x8x8xf32>
    %15 = vector.shape_cast %14 : vector<1x1x8x8xf32> to vector<8x8xf32>
    %cst_21 = arith.constant dense<0.000000e+00> : vector<8x64xf32>
    %16 = tpu.matmul %15, %1, %cst_21 {dimension_numbers = #tpu.dot_dimension_numbers<[1], [0], [0], [1], [0, 0, 1, 1], [], []>} : vector<8x8xf32>, vector<8x64xf32>, vector<8x64xf32> -> vector<8x64xf32>
    %cst_22 = arith.constant dense<0.000000e+00> : vector<64x64xf32>
    %17 = tpu.matmul %0, %16, %cst_22 {dimension_numbers = #tpu.dot_dimension_numbers<[1], [0], [0], [1], [0, 0, 1, 1], [], []>} : vector<64x8xf32>, vector<8x64xf32>, vector<64x64xf32> -> vector<64x64xf32>
    %c0_23 = arith.constant 0 : index
    %c4 = arith.constant 4 : index
    %c0_24 = arith.constant 0 : index
    %c0_25 = arith.constant 0 : index
    %18 = vector.load %arg2[%c0_23, %c4, %c0_24, %c0_25] : memref<1x5x8x8xf32, #tpu.memory_space<vmem>>, vector<1x1x8x8xf32>
    %19 = vector.shape_cast %18 : vector<1x1x8x8xf32> to vector<8x8xf32>
    %cst_26 = arith.constant dense<0.000000e+00> : vector<8x64xf32>
    %20 = tpu.matmul %19, %1, %cst_26 {dimension_numbers = #tpu.dot_dimension_numbers<[1], [0], [0], [1], [0, 0, 1, 1], [], []>} : vector<8x8xf32>, vector<8x64xf32>, vector<8x64xf32> -> vector<8x64xf32>
    %cst_27 = arith.constant dense<0.000000e+00> : vector<64x64xf32>
    %21 = tpu.matmul %0, %20, %cst_27 {dimension_numbers = #tpu.dot_dimension_numbers<[1], [0], [0], [1], [0, 0, 1, 1], [], []>} : vector<64x8xf32>, vector<8x64xf32>, vector<64x64xf32> -> vector<64x64xf32>
    %22 = arith.maximumf %5, %9 : vector<64x64xf32>
    %23 = arith.maximumf %22, %13 : vector<64x64xf32>
    %24 = arith.maximumf %23, %17 : vector<64x64xf32>
    %25 = arith.maximumf %24, %21 : vector<64x64xf32>
    %26 = arith.subf %5, %25 : vector<64x64xf32>
    %27 = math.exp %26 : vector<64x64xf32>
    %28 = arith.subf %9, %25 : vector<64x64xf32>
    %29 = math.exp %28 : vector<64x64xf32>
    %30 = arith.subf %13, %25 : vector<64x64xf32>
    %31 = math.exp %30 : vector<64x64xf32>
    %32 = arith.subf %17, %25 : vector<64x64xf32>
    %33 = math.exp %32 : vector<64x64xf32>
    %34 = arith.subf %21, %25 : vector<64x64xf32>
    %35 = math.exp %34 : vector<64x64xf32>
    %36 = arith.addf %27, %29 : vector<64x64xf32>
    %37 = arith.addf %36, %31 : vector<64x64xf32>
    %38 = arith.addf %37, %33 : vector<64x64xf32>
    %39 = arith.addf %38, %35 : vector<64x64xf32>
    %cst_28 = arith.constant 1.000000e+00 : f32
    %40 = vector.broadcast %cst_28 : f32 to vector<64x64xf32>
    %41 = arith.divf %40, %39 : vector<64x64xf32>
    %42 = arith.mulf %27, %41 : vector<64x64xf32>
    %c0_29 = arith.constant 0 : index
    %c0_30 = arith.constant 0 : index
    %c0_31 = arith.constant 0 : index
    %c0_32 = arith.constant 0 : index
    %43 = vector.load %arg5[%c0_29, %c0_30, %c0_31, %c0_32] : memref<1x5x64x64xf32, #tpu.memory_space<vmem>>, vector<1x1x64x64xf32>
    %44 = vector.shape_cast %43 : vector<1x1x64x64xf32> to vector<64x64xf32>
    %45 = vector.shape_cast %42 : vector<64x64xf32> to vector<1x1x64x64xf32>
    tpu.vector_store %arg5[%c0_29, %c0_30, %c0_31, %c0_32], %45 {strides = array<i32>} : memref<1x5x64x64xf32, #tpu.memory_space<vmem>>, vector<1x1x64x64xf32>,
    %46 = arith.mulf %29, %41 : vector<64x64xf32>
    %c0_33 = arith.constant 0 : index
    %c1_34 = arith.constant 1 : index
    %c0_35 = arith.constant 0 : index
    %c0_36 = arith.constant 0 : index
    %47 = vector.load %arg5[%c0_33, %c1_34, %c0_35, %c0_36] : memref<1x5x64x64xf32, #tpu.memory_space<vmem>>, vector<1x1x64x64xf32>
    %48 = vector.shape_cast %47 : vector<1x1x64x64xf32> to vector<64x64xf32>
    %49 = vector.shape_cast %46 : vector<64x64xf32> to vector<1x1x64x64xf32>
    tpu.vector_store %arg5[%c0_33, %c1_34, %c0_35, %c0_36], %49 {strides = array<i32>} : memref<1x5x64x64xf32, #tpu.memory_space<vmem>>, vector<1x1x64x64xf32>,
    %50 = arith.mulf %31, %41 : vector<64x64xf32>
    %c0_37 = arith.constant 0 : index
    %c2_38 = arith.constant 2 : index
    %c0_39 = arith.constant 0 : index
    %c0_40 = arith.constant 0 : index
    %51 = vector.load %arg5[%c0_37, %c2_38, %c0_39, %c0_40] : memref<1x5x64x64xf32, #tpu.memory_space<vmem>>, vector<1x1x64x64xf32>
    %52 = vector.shape_cast %51 : vector<1x1x64x64xf32> to vector<64x64xf32>
    %53 = vector.shape_cast %50 : vector<64x64xf32> to vector<1x1x64x64xf32>
    tpu.vector_store %arg5[%c0_37, %c2_38, %c0_39, %c0_40], %53 {strides = array<i32>} : memref<1x5x64x64xf32, #tpu.memory_space<vmem>>, vector<1x1x64x64xf32>,
    %54 = arith.mulf %33, %41 : vector<64x64xf32>
    %c0_41 = arith.constant 0 : index
    %c3_42 = arith.constant 3 : index
    %c0_43 = arith.constant 0 : index
    %c0_44 = arith.constant 0 : index
    %55 = vector.load %arg5[%c0_41, %c3_42, %c0_43, %c0_44] : memref<1x5x64x64xf32, #tpu.memory_space<vmem>>, vector<1x1x64x64xf32>
    %56 = vector.shape_cast %55 : vector<1x1x64x64xf32> to vector<64x64xf32>
    %57 = vector.shape_cast %54 : vector<64x64xf32> to vector<1x1x64x64xf32>
    tpu.vector_store %arg5[%c0_41, %c3_42, %c0_43, %c0_44], %57 {strides = array<i32>} : memref<1x5x64x64xf32, #tpu.memory_space<vmem>>, vector<1x1x64x64xf32>,
    %58 = arith.mulf %35, %41 : vector<64x64xf32>
    %c0_45 = arith.constant 0 : index
    %c4_46 = arith.constant 4 : index
    %c0_47 = arith.constant 0 : index
    %c0_48 = arith.constant 0 : index
    %59 = vector.load %arg5[%c0_45, %c4_46, %c0_47, %c0_48] : memref<1x5x64x64xf32, #tpu.memory_space<vmem>>, vector<1x1x64x64xf32>
    %60 = vector.shape_cast %59 : vector<1x1x64x64xf32> to vector<64x64xf32>
    %61 = vector.shape_cast %58 : vector<64x64xf32> to vector<1x1x64x64xf32>
    tpu.vector_store %arg5[%c0_45, %c4_46, %c0_47, %c0_48], %61 {strides = array<i32>} : memref<1x5x64x64xf32, #tpu.memory_space<vmem>>, vector<1x1x64x64xf32>,
    return
  }
  func.func @transform_0(%arg0: i32, %arg1: i32) -> (i32, i32, i32, i32) {
    %c0_i32 = arith.constant 0 : i32
    %c0_i32_0 = arith.constant 0 : i32
    %c0_i32_1 = arith.constant 0 : i32
    %c0_i32_2 = arith.constant 0 : i32
    return %arg0, %c0_i32, %c0_i32_0, %c0_i32_1 : i32, i32, i32, i32
  }
  func.func @transform_1(%arg0: i32, %arg1: i32) -> (i32, i32) {
    %c0_i32 = arith.constant 0 : i32
    %c0_i32_0 = arith.constant 0 : i32
    return %arg1, %c0_i32 : i32, i32
  }
  func.func @transform_2(%arg0: i32, %arg1: i32) -> (i32, i32) {
    %c0_i32 = arith.constant 0 : i32
    %c0_i32_0 = arith.constant 0 : i32
    %c0_i32_1 = arith.constant 0 : i32
    return %c0_i32, %c0_i32_0 : i32, i32
  }
  func.func @transform_3(%arg0: i32, %arg1: i32) -> (i32, i32, i32, i32) {
    %c0_i32 = arith.constant 0 : i32
    %c0_i32_0 = arith.constant 0 : i32
    %c0_i32_1 = arith.constant 0 : i32
    return %arg0, %c0_i32, %arg1, %c0_i32_0 : i32, i32, i32, i32
  }
}

</mosaic_0001>

<bundles_post_ra>
// kernel: deeplabv3_forward.4
= control target key start
LH: loop header
LB: loop body
LE: loop exit
PB: predicated region body
PF: predicated region fallthrough
CT: control target
= control target key end

     0   :  { %s920_s27 = smov 0   ;;  %s1079_s0 = inlined_call_operand.vmem [shape: bf16[2,64,3], index: 0, kind: input, shape index: {}]   ;;  %s1080_s1 = inlined_call_operand.vmem [shape: bf16[3,320], index: 1, kind: input, shape index: {}]   ;;  %s1081_s2 = inlined_call_operand.vmem [shape: f32[1,320], index: 2, kind: input, shape index: {}]   ;;  %s1082_s3 = inlined_call_operand.vmem [shape: f32[1,320], index: 3, kind: input, shape index: {}]   ;;  %s1083_s4 = inlined_call_operand.vmem [shape: bf16[64,48], index: 4, kind: input, shape index: {}]   ;;  %s1084_s5 = inlined_call_operand.vmem [shape: f32[1,48], index: 5, kind: input, shape index: {}]   ;;  %s1085_s6 = inlined_call_operand.vmem [shape: f32[1,48], index: 6, kind: input, shape index: {}]   ;;  %s1086_s7 = inlined_call_operand.vmem [shape: bf16[2,64,256], index: 7, kind: output, shape index: {0}]   ;;  %s1087_s8 = inlined_call_operand.vmem [shape: bf16[2,64,48], index: 8, kind: output, shape index: {1}]  }
   0x1 LB: > { %s783_s28 = sadd.s32 4294967295, %s872_s27   ;;  %p787_p0 = scmp.ge.s32.totalorder %s872_s27, 1  ;;  %s872_s27 = sphi %s920_s27, %s19_s27  }
   0x2   : > { %p265_p1 = scmp.lt.s32.totalorder %s872_s27, 3 }
   0x4   : > { %p266_p2 = pnand %p787_p0, %p265_p1 }
   0x5   : > { %p304_p3 = scmp.lt.s32.totalorder (!%p266_p2), %s783_s28, 1 }
   0x6   : > { %269 = sbr.rel (%p266_p2) target bundleno = 370 (0x172), region = 48 }
   0xb   : > { %v328_v0 = vld [vmem:[%s1080_s1] sm:$0x3f]  ;;  %vm367_vm0 = vcmask 1040384   ;;  %s1089_s28 = smov (!%p304_p3, %s783_s28), 1  ;;  %vm368_vm1 = vcmask 1041408   ;;  %v874_v1 = vmov 65535  }
   0xc   : > { %350 = vst [vmem:[#allocation1] ss:$4 sm:$0xff] %v328_v0  ;;  %v369_v2 = vsel %vm367_vm0, 4294967295, %v874_v1  ;;  %s844_s9 = sshll.u32 %s1089_s28, 5  ;;  %vm354_vm2 = vcmask 23552   ;;  %v854_v10 = vld [vmem:[%s1083_s4 + $0x18] sm:$0xff] }
   0xd   : > { %v370_v3 = vsel %vm368_vm1, %v369_v2, 0  ;;  %s308_s12 = scalar_lea.vmem %s1079_s0, %s844_s9  ;;  %605 = vmatpush.bf16.msra.mxu3 %v854_v10  ;;  %v853_v11 = vld [vmem:[%s1083_s4 + $0x10] sm:$0xff]  ;;  %v852_v12 = vld [vmem:[%s1083_s4 + $0x8] sm:$0xff]  ;;  %v851_v17 = vld [vmem:[%s1083_s4] sm:$0xff]  ;;  %vm588_vm3 = vcmask 523264   ;;  %s845_s25 = sshll.u32 %s1089_s28, 6 }
   0xe   : > { %v847_v6 = vld [vmem:[%s308_s12] sm:$0xff]  ;;  %v848_v7 = vld [vmem:[%s308_s12 + $0x8] sm:$0xff]  ;;  %v849_v8 = vld [vmem:[%s308_s12 + $0x10] sm:$0xff]  ;;  %s989_s30 = scalar_lea.vmem %s1086_s7, %s845_s25  ;;  %s1033_s16 = scalar_lea.vmem %s1087_s8, %s844_s9  ;;  %vm686_vm4 = vcmask 388096  }
   0xf   : > { %v850_v9 = vld [vmem:[%s308_s12 + $0x18] sm:$0xff]  ;;  %v464_v18 = vld [vmem:[%s1081_s2] sm:$0x7] }
  0x10   : > { %v468_v20 = vperm.slane %v464_v18, 2  ;;  %v496_v21 = vld [vmem:[%s1082_s3] sm:$0x7]  ;;  %v973_v58 = vperm.slane %v464_v18, 0  ;;  %v975_v59 = vperm.slane %v464_v18, 1 }
  0x11   : > { %606 = vmatpush.bf16.msra.mxu3 %v853_v11  ;;  %v500_v23 = vperm.slane %v496_v21, 2  ;;  %v977_v60 = vperm.slane %v496_v21, 0  ;;  %v979_v61 = vperm.slane %v496_v21, 1 }
  0x13   : > { %v353_v4 = vld.sshfl [vmem:[#allocation1 + $0x10] sm:$0xff pattern:$0x73625140]  ;;  %v351_v13 = vld.sshfl [vmem:[#allocation1] sm:$0xff pattern:$0x73625140] }
  0x14   : > { %v375_v5 = vand.u32 %v370_v3, %v353_v4  ;;  %v352_v14 = vld.sshfl [vmem:[#allocation1 + $0x8] sm:$0xff pattern:$0x73625140]  ;;  %v371_v15 = vand.u32 %v370_v3, %v351_v13 }
  0x15   : > { %607 = vmatpush.bf16.msra.mxu3 %v852_v12  ;;  %v373_v16 = vand.u32 %v370_v3, %v352_v14 }
  0x16   : > { %442 = vmatpush.bf16.msra.mxu2 %v375_v5  ;;  %384 = vmatpush.bf16.msra.mxu0 %v371_v15 }
  0x17   : > { %413 = vmatpush.bf16.msra.mxu1 %v373_v16 }
  0x19   : > { %818 = vmatmul.msk.bf16.vlgmr.msra.gmra.mxu2 %vm354_vm2, %v847_v6  ;;  %608 = vmatpush.bf16.msra.mxu3 %v851_v17 }
  0x1a   : > { %810 = vmatmul.msk.bf16.vlgmr.msra.gmra.mxu0 %vm354_vm2, %v847_v6  ;;  %814 = vmatmul.msk.bf16.vlgmr.msra.gmra.mxu1 %vm354_vm2, %v847_v6 }
  0x29   : > { %819 = vmatmul.msk.bf16.gmra.mxu2 %vm354_vm2, %v848_v7 }
  0x2a   : > { %811 = vmatmul.msk.bf16.gmra.mxu0 %vm354_vm2, %v848_v7  ;;  %815 = vmatmul.msk.bf16.gmra.mxu1 %vm354_vm2, %v848_v7 }
  0x39   : > { %820 = vmatmul.msk.bf16.gmra.mxu2 %vm354_vm2, %v849_v8 }
  0x3a   : > { %812 = vmatmul.msk.bf16.gmra.mxu0 %vm354_vm2, %v849_v8  ;;  %816 = vmatmul.msk.bf16.gmra.mxu1 %vm354_vm2, %v849_v8 }
  0x49   : > { %821 = vmatmul.msk.bf16.gmra.mxu2 %vm354_vm2, %v850_v9 }
  0x4a   : > { %813 = vmatmul.msk.bf16.gmra.mxu0 %vm354_vm2, %v850_v9  ;;  %817 = vmatmul.msk.bf16.gmra.mxu1 %vm354_vm2, %v850_v9 }
  0x97   : > { %v386_v62 = vpop.f32.mrf.mxu0  ;;  %v415_v63 = vpop.f32.mrf.mxu1 }
  0x98   : > { %v472_v0 = vmul.f32 %v973_v58, %v386_v62  ;;  %v473_v1 = vmul.f32 %v975_v59, %v415_v63 }
  0x9a   : > { %v504_v2 = vadd.f32 %v977_v60, %v472_v0  ;;  %v505_v3 = vadd.f32 %v979_v61, %v473_v1 }
  0x9c   : > { %v444_v19 = vpop.f32.mrf.mxu2  ;;  %v528_v4 = vmax.f32 %v504_v2, 0.0  ;;  %v529_v5 = vmax.f32 %v505_v3, 0.0 }
  0x9d   : > { %v474_v22 = vmul.f32 %v468_v20, %v444_v19 }
  0x9e   : > { %v662_v6 = vpack.c.bf16 %v529_v5, %v528_v4 }
  0x9f   : > { %v506_v25 = vadd.f32 %v500_v23, %v474_v22  ;;  %v388_v7 = vpop.f32.mrf.mxu0  ;;  %v417_v8 = vpop.f32.mrf.mxu1 }
  0xa0   : > { %670 = vst [vmem:[%s989_s30] sm:$0xff] %v662_v6  ;;  %v475_v9 = vmul.f32 %v973_v58, %v388_v7  ;;  %v476_v10 = vmul.f32 %v975_v59, %v417_v8 }
  0xa1   : > { %v530_v28 = vmax.f32 %v506_v25, 0.0 }
  0xa2   : > { %v507_v11 = vadd.f32 %v977_v60, %v475_v9  ;;  %v508_v12 = vadd.f32 %v979_v61, %v476_v10 }
  0xa4   : > { %v446_v24 = vpop.f32.mrf.mxu2  ;;  %v531_v13 = vmax.f32 %v507_v11, 0.0  ;;  %v532_v14 = vmax.f32 %v508_v12, 0.0 }
  0xa5   : > { %v477_v26 = vmul.f32 %v468_v20, %v446_v24 }
  0xa6   : > { %v663_v15 = vpack.c.bf16 %v532_v14, %v531_v13 }
  0xa7   : > { %v509_v27 = vadd.f32 %v500_v23, %v477_v26  ;;  %v391_v16 = vpop.f32.mrf.mxu0  ;;  %v420_v17 = vpop.f32.mrf.mxu1 }
  0xa8   : > { %671 = vst [vmem:[%s989_s30 + $0x8] sm:$0xff] %v663_v15  ;;  %v478_v18 = vmul.f32 %v973_v58, %v391_v16  ;;  %v479_v19 = vmul.f32 %v975_v59, %v420_v17 }
  0xa9   : > { %v533_v29 = vmax.f32 %v509_v27, 0.0 }
  0xaa   : > { %v511_v21 = vadd.f32 %v979_v61, %v479_v19 }
  0xab   : > { %v552_v30 = vpack.c.bf16 %v533_v29, %v530_v28 }
  0xac   : > { %v449_v31 = vpop.f32.mrf.mxu2 }
  0xad   : > { %838 = vmatmul.msk.bf16.vlgmr.msra.gmra.mxu3 %vm588_vm3, %v552_v30  ;;  %v480_v32 = vmul.f32 %v468_v20, %v449_v31 }
  0xaf   : > { %v512_v34 = vadd.f32 %v500_v23, %v480_v32  ;;  %v393_v25 = vpop.f32.mrf.mxu0  ;;  %v422_v26 = vpop.f32.mrf.mxu1 }
  0xb0   : > { %v481_v27 = vmul.f32 %v973_v58, %v393_v25  ;;  %v482_v28 = vmul.f32 %v975_v59, %v422_v26 }
  0xb1   : > { %v536_v37 = vmax.f32 %v512_v34, 0.0 }
  0xb2   : > { %v513_v29 = vadd.f32 %v977_v60, %v481_v27  ;;  %v514_v30 = vadd.f32 %v979_v61, %v482_v28 }
  0xb4   : > { %v451_v33 = vpop.f32.mrf.mxu2  ;;  %v537_v31 = vmax.f32 %v513_v29, 0.0  ;;  %v538_v32 = vmax.f32 %v514_v30, 0.0 }
  0xb5   : > { %v483_v35 = vmul.f32 %v468_v20, %v451_v33 }
  0xb6   : > { %v665_v33 = vpack.c.bf16 %v538_v32, %v537_v31 }
  0xb7   : > { %v515_v36 = vadd.f32 %v500_v23, %v483_v35  ;;  %v396_v34 = vpop.f32.mrf.mxu0  ;;  %v425_v35 = vpop.f32.mrf.mxu1 }
  0xb8   : > { %673 = vst [vmem:[%s989_s30 + $0x18] sm:$0xff] %v665_v33 }
  0xb9   : > { %v539_v38 = vmax.f32 %v515_v36, 0.0  ;;  %v484_v36 = vmul.f32 %v973_v58, %v396_v34 }
  0xbb   : > { %v553_v39 = vpack.c.bf16 %v539_v38, %v536_v37  ;;  %v485_v37 = vmul.f32 %v975_v59, %v425_v35  ;;  %v516_v38 = vadd.f32 %v977_v60, %v484_v36 }
  0xbc   : > { %v454_v40 = vpop.f32.mrf.mxu2 }
  0xbd   : > { %839 = vmatmul.msk.bf16.gmra.mxu3 %vm588_vm3, %v553_v39  ;;  %v486_v41 = vmul.f32 %v468_v20, %v454_v40  ;;  %v517_v39 = vadd.f32 %v979_v61, %v485_v37  ;;  %v1014_v40 = vld [vmem:[%s1084_s5] ss:$0 sm:$0xff] }
  0xbf   : > { %v518_v43 = vadd.f32 %v500_v23, %v486_v41  ;;  %v540_v41 = vmax.f32 %v516_v38, 0.0 }
  0xc1   : > { %v542_v46 = vmax.f32 %v518_v43, 0.0  ;;  %v1019_v43 = vld [vmem:[%s1085_s6] ss:$0 sm:$0xff] }
  0xc4   : > { %v456_v42 = vpop.f32.mrf.mxu2 }
  0xc5   : > { %v489_v44 = vmul.f32 %v468_v20, %v456_v42  ;;  %v541_v42 = vmax.f32 %v517_v39, 0.0 }
  0xc7   : > { %v521_v45 = vadd.f32 %v500_v23, %v489_v44  ;;  %v666_v44 = vpack.c.bf16 %v541_v42, %v540_v41 }
  0xc9   : > { %v545_v47 = vmax.f32 %v521_v45, 0.0  ;;  %674 = vst [vmem:[%s989_s30 + $0x20] sm:$0xff] %v666_v44 }
  0xcb   : > { %v554_v48 = vpack.c.bf16 %v545_v47, %v542_v46  ;;  %v398_v46 = vpop.f32.mrf.mxu0 }
  0xcc   : > { %v459_v49 = vpop.f32.mrf.mxu2 }
  0xcd   : > { %840 = vmatmul.msk.bf16.gmra.mxu3 %vm588_vm3, %v554_v48  ;;  %v492_v50 = vmul.f32 %v468_v20, %v459_v49  ;;  %v487_v48 = vmul.f32 %v973_v58, %v398_v46  ;;  %v427_v49 = vpop.f32.mrf.mxu1 }
  0xcf   : > { %v524_v52 = vadd.f32 %v500_v23, %v492_v50  ;;  %v488_v50 = vmul.f32 %v975_v59, %v427_v49 }
  0xd1   : > { %v548_v55 = vmax.f32 %v524_v52, 0.0  ;;  %v519_v52 = vadd.f32 %v977_v60, %v487_v48 }
  0xd3   : > { %v401_v0 = vpop.f32.mrf.mxu0 }
  0xd4   : > { %v461_v51 = vpop.f32.mrf.mxu2  ;;  %v490_v2 = vmul.f32 %v973_v58, %v401_v0 }
  0xd5   : > { %v495_v53 = vmul.f32 %v468_v20, %v461_v51  ;;  %v510_v20 = vadd.f32 %v977_v60, %v478_v18  ;;  %v430_v3 = vpop.f32.mrf.mxu1 }
  0xd6   : > { %v491_v4 = vmul.f32 %v975_v59, %v430_v3  ;;  %v522_v6 = vadd.f32 %v977_v60, %v490_v2 }
  0xd7   : > { %v527_v54 = vadd.f32 %v500_v23, %v495_v53  ;;  %v534_v22 = vmax.f32 %v510_v20, 0.0  ;;  %v535_v23 = vmax.f32 %v511_v21, 0.0  ;;  %v520_v53 = vadd.f32 %v979_v61, %v488_v50 }
  0xd8   : > { %v523_v7 = vadd.f32 %v979_v61, %v491_v4  ;;  %v546_v9 = vmax.f32 %v522_v6, 0.0 }
  0xd9   : > { %v551_v56 = vmax.f32 %v527_v54, 0.0  ;;  %v664_v24 = vpack.c.bf16 %v535_v23, %v534_v22 }
  0xda   : > { %v547_v10 = vmax.f32 %v523_v7, 0.0 }
  0xdb   : > { %v555_v57 = vpack.c.bf16 %v551_v56, %v548_v55  ;;  %672 = vst [vmem:[%s989_s30 + $0x10] sm:$0xff] %v664_v24  ;;  %v543_v55 = vmax.f32 %v519_v52, 0.0  ;;  %v544_v56 = vmax.f32 %v520_v53, 0.0  ;;  %v403_v14 = vpop.f32.mrf.mxu0 }
  0xdc   : > { %v668_v13 = vpack.c.bf16 %v547_v10, %v546_v9  ;;  %v493_v16 = vmul.f32 %v973_v58, %v403_v14 }
  0xdd   : > { %841 = vmatmul.msk.bf16.gmra.mxu3 %vm588_vm3, %v555_v57  ;;  %v667_v63 = vpack.c.bf16 %v544_v56, %v543_v55  ;;  %v432_v17 = vpop.f32.mrf.mxu1 }
  0xde   : > { %676 = vst [vmem:[%s989_s30 + $0x30] sm:$0xff] %v668_v13  ;;  %v494_v18 = vmul.f32 %v975_v59, %v432_v17  ;;  %v525_v20 = vadd.f32 %v977_v60, %v493_v16 }
  0xdf   : > { %675 = vst [vmem:[%s989_s30 + $0x28] sm:$0xff] %v667_v63 }
  0xe0   : > { %v526_v21 = vadd.f32 %v979_v61, %v494_v18  ;;  %v549_v23 = vmax.f32 %v525_v20, 0.0 }
  0xe2   : > { %v550_v24 = vmax.f32 %v526_v21, 0.0 }
  0xe4   : > { %v669_v27 = vpack.c.bf16 %v550_v24, %v549_v23 }
  0xe6   : > { %677 = vst [vmem:[%s989_s30 + $0x38] sm:$0xff] %v669_v27 }
 0x130   : > { %v610_v45 = vpop.f32.mrf.mxu3 }
 0x131   : > { %v634_v47 = vmul.f32 %v1014_v40, %v610_v45 }
 0x133   : > { %v646_v51 = vadd.f32 %v1019_v43, %v634_v47 }
 0x135   : > { %v654_v54 = vmax.f32 %v646_v51, 0.0 }
 0x137   : > { %v678_v57 = vpack.c.bf16 %v654_v54, %v654_v54 }
 0x138   : > { %v612_v62 = vpop.f32.mrf.mxu3 }
 0x139   : > { %687 = vst.msk [vmem:[%s1033_s16] sm:$0xf] %vm686_vm4, %v678_v57  ;;  %v635_v1 = vmul.f32 %v1014_v40, %v612_v62 }
 0x13b   : > { %v647_v5 = vadd.f32 %v1019_v43, %v635_v1 }
 0x13d   : > { %v655_v8 = vmax.f32 %v647_v5, 0.0 }
 0x13f   : > { %v679_v11 = vpack.c.bf16 %v655_v8, %v655_v8 }
 0x140   : > { %v615_v12 = vpop.f32.mrf.mxu3 }
 0x141   : > { %688 = vst.msk [vmem:[%s1033_s16 + $0x4] sm:$0xf] %vm686_vm4, %v679_v11  ;;  %v636_v15 = vmul.f32 %v1014_v40, %v615_v12 }
 0x143   : > { %v648_v19 = vadd.f32 %v1019_v43, %v636_v15 }
 0x145   : > { %v656_v22 = vmax.f32 %v648_v19, 0.0 }
 0x147   : > { %v680_v25 = vpack.c.bf16 %v656_v22, %v656_v22 }
 0x148   : > { %v617_v26 = vpop.f32.mrf.mxu3 }
 0x149   : > { %689 = vst.msk [vmem:[%s1033_s16 + $0x8] sm:$0xf] %vm686_vm4, %v680_v25  ;;  %v637_v58 = vmul.f32 %v1014_v40, %v617_v26 }
 0x14b   : > { %v649_v59 = vadd.f32 %v1019_v43, %v637_v58 }
 0x14d   : > { %v657_v28 = vmax.f32 %v649_v59, 0.0 }
 0x14f   : > { %v681_v29 = vpack.c.bf16 %v657_v28, %v657_v28 }
 0x150   : > { %v620_v60 = vpop.f32.mrf.mxu3 }
 0x151   : > { %690 = vst.msk [vmem:[%s1033_s16 + $0xc] sm:$0xf] %vm686_vm4, %v681_v29  ;;  %v638_v61 = vmul.f32 %v1014_v40, %v620_v60 }
 0x153   : > { %v650_v30 = vadd.f32 %v1019_v43, %v638_v61 }
 0x155   : > { %v658_v31 = vmax.f32 %v650_v30, 0.0 }
 0x157   : > { %v682_v32 = vpack.c.bf16 %v658_v31, %v658_v31 }
 0x158   : > { %v622_v33 = vpop.f32.mrf.mxu3 }
 0x159   : > { %691 = vst.msk [vmem:[%s1033_s16 + $0x10] sm:$0xf] %vm686_vm4, %v682_v32  ;;  %v639_v34 = vmul.f32 %v1014_v40, %v622_v33 }
 0x15b   : > { %v651_v35 = vadd.f32 %v1019_v43, %v639_v34 }
 0x15d   : > { %v659_v36 = vmax.f32 %v651_v35, 0.0 }
 0x15f   : > { %v683_v37 = vpack.c.bf16 %v659_v36, %v659_v36 }
 0x160   : > { %v625_v38 = vpop.f32.mrf.mxu3 }
 0x161   : > { %692 = vst.msk [vmem:[%s1033_s16 + $0x14] sm:$0xf] %vm686_vm4, %v683_v37  ;;  %v640_v39 = vmul.f32 %v1014_v40, %v625_v38 }
 0x163   : > { %v652_v41 = vadd.f32 %v1019_v43, %v640_v39 }
 0x165   : > { %v660_v42 = vmax.f32 %v652_v41, 0.0 }
 0x167   : > { %v684_v44 = vpack.c.bf16 %v660_v42, %v660_v42 }
 0x168   : > { %v627_v45 = vpop.f32.mrf.mxu3 }
 0x169   : > { %693 = vst.msk [vmem:[%s1033_s16 + $0x18] sm:$0xf] %vm686_vm4, %v684_v44  ;;  %v641_v46 = vmul.f32 %v1014_v40, %v627_v45 }
 0x16b   : > { %v653_v47 = vadd.f32 %v1019_v43, %v641_v46 }
 0x16d   : > { %v661_v48 = vmax.f32 %v653_v47, 0.0 }
 0x16f   : > { %v685_v49 = vpack.c.bf16 %v661_v48, %v661_v48 }
 0x171   : > { %694 = vst.msk [vmem:[%s1033_s16 + $0x1c] sm:$0xf] %vm686_vm4, %v685_v49 }
 0x172 PF: > { %s19_s27 = sadd.s32 1, %s872_s27  }
 0x173   : > { %p16_p4 = scmp.ge.s32.totalorder %s19_s27, 4  }
 0x175   :  { %18 = sbr.rel (!%p16_p4) target bundleno = 1 (0x1), region = 90 }

// kernel: deeplabv3_forward.7
= control target key start
LH: loop header
LB: loop body
LE: loop exit
PB: predicated region body
PF: predicated region fallthrough
CT: control target
= control target key end

     0   :  { %8 = vsyncpa [#allocation3], 0  ;;  %s2061_s0 = inlined_call_operand.vmem [shape: f32[2,5,8,8], index: 0, kind: input, shape index: {}]   ;;  %s2062_s1 = inlined_call_operand.vmem [shape: f32[64,8], index: 1, kind: input, shape index: {}]   ;;  %s2063_s2 = inlined_call_operand.vmem [shape: f32[8,64], index: 2, kind: input, shape index: {}]   ;;  %s2064_s3 = inlined_call_operand.hbm [shape: f32[2,5,64,64], index: 3, kind: output, shape index: {}]  }
   0x1   :  { %10 = vsyncpa [#allocation3 + $0x1], 0  ;;  %s1415_s12 = smov 0   ;;  %s1417_s13 = smov 0  }
   0x2   :  { %s1419_s14 = smov 0   ;;  %s1421_s15 = smov 0  }
   0x3   :  { %s1423_s16 = smov 0   ;;  %s1425_s17 = smov 0  }
   0x4 LB: > { %s1064_s18 = sadd.s32 4294967295, %s1391_s17   ;;  %s1065_s19 = sadd.s32 4294967294, %s1391_s17   ;;  %s1391_s17 = sphi %s1425_s17, %s16_s17   ;;  %s1387_s16 = sphi %s1423_s16, %s2077_s16   ;;  %s1383_s15 = sphi %s1421_s15, %s2076_s15   ;;  %s1379_s14 = sphi %s1419_s14, %s2075_s14   ;;  %s1375_s13 = sphi %s1417_s13, %s2074_s13   ;;  %s1371_s12 = sphi %s1415_s12, %s2073_s12  }
   0x5   : > { %s28_s20 = sadd.s32 1, %s1387_s16  ;;  %s110_s21 = sadd.s32 1, %s1379_s14 }
   0x6   : > { %p30_p0 = scmp.ge.s32.totalorder %s28_s20, 2  ;;  %p120_p1 = scmp.ne.s32.totalorder %s1379_s14, %s1375_s13 }
   0x7   : > { %p121_p2 = scmp.eq.s32.totalorder %s1064_s18, 1  ;;  %p126_p3 = scmp.ne.s32.totalorder %s1375_s13, %s1371_s12 }
   0x8   : > { %s2079_s20 = smov (%p30_p0, %s28_s20), 0  ;;  %p127_p5 = scmp.eq.s32.totalorder %s1065_s19, 1 }
   0x9   : > { %p1455_p4 = por %p121_p2, %p120_p1  ;;  %s105_s23 = ssub.s32 %s1387_s16, %s2079_s20 }
   0xa   : > { %p1069_p6 = scmp.ge.s32.totalorder %s1391_s17, 1  ;;  %p108_p7 = scmp.eq.s32.totalorder %s105_s23, 0 }
   0xb   : > { %p1462_p8 = por %p127_p5, %p126_p3  ;;  %p165_p9 = scmp.lt.s32.totalorder %s1391_s17, 3 }
   0xc   : > { %s1468_s25 = scalar_select %p108_p7, %s1379_s14, %s110_s21  }
   0xd   : > { %p166_p10 = pnand %p1069_p6, %p165_p9 }
   0xe   : > { %p194_p11 = scmp.lt.s32.totalorder (!%p166_p10), %s1383_s15, 1  ;;  %s1159_s8 = smul.u32 (!%p166_p10), 320, %s1383_s15 }
   0xf   : > { %169 = sbr.rel (%p166_p10) target bundleno = 612 (0x264), region = 32 }
  0x10   : > { %s972_s10 = scalar_lea.hbm (!%p166_p10), %s2064_s3, %s1159_s8 }
  0x11   : > { %s975_s18 = sshll.u32 (!%p166_p10), %s972_s10, 4  ;;  %s976_s18 = int_to_ptr.hbm [resolvable:$true] %s975_s18 }
  0x12   : > { %s1327_s21 = sshra.s32 (!%p166_p10), %s976_s18, 4  ;;  %s1328_s21 = int_to_ptr.hbm [resolvable:$true] %s1327_s21 }
  0x13   : > { %s1329_s23 = scalar_lea.hbm (!%p166_p10), %s1328_s21, 320  ;;  %p1334_p1 = scmp.lt.s32.totalorder (!%p166_p10), %s1328_s21, %s2064_s3 }
  0x14   : > { %v214_v0 = vld [vmem:[%s2063_s2] sm:$0xff]  ;;  %s195_s28 = scalar_select %p194_p11, %s1383_s15, 1  ;;  %vm216_vm0 = vcmask 64512   ;;  %v1489_v4 = vld [vmem:[%s2062_s1 + $0x38] sm:$0xff]  ;;  %v207_v9 = vld [vmem:[%s2062_s1 + $0x8] sm:$0xff]  ;;  %vm881_vm3 = vcmask 523264  }
  0x15   : > { %235 = vmatpush.msra.mxu0 %v214_v0  ;;  %v1494_v6 = vld [vmem:[%s2062_s1] sm:$0xff]  ;;  %v208_v10 = vld [vmem:[%s2062_s1 + $0x10] sm:$0xff]  ;;  %v209_v11 = vld [vmem:[%s2062_s1 + $0x18] sm:$0xff]  ;;  %p1330_p12 = scmp.ne.s32.totalorder %s1328_s21, %s1329_s23 }
  0x16   : > { %s1158_s29 = smul.u32 40, %s195_s28  ;;  %v210_v12 = vld [vmem:[%s2062_s1 + $0x20] sm:$0xff]  ;;  %v211_v13 = vld [vmem:[%s2062_s1 + $0x28] sm:$0xff]  ;;  %v212_v14 = vld [vmem:[%s2062_s1 + $0x30] sm:$0xff]  ;;  %s1333_s28 = scalar_lea.hbm %s2064_s3, 640 }
  0x17   : > { %391 = vmatpush.msrb.mxu0 %v214_v0  ;;  %p1331_p13 = pnand %p1330_p12, %p1455_p4  ;;  %p1335_p2 = scmp.lt.s32.totalorder %s1333_s28, %s1329_s23 }
  0x18   : > { %s1478_s5 = scalar_lea.vmem %s2061_s0, %s1158_s29 }
  0x19   : > { %v215_v1 = vld [vmem:[%s1478_s5] sm:$0xff]  ;;  %v1090_v2 = vld [vmem:[%s1478_s5 + $0x10] sm:$0xff]  ;;  %v1100_v3 = vld [vmem:[%s1478_s5 + $0x18] sm:$0xff]  ;;  %p1332_p0 = pneg %p1331_p13  ;;  %p1336_p3 = por %p1335_p2, %p1334_p1 }
  0x1a   : > { %1071 = vmatmul.msk.f32.vlgmr.msra.gmra.mxu0 %vm216_vm0, %v215_v1  ;;  %v1080_v7 = vld [vmem:[%s1478_s5 + $0x8] sm:$0xff]  ;;  %v1110_v16 = vld [vmem:[%s1478_s5 + $0x20] sm:$0xff]  ;;  %s191_s5 = sand.u32 1, %s1375_s13  }
  0x1b   : > { %457 = vmatpush.msra.mxu0 %v214_v0  ;;  %s1701_s6 = smul.u32 320, %s191_s5  ;;  %s959_s19 = scalar_lea.sflag [#allocation3], %s191_s5 }
  0x1c   : > { %p1337_p5 = pnand %p1336_p3, %p1332_p0 }
  0x1d   : > { %s1745_s7 = scalar_lea.vmem [#allocation2], %s1701_s6 }
  0x1e   : > { %s973_s11 = sshll.u32 %s1745_s7, 4  ;;  %s974_s11 = int_to_ptr.vmem [resolvable:$true] %s973_s11 }
  0x22   : > { %1091 = vmatmul.msk.f32.vlgmr.msrb.gmra.mxu0 %vm216_vm0, %v1090_v2 }
  0x2a   : > { %1101 = vmatmul.msk.f32.vlgmr.msra.gmra.mxu0 %vm216_vm0, %v1100_v3 }
  0x97   : > { %v237_v5 = vpop.f32.mrf.mxu0 }
  0x98   : > { %279 = vmatpush.msra.mxu1 %v237_v5  ;;  %1155 = vmatpush.msra.mxu2 %v237_v5 }
  0x99   : > { %1079 = vmatmul.msk.f32.vlgmr.msra.gmra.mxu2 %vm216_vm0, %v1489_v4  ;;  %1072 = vmatmul.msk.f32.vlgmr.msra.gmra.mxu1 %vm216_vm0, %v1494_v6 }
  0x9a   : > { %325 = vmatpush.msrb.mxu2 %v214_v0 }
  0x9f   : > { %v393_v8 = vpop.f32.mrf.mxu0 }
  0xa0   : > { %411 = vmatpush.msra.mxu2 %v393_v8 }
  0xa1   : > { %1081 = vmatmul.msk.f32.vlgmr.msrb.gmra.mxu2 %vm216_vm0, %v1080_v7  ;;  %1073 = vmatmul.msk.f32.gmra.mxu1 %vm216_vm0, %v207_v9 }
  0xa2   : > { %523 = vmatpush.msrb.mxu2 %v214_v0 }
  0xa7   : > { %v459_v15 = vpop.f32.mrf.mxu0 }
  0xa8   : > { %477 = vmatpush.msrb.mxu0 %v459_v15 }
  0xa9   : > { %1092 = vmatmul.msk.f32.vlgmr.msra.gmra.mxu2 %vm216_vm0, %v1494_v6  ;;  %1074 = vmatmul.msk.f32.gmra.mxu1 %vm216_vm0, %v208_v10 }
  0xaa   : > { %1102 = vmatmul.msk.f32.vlgmr.msrb.gmra.mxu0 %vm216_vm0, %v1494_v6 }
  0xb1   : > { %1093 = vmatmul.msk.f32.gmra.mxu2 %vm216_vm0, %v207_v9  ;;  %1075 = vmatmul.msk.f32.gmra.mxu1 %vm216_vm0, %v209_v11 }
  0xb2   : > { %1103 = vmatmul.msk.f32.gmra.mxu0 %vm216_vm0, %v207_v9 }
  0xb9   : > { %1094 = vmatmul.msk.f32.gmra.mxu2 %vm216_vm0, %v208_v10  ;;  %1076 = vmatmul.msk.f32.gmra.mxu1 %vm216_vm0, %v210_v12 }
  0xba   : > { %1104 = vmatmul.msk.f32.gmra.mxu0 %vm216_vm0, %v208_v10 }
  0xc1   : > { %1095 = vmatmul.msk.f32.gmra.mxu2 %vm216_vm0, %v209_v11  ;;  %1077 = vmatmul.msk.f32.gmra.mxu1 %vm216_vm0, %v211_v13 }
  0xc2   : > { %1105 = vmatmul.msk.f32.gmra.mxu0 %vm216_vm0, %v209_v11 }
  0xc9   : > { %1096 = vmatmul.msk.f32.gmra.mxu2 %vm216_vm0, %v210_v12  ;;  %1078 = vmatmul.msk.f32.gmra.mxu1 %vm216_vm0, %v212_v14 }
  0xca   : > { %1106 = vmatmul.msk.f32.gmra.mxu0 %vm216_vm0, %v210_v12 }
  0xd1   : > { %1097 = vmatmul.msk.f32.gmra.mxu2 %vm216_vm0, %v211_v13 }
  0xd2   : > { %1107 = vmatmul.msk.f32.gmra.mxu0 %vm216_vm0, %v211_v13 }
  0xd9   : > { %1098 = vmatmul.msk.f32.gmra.mxu2 %vm216_vm0, %v212_v14 }
  0xda   : > { %1108 = vmatmul.msk.f32.gmra.mxu0 %vm216_vm0, %v212_v14 }
  0xe1   : > { %1099 = vmatmul.msk.f32.gmra.mxu2 %vm216_vm0, %v1489_v4 }
  0xe2   : > { %1109 = vmatmul.msk.f32.gmra.mxu0 %vm216_vm0, %v1489_v4 }
  0xe9   : > { %1111 = vmatmul.msk.f32.vlgmr.msrb.gmra.mxu2 %vm216_vm0, %v1110_v16 }
 0x116   : > { %v281_v28 = vpop.f32.mrf.mxu1 }
 0x11c   : > { %v1548_v17 = vpop.f32.mrf.mxu2 }
 0x11e   : > { %v284_v29 = vpop.f32.mrf.mxu1 }
 0x124   : > { %v327_v18 = vpop.f32.mrf.mxu2 }
 0x125   : > { %345 = vmatpush.msrb.mxu1 %v327_v18  ;;  %1156 = vmatpush.msra.mxu3 %v327_v18 }
 0x126   : > { %1082 = vmatmul.msk.f32.vlgmr.msrb.gmra.mxu1 %vm216_vm0, %v1494_v6  ;;  %1086 = vmatmul.msk.f32.vlgmr.msra.gmra.mxu3 %vm216_vm0, %v210_v12  ;;  %v1584_v30 = vpop.f32.mrf.mxu1 }
 0x127   : > { %v479_v37 = vpop.f32.mrf.mxu0 }
 0x12c   : > { %v413_v19 = vpop.f32.mrf.mxu2 }
 0x12e   : > { %1083 = vmatmul.msk.f32.gmra.mxu1 %vm216_vm0, %v207_v9  ;;  %1087 = vmatmul.msk.f32.gmra.mxu3 %vm216_vm0, %v211_v13  ;;  %v1586_v31 = vpop.f32.mrf.mxu1 }
 0x12f   : > { %v482_v40 = vpop.f32.mrf.mxu0 }
 0x134   : > { %v1555_v20 = vpop.f32.mrf.mxu2 }
 0x136   : > { %1084 = vmatmul.msk.f32.gmra.mxu1 %vm216_vm0, %v208_v10  ;;  %1088 = vmatmul.msk.f32.gmra.mxu3 %vm216_vm0, %v212_v14  ;;  %v1588_v32 = vpop.f32.mrf.mxu1 }
 0x137   : > { %v1602_v44 = vpop.f32.mrf.mxu0 }
 0x13c   : > { %v1559_v21 = vpop.f32.mrf.mxu2 }
 0x13e   : > { %1085 = vmatmul.msk.f32.gmra.mxu1 %vm216_vm0, %v209_v11  ;;  %1089 = vmatmul.msk.f32.gmra.mxu3 %vm216_vm0, %v1489_v4  ;;  %v1590_v33 = vpop.f32.mrf.mxu1 }
 0x13f   : > { %v1605_v56 = vpop.f32.mrf.mxu0 }
 0x144   : > { %v1564_v22 = vpop.f32.mrf.mxu2 }
 0x146   : > { %v1594_v35 = vpop.f32.mrf.mxu1 }
 0x147   : > { %v1618_v15 = vpop.f32.mrf.mxu0 }
 0x14c   : > { %v1566_v23 = vpop.f32.mrf.mxu2 }
 0x154   : > { %v1568_v24 = vpop.f32.mrf.mxu2 }
 0x15c   : > { %v1570_v25 = vpop.f32.mrf.mxu2 }
 0x164   : > { %v1572_v26 = vpop.f32.mrf.mxu2 }
 0x16c   : > { %v525_v27 = vpop.f32.mrf.mxu2 }
 0x16d   : > { %543 = vmatpush.msrb.mxu3 %v525_v27 }
 0x16e   : > { %1112 = vmatmul.msk.f32.vlgmr.msrb.gmra.mxu3 %vm216_vm0, %v1494_v6 }
 0x176   : > { %1113 = vmatmul.msk.f32.gmra.mxu3 %vm216_vm0, %v207_v9 }
 0x17e   : > { %1114 = vmatmul.msk.f32.gmra.mxu3 %vm216_vm0, %v208_v10 }
 0x186   : > { %1115 = vmatmul.msk.f32.gmra.mxu3 %vm216_vm0, %v209_v11 }
 0x18e   : > { %1116 = vmatmul.msk.f32.gmra.mxu3 %vm216_vm0, %v210_v12 }
 0x196   : > { %1117 = vmatmul.msk.f32.gmra.mxu3 %vm216_vm0, %v211_v13 }
 0x19e   : > { %1118 = vmatmul.msk.f32.gmra.mxu3 %vm216_vm0, %v212_v14 }
 0x1a3   : > { %v347_v38 = vpop.f32.mrf.mxu1 }
 0x1a4   : > { %v569_v41 = vmax.f32 %v281_v28, %v347_v38 }
 0x1a6   : > { %1119 = vmatmul.msk.f32.gmra.mxu3 %vm216_vm0, %v1489_v4  ;;  %v577_v45 = vmax.f32 %v569_v41, %v413_v19 }
 0x1a8   : > { %v585_v47 = vmax.f32 %v577_v45, %v479_v37 }
 0x1a9   : > { %v1592_v34 = vpop.f32.mrf.mxu3 }
 0x1ab   : > { %v350_v42 = vpop.f32.mrf.mxu1 }
 0x1ac   : > { %v570_v46 = vmax.f32 %v284_v29, %v350_v42 }
 0x1ae   : > { %v578_v51 = vmax.f32 %v570_v46, %v1555_v20 }
 0x1b0   : > { %v586_v62 = vmax.f32 %v578_v51, %v482_v40 }
 0x1b1   : > { %v1596_v36 = vpop.f32.mrf.mxu3 }
 0x1b3   : > { %v353_v49 = vpop.f32.mrf.mxu1 }
 0x1b4   : > { %v571_v61 = vmax.f32 %v1584_v30, %v353_v49 }
 0x1b6   : > { %v579_v3 = vmax.f32 %v571_v61, %v1559_v21 }
 0x1b9   : > { %v1598_v39 = vpop.f32.mrf.mxu3 }
 0x1bb   : > { %v1609_v4 = vpop.f32.mrf.mxu1 }
 0x1bc   : > { %v572_v13 = vmax.f32 %v1586_v31, %v1609_v4 }
 0x1be   : > { %v580_v41 = vmax.f32 %v572_v13, %v1564_v22 }
 0x1c1   : > { %v1600_v43 = vpop.f32.mrf.mxu3 }
 0x1f1   : > { %v545_v48 = vpop.f32.mrf.mxu3 }
 0x1f2   : > { %v593_v50 = vmax.f32 %v585_v47, %v545_v48 }
 0x1f4   : > { %v601_v52 = vsub.f32 %v281_v28, %v593_v50  ;;  %v625_v53 = vsub.f32 %v347_v38, %v593_v50  ;;  %v649_v54 = vsub.f32 %v413_v19, %v593_v50  ;;  %v673_v55 = vsub.f32 %v479_v37, %v593_v50 }
 0x1f5   : > { %v697_v60 = vsub.f32 %v545_v48, %v593_v50  ;;  %v587_v19 = vmax.f32 %v579_v3, %v1602_v44  ;;  %v574_v50 = vmax.f32 %v1590_v33, %v1596_v36 }
 0x1f6   : > { %v609_v57 = vmul.f32 1.442695, %v601_v52  ;;  %v633_v58 = vmul.f32 1.442695, %v625_v53  ;;  %v657_v59 = vmul.f32 1.442695, %v649_v54 }
 0x1f7   : > { %v681_v63 = vmul.f32 1.442695, %v673_v55  ;;  %v705_v2 = vmul.f32 1.442695, %v697_v60 }
 0x1f8   : > { %1217 = vpow2.f32 %v609_v57 }
 0x1f9   : > { %1219 = vpow2.f32 %v633_v58  ;;  %v548_v0 = vpop.f32.mrf.mxu3 }
 0x1fa   : > { %v594_v1 = vmax.f32 %v586_v62, %v548_v0  ;;  %1221 = vpow2.f32 %v657_v59  ;;  %v588_v59 = vmax.f32 %v580_v41, %v1605_v56 }
 0x1fb   : > { %1223 = vpow2.f32 %v681_v63  ;;  %v1656_v63 = vpop.f32.mrf.mxu0 }
 0x1fc   : > { %v602_v5 = vsub.f32 %v284_v29, %v594_v1  ;;  %v626_v6 = vsub.f32 %v350_v42, %v594_v1  ;;  %v650_v7 = vsub.f32 %v1555_v20, %v594_v1  ;;  %v674_v8 = vsub.f32 %v482_v40, %v594_v1 }
 0x1fd   : > { %1225 = vpow2.f32 %v705_v2  ;;  %v698_v14 = vsub.f32 %v548_v0, %v594_v1  ;;  %v573_v40 = vmax.f32 %v1588_v32, %v1592_v34 }
 0x1fe   : > { %v1612_v9 = vpop.eup %1217  ;;  %v611_v10 = vmul.f32 1.442695, %v602_v5  ;;  %v635_v11 = vmul.f32 1.442695, %v626_v6  ;;  %v659_v18 = vmul.f32 1.442695, %v650_v7 }
 0x1ff   : > { %v1614_v12 = vpop.eup %1219  ;;  %v683_v27 = vmul.f32 1.442695, %v674_v8  ;;  %v707_v42 = vmul.f32 1.442695, %v698_v14 }
 0x200   : > { %v721_v16 = vadd.f32 %v1614_v12, %v1612_v9  ;;  %1227 = vpow2.f32 %v611_v10  ;;  %v1623_v20 = vpop.eup %1221 }
 0x201   : > { %1229 = vpow2.f32 %v635_v11  ;;  %v551_v28 = vpop.f32.mrf.mxu3  ;;  %v1626_v38 = vpop.eup %1223 }
 0x202   : > { %v729_v29 = vadd.f32 %v1623_v20, %v721_v16  ;;  %v595_v37 = vmax.f32 %v587_v19, %v551_v28  ;;  %1231 = vpow2.f32 %v659_v18 }
 0x203   : > { %v1633_v48 = vpop.eup %1225  ;;  %1233 = vpow2.f32 %v683_v27 }
 0x204   : > { %v737_v45 = vadd.f32 %v1626_v38, %v729_v29  ;;  %v603_v46 = vsub.f32 %v1584_v30, %v595_v37  ;;  %v627_v47 = vsub.f32 %v353_v49, %v595_v37  ;;  %v651_v51 = vsub.f32 %v1559_v21, %v595_v37 }
 0x205   : > { %v675_v57 = vsub.f32 %v1602_v44, %v595_v37  ;;  %1235 = vpow2.f32 %v707_v42  ;;  %v699_v30 = vsub.f32 %v551_v28, %v595_v37  ;;  %v581_v49 = vmax.f32 %v573_v40, %v1566_v23 }
 0x206   : > { %v1638_v52 = vpop.eup %1227  ;;  %v1641_v53 = vadd.f32 %v1633_v48, %v737_v45  ;;  %v613_v54 = vmul.f32 1.442695, %v603_v46  ;;  %v637_v55 = vmul.f32 1.442695, %v627_v47  ;;  %v1650_v21 = vmax.f32 %v574_v50, %v1568_v24 }
 0x207   : > { %v1644_v58 = vpop.eup %1229  ;;  %v661_v61 = vmul.f32 1.442695, %v651_v51  ;;  %v685_v0 = vmul.f32 1.442695, %v675_v57  ;;  %v709_v5 = vmul.f32 1.442695, %v699_v30  ;;  %v589_v6 = vmax.f32 %v581_v49, %v1618_v15 }
 0x208   : > { %1237 = vrcp.f32 %v1641_v53  ;;  %v722_v60 = vadd.f32 %v1644_v58, %v1638_v52  ;;  %v1654_v44 = vpop.eup %1231  ;;  %v590_v11 = vmax.f32 %v1650_v21, %v1656_v63  ;;  %v762_v40 = vand.u32 2147483647, %v1641_v53 }
 0x209   : > { %1239 = vpow2.f32 %v613_v54  ;;  %v554_v62 = vpop.f32.mrf.mxu3  ;;  %v1658_v2 = vpop.eup %1233  ;;  %vm758_vm1 = vweird.f32 %v1641_v53 }
 0x20a   : > { %1241 = vpow2.f32 %v637_v55  ;;  %v596_v1 = vmax.f32 %v588_v59, %v554_v62  ;;  %v730_v3 = vadd.f32 %v1654_v44, %v722_v60  ;;  %vm1703_vm4 = vcmp.eq.f32.partialorder %v762_v40, 8.507059e+37 }
 0x20b   : > { %v1664_v10 = vpop.eup %1235  ;;  %1243 = vpow2.f32 %v661_v61 }
 0x20c   : > { %v604_v7 = vsub.f32 %v1586_v31, %v596_v1  ;;  %v628_v8 = vsub.f32 %v1609_v4, %v596_v1  ;;  %v738_v13 = vadd.f32 %v1658_v2, %v730_v3  ;;  %v652_v14 = vsub.f32 %v1564_v22, %v596_v1 }
 0x20d   : > { %1245 = vpow2.f32 %v685_v0  ;;  %v676_v27 = vsub.f32 %v1605_v56, %v596_v1  ;;  %v575_v4 = vmax.f32 %v1594_v35, %v1598_v39  ;;  %v576_v22 = vmax.f32 %v1548_v17, %v1600_v43 }
 0x20e   : > { %v1238_v16 = vpop.eup %1237  ;;  %v615_v18 = vmul.f32 1.442695, %v604_v7  ;;  %v639_v19 = vmul.f32 1.442695, %v628_v8  ;;  %v1677_v29 = vadd.f32 %v1664_v10, %v738_v13  ;;  %1247 = vpow2.f32 %v709_v5 }
 0x20f   : > { %v1671_v31 = vpop.eup %1239  ;;  %v754_v28 = vmul.f32 %v1238_v16, %v1641_v53  ;;  %v764_v56 = vand.u32 2147483648, %v1641_v53  ;;  %v663_v42 = vmul.f32 1.442695, %v652_v14  ;;  %v700_v45 = vsub.f32 %v554_v62, %v596_v1 }
 0x210   : > { %v1679_v37 = vpop.eup %1241  ;;  %1249 = vpow2.f32 %v615_v18  ;;  %v687_v50 = vmul.f32 1.442695, %v676_v27  ;;  %vm759_vm2 = vweird.f32 %v1238_v16  ;;  %v777_v5 = vand.u32 2147483647, %v1677_v29 }
 0x211   : > { %v755_v41 = vsub.f32 1.0, %v754_v28  ;;  %1251 = vrcp.f32 %v1677_v29  ;;  %v1687_v46 = vpop.f32.mrf.mxu3  ;;  %v723_v47 = vadd.f32 %v1679_v37, %v1671_v31  ;;  %v1694_v54 = vpop.eup %1243  ;;  %v765_v49 = vor.u32 1.1754944e-38, %v764_v56  ;;  %vm760_vm5 = vmor %vm758_vm1, %vm759_vm2 }
 0x212   : > { %1253 = vpow2.f32 %v639_v19  ;;  %v1692_v51 = vmax.f32 %v589_v6, %v1687_v46  ;;  %v711_v0 = vmul.f32 1.442695, %v700_v45  ;;  %v779_v6 = vand.u32 2147483648, %v1677_v29  ;;  %v1742_v45 = vpop.f32.mrf.mxu0 }
 0x213   : > { %v756_v55 = vmul.f32 %v1238_v16, %v755_v41  ;;  %v1697_v57 = vpop.eup %1245  ;;  %v731_v59 = vadd.f32 %v1694_v54, %v723_v47  ;;  %1255 = vpow2.f32 %v663_v42  ;;  %vm773_vm7 = vweird.f32 %v1677_v29 }
 0x214   : > { %v605_v60 = vsub.f32 %v1588_v32, %v1692_v51  ;;  %v1710_v61 = vpop.eup %1247  ;;  %v629_v1 = vsub.f32 %v1592_v34, %v1692_v51  ;;  %1257 = vpow2.f32 %v687_v50  ;;  %v653_v14 = vsub.f32 %v1566_v23, %v1692_v51 }
 0x215   : > { %v757_v62 = vadd.f32 %v1238_v16, %v756_v55  ;;  %v739_v7 = vadd.f32 %v1697_v57, %v731_v59  ;;  %v677_v34 = vsub.f32 %v1618_v15, %v1692_v51  ;;  %1259 = vpow2.f32 %v711_v0 }
 0x216   : > { %v1714_v3 = vpop.eup %1249  ;;  %v617_v13 = vmul.f32 1.442695, %v605_v60  ;;  %v641_v28 = vmul.f32 1.442695, %v629_v1  ;;  %v701_v41 = vsub.f32 %v1687_v46, %v1692_v51  ;;  %v1768_v51 = vmax.f32 %v576_v22, %v1572_v26 }
 0x217   : > { %v1252_v32 = vpop.eup %1251  ;;  %v761_v8 = vsel %vm760_vm5, %v1238_v16, %v757_v62  ;;  %v1731_v27 = vadd.f32 %v1710_v61, %v739_v7  ;;  %v689_v50 = vmul.f32 1.442695, %v677_v34  ;;  %vm1776_vm8 = vcmp.eq.f32.partialorder %v777_v5, 8.507059e+37 }
 0x218   : > { %v1725_v18 = vpop.eup %1253  ;;  %v766_v53 = vsel %vm1703_vm4, %v765_v49, %v761_v8  ;;  %v769_v19 = vmul.f32 %v1252_v32, %v1677_v29  ;;  %vm774_vm6 = vweird.f32 %v1252_v32  ;;  %v780_v29 = vor.u32 1.1754944e-38, %v779_v6 }
 0x219   : > { %v873_v16 = vmul.f32 %v1612_v9, %v766_v53  ;;  %v890_v40 = vmul.f32 %v1614_v12, %v766_v53  ;;  %v907_v23 = vmul.f32 %v1623_v20, %v766_v53  ;;  %v924_v15 = vmul.f32 %v1626_v38, %v766_v53  ;;  %v1740_v42 = vpop.eup %1255  ;;  %v1752_v38 = vpop.f32.mrf.mxu3  ;;  %vm775_vm9 = vmor %vm773_vm7, %vm774_vm6 }
 0x21a   : > { %v770_v56 = vsub.f32 1.0, %v769_v19  ;;  %1261 = vrcp.f32 %v1731_v27  ;;  %v941_v9 = vmul.f32 %v1633_v48, %v766_v53  ;;  %v724_v12 = vadd.f32 %v1725_v18, %v1714_v3  ;;  %v1754_v46 = vpop.eup %1257 }
 0x21b   : > { %882 = vst.msk [vmem:[%s1745_s7] sm:$0xff] %vm881_vm3, %v873_v16  ;;  %1263 = vpow2.f32 %v617_v13  ;;  %v665_v20 = vmul.f32 1.442695, %v653_v14  ;;  %v1762_v48 = vmax.f32 %v575_v4, %v1570_v25  ;;  %v713_v4 = vmul.f32 1.442695, %v701_v41  ;;  %v1784_v59 = vpop.eup %1259 }
 0x21c   : > { %1120 = vst.msk [vmem:[%s1745_s7 + $0x40] sm:$0xff] %vm881_vm3, %v890_v40  ;;  %v771_v47 = vmul.f32 %v1252_v32, %v770_v56  ;;  %1265 = vpow2.f32 %v641_v28  ;;  %v732_v55 = vadd.f32 %v1740_v42, %v724_v12  ;;  %v598_v22 = vmax.f32 %v590_v11, %v1752_v38  ;;  %v1817_v28 = vpop.f32.mrf.mxu0 }
 0x21d   : > { %1128 = vst.msk [vmem:[%s1745_s7 + $0x80] sm:$0xff] %vm881_vm3, %v907_v23  ;;  %v792_v60 = vand.u32 2147483647, %v1731_v27  ;;  %1267 = vpow2.f32 %v665_v20  ;;  %v794_v19 = vand.u32 2147483648, %v1731_v27  ;;  %v591_v56 = vmax.f32 %v1762_v48, %v1742_v45 }
 0x21e   : > { %1136 = vst.msk [vmem:[%s1745_s7 + $0xc0] sm:$0xff] %vm881_vm3, %v924_v15  ;;  %v772_v30 = vadd.f32 %v1252_v32, %v771_v47  ;;  %v740_v62 = vadd.f32 %v1754_v46, %v732_v55  ;;  %1269 = vpow2.f32 %v689_v50  ;;  %v606_v5 = vsub.f32 %v1590_v33, %v598_v22 }
 0x21f   : > { %1144 = vst.msk [vmem:[%s1745_s7 + $0x100] sm:$0xff] %vm881_vm3, %v941_v9  ;;  %v630_v21 = vsub.f32 %v1596_v36, %v598_v22  ;;  %v654_v13 = vsub.f32 %v1568_v24, %v598_v22  ;;  %1271 = vpow2.f32 %v713_v4  ;;  %v678_v23 = vsub.f32 %v1656_v63, %v598_v22 }
 0x220   : > { %v1262_v0 = vpop.eup %1261  ;;  %v776_v1 = vsel %vm775_vm9, %v1252_v32, %v772_v30  ;;  %v1799_v8 = vadd.f32 %v1784_v59, %v740_v62  ;;  %vm788_vm11 = vweird.f32 %v1731_v27  ;;  %v702_v63 = vsub.f32 %v1752_v38, %v598_v22 }
 0x221   : > { %v1793_v11 = vpop.eup %1263  ;;  %v781_v7 = vsel %vm1776_vm8, %v780_v29, %v776_v1  ;;  %v784_v6 = vmul.f32 %v1262_v0, %v1731_v27  ;;  %vm789_vm10 = vweird.f32 %v1262_v0  ;;  %v643_v16 = vmul.f32 1.442695, %v630_v21  ;;  %v1822_v15 = vpop.f32.mrf.mxu3 }
 0x222   : > { %v1802_v14 = vpop.eup %1265  ;;  %v874_v33 = vmul.f32 %v1638_v52, %v781_v7  ;;  %v891_v32 = vmul.f32 %v1644_v58, %v781_v7  ;;  %v908_v36 = vmul.f32 %v1654_v44, %v781_v7  ;;  %v925_v34 = vmul.f32 %v1658_v2, %v781_v7  ;;  %vm790_vm12 = vmor %vm788_vm11, %vm789_vm10 }
 0x223   : > { %v785_v53 = vsub.f32 1.0, %v784_v6  ;;  %1273 = vrcp.f32 %v1799_v8  ;;  %v942_v24 = vmul.f32 %v1664_v10, %v781_v7  ;;  %v725_v52 = vadd.f32 %v1802_v14, %v1793_v11  ;;  %v1815_v44 = vpop.eup %1267 }
 0x224   : > { %883 = vst.msk [vmem:[%s1745_s7 + $0x8] sm:$0xff] %vm881_vm3, %v874_v33  ;;  %v619_v58 = vmul.f32 1.442695, %v606_v5  ;;  %v667_v40 = vmul.f32 1.442695, %v654_v13  ;;  %v1824_v10 = vpop.eup %1269  ;;  %v592_v47 = vmax.f32 %v1768_v51, %v1817_v28  ;;  %vm793_vm13 = vcmp.eq.f32.partialorder %v792_v60, 8.507059e+37 }
 0x225   : > { %1121 = vst.msk [vmem:[%s1745_s7 + $0x48] sm:$0xff] %vm881_vm3, %v891_v32  ;;  %v786_v2 = vmul.f32 %v1262_v0, %v785_v53  ;;  %v733_v41 = vadd.f32 %v1815_v44, %v725_v52  ;;  %v691_v12 = vmul.f32 1.442695, %v678_v23  ;;  %v1835_v20 = vpop.eup %1271  ;;  %v795_v27 = vor.u32 1.1754944e-38, %v794_v19 }
 0x226   : > { %1129 = vst.msk [vmem:[%s1745_s7 + $0x88] sm:$0xff] %vm881_vm3, %v908_v36  ;;  %1275 = vpow2.f32 %v619_v58  ;;  %v715_v30 = vmul.f32 1.442695, %v702_v63  ;;  %v1844_v38 = vmax.f32 %v591_v56, %v1822_v15  ;;  %v807_v51 = vand.u32 2147483647, %v1799_v8 }
 0x227   : > { %1137 = vst.msk [vmem:[%s1745_s7 + $0xc8] sm:$0xff] %vm881_vm3, %v925_v34  ;;  %v787_v9 = vadd.f32 %v1262_v0, %v786_v2  ;;  %1277 = vpow2.f32 %v643_v16  ;;  %v741_v50 = vadd.f32 %v1824_v10, %v733_v41  ;;  %v809_v21 = vand.u32 2147483648, %v1799_v8 }
 0x228   : > { %1145 = vst.msk [vmem:[%s1745_s7 + $0x108] sm:$0xff] %vm881_vm3, %v942_v24  ;;  %1279 = vpow2.f32 %v667_v40  ;;  %v631_v6 = vsub.f32 %v1598_v39, %v1844_v38  ;;  %v655_v13 = vsub.f32 %v1570_v25, %v1844_v38  ;;  %vm803_vm15 = vweird.f32 %v1799_v8 }
 0x229   : > { %v1274_v48 = vpop.eup %1273  ;;  %v791_v55 = vsel %vm790_vm12, %v1262_v0, %v787_v9  ;;  %v1849_v22 = vadd.f32 %v1835_v20, %v741_v50  ;;  %1281 = vpow2.f32 %v691_v12  ;;  %vm1879_vm0 = vcmp.eq.f32.partialorder %v807_v51, 8.507059e+37  ;;  %v1885_v36 = vpop.f32.mrf.mxu3 }
 0x22a   : > { %v796_v49 = vsel %vm793_vm13, %v795_v27, %v791_v55  ;;  %v799_v4 = vmul.f32 %v1274_v48, %v1799_v8  ;;  %vm804_vm14 = vweird.f32 %v1274_v48  ;;  %v679_v32 = vsub.f32 %v1742_v45, %v1844_v38 }
 0x22b   : > { %v875_v29 = vmul.f32 %v1671_v31, %v796_v49  ;;  %v892_v60 = vmul.f32 %v1679_v37, %v796_v49  ;;  %v909_v62 = vmul.f32 %v1694_v54, %v796_v49  ;;  %v926_v1 = vmul.f32 %v1697_v57, %v796_v49  ;;  %vm805_vm1 = vmor %vm803_vm15, %vm804_vm14 }
 0x22c   : > { %v1854_v0 = vpop.eup %1275  ;;  %v800_v5 = vsub.f32 1.0, %v799_v4  ;;  %1283 = vrcp.f32 %v1849_v22  ;;  %v943_v31 = vmul.f32 %v1710_v61, %v796_v49  ;;  %v607_v37 = vsub.f32 %v1594_v35, %v1844_v38 }
 0x22d   : > { %v1859_v7 = vpop.eup %1277  ;;  %884 = vst.msk [vmem:[%s1745_s7 + $0x10] sm:$0xff] %vm881_vm3, %v875_v29  ;;  %1285 = vpow2.f32 %v715_v30  ;;  %v645_v34 = vmul.f32 1.442695, %v631_v6  ;;  %v669_v53 = vmul.f32 1.442695, %v655_v13  ;;  %v810_v8 = vor.u32 1.1754944e-38, %v809_v21 }
 0x22e   : > { %1122 = vst.msk [vmem:[%s1745_s7 + $0x50] sm:$0xff] %vm881_vm3, %v892_v60  ;;  %v801_v54 = vmul.f32 %v1274_v48, %v800_v5  ;;  %v726_v57 = vadd.f32 %v1859_v7, %v1854_v0  ;;  %v1874_v61 = vpop.eup %1279  ;;  %v621_v33 = vmul.f32 1.442695, %v607_v37  ;;  %v693_v24 = vmul.f32 1.442695, %v679_v32 }
 0x22f   : > { %1130 = vst.msk [vmem:[%s1745_s7 + $0x90] sm:$0xff] %vm881_vm3, %v909_v62  ;;  %v1890_v19 = vpop.eup %1281  ;;  %v703_v45 = vsub.f32 %v1822_v15, %v1844_v38  ;;  %v600_v16 = vmax.f32 %v592_v47, %v1885_v36  ;;  %v824_v41 = vand.u32 2147483648, %v1849_v22  ;;  %vm818_vm4 = vweird.f32 %v1849_v22 }
 0x230   : > { %1138 = vst.msk [vmem:[%s1745_s7 + $0xd0] sm:$0xff] %vm881_vm3, %v926_v1  ;;  %v802_v39 = vadd.f32 %v1274_v48, %v801_v54  ;;  %v734_v25 = vadd.f32 %v1874_v61, %v726_v57  ;;  %1287 = vpow2.f32 %v621_v33 }
 0x231   : > { %1146 = vst.msk [vmem:[%s1745_s7 + $0x110] sm:$0xff] %vm881_vm3, %v943_v31  ;;  %1289 = vpow2.f32 %v645_v34  ;;  %v825_v49 = vor.u32 1.1754944e-38, %v824_v41  ;;  %v704_v29 = vsub.f32 %v1885_v36, %v600_v16 }
 0x232   : > { %v1284_v52 = vpop.eup %1283  ;;  %v806_v58 = vsel %vm805_vm1, %v1274_v48, %v802_v39  ;;  %v742_v2 = vadd.f32 %v1890_v19, %v734_v25  ;;  %1291 = vpow2.f32 %v669_v53  ;;  %v717_v48 = vmul.f32 1.442695, %v703_v45 }
 0x233   : > { %v1899_v40 = vpop.eup %1285  ;;  %v811_v23 = vsel %vm1879_vm0, %v810_v8, %v806_v58  ;;  %v814_v56 = vmul.f32 %v1284_v52, %v1849_v22  ;;  %1293 = vpow2.f32 %v693_v24  ;;  %vm819_vm2 = vweird.f32 %v1284_v52 }
 0x234   : > { %v876_v15 = vmul.f32 %v1714_v3, %v811_v23  ;;  %v893_v9 = vmul.f32 %v1725_v18, %v811_v23  ;;  %v910_v12 = vmul.f32 %v1740_v42, %v811_v23  ;;  %v927_v63 = vmul.f32 %v1754_v46, %v811_v23  ;;  %vm820_vm5 = vmor %vm818_vm4, %vm819_vm2 }
 0x235   : > { %v944_v47 = vmul.f32 %v1784_v59, %v811_v23  ;;  %v815_v27 = vsub.f32 1.0, %v814_v56  ;;  %v1911_v50 = vadd.f32 %v1899_v40, %v742_v2  ;;  %v608_v3 = vsub.f32 %v1548_v17, %v600_v16 }
 0x236   : > { %885 = vst.msk [vmem:[%s1745_s7 + $0x18] sm:$0xff] %vm881_vm3, %v876_v15  ;;  %v632_v18 = vsub.f32 %v1600_v43, %v600_v16  ;;  %v656_v42 = vsub.f32 %v1572_v26, %v600_v16  ;;  %v1918_v55 = vpop.eup %1287  ;;  %v822_v59 = vand.u32 2147483647, %v1849_v22  ;;  %v680_v22 = vsub.f32 %v1817_v28, %v600_v16 }
 0x237   : > { %1123 = vst.msk [vmem:[%s1745_s7 + $0x58] sm:$0xff] %vm881_vm3, %v893_v9  ;;  %v816_v46 = vmul.f32 %v1284_v52, %v815_v27  ;;  %1295 = vrcp.f32 %v1911_v50  ;;  %v1924_v30 = vpop.eup %1289  ;;  %v623_v17 = vmul.f32 1.442695, %v608_v3  ;;  %v719_v57 = vmul.f32 1.442695, %v704_v29 }
 0x238   : > { %1131 = vst.msk [vmem:[%s1745_s7 + $0x98] sm:$0xff] %vm881_vm3, %v910_v12  ;;  %v647_v43 = vmul.f32 1.442695, %v632_v18  ;;  %v1929_v26 = vpop.eup %1291  ;;  %1297 = vpow2.f32 %v717_v48  ;;  %v727_v4 = vadd.f32 %v1924_v30, %v1918_v55  ;;  %v671_v51 = vmul.f32 1.442695, %v656_v42 }
 0x239   : > { %1139 = vst.msk [vmem:[%s1745_s7 + $0xd8] sm:$0xff] %vm881_vm3, %v927_v63  ;;  %v817_v38 = vadd.f32 %v1284_v52, %v816_v46  ;;  %1299 = vpow2.f32 %v623_v17  ;;  %v1940_v60 = vpop.eup %1293  ;;  %vm823_vm6 = vcmp.eq.f32.partialorder %v822_v59, 8.507059e+37  ;;  %v695_v21 = vmul.f32 1.442695, %v680_v22 }
 0x23a   : > { %1147 = vst.msk [vmem:[%s1745_s7 + $0x118] sm:$0xff] %vm881_vm3, %v944_v47  ;;  %v735_v1 = vadd.f32 %v1929_v26, %v727_v4  ;;  %1301 = vpow2.f32 %v647_v43  ;;  %v839_v36 = vand.u32 2147483648, %v1911_v50  ;;  %vm833_vm8 = vweird.f32 %v1911_v50 }
 0x23b   : > { %v821_v62 = vsel %vm820_vm5, %v1284_v52, %v817_v38  ;;  %1303 = vpow2.f32 %v671_v51 }
 0x23c   : > { %v826_v5 = vsel %vm823_vm6, %v825_v49, %v821_v62  ;;  %v743_v35 = vadd.f32 %v1940_v60, %v735_v1  ;;  %1305 = vpow2.f32 %v695_v21  ;;  %v840_v8 = vor.u32 1.1754944e-38, %v839_v36 }
 0x23d   : > { %v1296_v31 = vpop.eup %1295  ;;  %v877_v37 = vmul.f32 %v1793_v11, %v826_v5  ;;  %v894_v54 = vmul.f32 %v1802_v14, %v826_v5  ;;  %v911_v28 = vmul.f32 %v1815_v44, %v826_v5  ;;  %v928_v6 = vmul.f32 %v1824_v10, %v826_v5 }
 0x23e   : > { %v829_v13 = vmul.f32 %v1296_v31, %v1911_v50  ;;  %v1949_v33 = vpop.eup %1297  ;;  %v945_v11 = vmul.f32 %v1835_v20, %v826_v5  ;;  %1307 = vpow2.f32 %v719_v57  ;;  %vm834_vm7 = vweird.f32 %v1296_v31 }
 0x23f   : > { %886 = vst.msk [vmem:[%s1745_s7 + $0x20] sm:$0xff] %vm881_vm3, %v877_v37  ;;  %v1954_v14 = vpop.eup %1299  ;;  %v751_v10 = vadd.f32 %v1949_v33, %v743_v35  ;;  %v837_v20 = vand.u32 2147483647, %v1911_v50  ;;  %vm835_vm9 = vmor %vm833_vm8, %vm834_vm7 }
 0x240   : > { %1124 = vst.msk [vmem:[%s1745_s7 + $0x60] sm:$0xff] %vm881_vm3, %v894_v54  ;;  %v830_v44 = vsub.f32 1.0, %v829_v13  ;;  %v1959_v32 = vpop.eup %1301 }
 0x241   : > { %1132 = vst.msk [vmem:[%s1745_s7 + $0xa0] sm:$0xff] %vm881_vm3, %v911_v28  ;;  %1309 = vrcp.f32 %v751_v10  ;;  %v728_v25 = vadd.f32 %v1959_v32, %v1954_v14  ;;  %v1971_v34 = vpop.eup %1303  ;;  %vm838_vm10 = vcmp.eq.f32.partialorder %v837_v20, 8.507059e+37  ;;  %vm848_vm12 = vweird.f32 %v751_v10 }
 0x242   : > { %1140 = vst.msk [vmem:[%s1745_s7 + $0xe0] sm:$0xff] %vm881_vm3, %v928_v6  ;;  %v831_v39 = vmul.f32 %v1296_v31, %v830_v44  ;;  %v1975_v45 = vpop.eup %1305 }
 0x243   : > { %1148 = vst.msk [vmem:[%s1745_s7 + $0x120] sm:$0xff] %vm881_vm3, %v945_v11  ;;  %v736_v24 = vadd.f32 %v1971_v34, %v728_v25 }
 0x244   : > { %v832_v53 = vadd.f32 %v1296_v31, %v831_v39  ;;  %v1308_v58 = vpop.eup %1307 }
 0x245   : > { %v744_v16 = vadd.f32 %v1975_v45, %v736_v24 }
 0x246   : > { %v836_v52 = vsel %vm835_vm9, %v1296_v31, %v832_v53 }
 0x247   : > { %v841_v2 = vsel %vm838_vm10, %v840_v8, %v836_v52  ;;  %v1310_v23 = vpop.eup %1309  ;;  %v752_v63 = vadd.f32 %v1308_v58, %v744_v16 }
 0x248   : > { %v878_v56 = vmul.f32 %v1854_v0, %v841_v2  ;;  %v895_v41 = vmul.f32 %v1859_v7, %v841_v2  ;;  %v912_v15 = vmul.f32 %v1874_v61, %v841_v2  ;;  %v929_v9 = vmul.f32 %v1890_v19, %v841_v2 }
 0x249   : > { %v844_v12 = vmul.f32 %v1310_v23, %v751_v10  ;;  %v946_v47 = vmul.f32 %v1899_v40, %v841_v2  ;;  %1311 = vrcp.f32 %v752_v63  ;;  %v854_v0 = vand.u32 2147483648, %v751_v10 }
 0x24a   : > { %887 = vst.msk [vmem:[%s1745_s7 + $0x28] sm:$0xff] %vm881_vm3, %v878_v56  ;;  %vm849_vm11 = vweird.f32 %v1310_v23  ;;  %v852_v61 = vand.u32 2147483647, %v751_v10  ;;  %v869_v49 = vand.u32 2147483648, %v752_v63  ;;  %vm863_vm0 = vweird.f32 %v752_v63 }
 0x24b   : > { %1125 = vst.msk [vmem:[%s1745_s7 + $0x68] sm:$0xff] %vm881_vm3, %v895_v41  ;;  %v845_v27 = vsub.f32 1.0, %v844_v12  ;;  %vm850_vm13 = vmor %vm848_vm12, %vm849_vm11  ;;  %v855_v40 = vor.u32 1.1754944e-38, %v854_v0 }
 0x24c   : > { %1133 = vst.msk [vmem:[%s1745_s7 + $0xa8] sm:$0xff] %vm881_vm3, %v912_v15  ;;  %vm853_vm14 = vcmp.eq.f32.partialorder %v852_v61, 8.507059e+37 }
 0x24d   : > { %1141 = vst.msk [vmem:[%s1745_s7 + $0xe8] sm:$0xff] %vm881_vm3, %v929_v9  ;;  %v846_v7 = vmul.f32 %v1310_v23, %v845_v27 }
 0x24e   : > { %1149 = vst.msk [vmem:[%s1745_s7 + $0x128] sm:$0xff] %vm881_vm3, %v946_v47 }
 0x24f   : > { %v847_v19 = vadd.f32 %v1310_v23, %v846_v7  ;;  %v1312_v50 = vpop.eup %1311 }
 0x250   : > { %v859_v18 = vmul.f32 %v1312_v50, %v752_v63  ;;  %vm864_vm15 = vweird.f32 %v1312_v50 }
 0x251   : > { %v851_v48 = vsel %vm850_vm13, %v1310_v23, %v847_v19  ;;  %vm865_vm1 = vmor %vm863_vm0, %vm864_vm15 }
 0x252   : > { %v856_v3 = vsel %vm853_vm14, %v855_v40, %v851_v48  ;;  %v860_v43 = vsub.f32 1.0, %v859_v18 }
 0x253   : > { %v879_v42 = vmul.f32 %v1918_v55, %v856_v3  ;;  %v896_v46 = vmul.f32 %v1924_v30, %v856_v3  ;;  %v913_v59 = vmul.f32 %v1929_v26, %v856_v3  ;;  %v930_v17 = vmul.f32 %v1940_v60, %v856_v3 }
 0x254   : > { %v947_v38 = vmul.f32 %v1949_v33, %v856_v3  ;;  %v861_v4 = vmul.f32 %v1312_v50, %v860_v43  ;;  %v867_v55 = vand.u32 2147483647, %v752_v63  ;;  %v870_v26 = vor.u32 1.1754944e-38, %v869_v49 }
 0x255   : > { %888 = vst.msk [vmem:[%s1745_s7 + $0x30] sm:$0xff] %vm881_vm3, %v879_v42 }
 0x256   : > { %1126 = vst.msk [vmem:[%s1745_s7 + $0x70] sm:$0xff] %vm881_vm3, %v896_v46  ;;  %v862_v30 = vadd.f32 %v1312_v50, %v861_v4  ;;  %vm868_vm2 = vcmp.eq.f32.partialorder %v867_v55, 8.507059e+37 }
 0x257   : > { %1134 = vst.msk [vmem:[%s1745_s7 + $0xb0] sm:$0xff] %vm881_vm3, %v913_v59 }
 0x258   : > { %1142 = vst.msk [vmem:[%s1745_s7 + $0xf0] sm:$0xff] %vm881_vm3, %v930_v17  ;;  %v866_v51 = vsel %vm865_vm1, %v1312_v50, %v862_v30 }
 0x259   : > { %1150 = vst.msk [vmem:[%s1745_s7 + $0x130] sm:$0xff] %vm881_vm3, %v947_v38  ;;  %v871_v22 = vsel %vm868_vm2, %v870_v26, %v866_v51 }
 0x25a   : > { %v880_v29 = vmul.f32 %v1954_v14, %v871_v22  ;;  %v897_v60 = vmul.f32 %v1959_v32, %v871_v22  ;;  %v914_v62 = vmul.f32 %v1971_v34, %v871_v22  ;;  %v931_v1 = vmul.f32 %v1975_v45, %v871_v22 }
 0x25b   : > { %v948_v5 = vmul.f32 %v1308_v58, %v871_v22 }
 0x25c   : > { %889 = vst.msk [vmem:[%s1745_s7 + $0x38] sm:$0xff] %vm881_vm3, %v880_v29 }
 0x25d   : > { %1127 = vst.msk [vmem:[%s1745_s7 + $0x78] sm:$0xff] %vm881_vm3, %v897_v60 }
 0x25e   : > { %1135 = vst.msk [vmem:[%s1745_s7 + $0xb8] sm:$0xff] %vm881_vm3, %v914_v62 }
 0x25f   : > { %1143 = vst.msk [vmem:[%s1745_s7 + $0xf8] sm:$0xff] %vm881_vm3, %v931_v1 }
 0x260   : > { %1151 = vst.msk [vmem:[%s1745_s7 + $0x138] sm:$0xff] %vm881_vm3, %v948_v5 }
 0x261   : > { %1340 = shalt.err (!%p1337_p5)
}
 0x262   : > { %s1393_s4 = smov 128   ;;  %s1394_s5 = smov 8  }
 0x263   : > { %1160 = dma.vmem_to_hbm [thread:$0]  (%p1455_p4), %s974_s11, 5120, %s976_s18, %s959_s19, %s1393_s4, %s1393_s4, %s1394_s5  }
 0x264 PF: > { %p1166_p6 = scmp.ge.s32.totalorder %s1391_s17, 2  ;;  %s990_s6 = sand.u32 1, %s1371_s12  }
 0x265   : > { %s991_s7 = scalar_lea.sflag [#allocation3], %s990_s6 }
 0x266   : > { %p1163_p7 = pnand %p1166_p6, %p1462_p8 }
 0x268   : > { %p1164_p9 = pneg %p1163_p7 }
 0x26a   : > { %1366 = dma.done.wait (%p1164_p9), %s991_s7, 5120  }
 0x26b   : > { %1368 = vsyncadd (%p1164_p9), %s991_s7, 4294962176  ;;  %s16_s17 = sadd.s32 1, %s1391_s17   ;;  %s2073_s12 = smov %s1375_s13 }
 0x26c   : > { %p13_p10 = scmp.ge.s32.totalorder %s16_s17, 4   ;;  %s2074_s13 = smov %s1379_s14 }
 0x26d   : > { %s2075_s14 = smov %s1468_s25  ;;  %s2076_s15 = smov %s1387_s16 }
 0x26e   : > { %s2077_s16 = smov %s2079_s20  ;;  %15 = sbr.rel (!%p13_p10) target bundleno = 4 (0x4), region = 78 }
 0x273   :  { %997 = vsyncpa [#allocation3], 1 }
 0x274   :  { %999 = vsyncpa [#allocation3 + $0x1], 1 }

// kernel: deeplabv3_forward.5
= control target key start
LH: loop header
LB: loop body
LE: loop exit
PB: predicated region body
PF: predicated region fallthrough
CT: control target
= control target key end

     0   :  { %s6235_s13 = smov 0   ;;  %s8156_s0 = inlined_call_operand.vmem [shape: bf16[2,64,256], index: 0, kind: input, shape index: {}]   ;;  %s8157_s1 = inlined_call_operand.vmem [shape: bf16[3,256,64], index: 1, kind: input, shape index: {}]   ;;  %s8158_s2 = inlined_call_operand.vmem [shape: bf16[3,9,64,64], index: 2, kind: input, shape index: {}]   ;;  %s8159_s3 = inlined_call_operand.vmem [shape: bf16[3,64,256], index: 3, kind: input, shape index: {}]   ;;  %s8160_s4 = inlined_call_operand.vmem [shape: f32[3,1,64], index: 4, kind: input, shape index: {}]   ;;  %s8161_s5 = inlined_call_operand.vmem [shape: f32[3,1,64], index: 5, kind: input, shape index: {}]   ;;  %s8162_s6 = inlined_call_operand.vmem [shape: f32[3,1,64], index: 6, kind: input, shape index: {}]   ;;  %s8163_s7 = inlined_call_operand.vmem [shape: f32[3,1,64], index: 7, kind: input, shape index: {}]   ;;  %s8164_s8 = inlined_call_operand.vmem [shape: f32[3,1,256], index: 8, kind: input, shape index: {}]   ;;  %s8165_s9 = inlined_call_operand.vmem [shape: f32[3,1,256], index: 9, kind: input, shape index: {}]   ;;  %s8166_s10 = inlined_call_operand.vmem [shape: bf16[2,64,256], index: 10, kind: output, shape index: {}]  }
   0x1 LB: > { %s4745_s14 = sadd.s32 4294967295, %s6177_s13   ;;  %p4749_p0 = scmp.ge.s32.totalorder %s6177_s13, 1  ;;  %s6177_s13 = sphi %s6235_s13, %s20_s13  }
   0x2   : > { %p312_p1 = scmp.lt.s32.totalorder %s6177_s13, 3 }
   0x4   : > { %p313_p2 = pnand %p4749_p0, %p312_p1 }
   0x6   : > { %316 = sbr.rel (%p313_p2) target bundleno = 1789 (0x6fd), region = 60 }
   0xb   : > { %v5973_v0 = vld [vmem:[%s8157_s1 + $0x38] sm:$0xff]  ;;  %v5972_v2 = vld [vmem:[%s8157_s1 + $0x30] sm:$0xff]  ;;  %v5971_v4 = vld [vmem:[%s8157_s1 + $0x28] sm:$0xff]  ;;  %p350_p3 = scmp.lt.s32.totalorder %s4745_s14, 1  ;;  %vm361_vm0 = vcmask 523264   ;;  %v6179_v46 = vmov 0.0  }
   0xc   : > { %v5981_v1 = vld [vmem:[%s8157_s1 + $0x78] sm:$0xff]  ;;  %721 = vmatpush.bf16.msra.mxu0 %v5973_v0  ;;  %v5980_v3 = vld [vmem:[%s8157_s1 + $0x70] sm:$0xff]  ;;  %v5979_v5 = vld [vmem:[%s8157_s1 + $0x68] sm:$0xff]  ;;  %364 = vst.msk [vmem:[#allocation2 + $0x10] sm:$0xff] %vm361_vm0, %v6179_v46  ;;  %vm374_vm2 = vcmask 519168  }
   0xd   : > { %750 = vmatpush.bf16.msra.mxu1 %v5981_v1  ;;  %v5970_v6 = vld [vmem:[%s8157_s1 + $0x20] sm:$0xff]  ;;  %v5969_v8 = vld [vmem:[%s8157_s1 + $0x18] sm:$0xff]  ;;  %s8307_s14 = smov (!%p350_p3, %s4745_s14), 1  ;;  %v5968_v10 = vld [vmem:[%s8157_s1 + $0x10] sm:$0xff]  ;;  %365 = vst.msk [vmem:[#allocation2 + $0x18] sm:$0xff] %vm361_vm0, %v6179_v46 }
   0xe   : > { %v5978_v7 = vld [vmem:[%s8157_s1 + $0x60] sm:$0xff]  ;;  %v5977_v9 = vld [vmem:[%s8157_s1 + $0x58] sm:$0xff]  ;;  %v5976_v11 = vld [vmem:[%s8157_s1 + $0x50] sm:$0xff]  ;;  %s5956_s21 = sshll.u32 %s8307_s14, 6  ;;  %362 = vst.msk [vmem:[#allocation2] sm:$0xff] %vm361_vm0, %v6179_v46 }
   0xf   : > { %v5967_v12 = vld [vmem:[%s8157_s1 + $0x8] sm:$0xff]  ;;  %s6293_s28 = scalar_lea.vmem %s8156_s0, %s5956_s21  ;;  %v5966_v14 = vld [vmem:[%s8157_s1] sm:$0xff]  ;;  %v5985_v28 = vld [vmem:[%s8158_s2 + $0x18] sm:$0xff]  ;;  %363 = vst.msk [vmem:[#allocation2 + $0x8] sm:$0xff] %vm361_vm0, %v6179_v46  ;;  %s8089_s12 = scalar_lea.vmem %s8166_s10, %s5956_s21 }
  0x10   : > { %722 = vmatpush.bf16.msra.mxu0 %v5972_v2  ;;  %v5975_v13 = vld [vmem:[%s8157_s1 + $0x48] sm:$0xff]  ;;  %v5974_v15 = vld [vmem:[%s8157_s1 + $0x40] sm:$0xff]  ;;  %v4780_v22 = vld [vmem:[%s6293_s28 + $0x10] sm:$0xf]  ;;  %879 = vmatpush.bf16.msra.mxu2 %v5985_v28  ;;  %366 = vst.msk [vmem:[#allocation2 + $0x20] sm:$0xff] %vm361_vm0, %v6179_v46 }
  0x11   : > { %751 = vmatpush.bf16.msra.mxu1 %v5980_v3  ;;  %v4772_v16 = vld [vmem:[%s6293_s28] sm:$0xf]  ;;  %v5959_v17 = vld [vmem:[%s6293_s28 + $0x4] sm:$0xf0]  ;;  %v5958_v18 = vld [vmem:[%s6293_s28 + $0x4] sm:$0xf] }
  0x12   : > { %v4774_v19 = vld [vmem:[%s6293_s28 + $0x8] sm:$0xf0]  ;;  %v4773_v20 = vor.u32 %v5959_v17, %v4772_v16  ;;  %v5961_v23 = vld [vmem:[%s6293_s28 + $0x14] sm:$0xf0]  ;;  %v5960_v24 = vld [vmem:[%s6293_s28 + $0x14] sm:$0xf] }
  0x13   : > { %v4777_v21 = vor.u32 %v5958_v18, %v4774_v19  ;;  %v4782_v25 = vld [vmem:[%s6293_s28 + $0x18] sm:$0xf0]  ;;  %v4781_v26 = vor.u32 %v5961_v23, %v4780_v22  ;;  %v5984_v30 = vld [vmem:[%s8158_s2 + $0x10] sm:$0xff]  ;;  %v5983_v32 = vld [vmem:[%s8158_s2 + $0x8] sm:$0xff]  ;;  %367 = vst.msk [vmem:[#allocation2 + $0x28] sm:$0xff] %vm361_vm0, %v6179_v46 }
  0x14   : > { %723 = vmatpush.bf16.msra.mxu0 %v5971_v4  ;;  %v4785_v27 = vor.u32 %v5960_v24, %v4782_v25  ;;  %v5989_v29 = vld [vmem:[%s8158_s2 + $0x38] sm:$0xff]  ;;  %v5988_v31 = vld [vmem:[%s8158_s2 + $0x30] sm:$0xff]  ;;  %880 = vmatpush.bf16.msra.mxu2 %v5984_v30  ;;  %v5987_v33 = vld [vmem:[%s8158_s2 + $0x28] sm:$0xff]  ;;  %368 = vst.msk [vmem:[#allocation2 + $0x30] sm:$0xff] %vm361_vm0, %v6179_v46 }
  0x15   : > { %752 = vmatpush.bf16.msra.mxu1 %v5979_v5  ;;  %981 = vmatpush.bf16.msra.mxu3 %v5989_v29  ;;  %v4788_v34 = vld [vmem:[%s6293_s28 + $0x20] sm:$0xf]  ;;  %v5963_v35 = vld [vmem:[%s6293_s28 + $0x24] sm:$0xf0]  ;;  %v5962_v36 = vld [vmem:[%s6293_s28 + $0x24] sm:$0xf] }
  0x16   : > { %v4790_v37 = vld [vmem:[%s6293_s28 + $0x28] sm:$0xf0]  ;;  %v4789_v38 = vor.u32 %v5963_v35, %v4788_v34  ;;  %v4796_v40 = vld [vmem:[%s6293_s28 + $0x30] sm:$0xf]  ;;  %v5965_v41 = vld [vmem:[%s6293_s28 + $0x34] sm:$0xf0] }
  0x17   : > { %v4793_v39 = vor.u32 %v5962_v36, %v4790_v37  ;;  %v5964_v42 = vld [vmem:[%s6293_s28 + $0x34] sm:$0xf]  ;;  %v4798_v43 = vld [vmem:[%s6293_s28 + $0x38] sm:$0xf0]  ;;  %v4797_v44 = vor.u32 %v5965_v41, %v4796_v40  ;;  %v5982_v47 = vld [vmem:[%s8158_s2] sm:$0xff]  ;;  %369 = vst.msk [vmem:[#allocation2 + $0x38] sm:$0xff] %vm361_vm0, %v6179_v46 }
  0x18   : > { %724 = vmatpush.bf16.msra.mxu0 %v5970_v6  ;;  %881 = vmatpush.bf16.msra.mxu2 %v5983_v32  ;;  %v4801_v45 = vor.u32 %v5964_v42, %v4798_v43  ;;  %v5986_v48 = vld [vmem:[%s8158_s2 + $0x20] sm:$0xff]  ;;  %370 = vst.msk [vmem:[#allocation2 + $0x40] sm:$0xff] %vm361_vm0, %v6179_v46  ;;  %v820_v50 = vld [vmem:[#allocation2 + $0x8] sm:$0xff]  ;;  %v6001_v55 = vld [vmem:[%s8158_s2 + $0x98] sm:$0xff] }
  0x19   : > { %753 = vmatpush.bf16.msra.mxu1 %v5978_v7  ;;  %982 = vmatpush.bf16.msra.mxu3 %v5988_v31  ;;  %371 = vst.msk [vmem:[#allocation2 + $0x48] sm:$0xff] %vm361_vm0, %v6179_v46  ;;  %v819_v49 = vld [vmem:[#allocation2] sm:$0xff]  ;;  %v921_v53 = vld [vmem:[#allocation2 + $0xa] sm:$0xff]  ;;  %v5993_v57 = vld [vmem:[%s8158_s2 + $0x58] sm:$0xff] }
  0x1a   : > { %372 = vst.msk [vmem:[#allocation2 + $0x50] sm:$0xff] %vm361_vm0, %v6179_v46  ;;  %v920_v51 = vld [vmem:[#allocation2 + $0x2] sm:$0xff]  ;;  %v827_v52 = vpack.c.bf16 %v820_v50, %v819_v49  ;;  %v6000_v56 = vld [vmem:[%s8158_s2 + $0x90] sm:$0xff]  ;;  %v5997_v58 = vld [vmem:[%s8158_s2 + $0x78] sm:$0xff] }
  0x1b   : > { %373 = vst.msk [vmem:[#allocation2 + $0x58] sm:$0xff] %vm361_vm0, %v6179_v46  ;;  %v928_v54 = vpack.c.bf16 %v921_v53, %v920_v51  ;;  %v5999_v59 = vld [vmem:[%s8158_s2 + $0x88] sm:$0xff]  ;;  %v6005_v60 = vld [vmem:[%s8158_s2 + $0xb8] sm:$0xff]  ;;  %v5998_v61 = vld [vmem:[%s8158_s2 + $0x80] sm:$0xff] }
  0x1c   : > { %725 = vmatpush.bf16.msra.mxu0 %v5969_v8  ;;  %882 = vmatpush.bf16.msra.mxu2 %v5982_v47  ;;  %v6004_v62 = vld [vmem:[%s8158_s2 + $0xb0] sm:$0xff]  ;;  %v6003_v63 = vld [vmem:[%s8158_s2 + $0xa8] sm:$0xff]  ;;  %v6397_v0 = vld [vmem:[%s8160_s4] ss:$0 sm:$0xff]  ;;  %375 = vst.msk [vmem:[#allocation2 + $0x60] sm:$0xf] %vm374_vm2, %v6179_v46 }
  0x1d   : > { %754 = vmatpush.bf16.msra.mxu1 %v5977_v9  ;;  %983 = vmatpush.bf16.msra.mxu3 %v5987_v33  ;;  %v6002_v1 = vld [vmem:[%s8158_s2 + $0xa0] sm:$0xff]  ;;  %v5992_v6 = vld [vmem:[%s8158_s2 + $0x50] sm:$0xff] }
  0x1e   : > { %v6405_v5 = vld [vmem:[%s8161_s5] ss:$0 sm:$0xff]  ;;  %v5996_v7 = vld [vmem:[%s8158_s2 + $0x70] sm:$0xff] }
  0x1f   : > { %4882 = vmatmul.msk.bf16.vlgmr.msra.gmra.mxu2 %vm361_vm0, %v827_v52  ;;  %v5990_v43 = vld [vmem:[%s8158_s2 + $0x40] sm:$0xff] }
  0x20   : > { %726 = vmatpush.bf16.msra.mxu0 %v5968_v10  ;;  %1075 = vmatpush.bf16.msrb.mxu2 %v5993_v57 }
  0x21   : > { %755 = vmatpush.bf16.msra.mxu1 %v5976_v11  ;;  %984 = vmatpush.bf16.msra.mxu3 %v5986_v48 }
  0x24   : > { %727 = vmatpush.bf16.msra.mxu0 %v5967_v12  ;;  %4910 = vmatmul.msk.bf16.vlgmr.msra.gmra.mxu3 %vm361_vm0, %v928_v54 }
  0x25   : > { %756 = vmatpush.bf16.msra.mxu1 %v5975_v13  ;;  %1177 = vmatpush.bf16.msrb.mxu3 %v5997_v58 }
  0x26   : > { %1076 = vmatpush.bf16.msrb.mxu2 %v5992_v6 }
  0x28   : > { %728 = vmatpush.bf16.msra.mxu0 %v5966_v14 }
  0x29   : > { %757 = vmatpush.bf16.msra.mxu1 %v5974_v15  ;;  %1178 = vmatpush.bf16.msrb.mxu3 %v5996_v7 }
  0x2b   : > { %729 = vmatmul.bf16.vlgmr.msra.gmra.mxu0 %v4773_v20  ;;  %v5991_v20 = vld [vmem:[%s8158_s2 + $0x48] sm:$0xff] }
  0x2c   : > { %758 = vmatmul.bf16.vlgmr.msra.gmra.mxu1 %v4777_v21  ;;  %1279 = vmatpush.bf16.msrb.mxu0 %v6001_v55  ;;  %v5995_v21 = vld [vmem:[%s8158_s2 + $0x68] sm:$0xff] }
  0x2d   : > { %1373 = vmatpush.bf16.msrb.mxu1 %v6005_v60  ;;  %1077 = vmatpush.bf16.msrb.mxu2 %v5991_v20  ;;  %v6009_v60 = vld [vmem:[%s8158_s2 + $0xd8] sm:$0xff] }
  0x2e   : > { %1179 = vmatpush.bf16.msrb.mxu3 %v5995_v21 }
  0x30   : > { %1280 = vmatpush.bf16.msrb.mxu0 %v6000_v56 }
  0x31   : > { %1374 = vmatpush.bf16.msrb.mxu1 %v6004_v62  ;;  %1078 = vmatpush.bf16.msrb.mxu2 %v5990_v43  ;;  %v376_v43 = vlaneseq }
  0x34   : > { %1281 = vmatpush.bf16.msrb.mxu0 %v5999_v59  ;;  %v6017_v59 = vld [vmem:[%s8158_s2 + $0x118] sm:$0xff] }
  0x35   : > { %1375 = vmatpush.bf16.msrb.mxu1 %v6003_v63  ;;  %v6016_v63 = vld [vmem:[%s8158_s2 + $0x110] sm:$0xff]  ;;  %1475 = vmatpush.bf16.msra.mxu2 %v6009_v60 }
  0x38   : > { %1282 = vmatpush.bf16.msrb.mxu0 %v5998_v61  ;;  %v6013_v61 = vld [vmem:[%s8158_s2 + $0xf8] sm:$0xff] }
  0x39   : > { %1376 = vmatpush.bf16.msrb.mxu1 %v6002_v1 }
  0x3b   : > { %734 = vmatmul.bf16.gmra.mxu0 %v4781_v26 }
  0x3c   : > { %763 = vmatmul.bf16.gmra.mxu1 %v4785_v27  ;;  %1671 = vmatpush.bf16.msra.mxu0 %v6017_v59 }
  0x3d   : > { %6146 = vmatpush.bf16.msra.mxu1 %v6017_v59 }
  0x40   : > { %1672 = vmatpush.bf16.msra.mxu0 %v6016_v63 }
  0x41   : > { %6147 = vmatpush.bf16.msra.mxu1 %v6016_v63 }
  0x4b   : > { %739 = vmatmul.bf16.gmra.mxu0 %v4789_v38 }
  0x4c   : > { %768 = vmatmul.bf16.gmra.mxu1 %v4793_v39 }
  0x5b   : > { %744 = vmatmul.bf16.gmra.mxu0 %v4797_v44  ;;  %v5994_v44 = vld [vmem:[%s8158_s2 + $0x60] sm:$0xff] }
  0x5c   : > { %773 = vmatmul.bf16.gmra.mxu1 %v4801_v45  ;;  %1180 = vmatpush.bf16.msrb.mxu3 %v5994_v44  ;;  %v6534_v44 = vshrl.u32 %v376_v43, 7 }
  0x5e   : > { %v6579_v63 = vadd.s32 32, %v6534_v44 }
  0x60   : > { %1577 = vmatpush.bf16.msra.mxu3 %v6013_v61 }
  0xa8   : > { %v730_v2 = vpop.f32.mrf.mxu0 }
  0xa9   : > { %v759_v3 = vpop.f32.mrf.mxu1 }
  0xaa   : > { %v760_v4 = vadd.f32 %v759_v3, %v730_v2 }
  0xac   : > { %v783_v8 = vmul.f32 %v6397_v0, %v760_v4 }
  0xae   : > { %v795_v9 = vadd.f32 %v6405_v5, %v783_v8 }
  0xb0   : > { %v803_v10 = vmax.f32 %v795_v9, 0.0  ;;  %v732_v11 = vpop.f32.mrf.mxu0  ;;  %v6015_v9 = vld [vmem:[%s8158_s2 + $0x108] sm:$0xff] }
  0xb1   : > { %v761_v12 = vpop.f32.mrf.mxu1  ;;  %1673 = vmatpush.bf16.msra.mxu0 %v6015_v9  ;;  %6148 = vmatpush.bf16.msra.mxu1 %v6015_v9 }
  0xb2   : > { %811 = vst.msk [vmem:[#allocation2 + $0x12] sm:$0xff] %vm361_vm0, %v803_v10  ;;  %v762_v13 = vadd.f32 %v761_v12, %v732_v11  ;;  %v6014_v12 = vld [vmem:[%s8158_s2 + $0x100] sm:$0xff] }
  0xb4   : > { %v784_v14 = vmul.f32 %v6397_v0, %v762_v13 }
  0xb5   : > { %1674 = vmatpush.bf16.msra.mxu0 %v6014_v12  ;;  %6149 = vmatpush.bf16.msra.mxu1 %v6014_v12 }
  0xb6   : > { %v796_v15 = vadd.f32 %v6405_v5, %v784_v14 }
  0xb8   : > { %v804_v16 = vmax.f32 %v796_v15, 0.0  ;;  %v735_v17 = vpop.f32.mrf.mxu0 }
  0xb9   : > { %v764_v18 = vpop.f32.mrf.mxu1  ;;  %v821_v25 = vld [vmem:[#allocation2 + $0x10] sm:$0xff] }
  0xba   : > { %812 = vst.msk [vmem:[#allocation2 + $0x1a] sm:$0xff] %vm361_vm0, %v804_v16  ;;  %v765_v19 = vadd.f32 %v764_v18, %v735_v17  ;;  %v922_v29 = vld [vmem:[#allocation2 + $0x12] sm:$0xff] }
  0xbc   : > { %v785_v22 = vmul.f32 %v6397_v0, %v765_v19 }
  0xbe   : > { %v797_v23 = vadd.f32 %v6405_v5, %v785_v22 }
  0xc0   : > { %v805_v24 = vmax.f32 %v797_v23, 0.0  ;;  %v737_v26 = vpop.f32.mrf.mxu0 }
  0xc1   : > { %v766_v27 = vpop.f32.mrf.mxu1  ;;  %v822_v28 = vld [vmem:[#allocation2 + $0x18] sm:$0xff] }
  0xc2   : > { %v923_v30 = vld [vmem:[#allocation2 + $0x1a] sm:$0xff]  ;;  %813 = vst.msk [vmem:[#allocation2 + $0x22] sm:$0xff] %vm361_vm0, %v805_v24  ;;  %v767_v31 = vadd.f32 %v766_v27, %v737_v26  ;;  %v6428_v32 = vpack.c.bf16 %v822_v28, %v821_v25  ;;  %v6008_v24 = vld [vmem:[%s8158_s2 + $0xd0] sm:$0xff] }
  0xc3   : > { %v929_v33 = vpack.c.bf16 %v923_v30, %v922_v29  ;;  %v1312_v39 = vld [vmem:[#allocation2 + $0x14] sm:$0xff]  ;;  %1476 = vmatpush.bf16.msra.mxu2 %v6008_v24  ;;  %v1014_v30 = vld [vmem:[#allocation2 + $0x4] sm:$0xff] }
  0xc4   : > { %v786_v34 = vmul.f32 %v6397_v0, %v767_v31  ;;  %4883 = vmatmul.msk.bf16.gmra.mxu2 %vm361_vm0, %v6428_v32  ;;  %v6012_v25 = vld [vmem:[%s8158_s2 + $0xf0] sm:$0xff] }
  0xc5   : > { %4911 = vmatmul.msk.bf16.gmra.mxu3 %vm361_vm0, %v929_v33  ;;  %4994 = vmatmul.msk.bf16.vlgmr.msrb.gmra.mxu0 %vm361_vm0, %v929_v33  ;;  %v1015_v31 = vld [vmem:[#allocation2 + $0xc] sm:$0xff] }
  0xc6   : > { %v798_v35 = vadd.f32 %v6405_v5, %v786_v34  ;;  %1578 = vmatpush.bf16.msra.mxu3 %v6012_v25 }
  0xc8   : > { %v806_v36 = vmax.f32 %v798_v35, 0.0  ;;  %v740_v37 = vpop.f32.mrf.mxu0  ;;  %v1022_v35 = vpack.c.bf16 %v1015_v31, %v1014_v30 }
  0xc9   : > { %v769_v38 = vpop.f32.mrf.mxu1  ;;  %v1313_v40 = vld [vmem:[#allocation2 + $0x1c] sm:$0xff] }
  0xca   : > { %814 = vst.msk [vmem:[#allocation2 + $0x2a] sm:$0xff] %vm361_vm0, %v806_v36  ;;  %v770_v41 = vadd.f32 %v769_v38, %v740_v37  ;;  %v6437_v42 = vpack.c.bf16 %v1313_v40, %v1312_v39  ;;  %v823_v49 = vld [vmem:[#allocation2 + $0x20] sm:$0xff]  ;;  %v6011_v39 = vld [vmem:[%s8158_s2 + $0xe8] sm:$0xff] }
  0xcb   : > { %v924_v53 = vld [vmem:[#allocation2 + $0x22] sm:$0xff]  ;;  %1579 = vmatpush.bf16.msra.mxu3 %v6011_v39 }
  0xcc   : > { %v787_v45 = vmul.f32 %v6397_v0, %v770_v41  ;;  %5022 = vmatmul.msk.bf16.vlgmr.msrb.gmra.mxu1 %vm361_vm0, %v6437_v42  ;;  %v6010_v41 = vld [vmem:[%s8158_s2 + $0xe0] sm:$0xff] }
  0xce   : > { %v799_v47 = vadd.f32 %v6405_v5, %v787_v45 }
  0xcf   : > { %1580 = vmatpush.bf16.msra.mxu3 %v6010_v41 }
  0xd0   : > { %v807_v48 = vmax.f32 %v799_v47, 0.0  ;;  %v742_v50 = vpop.f32.mrf.mxu0  ;;  %v884_v47 = vpop.f32.mrf.mxu2 }
  0xd1   : > { %v771_v51 = vpop.f32.mrf.mxu1  ;;  %v824_v52 = vld [vmem:[#allocation2 + $0x28] sm:$0xff] }
  0xd2   : > { %v925_v54 = vld [vmem:[#allocation2 + $0x2a] sm:$0xff]  ;;  %815 = vst.msk [vmem:[#allocation2 + $0x32] sm:$0xff] %vm361_vm0, %v807_v48  ;;  %v772_v55 = vadd.f32 %v771_v51, %v742_v50  ;;  %v6450_v56 = vpack.c.bf16 %v824_v52, %v823_v49  ;;  %v986_v49 = vpop.f32.mrf.mxu3 }
  0xd3   : > { %v6452_v57 = vpack.c.bf16 %v925_v54, %v924_v53  ;;  %v1314_v4 = vld [vmem:[#allocation2 + $0x24] sm:$0xff]  ;;  %v6558_v54 = vadd.s32 16, %v6534_v44 }
  0xd4   : > { %v788_v58 = vmul.f32 %v6397_v0, %v772_v55  ;;  %4884 = vmatmul.msk.bf16.gmra.mxu2 %vm361_vm0, %v6450_v56 }
  0xd5   : > { %4912 = vmatmul.msk.bf16.gmra.mxu3 %vm361_vm0, %v6452_v57  ;;  %4995 = vmatmul.msk.bf16.gmra.mxu0 %vm361_vm0, %v6452_v57  ;;  %v403_v55 = vand.u32 7, %v6558_v54 }
  0xd6   : > { %v800_v62 = vadd.f32 %v6405_v5, %v788_v58 }
  0xd7   : > { %vm483_vm3 = vcmp.ge.s32.totalorder %v403_v55, 2  ;;  %vm507_vm7 = vcmp.lt.s32.totalorder %v403_v55, 6 }
  0xd8   : > { %v808_v1 = vmax.f32 %v800_v62, 0.0  ;;  %v745_v2 = vpop.f32.mrf.mxu0  ;;  %v6561_v58 = vpop.f32.mrf.mxu2 }
  0xd9   : > { %v774_v3 = vpop.f32.mrf.mxu1  ;;  %v1315_v6 = vld [vmem:[#allocation2 + $0x2c] sm:$0xff] }
  0xda   : > { %816 = vst.msk [vmem:[#allocation2 + $0x3a] sm:$0xff] %vm361_vm0, %v808_v1  ;;  %v775_v7 = vadd.f32 %v774_v3, %v745_v2  ;;  %v6475_v8 = vpack.c.bf16 %v1315_v6, %v1314_v4  ;;  %v825_v14 = vld [vmem:[#allocation2 + $0x30] sm:$0xff]  ;;  %v6563_v59 = vpop.f32.mrf.mxu3  ;;  %v1617_v2 = vld [vmem:[#allocation2 + $0x5c] sm:$0xff]  ;;  %v417_v4 = vand.u32 7, %v6579_v63 }
  0xdb   : > { %v926_v18 = vld [vmem:[#allocation2 + $0x32] sm:$0xff]  ;;  %v5122_v63 = vld [vmem:[%s8159_s3 + $0x18] sm:$0xf0] }
  0xdc   : > { %v789_v10 = vmul.f32 %v6397_v0, %v775_v7  ;;  %5023 = vmatmul.msk.bf16.gmra.mxu1 %vm361_vm0, %v6475_v8  ;;  %v1616_v1 = vld [vmem:[#allocation2 + $0x54] sm:$0xff]  ;;  %vm485_vm4 = vcmp.ge.s32.totalorder %v417_v4, 2  ;;  %vm509_vm8 = vcmp.lt.s32.totalorder %v417_v4, 6 }
  0xdd   : > { %v1621_v3 = vpack.c.bf16 %v1617_v2, %v1616_v1 }
  0xde   : > { %v801_v11 = vadd.f32 %v6405_v5, %v789_v10 }
  0xe0   : > { %v809_v13 = vmax.f32 %v801_v11, 0.0  ;;  %v747_v15 = vpop.f32.mrf.mxu0 }
  0xe1   : > { %v776_v16 = vpop.f32.mrf.mxu1  ;;  %v826_v17 = vld [vmem:[#allocation2 + $0x38] sm:$0xff] }
  0xe2   : > { %v927_v19 = vld [vmem:[#allocation2 + $0x3a] sm:$0xff]  ;;  %817 = vst.msk [vmem:[#allocation2 + $0x42] sm:$0xff] %vm361_vm0, %v809_v13  ;;  %v777_v20 = vadd.f32 %v776_v16, %v747_v15  ;;  %v6488_v21 = vpack.c.bf16 %v826_v17, %v825_v14  ;;  %v6599_v13 = vadd.s32 48, %v6534_v44  ;;  %v1522_v14 = vld [vmem:[#allocation2 + $0x52] sm:$0xff] }
  0xe3   : > { %v6490_v22 = vpack.c.bf16 %v927_v19, %v926_v18  ;;  %v1316_v27 = vld [vmem:[#allocation2 + $0x34] sm:$0xff] }
  0xe4   : > { %v790_v23 = vmul.f32 %v6397_v0, %v777_v20  ;;  %4885 = vmatmul.msk.bf16.gmra.mxu2 %vm361_vm0, %v6488_v21  ;;  %v1523_v15 = vld [vmem:[#allocation2 + $0x5a] sm:$0xff]  ;;  %v431_v16 = vand.u32 7, %v6599_v13 }
  0xe5   : > { %4913 = vmatmul.msk.bf16.gmra.mxu3 %vm361_vm0, %v6490_v22  ;;  %4996 = vmatmul.msk.bf16.gmra.mxu0 %vm361_vm0, %v6490_v22  ;;  %v1421_v20 = vld [vmem:[#allocation2 + $0x58] sm:$0xff] }
  0xe6   : > { %v802_v26 = vadd.f32 %v6405_v5, %v790_v23  ;;  %v6007_v5 = vld [vmem:[%s8158_s2 + $0xc8] sm:$0xff]  ;;  %vm487_vm5 = vcmp.ge.s32.totalorder %v431_v16, 2  ;;  %vm511_vm9 = vcmp.lt.s32.totalorder %v431_v16, 6 }
  0xe7   : > { %1477 = vmatpush.bf16.msra.mxu2 %v6007_v5  ;;  %v6611_v24 = vsel %vm487_vm5, 1.0, %v6179_v46 }
  0xe8   : > { %v810_v0 = vmax.f32 %v802_v26, 0.0 }
  0xe9   : > { %v1317_v28 = vld [vmem:[#allocation2 + $0x3c] sm:$0xff] }
  0xea   : > { %818 = vst.msk [vmem:[#allocation2 + $0x4a] sm:$0xff] %vm361_vm0, %v810_v0  ;;  %v1322_v29 = vpack.c.bf16 %v1317_v28, %v1316_v27  ;;  %v1224_v33 = vld [vmem:[#allocation2 + $0x42] sm:$0xff] }
  0xeb   : > { %v1122_v52 = vld [vmem:[#allocation2 + $0x40] sm:$0xff] }
  0xec   : > { %5024 = vmatmul.msk.bf16.gmra.mxu1 %vm361_vm0, %v1322_v29 }
  0xf1   : > { %v1225_v34 = vld [vmem:[#allocation2 + $0x4a] sm:$0xff] }
  0xf2   : > { %v6508_v36 = vpack.c.bf16 %v1225_v34, %v1224_v33  ;;  %v1318_v37 = vld [vmem:[#allocation2 + $0x44] sm:$0xff]  ;;  %v1319_v38 = vld [vmem:[#allocation2 + $0x4c] sm:$0xff]  ;;  %v6024_v33 = vld [vmem:[%s8159_s3 + $0x34] sm:$0xf] }
  0xf3   : > { %v1323_v40 = vpack.c.bf16 %v1319_v38, %v1318_v37  ;;  %v1123_v51 = vld [vmem:[#allocation2 + $0x48] sm:$0xff]  ;;  %v1420_v19 = vld [vmem:[#allocation2 + $0x50] sm:$0xff]  ;;  %v5138_v34 = vld [vmem:[%s8159_s3 + $0x38] sm:$0xf0] }
  0xf4   : > { %4938 = vmatmul.msk.bf16.vlgmr.msrb.gmra.mxu2 %vm361_vm0, %v1022_v35  ;;  %v1127_v53 = vpack.c.bf16 %v1123_v51, %v1122_v52  ;;  %v1425_v23 = vpack.c.bf16 %v1421_v20, %v1420_v19  ;;  %v5141_v37 = vor.u32 %v6024_v33, %v5138_v34  ;;  %v6655_v51 = vsel %vm507_vm7, 1.0, %v6179_v46 }
  0xf5   : > { %4966 = vmatmul.msk.bf16.vlgmr.msrb.gmra.mxu3 %vm361_vm0, %v6428_v32  ;;  %4997 = vmatmul.msk.bf16.gmra.mxu0 %vm361_vm0, %v6508_v36  ;;  %v6006_v32 = vld [vmem:[%s8158_s2 + $0xc0] sm:$0xff]  ;;  %v6682_v19 = vsel %vm509_vm8, 1.0, %v6179_v46 }
  0xf6   : > { %1478 = vmatpush.bf16.msra.mxu2 %v6006_v32 }
  0xfa   : > { %1841 = vmatpush.bf16.msrb.mxu2 %v5141_v37 }
  0xfc   : > { %5025 = vmatmul.msk.bf16.gmra.mxu1 %vm361_vm0, %v1323_v40 }
 0x104   : > { %4939 = vmatmul.msk.bf16.gmra.mxu2 %vm361_vm0, %v6437_v42  ;;  %v389_v42 = vand.u32 7, %v6534_v44 }
 0x105   : > { %4967 = vmatmul.msk.bf16.gmra.mxu3 %vm361_vm0, %v6450_v56  ;;  %5106 = vmatmul.msk.bf16.vlgmr.msra.gmra.mxu0 %vm361_vm0, %v6475_v8 }
 0x106   : > { %vm481_vm1 = vcmp.ge.s32.totalorder %v389_v42, 2  ;;  %vm505_vm6 = vcmp.lt.s32.totalorder %v389_v42, 6 }
 0x107   : > { %v6541_v45 = vsel %vm481_vm1, 1.0, %v6179_v46  ;;  %v6631_v35 = vsel %vm505_vm6, 1.0, %v6179_v46 }
 0x108   : > { %v904_v48 = vmul.f32 %v6541_v45, %v884_v47 }
 0x10a   : > { %v6549_v50 = vadd.f32 %v986_v49, %v904_v48  ;;  %v6022_v49 = vld [vmem:[%s8159_s3 + $0x24] sm:$0xf] }
 0x10c   : > { %5108 = vmatmul.msk.bf16.vlgmr.msra.gmra.mxu1 %vm361_vm0, %v1323_v40 }
 0x114   : > { %4940 = vmatmul.msk.bf16.gmra.mxu2 %vm361_vm0, %v6475_v8  ;;  %v6593_v8 = vsel %vm485_vm4, 1.0, %v6179_v46 }
 0x115   : > { %4968 = vmatmul.msk.bf16.gmra.mxu3 %vm361_vm0, %v6488_v21  ;;  %5107 = vmatmul.msk.bf16.gmra.mxu0 %vm361_vm0, %v1322_v29 }
 0x11c   : > { %5109 = vmatmul.msk.bf16.gmra.mxu1 %vm361_vm0, %v1621_v3 }
 0x124   : > { %4941 = vmatmul.msk.bf16.gmra.mxu2 %vm361_vm0, %v1322_v29 }
 0x125   : > { %4969 = vmatmul.msk.bf16.gmra.mxu3 %vm361_vm0, %v1127_v53 }
 0x134   : > { %5050 = vmatmul.msk.bf16.vlgmr.msra.gmra.mxu2 %vm361_vm0, %v6450_v56  ;;  %v6573_v56 = vsel %vm483_vm3, 1.0, %v6179_v46 }
 0x135   : > { %5078 = vmatmul.msk.bf16.vlgmr.msra.gmra.mxu3 %vm361_vm0, %v6452_v57 }
 0x144   : > { %5051 = vmatmul.msk.bf16.gmra.mxu2 %vm361_vm0, %v6488_v21  ;;  %v1527_v21 = vpack.c.bf16 %v1523_v15, %v1522_v14  ;;  %v6025_v14 = vld [vmem:[%s8159_s3 + $0x34] sm:$0xf0]  ;;  %v6020_v15 = vld [vmem:[%s8159_s3 + $0x14] sm:$0xf] }
 0x145   : > { %5079 = vmatmul.msk.bf16.gmra.mxu3 %vm361_vm0, %v6490_v22  ;;  %v1284_v22 = vpop.f32.mrf.mxu0 }
 0x147   : > { %v889_v57 = vpop.f32.mrf.mxu2 }
 0x148   : > { %v991_v60 = vpop.f32.mrf.mxu3  ;;  %v906_v61 = vmul.f32 %v6573_v56, %v889_v57 }
 0x149   : > { %v6644_v48 = vpop.f32.mrf.mxu1 }
 0x14a   : > { %v6576_v62 = vadd.f32 %v991_v60, %v906_v61 }
 0x14d   : > { %v6616_v28 = vpop.f32.mrf.mxu0 }
 0x14f   : > { %v6583_v6 = vpop.f32.mrf.mxu2 }
 0x150   : > { %v6585_v7 = vpop.f32.mrf.mxu3 }
 0x151   : > { %v6660_v2 = vpop.f32.mrf.mxu1 }
 0x154   : > { %5052 = vmatmul.msk.bf16.gmra.mxu2 %vm361_vm0, %v1127_v53 }
 0x155   : > { %5080 = vmatmul.msk.bf16.gmra.mxu3 %vm361_vm0, %v6508_v36  ;;  %v1289_v31 = vpop.f32.mrf.mxu0 }
 0x157   : > { %v894_v9 = vpop.f32.mrf.mxu2 }
 0x158   : > { %v996_v10 = vpop.f32.mrf.mxu3  ;;  %v908_v11 = vmul.f32 %v6593_v8, %v894_v9 }
 0x159   : > { %v6687_v4 = vpop.f32.mrf.mxu1 }
 0x15a   : > { %v6596_v12 = vadd.f32 %v996_v10, %v908_v11 }
 0x15d   : > { %v6642_v47 = vpop.f32.mrf.mxu0 }
 0x15f   : > { %v6602_v17 = vpop.f32.mrf.mxu2 }
 0x160   : > { %v6604_v18 = vpop.f32.mrf.mxu3 }
 0x164   : > { %5053 = vmatmul.msk.bf16.gmra.mxu2 %vm361_vm0, %v1425_v23 }
 0x165   : > { %5081 = vmatmul.msk.bf16.gmra.mxu3 %vm361_vm0, %v1527_v21  ;;  %v1294_v61 = vpop.f32.mrf.mxu0 }
 0x167   : > { %v899_v25 = vpop.f32.mrf.mxu2 }
 0x168   : > { %v1001_v26 = vpop.f32.mrf.mxu3  ;;  %v910_v0 = vmul.f32 %v6611_v24, %v899_v25  ;;  %v5125_v25 = vor.u32 %v6020_v15, %v5122_v63 }
 0x16a   : > { %v6614_v27 = vadd.f32 %v1001_v26, %v910_v0 }
 0x16d   : > { %v6668_v11 = vpop.f32.mrf.mxu0 }
 0x16f   : > { %v6618_v29 = vpop.f32.mrf.mxu2 }
 0x170   : > { %v6620_v30 = vpop.f32.mrf.mxu3 }
 0x175   : > { %v1299_v33 = vpop.f32.mrf.mxu0 }
 0x177   : > { %v1080_v36 = vpop.f32.mrf.mxu2 }
 0x178   : > { %v1182_v5 = vpop.f32.mrf.mxu3  ;;  %v1100_v38 = vmul.f32 %v6631_v35, %v1080_v36  ;;  %v378_v36 = vadd.s32 8, %v6534_v44 }
 0x179   : > { %v1202_v40 = vmul.f32 %v6541_v45, %v1182_v5 }
 0x17a   : > { %v1108_v39 = vadd.f32 %v1100_v38, %v6549_v50  ;;  %v5130_v50 = vld [vmem:[%s8159_s3 + $0x28] sm:$0xf0]  ;;  %v6699_v38 = vpop.f32.mrf.mxu1 }
 0x17b   : > { %v5133_v57 = vor.u32 %v6022_v49, %v5130_v50  ;;  %v6710_v49 = vsel %vm511_vm9, 1.0, %v6179_v46 }
 0x17c   : > { %v1210_v32 = vadd.f32 %v1202_v40, %v1108_v39  ;;  %v396_v39 = vand.u32 7, %v378_v36  ;;  %v6023_v40 = vld [vmem:[%s8159_s3 + $0x24] sm:$0xf0] }
 0x17d   : > { %1842 = vmatpush.bf16.msrb.mxu2 %v5133_v57  ;;  %v6021_v57 = vld [vmem:[%s8159_s3 + $0x14] sm:$0xf0] }
 0x17e   : > { %v6636_v41 = vadd.f32 %v1284_v22, %v1210_v32  ;;  %vm482_vm10 = vcmp.ge.s32.totalorder %v396_v39, 2  ;;  %vm506_vm11 = vcmp.lt.s32.totalorder %v396_v39, 6 }
 0x17f   : > { %v6638_v43 = vpop.f32.mrf.mxu2 }
 0x180   : > { %v6640_v42 = vpop.f32.mrf.mxu3 }
 0x181   : > { %1843 = vmatpush.bf16.msrb.mxu2 %v5125_v25  ;;  %v380_v25 = vadd.s32 24, %v6534_v44 }
 0x182   : > { %v6735_v15 = vpop.f32.mrf.mxu1 }
 0x187   : > { %v1085_v52 = vpop.f32.mrf.mxu2 }
 0x188   : > { %v1187_v53 = vpop.f32.mrf.mxu3  ;;  %v1102_v60 = vmul.f32 %v6655_v51, %v1085_v52 }
 0x189   : > { %v1204_v55 = vmul.f32 %v6573_v56, %v1187_v53  ;;  %v5120_v53 = vld [vmem:[%s8159_s3 + $0x10] sm:$0xf] }
 0x18a   : > { %v1110_v54 = vadd.f32 %v1102_v60, %v6576_v62  ;;  %v5136_v62 = vld [vmem:[%s8159_s3 + $0x30] sm:$0xf]  ;;  %v6718_v60 = vpop.f32.mrf.mxu0  ;;  %v5121_v16 = vor.u32 %v6021_v57, %v5120_v53 }
 0x18b   : > { %v5137_v22 = vor.u32 %v6025_v14, %v5136_v62  ;;  %v5114_v62 = vld [vmem:[%s8159_s3 + $0x8] sm:$0xf0]  ;;  %v5112_v14 = vld [vmem:[%s8159_s3] sm:$0xf] }
 0x18c   : > { %v1212_v1 = vadd.f32 %v1204_v55, %v1110_v54 }
 0x18d   : > { %1812 = vmatpush.bf16.msrb.mxu1 %v5137_v22 }
 0x18e   : > { %v6662_v3 = vadd.f32 %v1289_v31, %v1212_v1  ;;  %v6018_v1 = vld [vmem:[%s8159_s3 + $0x4] sm:$0xf] }
 0x18f   : > { %v6664_v9 = vpop.f32.mrf.mxu2 }
 0x190   : > { %v6666_v10 = vpop.f32.mrf.mxu3 }
 0x197   : > { %v1090_v20 = vpop.f32.mrf.mxu2 }
 0x198   : > { %v1192_v21 = vpop.f32.mrf.mxu3  ;;  %v1104_v23 = vmul.f32 %v6682_v19, %v1090_v20 }
 0x199   : > { %v1206_v0 = vmul.f32 %v6593_v8, %v1192_v21  ;;  %v6019_v21 = vld [vmem:[%s8159_s3 + $0x4] sm:$0xf0] }
 0x19a   : > { %v1112_v26 = vadd.f32 %v1104_v23, %v6596_v12  ;;  %v5128_v12 = vld [vmem:[%s8159_s3 + $0x20] sm:$0xf]  ;;  %v5113_v22 = vor.u32 %v6019_v21, %v5112_v14 }
 0x19b   : > { %v5129_v32 = vor.u32 %v6023_v40, %v5128_v12  ;;  %v1676_v12 = vpop.f32.mrf.mxu0  ;;  %v1398_v40 = vmul.f32 %v6631_v35, %v6644_v48 }
 0x19c   : > { %v1214_v31 = vadd.f32 %v1206_v0, %v1112_v26  ;;  %v6746_v26 = vsel %vm506_vm11, 1.0, %v6179_v46 }
 0x19d   : > { %1813 = vmatpush.bf16.msrb.mxu1 %v5129_v32  ;;  %v1101_v36 = vmul.f32 %v6746_v26, %v6638_v43  ;;  %v6757_v32 = vpop.f32.mrf.mxu1  ;;  %v1406_v43 = vadd.f32 %v1398_v40, %v6636_v41  ;;  %v1696_v41 = vmul.f32 %v6631_v35, %v1676_v12 }
 0x19e   : > { %v6692_v34 = vadd.f32 %v1294_v61, %v1214_v31  ;;  %v6722_v61 = vsel %vm482_vm10, 1.0, %v6179_v46 }
 0x19f   : > { %v6695_v5 = vpop.f32.mrf.mxu2  ;;  %v905_v63 = vmul.f32 %v6722_v61, %v6561_v58  ;;  %v410_v58 = vand.u32 7, %v380_v25 }
 0x1a0   : > { %v6697_v37 = vpop.f32.mrf.mxu3 }
 0x1a1   : > { %1814 = vmatpush.bf16.msrb.mxu1 %v5121_v16  ;;  %v1007_v39 = vadd.f32 %v6563_v59, %v905_v63  ;;  %vm484_vm12 = vcmp.ge.s32.totalorder %v410_v58, 2  ;;  %vm508_vm13 = vcmp.lt.s32.totalorder %v410_v58, 6 }
 0x1a2   : > { %v6764_v59 = vsel %vm484_vm12, 1.0, %v6179_v46 }
 0x1a5   : > { %1815 = vmatpush.bf16.msrb.mxu1 %v5113_v22  ;;  %v6775_v14 = vpop.f32.mrf.mxu1 }
 0x1a7   : > { %v1095_v50 = vpop.f32.mrf.mxu2 }
 0x1a8   : > { %v1197_v52 = vpop.f32.mrf.mxu3  ;;  %v1106_v13 = vmul.f32 %v6710_v49, %v1095_v50  ;;  %v1203_v50 = vmul.f32 %v6722_v61, %v6640_v42  ;;  %v907_v42 = vmul.f32 %v6764_v59, %v6583_v6  ;;  %v6783_v6 = vld [vmem:[%s8162_s6] ss:$0 sm:$0xff] }
 0x1a9   : > { %v1208_v55 = vmul.f32 %v6611_v24, %v1197_v52 }
 0x1aa   : > { %v1114_v54 = vadd.f32 %v1106_v13, %v6614_v27  ;;  %v5117_v27 = vor.u32 %v6018_v1, %v5114_v62  ;;  %v1399_v1 = vmul.f32 %v6746_v26, %v6660_v2  ;;  %v6772_v62 = vsel %vm508_vm13, 1.0, %v6179_v46 }
 0x1ab   : > { %v1009_v25 = vadd.f32 %v6585_v7, %v907_v42 }
 0x1ac   : > { %v1216_v20 = vadd.f32 %v1208_v55, %v1114_v54  ;;  %1844 = vmatpush.bf16.msrb.mxu2 %v5117_v27  ;;  %v1678_v54 = vpop.f32.mrf.mxu0 }
 0x1ad   : > { %v1697_v58 = vmul.f32 %v6746_v26, %v1678_v54  ;;  %v6802_v42 = vpop.f32.mrf.mxu1 }
 0x1ae   : > { %v6742_v23 = vadd.f32 %v1299_v33, %v1216_v20  ;;  %v1109_v33 = vadd.f32 %v1101_v36, %v1007_v39  ;;  %v382_v20 = vadd.s32 40, %v6534_v44 }
 0x1af   : > { %v6748_v0 = vpop.f32.mrf.mxu2 }
 0x1b0   : > { %v6750_v31 = vpop.f32.mrf.mxu3  ;;  %v1211_v57 = vadd.f32 %v1203_v50, %v1109_v33  ;;  %v424_v39 = vand.u32 7, %v382_v20  ;;  %v6792_v33 = vld [vmem:[%s8163_s7] ss:$0 sm:$0xff]  ;;  %v1205_v50 = vmul.f32 %v6764_v59, %v6666_v10 }
 0x1b2   : > { %v1305_v48 = vadd.f32 %v6616_v28, %v1211_v57  ;;  %v1103_v28 = vmul.f32 %v6772_v62, %v6664_v9  ;;  %vm486_vm14 = vcmp.ge.s32.totalorder %v424_v39, 2  ;;  %vm510_vm15 = vcmp.lt.s32.totalorder %v424_v39, 6 }
 0x1b4   : > { %v1407_v63 = vadd.f32 %v1399_v1, %v1305_v48  ;;  %v1111_v12 = vadd.f32 %v1103_v28, %v1009_v25  ;;  %v1681_v7 = vpop.f32.mrf.mxu0  ;;  %v6816_v25 = vsel %vm510_vm15, 1.0, %v6179_v46 }
 0x1b6   : > { %v1213_v57 = vadd.f32 %v1205_v50, %v1111_v12  ;;  %v1105_v12 = vmul.f32 %v6816_v25, %v6695_v5  ;;  %v1686_v50 = vpop.f32.mrf.mxu1  ;;  %v1402_v5 = vmul.f32 %v6682_v19, %v6735_v15 }
 0x1b7   : > { %v1480_v52 = vpop.f32.mrf.mxu2 }
 0x1b8   : > { %v1582_v53 = vpop.f32.mrf.mxu3  ;;  %v1500_v13 = vmul.f32 %v6541_v45, %v1480_v52  ;;  %v1400_v52 = vmul.f32 %v6655_v51, %v6687_v4  ;;  %v6806_v4 = vsel %vm486_vm14, 1.0, %v6179_v46 }
 0x1ba   : > { %v1508_v16 = vadd.f32 %v1500_v13, %v1406_v43 }
 0x1bc   : > { %v1602_v55 = vadd.f32 %v1582_v53, %v1508_v16 }
 0x1be   : > { %v1704_v22 = vadd.f32 %v1696_v41, %v1602_v55  ;;  %v1408_v55 = vadd.f32 %v1400_v52, %v6662_v3  ;;  %v1307_v41 = vadd.f32 %v6642_v47, %v1213_v57  ;;  %v909_v3 = vmul.f32 %v6806_v4, %v6602_v17  ;;  %v1683_v17 = vpop.f32.mrf.mxu0 }
 0x1bf   : > { %v1482_v27 = vpop.f32.mrf.mxu2  ;;  %v1699_v52 = vmul.f32 %v6772_v62, %v1683_v17  ;;  %v6032_v17 = vld [vmem:[%s8157_s1 + $0xb0] sm:$0xff] }
 0x1c0   : > { %v1584_v21 = vpop.f32.mrf.mxu3  ;;  %v1501_v2 = vmul.f32 %v6722_v61, %v1482_v27  ;;  %v1716_v9 = vmul.f32 %v6783_v6, %v1704_v22  ;;  %v1698_v22 = vmul.f32 %v6655_v51, %v1681_v7 }
 0x1c2   : > { %v1509_v36 = vadd.f32 %v1501_v2, %v1407_v63  ;;  %v1728_v16 = vadd.f32 %v6792_v33, %v1716_v9  ;;  %v384_v63 = vadd.s32 56, %v6534_v44  ;;  %v1011_v9 = vadd.f32 %v6604_v18, %v909_v3  ;;  %v1688_v3 = vpop.f32.mrf.mxu1 }
 0x1c3   : > { %v1410_v18 = vadd.f32 %v1402_v5, %v6692_v34  ;;  %v6031_v5 = vld [vmem:[%s8157_s1 + $0xa8] sm:$0xff] }
 0x1c4   : > { %v1603_v40 = vadd.f32 %v1584_v21, %v1509_v36  ;;  %v1736_v20 = vmax.f32 %v1728_v16, 0.0  ;;  %v1401_v21 = vmul.f32 %v6772_v62, %v6699_v38  ;;  %v1113_v7 = vadd.f32 %v1105_v12, %v1011_v9 }
 0x1c6   : > { %v1705_v53 = vadd.f32 %v1697_v58, %v1603_v40  ;;  %v1409_v47 = vadd.f32 %v1401_v21, %v1307_v41  ;;  %v438_v40 = vand.u32 7, %v384_v63  ;;  %v1700_v63 = vmul.f32 %v6682_v19, %v1686_v50 }
 0x1c7   : > { %v1485_v13 = vpop.f32.mrf.mxu2 }
 0x1c8   : > { %v1587_v43 = vpop.f32.mrf.mxu3  ;;  %v1717_v48 = vmul.f32 %v6783_v6, %v1705_v53  ;;  %v1502_v54 = vmul.f32 %v6573_v56, %v1485_v13  ;;  %v1207_v13 = vmul.f32 %v6806_v4, %v6697_v37  ;;  %vm488_vm1 = vcmp.ge.s32.totalorder %v438_v40, 2 }
 0x1c9   : > { %v6835_v41 = vsel %vm488_vm1, 1.0, %v6179_v46  ;;  %vm512_vm2 = vcmp.lt.s32.totalorder %v438_v40, 6  ;;  %v1701_v40 = vmul.f32 %v6816_v25, %v1688_v3 }
 0x1ca   : > { %v1729_v10 = vadd.f32 %v6792_v33, %v1717_v48  ;;  %v1510_v1 = vadd.f32 %v1502_v54, %v1408_v55  ;;  %v1215_v54 = vadd.f32 %v1207_v13, %v1113_v7  ;;  %v911_v21 = vmul.f32 %v6835_v41, %v6618_v29  ;;  %v1691_v7 = vpop.f32.mrf.mxu1 }
 0x1cc   : > { %v1737_v28 = vmax.f32 %v1729_v10, 0.0  ;;  %v1604_v27 = vadd.f32 %v1587_v43, %v1510_v1  ;;  %v1309_v37 = vadd.f32 %v6668_v11, %v1215_v54  ;;  %v1013_v29 = vadd.f32 %v6620_v30, %v911_v21 }
 0x1ce   : > { %v1744_v2 = vpack.c.bf16 %v1737_v28, %v1736_v20  ;;  %v1706_v58 = vadd.f32 %v1698_v22, %v1604_v27  ;;  %v1403_v22 = vmul.f32 %v6816_v25, %v6757_v32 }
 0x1cf   : > { %v1487_v36 = vpop.f32.mrf.mxu2 }
 0x1d0   : > { %v1589_v39 = vpop.f32.mrf.mxu3  ;;  %v1503_v38 = vmul.f32 %v6764_v59, %v1487_v36  ;;  %5142 = vmatmul.msk.bf16.vlgmr.msrb.gmra.mxu1 %vm361_vm0, %v1744_v2  ;;  %5146 = vmatmul.msk.bf16.vlgmr.msrb.gmra.mxu2 %vm361_vm0, %v1744_v2  ;;  %v1718_v53 = vmul.f32 %v6783_v6, %v1706_v58  ;;  %v6844_v2 = vsel %vm512_vm2, 1.0, %v6179_v46  ;;  %v6033_v46 = vld [vmem:[%s8157_s1 + $0xb8] sm:$0xff] }
 0x1d1   : > { %2079 = vmatpush.bf16.msrb.mxu3 %v6033_v46 }
 0x1d2   : > { %v1511_v44 = vadd.f32 %v1503_v38, %v1409_v47  ;;  %v1730_v1 = vadd.f32 %v6792_v33, %v1718_v53  ;;  %v1107_v47 = vmul.f32 %v6844_v2, %v6748_v0  ;;  %v1411_v38 = vadd.f32 %v1403_v22, %v1309_v37  ;;  %v6041_v0 = vld [vmem:[%s8157_s1 + $0xf8] sm:$0xff]  ;;  %v1693_v3 = vpop.f32.mrf.mxu1 }
 0x1d3   : > { %2108 = vmatpush.bf16.msrb.mxu0 %v6041_v0  ;;  %v1404_v53 = vmul.f32 %v6710_v49, %v6775_v14 }
 0x1d4   : > { %v1605_v57 = vadd.f32 %v1589_v39, %v1511_v44  ;;  %v1738_v27 = vmax.f32 %v1730_v1, 0.0  ;;  %v1115_v9 = vadd.f32 %v1107_v47, %v1013_v29  ;;  %v6040_v44 = vld [vmem:[%s8157_s1 + $0xf0] sm:$0xff] }
 0x1d5   : > { %2080 = vmatpush.bf16.msrb.mxu3 %v6032_v17  ;;  %v1412_v54 = vadd.f32 %v1404_v53, %v6742_v23  ;;  %v6029_v23 = vld [vmem:[%s8157_s1 + $0x98] sm:$0xff] }
 0x1d6   : > { %v1707_v43 = vadd.f32 %v1699_v52, %v1605_v57  ;;  %v1209_v52 = vmul.f32 %v6835_v41, %v6750_v31 }
 0x1d7   : > { %v1490_v16 = vpop.f32.mrf.mxu2  ;;  %2109 = vmatpush.bf16.msrb.mxu0 %v6040_v44  ;;  %v6038_v44 = vld [vmem:[%s8157_s1 + $0xe0] sm:$0xff] }
 0x1d8   : > { %v1592_v48 = vpop.f32.mrf.mxu3  ;;  %v1719_v55 = vmul.f32 %v6783_v6, %v1707_v43  ;;  %v1504_v10 = vmul.f32 %v6593_v8, %v1490_v16  ;;  %v1217_v13 = vadd.f32 %v1209_v52, %v1115_v9  ;;  %v6039_v9 = vld [vmem:[%s8157_s1 + $0xe8] sm:$0xff]  ;;  %v6034_v52 = vld [vmem:[%s8157_s1 + $0xc0] sm:$0xff] }
 0x1d9   : > { %2081 = vmatpush.bf16.msrb.mxu3 %v6031_v5  ;;  %v1888_v5 = vld [vmem:[%s8165_s9] sm:$0x3] }
 0x1da   : > { %v1512_v15 = vadd.f32 %v1504_v10, %v1410_v18  ;;  %v1731_v20 = vadd.f32 %v6792_v33, %v1719_v55  ;;  %v6030_v10 = vld [vmem:[%s8157_s1 + $0xa0] sm:$0xff]  ;;  %v1311_v1 = vadd.f32 %v6718_v60, %v1217_v13 }
 0x1db   : > { %2110 = vmatpush.bf16.msrb.mxu0 %v6039_v9 }
 0x1dc   : > { %v1606_v28 = vadd.f32 %v1592_v48, %v1512_v15  ;;  %v1739_v34 = vmax.f32 %v1731_v20, 0.0 }
 0x1dd   : > { %2082 = vmatpush.bf16.msrb.mxu3 %v6030_v10 }
 0x1de   : > { %v1745_v36 = vpack.c.bf16 %v1739_v34, %v1738_v27  ;;  %v1708_v12 = vadd.f32 %v1700_v63, %v1606_v28  ;;  %v1702_v28 = vmul.f32 %v6710_v49, %v1691_v7  ;;  %v1405_v27 = vmul.f32 %v6844_v2, %v6802_v42  ;;  %v1866_v7 = vld [vmem:[%s8164_s8] sm:$0x3] }
 0x1df   : > { %v1492_v11 = vpop.f32.mrf.mxu2  ;;  %v1703_v42 = vmul.f32 %v6844_v2, %v1693_v3  ;;  %2111 = vmatpush.bf16.msrb.mxu0 %v6038_v44  ;;  %v6929_v53 = vperm.slane %v1866_v7, 0 }
 0x1e0   : > { %v1594_v39 = vpop.f32.mrf.mxu3  ;;  %v1505_v58 = vmul.f32 %v6806_v4, %v1492_v11  ;;  %5143 = vmatmul.msk.bf16.gmra.mxu1 %vm361_vm0, %v1745_v36  ;;  %5147 = vmatmul.msk.bf16.gmra.mxu2 %vm361_vm0, %v1745_v36  ;;  %v1720_v30 = vmul.f32 %v6783_v6, %v1708_v12  ;;  %v1413_v60 = vadd.f32 %v1405_v27, %v1311_v1  ;;  %v6028_v11 = vld [vmem:[%s8157_s1 + $0x90] sm:$0xff]  ;;  %v6943_v1 = vperm.slane %v1888_v5, 1 }
 0x1e1   : > { %2083 = vmatpush.bf16.msrb.mxu3 %v6029_v23 }
 0x1e2   : > { %v1513_v32 = vadd.f32 %v1505_v58, %v1411_v38  ;;  %v1732_v18 = vadd.f32 %v6792_v33, %v1720_v30  ;;  %v6026_v30 = vld [vmem:[%s8157_s1 + $0x80] sm:$0xff] }
 0x1e4   : > { %v1607_v50 = vadd.f32 %v1594_v39, %v1513_v32  ;;  %v1740_v15 = vmax.f32 %v1732_v18, 0.0  ;;  %v6938_v18 = vperm.slane %v1866_v7, 1 }
 0x1e5   : > { %2084 = vmatpush.bf16.msrb.mxu3 %v6028_v11 }
 0x1e6   : > { %v1709_v57 = vadd.f32 %v1701_v40, %v1607_v50  ;;  %v6036_v40 = vld [vmem:[%s8157_s1 + $0xd0] sm:$0xff]  ;;  %v6035_v50 = vld [vmem:[%s8157_s1 + $0xc8] sm:$0xff] }
 0x1e7   : > { %v1495_v43 = vpop.f32.mrf.mxu2 }
 0x1e8   : > { %v1597_v16 = vpop.f32.mrf.mxu3  ;;  %v1721_v48 = vmul.f32 %v6783_v6, %v1709_v57  ;;  %v1506_v31 = vmul.f32 %v6611_v24, %v1495_v43  ;;  %v6935_v43 = vperm.slane %v1888_v5, 0 }
 0x1ea   : > { %v1733_v14 = vadd.f32 %v6792_v33, %v1721_v48  ;;  %v1514_v55 = vadd.f32 %v1506_v31, %v1412_v54  ;;  %v530_v31 = vld [vmem:[%s6293_s28 + $0x8] sm:$0xff] }
 0x1ec   : > { %v1741_v20 = vmax.f32 %v1733_v14, 0.0  ;;  %v1608_v37 = vadd.f32 %v1597_v16, %v1514_v55  ;;  %v529_v16 = vld [vmem:[%s6293_s28] sm:$0xff] }
 0x1ed   : > { %v537_v54 = vunpack.c.l.bf16 %v529_v16  ;;  %v538_v27 = vunpack.c.h.bf16 %v529_v16 }
 0x1ee   : > { %v1746_v34 = vpack.c.bf16 %v1741_v20, %v1740_v15  ;;  %v1710_v22 = vadd.f32 %v1702_v28, %v1608_v37  ;;  %v539_v15 = vunpack.c.l.bf16 %v530_v31 }
 0x1ef   : > { %v1497_v21 = vpop.f32.mrf.mxu2 }
 0x1f0   : > { %v1507_v63 = vmul.f32 %v6835_v41, %v1497_v21  ;;  %5144 = vmatmul.msk.bf16.gmra.mxu1 %vm361_vm0, %v1746_v34  ;;  %5148 = vmatmul.msk.bf16.gmra.mxu2 %vm361_vm0, %v1746_v34  ;;  %v1599_v36 = vpop.f32.mrf.mxu3  ;;  %v1722_v39 = vmul.f32 %v6783_v6, %v1710_v22 }
 0x1f2   : > { %v1515_v47 = vadd.f32 %v1507_v63, %v1413_v60  ;;  %v1734_v38 = vadd.f32 %v6792_v33, %v1722_v39  ;;  %v540_v63 = vunpack.c.h.bf16 %v530_v31 }
 0x1f4   : > { %v1609_v12 = vadd.f32 %v1599_v36, %v1515_v47  ;;  %v1742_v0 = vmax.f32 %v1734_v38, 0.0 }
 0x1f6   : > { %v1711_v58 = vadd.f32 %v1703_v42, %v1609_v12 }
 0x1f8   : > { %v1723_v46 = vmul.f32 %v6783_v6, %v1711_v58  ;;  %v6027_v6 = vld [vmem:[%s8157_s1 + $0x88] sm:$0xff]  ;;  %v531_v58 = vld [vmem:[%s6293_s28 + $0x10] sm:$0xff] }
 0x1f9   : > { %2085 = vmatpush.bf16.msrb.mxu3 %v6027_v6 }
 0x1fa   : > { %v1735_v29 = vadd.f32 %v6792_v33, %v1723_v46  ;;  %v6037_v33 = vld [vmem:[%s8157_s1 + $0xd8] sm:$0xff] }
 0x1fb   : > { %2112 = vmatpush.bf16.msrb.mxu0 %v6037_v33 }
 0x1fc   : > { %v1743_v32 = vmax.f32 %v1735_v29, 0.0 }
 0x1fd   : > { %2086 = vmatpush.bf16.msrb.mxu3 %v6026_v30 }
 0x1fe   : > { %v1747_v17 = vpack.c.bf16 %v1743_v32, %v1742_v0  ;;  %v532_v0 = vld [vmem:[%s6293_s28 + $0x18] sm:$0xff]  ;;  %v541_v32 = vunpack.c.l.bf16 %v531_v58 }
 0x1ff   : > { %2113 = vmatpush.bf16.msrb.mxu0 %v6036_v40  ;;  %v543_v33 = vunpack.c.l.bf16 %v532_v0  ;;  %v544_v31 = vunpack.c.h.bf16 %v532_v0  ;;  %v6045_v0 = vld [vmem:[%s8158_s2 + $0x138] sm:$0xff] }
 0x200   : > { %5145 = vmatmul.msk.bf16.gmra.mxu1 %vm361_vm0, %v1747_v17  ;;  %5149 = vmatmul.msk.bf16.gmra.mxu2 %vm361_vm0, %v1747_v17 }
 0x201   : > { %2240 = vmatpush.bf16.msra.mxu1 %v6045_v0 }
 0x203   : > { %2114 = vmatpush.bf16.msrb.mxu0 %v6035_v50 }
 0x207   : > { %2115 = vmatpush.bf16.msrb.mxu0 %v6034_v52 }
 0x24d   : > { %v1817_v57 = vpop.f32.mrf.mxu1 }
 0x24e   : > { %v1872_v13 = vmul.f32 %v6929_v53, %v1817_v57  ;;  %v542_v57 = vunpack.c.h.bf16 %v531_v58 }
 0x250   : > { %v1894_v14 = vadd.f32 %v6935_v43, %v1872_v13 }
 0x252   : > { %v6946_v37 = vadd.f32 %v1894_v14, %v537_v54 }
 0x253   : > { %v1846_v48 = vpop.f32.mrf.mxu2 }
 0x254   : > { %v1873_v10 = vmul.f32 %v6938_v18, %v1846_v48  ;;  %v8182_v3 = vmax.f32 %v6946_v37, 0.0 }
 0x255   : > { %v1819_v55 = vpop.f32.mrf.mxu1 }
 0x256   : > { %v1874_v20 = vmul.f32 %v6929_v53, %v1819_v55  ;;  %v1895_v34 = vadd.f32 %v6943_v1, %v1873_v10 }
 0x258   : > { %v1896_v28 = vadd.f32 %v6935_v43, %v1874_v20  ;;  %v6955_v47 = vadd.f32 %v1895_v34, %v538_v27 }
 0x25a   : > { %v6950_v23 = vadd.f32 %v1896_v28, %v539_v15  ;;  %v8181_v38 = vmax.f32 %v6955_v47, 0.0  ;;  %v533_v28 = vld [vmem:[%s6293_s28 + $0x20] sm:$0xff] }
 0x25b   : > { %v1848_v21 = vpop.f32.mrf.mxu2 }
 0x25c   : > { %v8180_v22 = vmax.f32 %v6950_v23, 0.0  ;;  %v1875_v60 = vmul.f32 %v6938_v18, %v1848_v21 }
 0x25d   : > { %v1822_v36 = vpop.f32.mrf.mxu1 }
 0x25e   : > { %v1942_v42 = vpack.c.bf16 %v8180_v22, %v8182_v3  ;;  %v1897_v11 = vadd.f32 %v6943_v1, %v1875_v60  ;;  %v1876_v12 = vmul.f32 %v6929_v53, %v1822_v36  ;;  %v545_v60 = vunpack.c.l.bf16 %v533_v28 }
 0x260   : > { %v6962_v39 = vadd.f32 %v1897_v11, %v540_v63  ;;  %2087 = vmatmul.bf16.vlgmr.msrb.gmra.mxu3 %v1942_v42  ;;  %v1898_v17 = vadd.f32 %v6935_v43, %v1876_v12  ;;  %v534_v63 = vld [vmem:[%s6293_s28 + $0x28] sm:$0xff] }
 0x261   : > { %v547_v58 = vunpack.c.l.bf16 %v534_v63 }
 0x262   : > { %8224 = vst [vmem:[#allocation3_spill] sm:$0xff] %v6962_v39  ;;  %v8179_v46 = vmax.f32 %v6962_v39, 0.0  ;;  %v6976_v30 = vadd.f32 %v1898_v17, %v541_v32  ;;  %v6049_v32 = vld [vmem:[%s8158_s2 + $0x158] sm:$0xff] }
 0x263   : > { %v1851_v29 = vpop.f32.mrf.mxu2  ;;  %2342 = vmatpush.bf16.msra.mxu2 %v6049_v32 }
 0x264   : > { %v1943_v9 = vpack.c.bf16 %v8179_v46, %v8181_v38  ;;  %v1877_v6 = vmul.f32 %v6938_v18, %v1851_v29  ;;  %8225 = vst [vmem:[#allocation4_spill] sm:$0xff] %v6976_v30  ;;  %v8178_v13 = vmax.f32 %v6976_v30, 0.0 }
 0x265   : > { %v1824_v44 = vpop.f32.mrf.mxu1 }
 0x266   : > { %v1878_v40 = vmul.f32 %v6929_v53, %v1824_v44  ;;  %2116 = vmatmul.bf16.vlgmr.msrb.gmra.mxu0 %v1943_v9  ;;  %v1899_v52 = vadd.f32 %v6943_v1, %v1877_v6  ;;  %v6044_v44 = vld [vmem:[%s8158_s2 + $0x130] sm:$0xff] }
 0x267   : > { %v6048_v6 = vld [vmem:[%s8158_s2 + $0x150] sm:$0xff]  ;;  %2241 = vmatpush.bf16.msra.mxu1 %v6044_v44 }
 0x268   : > { %v1900_v50 = vadd.f32 %v6935_v43, %v1878_v40  ;;  %v6990_v10 = vadd.f32 %v1899_v52, %v542_v57  ;;  %2343 = vmatpush.bf16.msra.mxu2 %v6048_v6 }
 0x26a   : > { %v6980_v7 = vadd.f32 %v1900_v50, %v543_v33  ;;  %8227 = vst [vmem:[#allocation6_spill] sm:$0xff] %v6990_v10  ;;  %v8177_v27 = vmax.f32 %v6990_v10, 0.0  ;;  %v546_v33 = vunpack.c.h.bf16 %v533_v28 }
 0x26b   : > { %v1853_v5 = vpop.f32.mrf.mxu2 }
 0x26c   : > { %8226 = vst [vmem:[#allocation5_spill] sm:$0xff] %v6980_v7  ;;  %v1879_v16 = vmul.f32 %v6938_v18, %v1853_v5  ;;  %v8176_v48 = vmax.f32 %v6980_v7, 0.0  ;;  %v548_v5 = vunpack.c.h.bf16 %v534_v63 }
 0x26d   : > { %v1827_v54 = vpop.f32.mrf.mxu1 }
 0x26e   : > { %v1901_v14 = vadd.f32 %v6943_v1, %v1879_v16  ;;  %v1944_v55 = vpack.c.bf16 %v8176_v48, %v8178_v13  ;;  %v1880_v15 = vmul.f32 %v6929_v53, %v1827_v54  ;;  %v6043_v54 = vld [vmem:[%s8158_s2 + $0x128] sm:$0xff] }
 0x26f   : > { %2242 = vmatpush.bf16.msra.mxu1 %v6043_v54 }
 0x270   : > { %2092 = vmatmul.bf16.gmra.mxu3 %v1944_v55  ;;  %v6993_v20 = vadd.f32 %v1901_v14, %v544_v31  ;;  %v1902_v36 = vadd.f32 %v6935_v43, %v1880_v15  ;;  %v6047_v55 = vld [vmem:[%s8158_s2 + $0x148] sm:$0xff] }
 0x271   : > { %2344 = vmatpush.bf16.msra.mxu2 %v6047_v55 }
 0x272   : > { %8228 = vst [vmem:[#allocation7_spill] sm:$0xff] %v6993_v20  ;;  %v8175_v34 = vmax.f32 %v6993_v20, 0.0  ;;  %v7012_v17 = vadd.f32 %v1902_v36, %v545_v60  ;;  %v535_v60 = vld [vmem:[%s6293_s28 + $0x30] sm:$0xff] }
 0x273   : > { %v1856_v21 = vpop.f32.mrf.mxu2  ;;  %v549_v44 = vunpack.c.l.bf16 %v535_v60 }
 0x274   : > { %v1945_v42 = vpack.c.bf16 %v8175_v34, %v8177_v27  ;;  %v1881_v12 = vmul.f32 %v6938_v18, %v1856_v21  ;;  %8229 = vst [vmem:[#allocation8_spill] sm:$0xff] %v7012_v17  ;;  %v8174_v57 = vmax.f32 %v7012_v17, 0.0 }
 0x275   : > { %v1829_v11 = vpop.f32.mrf.mxu1 }
 0x276   : > { %v1882_v29 = vmul.f32 %v6929_v53, %v1829_v11  ;;  %2121 = vmatmul.bf16.gmra.mxu0 %v1945_v42  ;;  %v1903_v40 = vadd.f32 %v6943_v1, %v1881_v12  ;;  %v6042_v42 = vld [vmem:[%s8158_s2 + $0x120] sm:$0xff] }
 0x277   : > { %v6046_v11 = vld [vmem:[%s8158_s2 + $0x140] sm:$0xff]  ;;  %2243 = vmatpush.bf16.msra.mxu1 %v6042_v42 }
 0x278   : > { %v1904_v9 = vadd.f32 %v6935_v43, %v1882_v29  ;;  %v7033_v15 = vadd.f32 %v1903_v40, %v546_v33  ;;  %v2281_v12 = vld [vmem:[#allocation2 + $0x2] sm:$0xff]  ;;  %2345 = vmatpush.bf16.msra.mxu2 %v6046_v11 }
 0x27a   : > { %v7022_v50 = vadd.f32 %v1904_v9, %v547_v58  ;;  %8231 = vst [vmem:[#allocation10_spill] sm:$0xff] %v7033_v15  ;;  %v2282_v58 = vld [vmem:[#allocation2 + $0xa] sm:$0xff]  ;;  %v8173_v29 = vmax.f32 %v7033_v15, 0.0  ;;  %v536_v9 = vld [vmem:[%s6293_s28 + $0x38] sm:$0xff] }
 0x27b   : > { %v1858_v52 = vpop.f32.mrf.mxu2  ;;  %v2289_v40 = vpack.c.bf16 %v2282_v58, %v2281_v12  ;;  %v552_v12 = vunpack.c.h.bf16 %v536_v9 }
 0x27c   : > { %8230 = vst [vmem:[#allocation9_spill] sm:$0xff] %v7022_v50  ;;  %v1883_v16 = vmul.f32 %v6938_v18, %v1858_v52  ;;  %v8172_v31 = vmax.f32 %v7022_v50, 0.0 }
 0x27d   : > { %v1832_v14 = vpop.f32.mrf.mxu1  ;;  %5300 = vmatmul.msk.bf16.vlgmr.msra.gmra.mxu2 %vm361_vm0, %v2289_v40 }
 0x27e   : > { %v1905_v28 = vadd.f32 %v6943_v1, %v1883_v16  ;;  %v1946_v21 = vpack.c.bf16 %v8172_v31, %v8174_v57  ;;  %v1884_v36 = vmul.f32 %v6929_v53, %v1832_v14  ;;  %v551_v16 = vunpack.c.l.bf16 %v536_v9 }
 0x280   : > { %v7040_v63 = vadd.f32 %v1905_v28, %v548_v5  ;;  %2097 = vmatmul.bf16.gmra.mxu3 %v1946_v21  ;;  %v1906_v6 = vadd.f32 %v6935_v43, %v1884_v36  ;;  %v550_v28 = vunpack.c.h.bf16 %v535_v60 }
 0x282   : > { %8232 = vst [vmem:[#allocation11_spill] sm:$0xff] %v7040_v63  ;;  %v8171_v0 = vmax.f32 %v7040_v63, 0.0  ;;  %v7060_v14 = vadd.f32 %v1906_v6, %v549_v44 }
 0x283   : > { %v1861_v32 = vpop.f32.mrf.mxu2 }
 0x284   : > { %v1947_v33 = vpack.c.bf16 %v8171_v0, %v8173_v29  ;;  %v1885_v5 = vmul.f32 %v6938_v18, %v1861_v32  ;;  %8233 = vst [vmem:[#allocation12_spill] sm:$0xff] %v7060_v14  ;;  %v8170_v11 = vmax.f32 %v7060_v14, 0.0 }
 0x285   : > { %v1834_v52 = vpop.f32.mrf.mxu1 }
 0x286   : > { %v1886_v54 = vmul.f32 %v6929_v53, %v1834_v52  ;;  %2126 = vmatmul.bf16.gmra.mxu0 %v1947_v33  ;;  %v1907_v21 = vadd.f32 %v6943_v1, %v1885_v5  ;;  %v2179_v33 = vld [vmem:[#allocation2] sm:$0xff]  ;;  %v6053_v52 = vld [vmem:[%s8158_s2 + $0x178] sm:$0xff]  ;;  %v6052_v5 = vld [vmem:[%s8158_s2 + $0x170] sm:$0xff] }
 0x287   : > { %2436 = vmatpush.bf16.msra.mxu3 %v6053_v52 }
 0x288   : > { %v1908_v55 = vadd.f32 %v6935_v43, %v1886_v54  ;;  %v7070_v32 = vadd.f32 %v1907_v21, %v550_v28  ;;  %v6051_v54 = vld [vmem:[%s8158_s2 + $0x168] sm:$0xff]  ;;  %v6056_v28 = vld [vmem:[%s8158_s2 + $0x190] sm:$0xff]  ;;  %v6061_v21 = vld [vmem:[%s8158_s2 + $0x1b8] sm:$0xff] }
 0x289   : > { %2640 = vmatpush.bf16.msrb.mxu1 %v6061_v21 }
 0x28a   : > { %v7065_v36 = vadd.f32 %v1908_v55, %v551_v16  ;;  %8235 = vst [vmem:[#allocation14_spill] sm:$0xff] %v7070_v32  ;;  %v8169_v6 = vmax.f32 %v7070_v32, 0.0  ;;  %v6057_v16 = vld [vmem:[%s8158_s2 + $0x198] sm:$0xff]  ;;  %v6050_v55 = vld [vmem:[%s8158_s2 + $0x160] sm:$0xff] }
 0x28b   : > { %v1863_v42 = vpop.f32.mrf.mxu2  ;;  %2437 = vmatpush.bf16.msra.mxu3 %v6052_v5  ;;  %2538 = vmatpush.bf16.msra.mxu0 %v6057_v16 }
 0x28c   : > { %8234 = vst [vmem:[#allocation13_spill] sm:$0xff] %v7065_v36  ;;  %v1887_v58 = vmul.f32 %v6938_v18, %v1863_v42  ;;  %v8168_v53 = vmax.f32 %v7065_v36, 0.0  ;;  %v6055_v42 = vld [vmem:[%s8158_s2 + $0x188] sm:$0xff] }
 0x28e   : > { %v1909_v44 = vadd.f32 %v6943_v1, %v1887_v58  ;;  %v1948_v43 = vpack.c.bf16 %v8168_v53, %v8170_v11  ;;  %v2180_v1 = vld [vmem:[#allocation2 + $0x8] sm:$0xff]  ;;  %v7116_v58 = vld [vmem:[%s8160_s4 + $0x1] ss:$0 sm:$0xff] }
 0x28f   : > { %v2187_v40 = vpack.c.bf16 %v2180_v1, %v2179_v33  ;;  %2438 = vmatpush.bf16.msra.mxu3 %v6051_v54  ;;  %2539 = vmatpush.bf16.msra.mxu0 %v6056_v28  ;;  %v7121_v33 = vld [vmem:[%s8161_s5 + $0x1] ss:$0 sm:$0xff]  ;;  %v6060_v1 = vld [vmem:[%s8158_s2 + $0x1b0] sm:$0xff] }
 0x290   : > { %v7077_v60 = vadd.f32 %v1909_v44, %v552_v12  ;;  %2102 = vmatmul.bf16.gmra.mxu3 %v1948_v43  ;;  %v6054_v12 = vld [vmem:[%s8158_s2 + $0x180] sm:$0xff]  ;;  %2641 = vmatpush.bf16.msrb.mxu1 %v6060_v1 }
 0x291   : > { %5272 = vmatmul.msk.bf16.vlgmr.msra.gmra.mxu1 %vm361_vm0, %v2187_v40 }
 0x292   : > { %8236 = vst [vmem:[#allocation15_spill] sm:$0xff] %v7077_v60  ;;  %v8167_v9 = vmax.f32 %v7077_v60, 0.0 }
 0x293   : > { %2439 = vmatpush.bf16.msra.mxu3 %v6050_v55  ;;  %2540 = vmatpush.bf16.msra.mxu0 %v6055_v42  ;;  %v2375_v42 = vld [vmem:[#allocation2 + $0x4] sm:$0xff] }
 0x294   : > { %v1949_v18 = vpack.c.bf16 %v8167_v9, %v8169_v6 }
 0x296   : > { %2131 = vmatmul.bf16.gmra.mxu0 %v1949_v18 }
 0x297   : > { %2541 = vmatpush.bf16.msra.mxu0 %v6054_v12 }
 0x2e3   : > { %v2088_v44 = vpop.f32.mrf.mxu3  ;;  %v2117_v43 = vpop.f32.mrf.mxu0 }
 0x2e4   : > { %v2118_v18 = vadd.f32 %v2117_v43, %v2088_v44 }
 0x2e6   : > { %v2142_v40 = vmul.f32 %v7116_v58, %v2118_v18 }
 0x2e8   : > { %v2155_v52 = vadd.f32 %v7121_v33, %v2142_v40  ;;  %v6059_v40 = vld [vmem:[%s8158_s2 + $0x1a8] sm:$0xff] }
 0x2e9   : > { %2642 = vmatpush.bf16.msrb.mxu1 %v6059_v40 }
 0x2ea   : > { %v2163_v5 = vmax.f32 %v2155_v52, 0.0 }
 0x2eb   : > { %v2090_v16 = vpop.f32.mrf.mxu3  ;;  %v2119_v54 = vpop.f32.mrf.mxu0 }
 0x2ec   : > { %2171 = vst.msk [vmem:[#allocation2 + $0x12] sm:$0xff] %vm361_vm0, %v2163_v5  ;;  %v2120_v55 = vadd.f32 %v2119_v54, %v2090_v16 }
 0x2ee   : > { %v2143_v28 = vmul.f32 %v7116_v58, %v2120_v55 }
 0x2f0   : > { %v2156_v21 = vadd.f32 %v7121_v33, %v2143_v28 }
 0x2f2   : > { %v2164_v12 = vmax.f32 %v2156_v21, 0.0 }
 0x2f3   : > { %v2093_v44 = vpop.f32.mrf.mxu3  ;;  %v2122_v43 = vpop.f32.mrf.mxu0  ;;  %v2376_v9 = vld [vmem:[#allocation2 + $0xc] sm:$0xff] }
 0x2f4   : > { %2172 = vst.msk [vmem:[#allocation2 + $0x1a] sm:$0xff] %vm361_vm0, %v2164_v12  ;;  %v2123_v18 = vadd.f32 %v2122_v43, %v2093_v44  ;;  %v2383_v1 = vpack.c.bf16 %v2376_v9, %v2375_v42  ;;  %v2181_v54 = vld [vmem:[#allocation2 + $0x10] sm:$0xff] }
 0x2f5   : > { %v2283_v53 = vld [vmem:[#allocation2 + $0x12] sm:$0xff] }
 0x2f6   : > { %v2144_v52 = vmul.f32 %v7116_v58, %v2123_v18  ;;  %5328 = vmatmul.msk.bf16.vlgmr.msra.gmra.mxu3 %vm361_vm0, %v2383_v1  ;;  %v6065_v18 = vld [vmem:[%s8158_s2 + $0x1d8] sm:$0xff] }
 0x2f7   : > { %2734 = vmatpush.bf16.msrb.mxu2 %v6065_v18 }
 0x2f8   : > { %v2157_v5 = vadd.f32 %v7121_v33, %v2144_v52 }
 0x2fa   : > { %v2165_v16 = vmax.f32 %v2157_v5, 0.0 }
 0x2fb   : > { %v2095_v55 = vpop.f32.mrf.mxu3  ;;  %v2124_v28 = vpop.f32.mrf.mxu0  ;;  %v2182_v21 = vld [vmem:[#allocation2 + $0x18] sm:$0xff] }
 0x2fc   : > { %v2284_v12 = vld [vmem:[#allocation2 + $0x1a] sm:$0xff]  ;;  %2173 = vst.msk [vmem:[#allocation2 + $0x22] sm:$0xff] %vm361_vm0, %v2165_v16  ;;  %v2125_v9 = vadd.f32 %v2124_v28, %v2095_v55  ;;  %v2188_v42 = vpack.c.bf16 %v2182_v21, %v2181_v54 }
 0x2fd   : > { %v7139_v44 = vpack.c.bf16 %v2284_v12, %v2283_v53  ;;  %v6064_v53 = vld [vmem:[%s8158_s2 + $0x1d0] sm:$0xff]  ;;  %v6058_v21 = vld [vmem:[%s8158_s2 + $0x1a0] sm:$0xff]  ;;  %v6069_v12 = vld [vmem:[%s8158_s2 + $0x1f8] sm:$0xff] }
 0x2fe   : > { %v2145_v43 = vmul.f32 %v7116_v58, %v2125_v9  ;;  %5273 = vmatmul.msk.bf16.gmra.mxu1 %vm361_vm0, %v2188_v42  ;;  %5356 = vmatmul.msk.bf16.vlgmr.msra.gmra.mxu0 %vm361_vm0, %v2188_v42  ;;  %v2377_v16 = vld [vmem:[#allocation2 + $0x14] sm:$0xff]  ;;  %v6063_v42 = vld [vmem:[%s8158_s2 + $0x1c8] sm:$0xff] }
 0x2ff   : > { %5301 = vmatmul.msk.bf16.gmra.mxu2 %vm361_vm0, %v7139_v44  ;;  %2643 = vmatpush.bf16.msrb.mxu1 %v6058_v21 }
 0x300   : > { %v2158_v1 = vadd.f32 %v7121_v33, %v2145_v43  ;;  %2735 = vmatpush.bf16.msrb.mxu2 %v6064_v53  ;;  %2836 = vmatpush.bf16.msrb.mxu3 %v6069_v12  ;;  %v6068_v43 = vld [vmem:[%s8158_s2 + $0x1f0] sm:$0xff] }
 0x302   : > { %v2166_v40 = vmax.f32 %v2158_v1, 0.0  ;;  %v6062_v1 = vld [vmem:[%s8158_s2 + $0x1c0] sm:$0xff] }
 0x303   : > { %v2098_v52 = vpop.f32.mrf.mxu3  ;;  %v2127_v5 = vpop.f32.mrf.mxu0  ;;  %v2378_v54 = vld [vmem:[#allocation2 + $0x1c] sm:$0xff] }
 0x304   : > { %2174 = vst.msk [vmem:[#allocation2 + $0x2a] sm:$0xff] %vm361_vm0, %v2166_v40  ;;  %v2128_v55 = vadd.f32 %v2127_v5, %v2098_v52  ;;  %v7154_v28 = vpack.c.bf16 %v2378_v54, %v2377_v16  ;;  %2736 = vmatpush.bf16.msrb.mxu2 %v6063_v42  ;;  %v2183_v53 = vld [vmem:[#allocation2 + $0x20] sm:$0xff]  ;;  %2837 = vmatpush.bf16.msrb.mxu3 %v6068_v43  ;;  %v6073_v42 = vld [vmem:[%s8158_s2 + $0x218] sm:$0xff]  ;;  %v6067_v43 = vld [vmem:[%s8158_s2 + $0x1e8] sm:$0xff] }
 0x305   : > { %v2285_v54 = vld [vmem:[#allocation2 + $0x22] sm:$0xff]  ;;  %2938 = vmatpush.bf16.msrb.mxu0 %v6073_v42 }
 0x306   : > { %v2146_v9 = vmul.f32 %v7116_v58, %v2128_v55  ;;  %5329 = vmatmul.msk.bf16.gmra.mxu3 %vm361_vm0, %v7154_v28 }
 0x308   : > { %v2159_v18 = vadd.f32 %v7121_v33, %v2146_v9  ;;  %2737 = vmatpush.bf16.msrb.mxu2 %v6062_v1  ;;  %2838 = vmatpush.bf16.msrb.mxu3 %v6067_v43  ;;  %v6071_v43 = vld [vmem:[%s8158_s2 + $0x208] sm:$0xff] }
 0x30a   : > { %v2167_v40 = vmax.f32 %v2159_v18, 0.0  ;;  %v6077_v18 = vld [vmem:[%s8158_s2 + $0x238] sm:$0xff] }
 0x30b   : > { %v2100_v52 = vpop.f32.mrf.mxu3  ;;  %v2129_v5 = vpop.f32.mrf.mxu0  ;;  %v2184_v16 = vld [vmem:[#allocation2 + $0x28] sm:$0xff]  ;;  %3032 = vmatpush.bf16.msra.mxu1 %v6077_v18 }
 0x30c   : > { %v2286_v55 = vld [vmem:[#allocation2 + $0x2a] sm:$0xff]  ;;  %2175 = vst.msk [vmem:[#allocation2 + $0x32] sm:$0xff] %vm361_vm0, %v2167_v40  ;;  %v2130_v21 = vadd.f32 %v2129_v5, %v2100_v52  ;;  %v7176_v12 = vpack.c.bf16 %v2184_v16, %v2183_v53  ;;  %v6066_v40 = vld [vmem:[%s8158_s2 + $0x1e0] sm:$0xff] }
 0x30d   : > { %v7178_v6 = vpack.c.bf16 %v2286_v55, %v2285_v54  ;;  %v6072_v53 = vld [vmem:[%s8158_s2 + $0x210] sm:$0xff]  ;;  %v2379_v54 = vld [vmem:[#allocation2 + $0x24] sm:$0xff]  ;;  %2839 = vmatpush.bf16.msrb.mxu3 %v6066_v40 }
 0x30e   : > { %v2147_v9 = vmul.f32 %v7116_v58, %v2130_v21  ;;  %5274 = vmatmul.msk.bf16.gmra.mxu1 %vm361_vm0, %v7176_v12  ;;  %5357 = vmatmul.msk.bf16.gmra.mxu0 %vm361_vm0, %v7176_v12 }
 0x30f   : > { %5302 = vmatmul.msk.bf16.gmra.mxu2 %vm361_vm0, %v7178_v6  ;;  %2939 = vmatpush.bf16.msrb.mxu0 %v6072_v53 }
 0x310   : > { %v2160_v1 = vadd.f32 %v7121_v33, %v2147_v9 }
 0x312   : > { %v2168_v52 = vmax.f32 %v2160_v1, 0.0  ;;  %v6070_v1 = vld [vmem:[%s8158_s2 + $0x200] sm:$0xff] }
 0x313   : > { %v2103_v5 = vpop.f32.mrf.mxu3  ;;  %v2132_v16 = vpop.f32.mrf.mxu0  ;;  %v2380_v55 = vld [vmem:[#allocation2 + $0x2c] sm:$0xff]  ;;  %2940 = vmatpush.bf16.msrb.mxu0 %v6071_v43 }
 0x314   : > { %2176 = vst.msk [vmem:[#allocation2 + $0x3a] sm:$0xff] %vm361_vm0, %v2168_v52  ;;  %v2133_v21 = vadd.f32 %v2132_v16, %v2103_v5  ;;  %v7204_v9 = vpack.c.bf16 %v2380_v55, %v2379_v54  ;;  %v2185_v5 = vld [vmem:[#allocation2 + $0x30] sm:$0xff] }
 0x315   : > { %v2287_v54 = vld [vmem:[#allocation2 + $0x32] sm:$0xff] }
 0x316   : > { %v2148_v42 = vmul.f32 %v7116_v58, %v2133_v21  ;;  %5330 = vmatmul.msk.bf16.gmra.mxu3 %vm361_vm0, %v7204_v9  ;;  %v6076_v43 = vld [vmem:[%s8158_s2 + $0x230] sm:$0xff] }
 0x317   : > { %2941 = vmatpush.bf16.msrb.mxu0 %v6070_v1  ;;  %3033 = vmatpush.bf16.msra.mxu1 %v6076_v43 }
 0x318   : > { %v2161_v18 = vadd.f32 %v7121_v33, %v2148_v42 }
 0x31a   : > { %v2169_v52 = vmax.f32 %v2161_v18, 0.0 }
 0x31b   : > { %v2105_v40 = vpop.f32.mrf.mxu3  ;;  %v2134_v53 = vpop.f32.mrf.mxu0  ;;  %v2186_v16 = vld [vmem:[#allocation2 + $0x38] sm:$0xff] }
 0x31c   : > { %v2288_v55 = vld [vmem:[#allocation2 + $0x3a] sm:$0xff]  ;;  %2177 = vst.msk [vmem:[#allocation2 + $0x42] sm:$0xff] %vm361_vm0, %v2169_v52  ;;  %v2135_v21 = vadd.f32 %v2134_v53, %v2105_v40  ;;  %v2190_v11 = vpack.c.bf16 %v2186_v16, %v2185_v5 }
 0x31d   : > { %v2292_v0 = vpack.c.bf16 %v2288_v55, %v2287_v54  ;;  %v2381_v40 = vld [vmem:[#allocation2 + $0x34] sm:$0xff] }
 0x31e   : > { %v2149_v42 = vmul.f32 %v7116_v58, %v2135_v21  ;;  %5275 = vmatmul.msk.bf16.gmra.mxu1 %vm361_vm0, %v2190_v11  ;;  %5358 = vmatmul.msk.bf16.gmra.mxu0 %vm361_vm0, %v2190_v11 }
 0x31f   : > { %5303 = vmatmul.msk.bf16.gmra.mxu2 %vm361_vm0, %v2292_v0 }
 0x320   : > { %v2162_v18 = vadd.f32 %v7121_v33, %v2149_v42  ;;  %v6075_v33 = vld [vmem:[%s8158_s2 + $0x228] sm:$0xff] }
 0x321   : > { %3034 = vmatpush.bf16.msra.mxu1 %v6075_v33 }
 0x322   : > { %v2170_v52 = vmax.f32 %v2162_v18, 0.0 }
 0x323   : > { %v2382_v5 = vld [vmem:[#allocation2 + $0x3c] sm:$0xff] }
 0x324   : > { %2178 = vst.msk [vmem:[#allocation2 + $0x4a] sm:$0xff] %vm361_vm0, %v2170_v52  ;;  %v2386_v1 = vpack.c.bf16 %v2382_v5, %v2381_v40  ;;  %v2483_v58 = vld [vmem:[#allocation2 + $0x40] sm:$0xff]  ;;  %v2782_v40 = vld [vmem:[#allocation2 + $0x58] sm:$0xff] }
 0x325   : > { %v2585_v43 = vld [vmem:[#allocation2 + $0x42] sm:$0xff] }
 0x326   : > { %5331 = vmatmul.msk.bf16.gmra.mxu3 %vm361_vm0, %v2386_v1 }
 0x32b   : > { %v2484_v53 = vld [vmem:[#allocation2 + $0x48] sm:$0xff] }
 0x32c   : > { %v2488_v16 = vpack.c.bf16 %v2484_v53, %v2483_v58  ;;  %v2679_v21 = vld [vmem:[#allocation2 + $0x44] sm:$0xff]  ;;  %v2680_v42 = vld [vmem:[#allocation2 + $0x4c] sm:$0xff]  ;;  %v2884_v58 = vld [vmem:[#allocation2 + $0x5a] sm:$0xff] }
 0x32d   : > { %v2684_v52 = vpack.c.bf16 %v2680_v42, %v2679_v21 }
 0x32e   : > { %5384 = vmatmul.msk.bf16.vlgmr.msrb.gmra.mxu1 %vm361_vm0, %v7139_v44  ;;  %5359 = vmatmul.msk.bf16.gmra.mxu0 %vm361_vm0, %v2488_v16  ;;  %v6074_v44 = vld [vmem:[%s8158_s2 + $0x220] sm:$0xff] }
 0x32f   : > { %5412 = vmatmul.msk.bf16.vlgmr.msrb.gmra.mxu2 %vm361_vm0, %v7154_v28  ;;  %3035 = vmatpush.bf16.msra.mxu1 %v6074_v44  ;;  %v2245_v28 = vpop.f32.mrf.mxu1 }
 0x330   : > { %v2265_v54 = vmul.f32 %v6541_v45, %v2245_v28 }
 0x336   : > { %5440 = vmatmul.msk.bf16.vlgmr.msrb.gmra.mxu3 %vm361_vm0, %v7176_v12  ;;  %v2347_v12 = vpop.f32.mrf.mxu2 }
 0x337   : > { %v2367_v55 = vadd.f32 %v2347_v12, %v2265_v54 }
 0x33e   : > { %5385 = vmatmul.msk.bf16.gmra.mxu1 %vm361_vm0, %v7178_v6  ;;  %5468 = vmatmul.msk.bf16.vlgmr.msrb.gmra.mxu0 %vm361_vm0, %v7178_v6  ;;  %v2586_v6 = vld [vmem:[#allocation2 + $0x4a] sm:$0xff]  ;;  %v7261_v33 = vpop.f32.mrf.mxu2 }
 0x33f   : > { %5413 = vmatmul.msk.bf16.gmra.mxu2 %vm361_vm0, %v7204_v9  ;;  %v2590_v18 = vpack.c.bf16 %v2586_v6, %v2585_v43 }
 0x346   : > { %5441 = vmatmul.msk.bf16.gmra.mxu3 %vm361_vm0, %v2190_v11  ;;  %v2781_v11 = vld [vmem:[#allocation2 + $0x50] sm:$0xff] }
 0x347   : > { %v2786_v5 = vpack.c.bf16 %v2782_v40, %v2781_v11 }
 0x34e   : > { %5386 = vmatmul.msk.bf16.gmra.mxu1 %vm361_vm0, %v2292_v0  ;;  %5469 = vmatmul.msk.bf16.gmra.mxu0 %vm361_vm0, %v2292_v0  ;;  %v2883_v0 = vld [vmem:[#allocation2 + $0x52] sm:$0xff] }
 0x34f   : > { %5414 = vmatmul.msk.bf16.gmra.mxu2 %vm361_vm0, %v2386_v1  ;;  %v2888_v53 = vpack.c.bf16 %v2884_v58, %v2883_v0 }
 0x356   : > { %5442 = vmatmul.msk.bf16.gmra.mxu3 %vm361_vm0, %v2488_v16  ;;  %v7259_v16 = vpop.f32.mrf.mxu1 }
 0x357   : > { %v2266_v17 = vmul.f32 %v6722_v61, %v7259_v16 }
 0x35e   : > { %5387 = vmatmul.msk.bf16.gmra.mxu1 %vm361_vm0, %v2590_v18  ;;  %5470 = vmatmul.msk.bf16.gmra.mxu0 %vm361_vm0, %v2590_v18 }
 0x35f   : > { %5415 = vmatmul.msk.bf16.gmra.mxu2 %vm361_vm0, %v2684_v52 }
 0x366   : > { %5443 = vmatmul.msk.bf16.gmra.mxu3 %vm361_vm0, %v2786_v5 }
 0x36e   : > { %5496 = vmatmul.msk.bf16.vlgmr.msra.gmra.mxu1 %vm361_vm0, %v7204_v9  ;;  %5471 = vmatmul.msk.bf16.gmra.mxu0 %vm361_vm0, %v2888_v53 }
 0x379   : > { %v2441_v44 = vpop.f32.mrf.mxu3 }
 0x37a   : > { %v2461_v28 = vmul.f32 %v6631_v35, %v2441_v44 }
 0x37b   : > { %v2250_v54 = vpop.f32.mrf.mxu1  ;;  %v2543_v0 = vpop.f32.mrf.mxu0 }
 0x37c   : > { %v2469_v12 = vadd.f32 %v2461_v28, %v2367_v55  ;;  %v2267_v6 = vmul.f32 %v6573_v56, %v2250_v54  ;;  %v2563_v27 = vmul.f32 %v6541_v45, %v2543_v0  ;;  %v6082_v0 = vld [vmem:[%s8159_s3 + $0x64] sm:$0xf] }
 0x37e   : > { %5497 = vmatmul.msk.bf16.gmra.mxu1 %vm361_vm0, %v2386_v1  ;;  %v2571_v46 = vadd.f32 %v2563_v27, %v2469_v12 }
 0x381   : > { %v7266_v42 = vpop.f32.mrf.mxu3 }
 0x382   : > { %v2352_v21 = vpop.f32.mrf.mxu2 }
 0x383   : > { %v2369_v43 = vadd.f32 %v2352_v21, %v2267_v6  ;;  %v7268_v9 = vpop.f32.mrf.mxu1  ;;  %v7279_v54 = vpop.f32.mrf.mxu0  ;;  %v2977_v6 = vld [vmem:[#allocation2 + $0x54] sm:$0xff]  ;;  %v2978_v21 = vld [vmem:[#allocation2 + $0x5c] sm:$0xff] }
 0x389   : > { %v2446_v11 = vpop.f32.mrf.mxu3 }
 0x38a   : > { %v7270_v18 = vpop.f32.mrf.mxu2  ;;  %v2463_v40 = vmul.f32 %v6655_v51, %v2446_v11 }
 0x38b   : > { %v2255_v5 = vpop.f32.mrf.mxu1 }
 0x38c   : > { %v2471_v58 = vadd.f32 %v2463_v40, %v2369_v43  ;;  %v2269_v1 = vmul.f32 %v6593_v8, %v2255_v5  ;;  %v2982_v43 = vpack.c.bf16 %v2978_v21, %v2977_v6  ;;  %v5536_v5 = vld [vmem:[%s8159_s3 + $0x70] sm:$0xf]  ;;  %v5538_v6 = vld [vmem:[%s8159_s3 + $0x78] sm:$0xf0] }
 0x38e   : > { %5498 = vmatmul.msk.bf16.gmra.mxu1 %vm361_vm0, %v2684_v52 }
 0x391   : > { %v7275_v53 = vpop.f32.mrf.mxu3 }
 0x392   : > { %v2357_v55 = vpop.f32.mrf.mxu2 }
 0x393   : > { %v2371_v44 = vadd.f32 %v2357_v55, %v2269_v1  ;;  %v7277_v28 = vpop.f32.mrf.mxu1  ;;  %v6085_v1 = vld [vmem:[%s8159_s3 + $0x74] sm:$0xf0]  ;;  %v6084_v55 = vld [vmem:[%s8159_s3 + $0x74] sm:$0xf] }
 0x394   : > { %v5537_v57 = vor.u32 %v6085_v1, %v5536_v5  ;;  %v5541_v21 = vor.u32 %v6084_v55, %v5538_v6  ;;  %v5528_v55 = vld [vmem:[%s8159_s3 + $0x60] sm:$0xf] }
 0x396   : > { %3176 = vmatpush.bf16.msra.mxu2 %v5537_v57  ;;  %3205 = vmatpush.bf16.msra.mxu3 %v5541_v21  ;;  %v6083_v57 = vld [vmem:[%s8159_s3 + $0x64] sm:$0xf0] }
 0x397   : > { %v5529_v6 = vor.u32 %v6083_v57, %v5528_v55  ;;  %v6081_v55 = vld [vmem:[%s8159_s3 + $0x54] sm:$0xf0]  ;;  %v6080_v57 = vld [vmem:[%s8159_s3 + $0x54] sm:$0xf] }
 0x399   : > { %v2451_v11 = vpop.f32.mrf.mxu3 }
 0x39a   : > { %v7281_v31 = vpop.f32.mrf.mxu2  ;;  %v2465_v29 = vmul.f32 %v6682_v19, %v2451_v11  ;;  %3177 = vmatpush.bf16.msra.mxu2 %v5529_v6 }
 0x39b   : > { %v2260_v40 = vpop.f32.mrf.mxu1 }
 0x39c   : > { %v2473_v52 = vadd.f32 %v2465_v29, %v2371_v44  ;;  %v2548_v29 = vpop.f32.mrf.mxu0  ;;  %v2271_v44 = vmul.f32 %v6611_v24, %v2260_v40 }
 0x39e   : > { %5499 = vmatmul.msk.bf16.gmra.mxu1 %vm361_vm0, %v2982_v43 }
 0x3a1   : > { %v7298_v43 = vpop.f32.mrf.mxu3 }
 0x3a2   : > { %v2362_v11 = vpop.f32.mrf.mxu2 }
 0x3a3   : > { %v2373_v34 = vadd.f32 %v2362_v11, %v2271_v44  ;;  %v7300_v48 = vpop.f32.mrf.mxu1 }
 0x3a4   : > { %v7303_v5 = vpop.f32.mrf.mxu0 }
 0x3a9   : > { %v2456_v13 = vpop.f32.mrf.mxu3 }
 0x3aa   : > { %v2467_v1 = vmul.f32 %v6710_v49, %v2456_v13  ;;  %v5530_v13 = vld [vmem:[%s8159_s3 + $0x68] sm:$0xf0] }
 0x3ab   : > { %v2645_v22 = vpop.f32.mrf.mxu1  ;;  %v5533_v27 = vor.u32 %v6082_v0, %v5530_v13 }
 0x3ac   : > { %v2475_v38 = vadd.f32 %v2467_v1, %v2373_v34  ;;  %v2665_v40 = vadd.f32 %v2645_v22, %v2571_v46  ;;  %v2553_v46 = vpop.f32.mrf.mxu0  ;;  %v2565_v34 = vmul.f32 %v6573_v56, %v2548_v29  ;;  %v5520_v1 = vld [vmem:[%s8159_s3 + $0x50] sm:$0xf] }
 0x3ad   : > { %3206 = vmatpush.bf16.msra.mxu3 %v5533_v27  ;;  %v5521_v0 = vor.u32 %v6081_v55, %v5520_v1  ;;  %v2567_v13 = vmul.f32 %v6593_v8, %v2553_v46  ;;  %v7338_v27 = vpop.f32.mrf.mxu2  ;;  %v6079_v46 = vld [vmem:[%s8159_s3 + $0x44] sm:$0xf0] }
 0x3ae   : > { %v2573_v12 = vadd.f32 %v2565_v34, %v2471_v58  ;;  %v5522_v58 = vld [vmem:[%s8159_s3 + $0x58] sm:$0xf0] }
 0x3af   : > { %v5525_v29 = vor.u32 %v6080_v57, %v5522_v58  ;;  %3178 = vmatpush.bf16.msra.mxu2 %v5521_v0  ;;  %v5512_v0 = vld [vmem:[%s8159_s3 + $0x40] sm:$0xf]  ;;  %v5514_v58 = vld [vmem:[%s8159_s3 + $0x48] sm:$0xf0] }
 0x3b1   : > { %3207 = vmatpush.bf16.msra.mxu3 %v5525_v29 }
 0x3b3   : > { %v2647_v22 = vpop.f32.mrf.mxu1 }
 0x3b4   : > { %v7321_v11 = vpop.f32.mrf.mxu0 }
 0x3b5   : > { %v2739_v1 = vpop.f32.mrf.mxu2 }
 0x3bb   : > { %v2650_v44 = vpop.f32.mrf.mxu1 }
 0x3bc   : > { %v7319_v21 = vadd.f32 %v2650_v44, %v2573_v12  ;;  %v2558_v34 = vpop.f32.mrf.mxu0  ;;  %v7340_v12 = vpop.f32.mrf.mxu3  ;;  %v2575_v44 = vadd.f32 %v2567_v13, %v2473_v52  ;;  %v6078_v52 = vld [vmem:[%s8159_s3 + $0x44] sm:$0xf] }
 0x3bd   : > { %v2569_v29 = vmul.f32 %v6611_v24, %v2558_v34  ;;  %v5517_v13 = vor.u32 %v6078_v52, %v5514_v58  ;;  %v2741_v32 = vpop.f32.mrf.mxu2  ;;  %v2368_v34 = vadd.f32 %v7261_v33, %v2266_v17  ;;  %v2759_v52 = vmul.f32 %v6631_v35, %v2739_v1 }
 0x3be   : > { %v2564_v58 = vmul.f32 %v6722_v61, %v7279_v54  ;;  %v2760_v20 = vmul.f32 %v6746_v26, %v2741_v32  ;;  %v2268_v32 = vmul.f32 %v6764_v59, %v7268_v9 }
 0x3bf   : > { %3208 = vmatpush.bf16.msra.mxu3 %v5517_v13 }
 0x3c3   : > { %v7335_v6 = vpop.f32.mrf.mxu1 }
 0x3c4   : > { %v7344_v55 = vpop.f32.mrf.mxu0  ;;  %v2841_v36 = vpop.f32.mrf.mxu3 }
 0x3cb   : > { %v2655_v3 = vpop.f32.mrf.mxu1 }
 0x3cc   : > { %v7342_v60 = vadd.f32 %v2655_v3, %v2575_v44  ;;  %v5513_v3 = vor.u32 %v6079_v46, %v5512_v0  ;;  %v2577_v44 = vadd.f32 %v2569_v29, %v2475_v38  ;;  %v2943_v63 = vpop.f32.mrf.mxu0  ;;  %v2843_v15 = vpop.f32.mrf.mxu3  ;;  %v2462_v0 = vmul.f32 %v6746_v26, %v7266_v42 }
 0x3cd   : > { %v2862_v17 = vmul.f32 %v6722_v61, %v2843_v15 }
 0x3ce   : > { %3179 = vmatpush.bf16.msra.mxu2 %v5513_v3  ;;  %v2744_v3 = vpop.f32.mrf.mxu2  ;;  %v2470_v38 = vadd.f32 %v2462_v0, %v2368_v34 }
 0x3d0   : > { %v2572_v16 = vadd.f32 %v2564_v58, %v2470_v38 }
 0x3d2   : > { %v2666_v10 = vadd.f32 %v2647_v22, %v2572_v16 }
 0x3d3   : > { %v7346_v57 = vpop.f32.mrf.mxu1 }
 0x3d4   : > { %v2945_v29 = vpop.f32.mrf.mxu0  ;;  %v2846_v13 = vpop.f32.mrf.mxu3  ;;  %v2768_v1 = vadd.f32 %v2760_v20, %v2666_v10  ;;  %v2761_v20 = vmul.f32 %v6655_v51, %v2744_v3 }
 0x3d5   : > { %v2863_v58 = vmul.f32 %v6573_v56, %v2846_v13 }
 0x3d6   : > { %v2746_v34 = vpop.f32.mrf.mxu2  ;;  %v2870_v30 = vadd.f32 %v2862_v17, %v2768_v1 }
 0x3db   : > { %v2660_v14 = vpop.f32.mrf.mxu1 }
 0x3dc   : > { %v7361_v50 = vadd.f32 %v2660_v14, %v2577_v44  ;;  %v2861_v14 = vmul.f32 %v6541_v45, %v2841_v36  ;;  %v2767_v44 = vadd.f32 %v2759_v52, %v2665_v40  ;;  %v2948_v54 = vpop.f32.mrf.mxu0  ;;  %v7380_v36 = vld [vmem:[%s8162_s6 + $0x1] ss:$0 sm:$0xff]  ;;  %v2464_v40 = vmul.f32 %v6772_v62, %v7275_v53  ;;  %v2848_v15 = vpop.f32.mrf.mxu3 }
 0x3dd   : > { %v7392_v52 = vld [vmem:[%s8163_s7 + $0x1] ss:$0 sm:$0xff]  ;;  %v2566_v53 = vmul.f32 %v6764_v59, %v7303_v5  ;;  %v2864_v13 = vmul.f32 %v6764_v59, %v2848_v15 }
 0x3de   : > { %v2869_v42 = vadd.f32 %v2861_v14, %v2767_v44  ;;  %v2769_v14 = vadd.f32 %v2761_v20, %v7319_v21  ;;  %v2762_v44 = vmul.f32 %v6772_v62, %v2746_v34  ;;  %v2466_v34 = vmul.f32 %v6816_v25, %v7298_v43 }
 0x3e0   : > { %v2963_v0 = vadd.f32 %v2943_v63, %v2869_v42  ;;  %v2964_v63 = vadd.f32 %v2945_v29, %v2870_v30  ;;  %v2749_v29 = vpop.f32.mrf.mxu2  ;;  %v2871_v16 = vadd.f32 %v2863_v58, %v2769_v14  ;;  %v2568_v14 = vmul.f32 %v6806_v4, %v7321_v11 }
 0x3e3   : > { %v7367_v46 = vpop.f32.mrf.mxu1 }
 0x3e4   : > { %v2950_v42 = vpop.f32.mrf.mxu0  ;;  %v2851_v5 = vpop.f32.mrf.mxu3 }
 0x3eb   : > { %v3037_v7 = vpop.f32.mrf.mxu1 }
 0x3ec   : > { %v3057_v33 = vmul.f32 %v6631_v35, %v3037_v7  ;;  %v2370_v7 = vadd.f32 %v7270_v18, %v2268_v32 }
 0x3ee   : > { %v3065_v39 = vadd.f32 %v3057_v33, %v2963_v0  ;;  %v2472_v9 = vadd.f32 %v2464_v40, %v2370_v7  ;;  %v2965_v7 = vadd.f32 %v2948_v54, %v2871_v16 }
 0x3f0   : > { %v3078_v22 = vmul.f32 %v7380_v36, %v3065_v39  ;;  %v2574_v3 = vadd.f32 %v2566_v53, %v2472_v9  ;;  %v2763_v9 = vmul.f32 %v6682_v19, %v2749_v29 }
 0x3f2   : > { %v3091_v30 = vadd.f32 %v7392_v52, %v3078_v22  ;;  %v2668_v33 = vadd.f32 %v7335_v6, %v2574_v3  ;;  %v2270_v6 = vmul.f32 %v6806_v4, %v7277_v28  ;;  %v2751_v22 = vpop.f32.mrf.mxu2  ;;  %v2853_v28 = vpop.f32.mrf.mxu3 }
 0x3f3   : > { %v3039_v10 = vpop.f32.mrf.mxu1  ;;  %v2764_v16 = vmul.f32 %v6816_v25, %v2751_v22  ;;  %v6092_v22 = vld [vmem:[%s8157_s1 + $0x130] sm:$0xff] }
 0x3f4   : > { %v3058_v38 = vmul.f32 %v6746_v26, %v3039_v10  ;;  %v3099_v0 = vmax.f32 %v3091_v30, 0.0  ;;  %v2770_v40 = vadd.f32 %v2762_v44, %v2668_v33  ;;  %v2372_v15 = vadd.f32 %v7281_v31, %v2270_v6  ;;  %v2953_v30 = vpop.f32.mrf.mxu0  ;;  %v6101_v6 = vld [vmem:[%s8157_s1 + $0x178] sm:$0xff] }
 0x3f5   : > { %v2771_v31 = vadd.f32 %v2763_v9, %v7342_v60  ;;  %3474 = vmatpush.bf16.msrb.mxu1 %v6101_v6  ;;  %v6088_v6 = vld [vmem:[%s8157_s1 + $0x110] sm:$0xff] }
 0x3f6   : > { %v3066_v18 = vadd.f32 %v3058_v38, %v2964_v63  ;;  %v2872_v20 = vadd.f32 %v2864_v13, %v2770_v40 }
 0x3f8   : > { %v3079_v39 = vmul.f32 %v7380_v36, %v3066_v18  ;;  %v2966_v54 = vadd.f32 %v2950_v42, %v2872_v20  ;;  %v2474_v18 = vadd.f32 %v2466_v34, %v2372_v15  ;;  %v2272_v34 = vmul.f32 %v6835_v41, %v7300_v48 }
 0x3f9   : > { %v2468_v15 = vmul.f32 %v6844_v2, %v7340_v12 }
 0x3fa   : > { %v3092_v17 = vadd.f32 %v7392_v52, %v3079_v39  ;;  %v2865_v39 = vmul.f32 %v6593_v8, %v2851_v5  ;;  %v2576_v44 = vadd.f32 %v2568_v14, %v2474_v18  ;;  %v2754_v60 = vpop.f32.mrf.mxu2  ;;  %v2374_v9 = vadd.f32 %v7338_v27, %v2272_v34  ;;  %v6091_v27 = vld [vmem:[%s8157_s1 + $0x128] sm:$0xff]  ;;  %v6096_v34 = vld [vmem:[%s8157_s1 + $0x150] sm:$0xff] }
 0x3fb   : > { %v3042_v1 = vpop.f32.mrf.mxu1  ;;  %v2570_v14 = vmul.f32 %v6835_v41, %v7344_v55 }
 0x3fc   : > { %v3100_v21 = vmax.f32 %v3092_v17, 0.0  ;;  %v3059_v32 = vmul.f32 %v6655_v51, %v3042_v1  ;;  %v2873_v42 = vadd.f32 %v2865_v39, %v2771_v31  ;;  %v2670_v33 = vadd.f32 %v7346_v57, %v2576_v44  ;;  %v6093_v57 = vld [vmem:[%s8157_s1 + $0x138] sm:$0xff]  ;;  %v6099_v39 = vld [vmem:[%s8157_s1 + $0x168] sm:$0xff] }
 0x3fd   : > { %v2866_v1 = vmul.f32 %v6806_v4, %v2853_v28  ;;  %3445 = vmatpush.bf16.msra.mxu0 %v6093_v57  ;;  %v2476_v18 = vadd.f32 %v2468_v15, %v2374_v9 }
 0x3fe   : > { %v3107_v10 = vpack.c.bf16 %v3100_v21, %v3099_v0  ;;  %v3067_v63 = vadd.f32 %v3059_v32, %v2965_v7  ;;  %v2772_v21 = vadd.f32 %v2764_v16, %v2670_v33  ;;  %v2967_v32 = vadd.f32 %v2953_v30, %v2873_v42  ;;  %v2955_v7 = vpop.f32.mrf.mxu0 }
 0x3ff   : > { %v2578_v44 = vadd.f32 %v2570_v14, %v2476_v18 }
 0x400   : > { %5542 = vmatmul.msk.bf16.vlgmr.msra.gmra.mxu2 %vm361_vm0, %v3107_v10  ;;  %5546 = vmatmul.msk.bf16.vlgmr.msra.gmra.mxu3 %vm361_vm0, %v3107_v10  ;;  %v3080_v53 = vmul.f32 %v7380_v36, %v3067_v63  ;;  %v2856_v10 = vpop.f32.mrf.mxu3  ;;  %v2874_v20 = vadd.f32 %v2866_v1, %v2772_v21 }
 0x401   : > { %v2867_v30 = vmul.f32 %v6611_v24, %v2856_v10  ;;  %3446 = vmatpush.bf16.msra.mxu0 %v6092_v22  ;;  %v2672_v1 = vadd.f32 %v7367_v46, %v2578_v44  ;;  %v6089_v10 = vld [vmem:[%s8157_s1 + $0x118] sm:$0xff] }
 0x402   : > { %v3093_v3 = vadd.f32 %v7392_v52, %v3080_v53  ;;  %v2765_v53 = vmul.f32 %v6710_v49, %v2754_v60  ;;  %v6097_v46 = vld [vmem:[%s8157_s1 + $0x158] sm:$0xff] }
 0x403   : > { %v3044_v38 = vpop.f32.mrf.mxu1 }
 0x404   : > { %v3060_v58 = vmul.f32 %v6772_v62, %v3044_v38  ;;  %v3101_v13 = vmax.f32 %v3093_v3, 0.0  ;;  %v6100_v38 = vld [vmem:[%s8157_s1 + $0x170] sm:$0xff]  ;;  %v2773_v3 = vadd.f32 %v2765_v53, %v7361_v50  ;;  %v6098_v50 = vld [vmem:[%s8157_s1 + $0x160] sm:$0xff] }
 0x405   : > { %3475 = vmatpush.bf16.msrb.mxu1 %v6100_v38  ;;  %3447 = vmatpush.bf16.msra.mxu0 %v6091_v27  ;;  %v5550_v27 = vld [vmem:[%s8164_s8 + $0x2] sm:$0x3] }
 0x406   : > { %v3068_v43 = vadd.f32 %v3060_v58, %v2966_v54  ;;  %v2968_v58 = vadd.f32 %v2955_v7, %v2874_v20  ;;  %v2958_v31 = vpop.f32.mrf.mxu0 }
 0x408   : > { %v3081_v29 = vmul.f32 %v7380_v36, %v3068_v43  ;;  %v2756_v43 = vpop.f32.mrf.mxu2  ;;  %v2858_v16 = vpop.f32.mrf.mxu3 }
 0x409   : > { %v2766_v42 = vmul.f32 %v6844_v2, %v2756_v43  ;;  %3476 = vmatpush.bf16.msrb.mxu1 %v6099_v39  ;;  %v7508_v39 = vperm.slane %v5550_v27, 0  ;;  %v7510_v43 = vperm.slane %v5550_v27, 1 }
 0x40a   : > { %v3094_v17 = vadd.f32 %v7392_v52, %v3081_v29 }
 0x40b   : > { %v3047_v11 = vpop.f32.mrf.mxu1 }
 0x40c   : > { %v3102_v5 = vmax.f32 %v3094_v17, 0.0  ;;  %v3061_v0 = vmul.f32 %v6682_v19, %v3047_v11  ;;  %v2875_v17 = vadd.f32 %v2867_v30, %v2773_v3  ;;  %v6090_v11 = vld [vmem:[%s8157_s1 + $0x120] sm:$0xff]  ;;  %v6087_v30 = vld [vmem:[%s8157_s1 + $0x108] sm:$0xff] }
 0x40d   : > { %3448 = vmatpush.bf16.msra.mxu0 %v6090_v11  ;;  %3477 = vmatpush.bf16.msrb.mxu1 %v6098_v50  ;;  %v5551_v3 = vld [vmem:[%s8165_s9 + $0x2] sm:$0x3] }
 0x40e   : > { %v3108_v40 = vpack.c.bf16 %v3102_v5, %v3101_v13  ;;  %v3069_v63 = vadd.f32 %v3061_v0, %v2967_v32  ;;  %v2868_v5 = vmul.f32 %v6835_v41, %v2858_v16  ;;  %v2774_v32 = vadd.f32 %v2766_v42, %v2672_v1  ;;  %v2960_v57 = vpop.f32.mrf.mxu0 }
 0x40f   : > { %v7516_v44 = vperm.slane %v5551_v3, 0  ;;  %v7519_v42 = vperm.slane %v5551_v3, 1 }
 0x410   : > { %5543 = vmatmul.msk.bf16.gmra.mxu2 %vm361_vm0, %v3108_v40  ;;  %5547 = vmatmul.msk.bf16.gmra.mxu3 %vm361_vm0, %v3108_v40  ;;  %v3082_v48 = vmul.f32 %v7380_v36, %v3069_v63  ;;  %v2969_v40 = vadd.f32 %v2958_v31, %v2875_v17  ;;  %v2876_v20 = vadd.f32 %v2868_v5, %v2774_v32  ;;  %v8237_v5 = vmax.f32 %v6946_v37, 0.0 }
 0x411   : > { %3449 = vmatpush.bf16.msra.mxu0 %v6089_v10  ;;  %3478 = vmatpush.bf16.msrb.mxu1 %v6097_v46  ;;  %v8240_v46 = vld [vmem:[#allocation3_spill] sm:$0xff] }
 0x412   : > { %v3095_v29 = vadd.f32 %v7392_v52, %v3082_v48  ;;  %v2970_v22 = vadd.f32 %v2960_v57, %v2876_v20  ;;  %v8241_v20 = vmax.f32 %v8240_v46, 0.0 }
 0x413   : > { %v3049_v54 = vpop.f32.mrf.mxu1 }
 0x414   : > { %v3062_v12 = vmul.f32 %v6816_v25, %v3049_v54  ;;  %v3103_v0 = vmax.f32 %v3095_v29, 0.0 }
 0x415   : > { %3450 = vmatpush.bf16.msra.mxu0 %v6088_v6  ;;  %3479 = vmatpush.bf16.msrb.mxu1 %v6096_v34 }
 0x416   : > { %v3070_v28 = vadd.f32 %v3062_v12, %v2968_v58 }
 0x418   : > { %v3083_v55 = vmul.f32 %v7380_v36, %v3070_v28  ;;  %v6095_v28 = vld [vmem:[%s8157_s1 + $0x148] sm:$0xff] }
 0x419   : > { %3451 = vmatpush.bf16.msra.mxu0 %v6087_v30  ;;  %3480 = vmatpush.bf16.msrb.mxu1 %v6095_v28 }
 0x41a   : > { %v3096_v33 = vadd.f32 %v7392_v52, %v3083_v55 }
 0x41b   : > { %v3052_v13 = vpop.f32.mrf.mxu1 }
 0x41c   : > { %v3104_v60 = vmax.f32 %v3096_v33, 0.0  ;;  %v3063_v21 = vmul.f32 %v6710_v49, %v3052_v13 }
 0x41e   : > { %v3109_v7 = vpack.c.bf16 %v3104_v60, %v3103_v0  ;;  %v3071_v63 = vadd.f32 %v3063_v21, %v2969_v40  ;;  %v8238_v60 = vmax.f32 %v6955_v47, 0.0 }
 0x420   : > { %5544 = vmatmul.msk.bf16.gmra.mxu2 %vm361_vm0, %v3109_v7  ;;  %5548 = vmatmul.msk.bf16.gmra.mxu3 %vm361_vm0, %v3109_v7  ;;  %v3084_v38 = vmul.f32 %v7380_v36, %v3071_v63  ;;  %v8239_v7 = vmax.f32 %v6950_v23, 0.0 }
 0x422   : > { %v3097_v53 = vadd.f32 %v7392_v52, %v3084_v38 }
 0x423   : > { %v3054_v15 = vpop.f32.mrf.mxu1 }
 0x424   : > { %v3064_v9 = vmul.f32 %v6844_v2, %v3054_v15  ;;  %v3105_v12 = vmax.f32 %v3097_v53, 0.0 }
 0x426   : > { %v3072_v54 = vadd.f32 %v3064_v9, %v2970_v22 }
 0x428   : > { %v3085_v58 = vmul.f32 %v7380_v36, %v3072_v54  ;;  %v6086_v36 = vld [vmem:[%s8157_s1 + $0x100] sm:$0xff] }
 0x429   : > { %3452 = vmatpush.bf16.msra.mxu0 %v6086_v36  ;;  %v8245_v36 = vld [vmem:[#allocation6_spill] sm:$0xff] }
 0x42a   : > { %v3098_v48 = vadd.f32 %v7392_v52, %v3085_v58  ;;  %v6094_v52 = vld [vmem:[%s8157_s1 + $0x140] sm:$0xff] }
 0x42b   : > { %3481 = vmatpush.bf16.msrb.mxu1 %v6094_v52  ;;  %v8246_v52 = vmax.f32 %v8245_v36, 0.0 }
 0x42c   : > { %v3106_v18 = vmax.f32 %v3098_v48, 0.0 }
 0x42e   : > { %v3110_v14 = vpack.c.bf16 %v3106_v18, %v3105_v12 }
 0x430   : > { %5545 = vmatmul.msk.bf16.gmra.mxu2 %vm361_vm0, %v3110_v14  ;;  %5549 = vmatmul.msk.bf16.gmra.mxu3 %vm361_vm0, %v3110_v14  ;;  %v8242_v14 = vld [vmem:[#allocation4_spill] sm:$0xff] }
 0x431   : > { %v8243_v30 = vmax.f32 %v8242_v14, 0.0  ;;  %v8254_v14 = vld [vmem:[#allocation8_spill] sm:$0xff] }
 0x483   : > { %v3181_v31 = vpop.f32.mrf.mxu2  ;;  %v3210_v29 = vpop.f32.mrf.mxu3 }
 0x484   : > { %v3237_v55 = vmul.f32 %v7508_v39, %v3181_v31  ;;  %v3238_v16 = vmul.f32 %v7510_v43, %v3210_v29  ;;  %v8248_v29 = vld [vmem:[#allocation5_spill] sm:$0xff] }
 0x486   : > { %v3260_v17 = vadd.f32 %v7516_v44, %v3237_v55  ;;  %v3261_v33 = vadd.f32 %v7519_v42, %v3238_v16  ;;  %v8249_v55 = vmax.f32 %v8248_v29, 0.0 }
 0x488   : > { %v7527_v0 = vadd.f32 %v3260_v17, %v8237_v5  ;;  %v7531_v21 = vadd.f32 %v3261_v33, %v8238_v60  ;;  %v8251_v17 = vld [vmem:[#allocation7_spill] sm:$0xff] }
 0x489   : > { %v8252_v33 = vmax.f32 %v8251_v17, 0.0  ;;  %v8260_v17 = vld [vmem:[#allocation9_spill] sm:$0xff] }
 0x48a   : > { %v8210_v37 = vmax.f32 %v7527_v0, 0.0  ;;  %v8211_v57 = vmax.f32 %v7531_v21, 0.0 }
 0x48b   : > { %v3183_v11 = vpop.f32.mrf.mxu2  ;;  %v3212_v50 = vpop.f32.mrf.mxu3 }
 0x48c   : > { %v3239_v1 = vmul.f32 %v7508_v39, %v3183_v11  ;;  %v3240_v13 = vmul.f32 %v7510_v43, %v3212_v50 }
 0x48e   : > { %v3262_v32 = vadd.f32 %v7516_v44, %v3239_v1  ;;  %v3263_v40 = vadd.f32 %v7519_v42, %v3240_v13 }
 0x490   : > { %v7537_v10 = vadd.f32 %v3262_v32, %v8239_v7  ;;  %v7541_v63 = vadd.f32 %v3263_v40, %v8241_v20 }
 0x492   : > { %v8208_v47 = vmax.f32 %v7537_v10, 0.0  ;;  %v8209_v6 = vmax.f32 %v7541_v63, 0.0 }
 0x493   : > { %v3186_v34 = vpop.f32.mrf.mxu2  ;;  %v3215_v15 = vpop.f32.mrf.mxu3 }
 0x494   : > { %v3308_v23 = vpack.c.bf16 %v8208_v47, %v8210_v37  ;;  %v3309_v22 = vpack.c.bf16 %v8209_v6, %v8211_v57  ;;  %v3241_v38 = vmul.f32 %v7508_v39, %v3186_v34  ;;  %v3242_v9 = vmul.f32 %v7510_v43, %v3215_v15  ;;  %v6105_v34 = vld [vmem:[%s8158_s2 + $0x258] sm:$0xff] }
 0x495   : > { %v6109_v15 = vld [vmem:[%s8158_s2 + $0x278] sm:$0xff]  ;;  %3606 = vmatpush.bf16.msrb.mxu2 %v6105_v34 }
 0x496   : > { %3453 = vmatmul.bf16.vlgmr.msra.gmra.mxu0 %v3308_v23  ;;  %3482 = vmatmul.bf16.vlgmr.msrb.gmra.mxu1 %v3309_v22  ;;  %v3264_v54 = vadd.f32 %v7516_v44, %v3241_v38  ;;  %v3265_v53 = vadd.f32 %v7519_v42, %v3242_v9  ;;  %v6104_v23 = vld [vmem:[%s8158_s2 + $0x250] sm:$0xff] }
 0x497   : > { %3708 = vmatpush.bf16.msrb.mxu3 %v6109_v15  ;;  %v6108_v22 = vld [vmem:[%s8158_s2 + $0x270] sm:$0xff] }
 0x498   : > { %v7563_v28 = vadd.f32 %v3264_v54, %v8243_v30  ;;  %v7567_v27 = vadd.f32 %v3265_v53, %v8246_v52  ;;  %v8255_v30 = vmax.f32 %v8254_v14, 0.0  ;;  %v8257_v52 = vld [vmem:[#allocation10_spill] sm:$0xff] }
 0x499   : > { %3607 = vmatpush.bf16.msrb.mxu2 %v6104_v23 }
 0x49a   : > { %8244 = vst [vmem:[#allocation3_spill] sm:$0xff] %v7563_v28  ;;  %v8206_v50 = vmax.f32 %v7563_v28, 0.0  ;;  %v8207_v1 = vmax.f32 %v7567_v27, 0.0 }
 0x49b   : > { %v3188_v58 = vpop.f32.mrf.mxu2  ;;  %v3217_v48 = vpop.f32.mrf.mxu3  ;;  %8247 = vst [vmem:[#allocation4_spill] sm:$0xff] %v7567_v27  ;;  %3709 = vmatpush.bf16.msrb.mxu3 %v6108_v22 }
 0x49c   : > { %v3243_v12 = vmul.f32 %v7508_v39, %v3188_v58  ;;  %v3244_v18 = vmul.f32 %v7510_v43, %v3217_v48 }
 0x49e   : > { %v3266_v31 = vadd.f32 %v7516_v44, %v3243_v12  ;;  %v3267_v3 = vadd.f32 %v7519_v42, %v3244_v18  ;;  %v6103_v12 = vld [vmem:[%s8158_s2 + $0x248] sm:$0xff] }
 0x49f   : > { %v6107_v18 = vld [vmem:[%s8158_s2 + $0x268] sm:$0xff]  ;;  %3608 = vmatpush.bf16.msrb.mxu2 %v6103_v12 }
 0x4a0   : > { %v7573_v16 = vadd.f32 %v3266_v31, %v8249_v55  ;;  %v7577_v11 = vadd.f32 %v3267_v3, %v8252_v33  ;;  %v8258_v31 = vmax.f32 %v8257_v52, 0.0  ;;  %v8261_v33 = vmax.f32 %v8260_v17, 0.0  ;;  %3710 = vmatpush.bf16.msrb.mxu3 %v6107_v18  ;;  %v8269_v17 = vld [vmem:[#allocation14_spill] sm:$0xff] }
 0x4a2   : > { %8250 = vst [vmem:[#allocation6_spill] sm:$0xff] %v7573_v16  ;;  %v8204_v13 = vmax.f32 %v7573_v16, 0.0  ;;  %v8205_v5 = vmax.f32 %v7577_v11, 0.0 }
 0x4a3   : > { %8253 = vst [vmem:[#allocation5_spill] sm:$0xff] %v7577_v11  ;;  %v3191_v60 = vpop.f32.mrf.mxu2  ;;  %v3220_v32 = vpop.f32.mrf.mxu3 }
 0x4a4   : > { %v3310_v40 = vpack.c.bf16 %v8204_v13, %v8206_v50  ;;  %v3311_v7 = vpack.c.bf16 %v8205_v5, %v8207_v1  ;;  %v3245_v46 = vmul.f32 %v7508_v39, %v3191_v60  ;;  %v3246_v20 = vmul.f32 %v7510_v43, %v3220_v32  ;;  %v8263_v32 = vld [vmem:[#allocation11_spill] sm:$0xff]  ;;  %v5938_v13 = vld [vmem:[%s8159_s3 + $0xb0] sm:$0xf] }
 0x4a6   : > { %3458 = vmatmul.bf16.gmra.mxu0 %v3310_v40  ;;  %3487 = vmatmul.bf16.gmra.mxu1 %v3311_v7  ;;  %v3268_v38 = vadd.f32 %v7516_v44, %v3245_v46  ;;  %v3269_v9 = vadd.f32 %v7519_v42, %v3246_v20  ;;  %v8264_v40 = vmax.f32 %v8263_v32, 0.0  ;;  %v6102_v46 = vld [vmem:[%s8158_s2 + $0x240] sm:$0xff] }
 0x4a7   : > { %3609 = vmatpush.bf16.msrb.mxu2 %v6102_v46 }
 0x4a8   : > { %v7617_v36 = vadd.f32 %v3268_v38, %v8255_v30  ;;  %v7621_v3 = vadd.f32 %v3269_v9, %v8258_v31  ;;  %v8266_v31 = vld [vmem:[#allocation12_spill] sm:$0xff] }
 0x4aa   : > { %8256 = vst [vmem:[#allocation7_spill] sm:$0xff] %v7617_v36  ;;  %v8202_v20 = vmax.f32 %v7617_v36, 0.0  ;;  %v8203_v34 = vmax.f32 %v7621_v3, 0.0 }
 0x4ab   : > { %v3193_v54 = vpop.f32.mrf.mxu2  ;;  %v3222_v53 = vpop.f32.mrf.mxu3  ;;  %8259 = vst [vmem:[#allocation8_spill] sm:$0xff] %v7621_v3 }
 0x4ac   : > { %v3247_v58 = vmul.f32 %v7508_v39, %v3193_v54  ;;  %v3248_v48 = vmul.f32 %v7510_v43, %v3222_v53 }
 0x4ae   : > { %v3270_v29 = vadd.f32 %v7516_v44, %v3247_v58  ;;  %v3271_v55 = vadd.f32 %v7519_v42, %v3248_v48 }
 0x4b0   : > { %v7627_v60 = vadd.f32 %v3270_v29, %v8261_v33  ;;  %v7631_v7 = vadd.f32 %v3271_v55, %v8264_v40  ;;  %v8267_v29 = vmax.f32 %v8266_v31, 0.0  ;;  %v8270_v33 = vmax.f32 %v8269_v17, 0.0  ;;  %v6113_v31 = vld [vmem:[%s8158_s2 + $0x298] sm:$0xff]  ;;  %v3648_v17 = vld [vmem:[#allocation2 + $0xa] sm:$0xff] }
 0x4b1   : > { %3802 = vmatpush.bf16.msrb.mxu0 %v6113_v31  ;;  %v7724_v31 = vld [vmem:[%s8161_s5 + $0x2] ss:$0 sm:$0xff] }
 0x4b2   : > { %8262 = vst [vmem:[#allocation10_spill] sm:$0xff] %v7627_v60  ;;  %v8200_v15 = vmax.f32 %v7627_v60, 0.0  ;;  %v8201_v23 = vmax.f32 %v7631_v7, 0.0 }
 0x4b3   : > { %8265 = vst [vmem:[#allocation9_spill] sm:$0xff] %v7631_v7  ;;  %v3196_v22 = vpop.f32.mrf.mxu2  ;;  %v3225_v38 = vpop.f32.mrf.mxu3 }
 0x4b4   : > { %v3312_v9 = vpack.c.bf16 %v8200_v15, %v8202_v20  ;;  %v3313_v54 = vpack.c.bf16 %v8201_v23, %v8203_v34  ;;  %v3249_v53 = vmul.f32 %v7508_v39, %v3196_v22  ;;  %v3250_v58 = vmul.f32 %v7510_v43, %v3225_v38  ;;  %v8272_v22 = vld [vmem:[#allocation13_spill] sm:$0xff] }
 0x4b5   : > { %v8273_v38 = vmax.f32 %v8272_v22, 0.0  ;;  %v6117_v22 = vld [vmem:[%s8158_s2 + $0x2b8] sm:$0xff] }
 0x4b6   : > { %3463 = vmatmul.bf16.gmra.mxu0 %v3312_v9  ;;  %3492 = vmatmul.bf16.gmra.mxu1 %v3313_v54  ;;  %v3272_v48 = vadd.f32 %v7516_v44, %v3249_v53  ;;  %v3273_v12 = vadd.f32 %v7519_v42, %v3250_v58  ;;  %v8275_v54 = vld [vmem:[#allocation15_spill] sm:$0xff] }
 0x4b7   : > { %3904 = vmatpush.bf16.msra.mxu1 %v6117_v22 }
 0x4b8   : > { %v7656_v55 = vadd.f32 %v3272_v48, %v8267_v29  ;;  %v7660_v32 = vadd.f32 %v3273_v12, %v8270_v33  ;;  %v3647_v29 = vld [vmem:[#allocation2 + $0x2] sm:$0xff] }
 0x4b9   : > { %v3655_v33 = vpack.c.bf16 %v3648_v17, %v3647_v29  ;;  %v6120_v29 = vld [vmem:[%s8158_s2 + $0x2d0] sm:$0xff] }
 0x4ba   : > { %8268 = vst [vmem:[#allocation11_spill] sm:$0xff] %v7656_v55  ;;  %v8199_v58 = vmax.f32 %v7660_v32, 0.0 }
 0x4bb   : > { %v3198_v18 = vpop.f32.mrf.mxu2  ;;  %v3227_v14 = vpop.f32.mrf.mxu3  ;;  %8271 = vst [vmem:[#allocation12_spill] sm:$0xff] %v7660_v32  ;;  %v5916_v32 = vld [vmem:[%s8159_s3 + $0x88] sm:$0xf0] }
 0x4bc   : > { %v3251_v30 = vmul.f32 %v7508_v39, %v3198_v18  ;;  %v3252_v52 = vmul.f32 %v7510_v43, %v3227_v14  ;;  %v8276_v39 = vmax.f32 %v8275_v54, 0.0  ;;  %v8198_v43 = vmax.f32 %v7656_v55, 0.0  ;;  %v6106_v18 = vld [vmem:[%s8158_s2 + $0x260] sm:$0xff]  ;;  %v6116_v54 = vld [vmem:[%s8158_s2 + $0x2b0] sm:$0xff] }
 0x4bd   : > { %v3545_v14 = vld [vmem:[#allocation2] sm:$0xff]  ;;  %3711 = vmatpush.bf16.msrb.mxu3 %v6106_v18  ;;  %3905 = vmatpush.bf16.msra.mxu1 %v6116_v54 }
 0x4be   : > { %v3274_v40 = vadd.f32 %v7516_v44, %v3251_v30  ;;  %v3275_v46 = vadd.f32 %v7519_v42, %v3252_v52  ;;  %v3546_v30 = vld [vmem:[#allocation2 + $0x8] sm:$0xff]  ;;  %v7719_v18 = vld [vmem:[%s8160_s4 + $0x2] ss:$0 sm:$0xff]  ;;  %v6138_v55 = vld [vmem:[%s8159_s3 + $0x84] sm:$0xf] }
 0x4bf   : > { %v3553_v52 = vpack.c.bf16 %v3546_v30, %v3545_v14  ;;  %v5919_v7 = vor.u32 %v6138_v55, %v5916_v32 }
 0x4c0   : > { %v7666_v9 = vadd.f32 %v3274_v40, %v8273_v38  ;;  %v7670_v53 = vadd.f32 %v3275_v46, %v8276_v39  ;;  %5702 = vmatmul.msk.bf16.vlgmr.msrb.gmra.mxu3 %vm361_vm0, %v3655_v33  ;;  %v6112_v40 = vld [vmem:[%s8158_s2 + $0x290] sm:$0xff]  ;;  %v6111_v46 = vld [vmem:[%s8158_s2 + $0x288] sm:$0xff]  ;;  %v6110_v38 = vld [vmem:[%s8158_s2 + $0x280] sm:$0xff] }
 0x4c1   : > { %5674 = vmatmul.msk.bf16.vlgmr.msrb.gmra.mxu2 %vm361_vm0, %v3553_v52  ;;  %3803 = vmatpush.bf16.msrb.mxu0 %v6112_v40  ;;  %v6121_v39 = vld [vmem:[%s8158_s2 + $0x2d8] sm:$0xff] }
 0x4c2   : > { %8274 = vst [vmem:[#allocation14_spill] sm:$0xff] %v7666_v9  ;;  %v8196_v48 = vmax.f32 %v7666_v9, 0.0  ;;  %v8197_v12 = vmax.f32 %v7670_v53, 0.0  ;;  %4006 = vmatpush.bf16.msra.mxu2 %v6121_v39  ;;  %v5914_v9 = vld [vmem:[%s8159_s3 + $0x80] sm:$0xf] }
 0x4c3   : > { %8277 = vst [vmem:[#allocation13_spill] sm:$0xff] %v7670_v53 }
 0x4c4   : > { %v3314_v44 = vpack.c.bf16 %v8196_v48, %v8198_v43  ;;  %v3315_v42 = vpack.c.bf16 %v8197_v12, %v8199_v58 }
 0x4c5   : > { %3804 = vmatpush.bf16.msrb.mxu0 %v6111_v46 }
 0x4c6   : > { %3468 = vmatmul.bf16.gmra.mxu0 %v3314_v44  ;;  %3497 = vmatmul.bf16.gmra.mxu1 %v3315_v42  ;;  %v6115_v44 = vld [vmem:[%s8158_s2 + $0x2a8] sm:$0xff]  ;;  %v6114_v42 = vld [vmem:[%s8158_s2 + $0x2a0] sm:$0xff] }
 0x4c7   : > { %3906 = vmatpush.bf16.msra.mxu1 %v6115_v44  ;;  %4007 = vmatpush.bf16.msra.mxu2 %v6120_v29  ;;  %v3741_v44 = vld [vmem:[#allocation2 + $0x4] sm:$0xff] }
 0x4c9   : > { %3805 = vmatpush.bf16.msrb.mxu0 %v6110_v38 }
 0x4cb   : > { %3907 = vmatpush.bf16.msra.mxu1 %v6114_v42 }
 0x513   : > { %v3454_v14 = vpop.f32.mrf.mxu0  ;;  %v3483_v30 = vpop.f32.mrf.mxu1 }
 0x514   : > { %v3484_v52 = vadd.f32 %v3483_v30, %v3454_v14 }
 0x516   : > { %v3508_v17 = vmul.f32 %v7719_v18, %v3484_v52 }
 0x518   : > { %v3521_v33 = vadd.f32 %v7724_v31, %v3508_v17  ;;  %v6119_v17 = vld [vmem:[%s8158_s2 + $0x2c8] sm:$0xff] }
 0x519   : > { %4008 = vmatpush.bf16.msra.mxu2 %v6119_v17 }
 0x51a   : > { %v3529_v40 = vmax.f32 %v3521_v33, 0.0 }
 0x51b   : > { %v3456_v46 = vpop.f32.mrf.mxu0  ;;  %v3485_v22 = vpop.f32.mrf.mxu1 }
 0x51c   : > { %3537 = vst.msk [vmem:[#allocation2 + $0x12] sm:$0xff] %vm361_vm0, %v3529_v40  ;;  %v3486_v38 = vadd.f32 %v3485_v22, %v3456_v46 }
 0x51e   : > { %v3509_v54 = vmul.f32 %v7719_v18, %v3486_v38 }
 0x520   : > { %v3522_v39 = vadd.f32 %v7724_v31, %v3509_v54 }
 0x522   : > { %v3530_v42 = vmax.f32 %v3522_v39, 0.0 }
 0x523   : > { %v3459_v14 = vpop.f32.mrf.mxu0  ;;  %v3488_v30 = vpop.f32.mrf.mxu1  ;;  %v3742_v48 = vld [vmem:[#allocation2 + $0xc] sm:$0xff] }
 0x524   : > { %3538 = vst.msk [vmem:[#allocation2 + $0x1a] sm:$0xff] %vm361_vm0, %v3530_v42  ;;  %v3489_v52 = vadd.f32 %v3488_v30, %v3459_v14  ;;  %v3749_v29 = vpack.c.bf16 %v3742_v48, %v3741_v44  ;;  %v3547_v22 = vld [vmem:[#allocation2 + $0x10] sm:$0xff] }
 0x525   : > { %v3649_v12 = vld [vmem:[#allocation2 + $0x12] sm:$0xff] }
 0x526   : > { %v3510_v33 = vmul.f32 %v7719_v18, %v3489_v52  ;;  %5730 = vmatmul.msk.bf16.vlgmr.msrb.gmra.mxu0 %vm361_vm0, %v3749_v29  ;;  %v6125_v52 = vld [vmem:[%s8158_s2 + $0x2f8] sm:$0xff] }
 0x527   : > { %4100 = vmatpush.bf16.msra.mxu3 %v6125_v52  ;;  %v6122_v52 = vld [vmem:[%s8158_s2 + $0x2e0] sm:$0xff] }
 0x528   : > { %v3523_v40 = vadd.f32 %v7724_v31, %v3510_v33 }
 0x52a   : > { %v3531_v46 = vmax.f32 %v3523_v40, 0.0 }
 0x52b   : > { %v3461_v38 = vpop.f32.mrf.mxu0  ;;  %v3490_v54 = vpop.f32.mrf.mxu1  ;;  %v3548_v39 = vld [vmem:[#allocation2 + $0x18] sm:$0xff] }
 0x52c   : > { %v3650_v42 = vld [vmem:[#allocation2 + $0x1a] sm:$0xff]  ;;  %3539 = vst.msk [vmem:[#allocation2 + $0x22] sm:$0xff] %vm361_vm0, %v3531_v46  ;;  %v3491_v48 = vadd.f32 %v3490_v54, %v3461_v38  ;;  %v3554_v44 = vpack.c.bf16 %v3548_v39, %v3547_v22 }
 0x52d   : > { %v7742_v14 = vpack.c.bf16 %v3650_v42, %v3649_v12  ;;  %v6124_v12 = vld [vmem:[%s8158_s2 + $0x2f0] sm:$0xff]  ;;  %v6118_v39 = vld [vmem:[%s8158_s2 + $0x2c0] sm:$0xff] }
 0x52e   : > { %v3511_v30 = vmul.f32 %v7719_v18, %v3491_v48  ;;  %5675 = vmatmul.msk.bf16.gmra.mxu2 %vm361_vm0, %v3554_v44  ;;  %5758 = vmatmul.msk.bf16.vlgmr.msra.gmra.mxu1 %vm361_vm0, %v3554_v44  ;;  %v3743_v46 = vld [vmem:[#allocation2 + $0x14] sm:$0xff]  ;;  %v6123_v48 = vld [vmem:[%s8158_s2 + $0x2e8] sm:$0xff] }
 0x52f   : > { %5703 = vmatmul.msk.bf16.gmra.mxu3 %vm361_vm0, %v7742_v14  ;;  %4009 = vmatpush.bf16.msra.mxu2 %v6118_v39  ;;  %v6129_v44 = vld [vmem:[%s8158_s2 + $0x318] sm:$0xff] }
 0x530   : > { %v3524_v29 = vadd.f32 %v7724_v31, %v3511_v30  ;;  %4101 = vmatpush.bf16.msra.mxu3 %v6124_v12  ;;  %4202 = vmatpush.bf16.msra.mxu0 %v6129_v44 }
 0x532   : > { %v3532_v17 = vmax.f32 %v3524_v29, 0.0  ;;  %v6128_v29 = vld [vmem:[%s8158_s2 + $0x310] sm:$0xff] }
 0x533   : > { %v3464_v33 = vpop.f32.mrf.mxu0  ;;  %v3493_v40 = vpop.f32.mrf.mxu1  ;;  %v3744_v22 = vld [vmem:[#allocation2 + $0x1c] sm:$0xff] }
 0x534   : > { %3540 = vst.msk [vmem:[#allocation2 + $0x2a] sm:$0xff] %vm361_vm0, %v3532_v17  ;;  %v3494_v38 = vadd.f32 %v3493_v40, %v3464_v33  ;;  %v7757_v54 = vpack.c.bf16 %v3744_v22, %v3743_v46  ;;  %4102 = vmatpush.bf16.msra.mxu3 %v6123_v48  ;;  %v3549_v12 = vld [vmem:[#allocation2 + $0x20] sm:$0xff]  ;;  %4203 = vmatpush.bf16.msra.mxu0 %v6128_v29 }
 0x535   : > { %v3651_v22 = vld [vmem:[#allocation2 + $0x22] sm:$0xff] }
 0x536   : > { %v3512_v42 = vmul.f32 %v7719_v18, %v3494_v38  ;;  %5731 = vmatmul.msk.bf16.gmra.mxu0 %vm361_vm0, %v7757_v54 }
 0x538   : > { %v3525_v30 = vadd.f32 %v7724_v31, %v3512_v42  ;;  %4103 = vmatpush.bf16.msra.mxu3 %v6122_v52  ;;  %v6137_v52 = vld [vmem:[%s8158_s2 + $0x358] sm:$0xff] }
 0x539   : > { %4398 = vmatpush.bf16.msrb.mxu2 %v6137_v52 }
 0x53a   : > { %v3533_v17 = vmax.f32 %v3525_v30, 0.0  ;;  %v6127_v30 = vld [vmem:[%s8158_s2 + $0x308] sm:$0xff] }
 0x53b   : > { %v3466_v33 = vpop.f32.mrf.mxu0  ;;  %v3495_v40 = vpop.f32.mrf.mxu1  ;;  %v3550_v46 = vld [vmem:[#allocation2 + $0x28] sm:$0xff]  ;;  %4204 = vmatpush.bf16.msra.mxu0 %v6127_v30 }
 0x53c   : > { %v3652_v38 = vld [vmem:[#allocation2 + $0x2a] sm:$0xff]  ;;  %3541 = vst.msk [vmem:[#allocation2 + $0x32] sm:$0xff] %vm361_vm0, %v3533_v17  ;;  %v3496_v39 = vadd.f32 %v3495_v40, %v3466_v33  ;;  %v7779_v42 = vpack.c.bf16 %v3550_v46, %v3549_v12  ;;  %v6133_v17 = vld [vmem:[%s8158_s2 + $0x338] sm:$0xff]  ;;  %v6126_v12 = vld [vmem:[%s8158_s2 + $0x300] sm:$0xff] }
 0x53d   : > { %v7781_v48 = vpack.c.bf16 %v3652_v38, %v3651_v22  ;;  %4304 = vmatpush.bf16.msrb.mxu1 %v6133_v17  ;;  %v6132_v33 = vld [vmem:[%s8158_s2 + $0x330] sm:$0xff]  ;;  %v3745_v38 = vld [vmem:[#allocation2 + $0x24] sm:$0xff] }
 0x53e   : > { %v3513_v44 = vmul.f32 %v7719_v18, %v3496_v39  ;;  %5676 = vmatmul.msk.bf16.gmra.mxu2 %vm361_vm0, %v7779_v42  ;;  %5759 = vmatmul.msk.bf16.gmra.mxu1 %vm361_vm0, %v7779_v42  ;;  %v6131_v17 = vld [vmem:[%s8158_s2 + $0x328] sm:$0xff] }
 0x53f   : > { %5704 = vmatmul.msk.bf16.gmra.mxu3 %vm361_vm0, %v7781_v48  ;;  %4205 = vmatpush.bf16.msra.mxu0 %v6126_v12 }
 0x540   : > { %v3526_v29 = vadd.f32 %v7724_v31, %v3513_v44 }
 0x541   : > { %4305 = vmatpush.bf16.msrb.mxu1 %v6132_v33 }
 0x542   : > { %v3534_v40 = vmax.f32 %v3526_v29, 0.0  ;;  %v6130_v29 = vld [vmem:[%s8158_s2 + $0x320] sm:$0xff] }
 0x543   : > { %v3469_v46 = vpop.f32.mrf.mxu0  ;;  %v3498_v22 = vpop.f32.mrf.mxu1  ;;  %v3746_v39 = vld [vmem:[#allocation2 + $0x2c] sm:$0xff] }
 0x544   : > { %3542 = vst.msk [vmem:[#allocation2 + $0x3a] sm:$0xff] %vm361_vm0, %v3534_v40  ;;  %v3499_v43 = vadd.f32 %v3498_v22, %v3469_v46  ;;  %v7807_v44 = vpack.c.bf16 %v3746_v39, %v3745_v38  ;;  %v3551_v46 = vld [vmem:[#allocation2 + $0x30] sm:$0xff] }
 0x545   : > { %4306 = vmatpush.bf16.msrb.mxu1 %v6131_v17  ;;  %v6136_v17 = vld [vmem:[%s8158_s2 + $0x350] sm:$0xff] }
 0x546   : > { %v3514_v30 = vmul.f32 %v7719_v18, %v3499_v43  ;;  %5732 = vmatmul.msk.bf16.gmra.mxu0 %vm361_vm0, %v7807_v44  ;;  %v3653_v43 = vld [vmem:[#allocation2 + $0x32] sm:$0xff]  ;;  %4399 = vmatpush.bf16.msrb.mxu2 %v6136_v17 }
 0x548   : > { %v3527_v52 = vadd.f32 %v7724_v31, %v3514_v30 }
 0x549   : > { %4307 = vmatpush.bf16.msrb.mxu1 %v6130_v29 }
 0x54a   : > { %v3535_v40 = vmax.f32 %v3527_v52, 0.0 }
 0x54b   : > { %v3471_v12 = vpop.f32.mrf.mxu0  ;;  %v3500_v33 = vpop.f32.mrf.mxu1  ;;  %v3552_v22 = vld [vmem:[#allocation2 + $0x38] sm:$0xff] }
 0x54c   : > { %v3654_v38 = vld [vmem:[#allocation2 + $0x3a] sm:$0xff]  ;;  %3543 = vst.msk [vmem:[#allocation2 + $0x42] sm:$0xff] %vm361_vm0, %v3535_v40  ;;  %v3501_v39 = vadd.f32 %v3500_v33, %v3471_v12  ;;  %v3556_v58 = vpack.c.bf16 %v3552_v22, %v3551_v46 }
 0x54d   : > { %v3658_v15 = vpack.c.bf16 %v3654_v38, %v3653_v43  ;;  %v3747_v12 = vld [vmem:[#allocation2 + $0x34] sm:$0xff] }
 0x54e   : > { %v3515_v30 = vmul.f32 %v7719_v18, %v3501_v39  ;;  %5677 = vmatmul.msk.bf16.gmra.mxu2 %vm361_vm0, %v3556_v58  ;;  %5760 = vmatmul.msk.bf16.gmra.mxu1 %vm361_vm0, %v3556_v58 }
 0x54f   : > { %5705 = vmatmul.msk.bf16.gmra.mxu3 %vm361_vm0, %v3658_v15 }
 0x550   : > { %v3528_v52 = vadd.f32 %v7724_v31, %v3515_v30  ;;  %v6135_v31 = vld [vmem:[%s8158_s2 + $0x348] sm:$0xff] }
 0x551   : > { %4400 = vmatpush.bf16.msrb.mxu2 %v6135_v31 }
 0x552   : > { %v3536_v40 = vmax.f32 %v3528_v52, 0.0 }
 0x553   : > { %v3748_v46 = vld [vmem:[#allocation2 + $0x3c] sm:$0xff] }
 0x554   : > { %3544 = vst.msk [vmem:[#allocation2 + $0x4a] sm:$0xff] %vm361_vm0, %v3536_v40  ;;  %v3752_v29 = vpack.c.bf16 %v3748_v46, %v3747_v12  ;;  %v3849_v18 = vld [vmem:[#allocation2 + $0x40] sm:$0xff]  ;;  %v4148_v12 = vld [vmem:[#allocation2 + $0x58] sm:$0xff] }
 0x555   : > { %v3951_v17 = vld [vmem:[#allocation2 + $0x42] sm:$0xff] }
 0x556   : > { %5733 = vmatmul.msk.bf16.gmra.mxu0 %vm361_vm0, %v3752_v29 }
 0x55b   : > { %v3850_v33 = vld [vmem:[#allocation2 + $0x48] sm:$0xff] }
 0x55c   : > { %v3854_v22 = vpack.c.bf16 %v3850_v33, %v3849_v18  ;;  %v4045_v39 = vld [vmem:[#allocation2 + $0x44] sm:$0xff]  ;;  %v4046_v30 = vld [vmem:[#allocation2 + $0x4c] sm:$0xff]  ;;  %v4250_v18 = vld [vmem:[#allocation2 + $0x5a] sm:$0xff] }
 0x55d   : > { %v4050_v40 = vpack.c.bf16 %v4046_v30, %v4045_v39 }
 0x55e   : > { %5786 = vmatmul.msk.bf16.vlgmr.msra.gmra.mxu2 %vm361_vm0, %v7742_v14  ;;  %5761 = vmatmul.msk.bf16.gmra.mxu1 %vm361_vm0, %v3854_v22  ;;  %v6134_v14 = vld [vmem:[%s8158_s2 + $0x340] sm:$0xff] }
 0x55f   : > { %5814 = vmatmul.msk.bf16.vlgmr.msra.gmra.mxu3 %vm361_vm0, %v7757_v54  ;;  %4401 = vmatpush.bf16.msrb.mxu2 %v6134_v14  ;;  %v3611_v54 = vpop.f32.mrf.mxu2 }
 0x560   : > { %v3631_v43 = vmul.f32 %v6541_v45, %v3611_v54 }
 0x566   : > { %5842 = vmatmul.msk.bf16.vlgmr.msra.gmra.mxu0 %vm361_vm0, %v7779_v42  ;;  %v3713_v42 = vpop.f32.mrf.mxu3 }
 0x567   : > { %v3733_v38 = vadd.f32 %v3713_v42, %v3631_v43  ;;  %v7863_v54 = vpop.f32.mrf.mxu2 }
 0x56e   : > { %5787 = vmatmul.msk.bf16.gmra.mxu2 %vm361_vm0, %v7781_v48  ;;  %5870 = vmatmul.msk.bf16.vlgmr.msrb.gmra.mxu1 %vm361_vm0, %v7781_v48  ;;  %v3952_v48 = vld [vmem:[#allocation2 + $0x4a] sm:$0xff]  ;;  %v7865_v43 = vpop.f32.mrf.mxu3 }
 0x56f   : > { %5815 = vmatmul.msk.bf16.gmra.mxu3 %vm361_vm0, %v7807_v44  ;;  %v3956_v52 = vpack.c.bf16 %v3952_v48, %v3951_v17 }
 0x576   : > { %5843 = vmatmul.msk.bf16.gmra.mxu0 %vm361_vm0, %v3556_v58  ;;  %v4147_v58 = vld [vmem:[#allocation2 + $0x50] sm:$0xff] }
 0x577   : > { %v4152_v46 = vpack.c.bf16 %v4148_v12, %v4147_v58 }
 0x57e   : > { %5788 = vmatmul.msk.bf16.gmra.mxu2 %vm361_vm0, %v3658_v15  ;;  %5871 = vmatmul.msk.bf16.gmra.mxu1 %vm361_vm0, %v3658_v15  ;;  %v4249_v15 = vld [vmem:[#allocation2 + $0x52] sm:$0xff] }
 0x57f   : > { %5816 = vmatmul.msk.bf16.gmra.mxu3 %vm361_vm0, %v3752_v29  ;;  %v4254_v33 = vpack.c.bf16 %v4250_v18, %v4249_v15 }
 0x586   : > { %5844 = vmatmul.msk.bf16.gmra.mxu0 %vm361_vm0, %v3854_v22 }
 0x58e   : > { %5789 = vmatmul.msk.bf16.gmra.mxu2 %vm361_vm0, %v3956_v52  ;;  %5872 = vmatmul.msk.bf16.gmra.mxu1 %vm361_vm0, %v3956_v52 }
 0x58f   : > { %5817 = vmatmul.msk.bf16.gmra.mxu3 %vm361_vm0, %v4050_v40 }
 0x596   : > { %5845 = vmatmul.msk.bf16.gmra.mxu0 %vm361_vm0, %v4152_v46 }
 0x59e   : > { %5898 = vmatmul.msk.bf16.vlgmr.msrb.gmra.mxu2 %vm361_vm0, %v7807_v44  ;;  %5873 = vmatmul.msk.bf16.gmra.mxu1 %vm361_vm0, %v4254_v33 }
 0x5a3   : > { %v3807_v22 = vpop.f32.mrf.mxu0 }
 0x5a4   : > { %v3827_v31 = vmul.f32 %v6631_v35, %v3807_v22 }
 0x5a6   : > { %v3835_v14 = vadd.f32 %v3827_v31, %v3733_v38 }
 0x5ab   : > { %v7867_v42 = vpop.f32.mrf.mxu0  ;;  %v3909_v15 = vpop.f32.mrf.mxu1 }
 0x5ae   : > { %5899 = vmatmul.msk.bf16.gmra.mxu2 %vm361_vm0, %v3752_v29 }
 0x5b1   : > { %v3616_v48 = vpop.f32.mrf.mxu2 }
 0x5b2   : > { %v3718_v39 = vpop.f32.mrf.mxu3  ;;  %v3633_v30 = vmul.f32 %v6573_v56, %v3616_v48 }
 0x5b3   : > { %v3812_v17 = vpop.f32.mrf.mxu0  ;;  %v7885_v20 = vpop.f32.mrf.mxu1 }
 0x5b4   : > { %v3735_v44 = vadd.f32 %v3718_v39, %v3633_v30  ;;  %v3829_v52 = vmul.f32 %v6655_v51, %v3812_v17  ;;  %v4343_v30 = vld [vmem:[#allocation2 + $0x54] sm:$0xff]  ;;  %v4344_v17 = vld [vmem:[#allocation2 + $0x5c] sm:$0xff] }
 0x5b5   : > { %v4348_v23 = vpack.c.bf16 %v4344_v17, %v4343_v30  ;;  %v6145_v30 = vld [vmem:[%s8159_s3 + $0xb4] sm:$0xf0] }
 0x5b6   : > { %v3837_v58 = vadd.f32 %v3829_v52, %v3735_v44  ;;  %v5939_v5 = vor.u32 %v6145_v30, %v5938_v13 }
 0x5b8   : > { %4542 = vmatpush.bf16.msrb.mxu3 %v5939_v5  ;;  %v5930_v5 = vld [vmem:[%s8159_s3 + $0xa0] sm:$0xf] }
 0x5b9   : > { %v7872_v12 = vpop.f32.mrf.mxu2 }
 0x5ba   : > { %v7874_v38 = vpop.f32.mrf.mxu3 }
 0x5bb   : > { %v7876_v46 = vpop.f32.mrf.mxu0 }
 0x5be   : > { %5900 = vmatmul.msk.bf16.gmra.mxu2 %vm361_vm0, %v4050_v40 }
 0x5c1   : > { %v3621_v18 = vpop.f32.mrf.mxu2 }
 0x5c2   : > { %v3723_v29 = vpop.f32.mrf.mxu3  ;;  %v3635_v33 = vmul.f32 %v6593_v8, %v3621_v18 }
 0x5c3   : > { %v3817_v22 = vpop.f32.mrf.mxu0 }
 0x5c4   : > { %v3737_v31 = vadd.f32 %v3723_v29, %v3635_v33  ;;  %v3831_v48 = vmul.f32 %v6682_v19, %v3817_v22 }
 0x5c6   : > { %v3839_v39 = vadd.f32 %v3831_v48, %v3737_v31  ;;  %v3914_v48 = vpop.f32.mrf.mxu1 }
 0x5c9   : > { %v7881_v44 = vpop.f32.mrf.mxu2 }
 0x5ca   : > { %v7883_v52 = vpop.f32.mrf.mxu3 }
 0x5cb   : > { %v7887_v40 = vpop.f32.mrf.mxu0 }
 0x5ce   : > { %5901 = vmatmul.msk.bf16.gmra.mxu2 %vm361_vm0, %v4348_v23  ;;  %v7907_v50 = vpop.f32.mrf.mxu1 }
 0x5d1   : > { %v3626_v34 = vpop.f32.mrf.mxu2 }
 0x5d2   : > { %v3637_v18 = vmul.f32 %v6611_v24, %v3626_v34  ;;  %v3728_v29 = vpop.f32.mrf.mxu3  ;;  %v3929_v34 = vmul.f32 %v6541_v45, %v3909_v15  ;;  %v6143_v15 = vld [vmem:[%s8159_s3 + $0xa4] sm:$0xf0] }
 0x5d3   : > { %v3822_v33 = vpop.f32.mrf.mxu0 }
 0x5d4   : > { %v3739_v22 = vadd.f32 %v3728_v29, %v3637_v18  ;;  %v3833_v31 = vmul.f32 %v6710_v49, %v3822_v33  ;;  %v6144_v18 = vld [vmem:[%s8159_s3 + $0xb4] sm:$0xf]  ;;  %v5940_v29 = vld [vmem:[%s8159_s3 + $0xb8] sm:$0xf0]  ;;  %v3937_v1 = vadd.f32 %v3929_v34, %v3835_v14  ;;  %v6142_v14 = vld [vmem:[%s8159_s3 + $0xa4] sm:$0xf] }
 0x5d5   : > { %v5943_v33 = vor.u32 %v6144_v18, %v5940_v29  ;;  %v3931_v18 = vmul.f32 %v6573_v56, %v3914_v48  ;;  %v5922_v48 = vld [vmem:[%s8159_s3 + $0x90] sm:$0xf] }
 0x5d6   : > { %v3841_v17 = vadd.f32 %v3833_v31, %v3739_v22  ;;  %v5931_v31 = vor.u32 %v6143_v15, %v5930_v5  ;;  %v3919_v30 = vpop.f32.mrf.mxu1  ;;  %v6141_v15 = vld [vmem:[%s8159_s3 + $0x94] sm:$0xf0] }
 0x5d7   : > { %4571 = vmatpush.bf16.msrb.mxu0 %v5943_v33  ;;  %v3939_v29 = vadd.f32 %v3931_v18, %v3837_v58  ;;  %v3933_v58 = vmul.f32 %v6593_v8, %v3919_v30 }
 0x5d8   : > { %4543 = vmatpush.bf16.msrb.mxu3 %v5931_v31  ;;  %v5923_v31 = vor.u32 %v6141_v15, %v5922_v48 }
 0x5d9   : > { %v7898_v23 = vpop.f32.mrf.mxu2 }
 0x5da   : > { %v7935_v18 = vpop.f32.mrf.mxu3 }
 0x5db   : > { %v7943_v48 = vpop.f32.mrf.mxu0 }
 0x5dc   : > { %4544 = vmatpush.bf16.msrb.mxu3 %v5923_v31 }
 0x5de   : > { %v7924_v5 = vpop.f32.mrf.mxu1 }
 0x5e1   : > { %v4011_v22 = vpop.f32.mrf.mxu2 }
 0x5e2   : > { %v4031_v13 = vadd.f32 %v4011_v22, %v3937_v1  ;;  %v5932_v1 = vld [vmem:[%s8159_s3 + $0xa8] sm:$0xf0]  ;;  %v4105_v30 = vpop.f32.mrf.mxu3 }
 0x5e3   : > { %v5935_v34 = vor.u32 %v6142_v14, %v5932_v1  ;;  %v6140_v1 = vld [vmem:[%s8159_s3 + $0x94] sm:$0xf]  ;;  %v4125_v36 = vmul.f32 %v6631_v35, %v4105_v30 }
 0x5e5   : > { %4572 = vmatpush.bf16.msrb.mxu0 %v5935_v34  ;;  %v5924_v34 = vld [vmem:[%s8159_s3 + $0x98] sm:$0xf0] }
 0x5e6   : > { %v3924_v14 = vpop.f32.mrf.mxu1 }
 0x5e9   : > { %v4013_v47 = vpop.f32.mrf.mxu2 }
 0x5ee   : > { %v7947_v37 = vpop.f32.mrf.mxu1 }
 0x5f1   : > { %v4016_v33 = vpop.f32.mrf.mxu2 }
 0x5f2   : > { %v7922_v22 = vadd.f32 %v4016_v33, %v3939_v29  ;;  %v5927_v29 = vor.u32 %v6140_v1, %v5924_v34  ;;  %v3941_v33 = vadd.f32 %v3933_v58, %v3839_v39  ;;  %v6139_v1 = vld [vmem:[%s8159_s3 + $0x84] sm:$0xf0]  ;;  %v4207_v39 = vpop.f32.mrf.mxu0  ;;  %v3935_v34 = vmul.f32 %v6611_v24, %v3924_v14 }
 0x5f3   : > { %v5915_v58 = vor.u32 %v6139_v1, %v5914_v9  ;;  %v3632_v14 = vmul.f32 %v6722_v61, %v7863_v54  ;;  %v4227_v32 = vmul.f32 %v6541_v45, %v4207_v39  ;;  %v7985_v45 = vld [vmem:[%s8162_s6 + $0x2] ss:$0 sm:$0xff] }
 0x5f4   : > { %4573 = vmatpush.bf16.msrb.mxu0 %v5927_v29  ;;  %v4107_v29 = vpop.f32.mrf.mxu3  ;;  %v7997_v39 = vld [vmem:[%s8163_s7 + $0x2] ss:$0 sm:$0xff] }
 0x5f5   : > { %4545 = vmatpush.bf16.msrb.mxu3 %v5915_v58  ;;  %v3734_v58 = vadd.f32 %v7865_v43, %v3632_v14 }
 0x5f8   : > { %4574 = vmatpush.bf16.msrb.mxu0 %v5919_v7  ;;  %v4133_v7 = vadd.f32 %v4125_v36, %v4031_v13 }
 0x5f9   : > { %v7932_v6 = vpop.f32.mrf.mxu2 }
 0x5fa   : > { %v4209_v9 = vpop.f32.mrf.mxu0  ;;  %v4235_v28 = vadd.f32 %v4227_v32, %v4133_v7 }
 0x5fb   : > { %v4228_v30 = vmul.f32 %v6722_v61, %v4209_v9 }
 0x601   : > { %v4021_v15 = vpop.f32.mrf.mxu2 }
 0x602   : > { %v7945_v31 = vadd.f32 %v4021_v15, %v3941_v33  ;;  %v3943_v33 = vadd.f32 %v3935_v34, %v3841_v17  ;;  %v4309_v15 = vpop.f32.mrf.mxu1  ;;  %v3828_v17 = vmul.f32 %v6746_v26, %v7867_v42  ;;  %v3930_v34 = vmul.f32 %v6722_v61, %v7885_v20  ;;  %v4212_v54 = vpop.f32.mrf.mxu0 }
 0x603   : > { %v4126_v42 = vmul.f32 %v6746_v26, %v4107_v29  ;;  %v3634_v20 = vmul.f32 %v6764_v59, %v7872_v12  ;;  %v4329_v27 = vadd.f32 %v4309_v15, %v4235_v28 }
 0x604   : > { %v3836_v55 = vadd.f32 %v3828_v17, %v3734_v58 }
 0x606   : > { %v3938_v3 = vadd.f32 %v3930_v34, %v3836_v55 }
 0x608   : > { %v4032_v16 = vadd.f32 %v4013_v47, %v3938_v3  ;;  %v3736_v47 = vadd.f32 %v7874_v38, %v3634_v20 }
 0x609   : > { %v7949_v57 = vpop.f32.mrf.mxu2 }
 0x60a   : > { %v4134_v14 = vadd.f32 %v4126_v42, %v4032_v16  ;;  %v3932_v16 = vmul.f32 %v6764_v59, %v7907_v50  ;;  %v4214_v3 = vpop.f32.mrf.mxu0  ;;  %v4229_v50 = vmul.f32 %v6573_v56, %v4212_v54  ;;  %v3636_v56 = vmul.f32 %v6806_v4, %v7881_v44 }
 0x60b   : > { %v3934_v44 = vmul.f32 %v6806_v4, %v7924_v5 }
 0x611   : > { %v4026_v53 = vpop.f32.mrf.mxu2 }
 0x612   : > { %v7964_v60 = vadd.f32 %v4026_v53, %v3943_v33  ;;  %v4110_v53 = vpop.f32.mrf.mxu3  ;;  %v4311_v33 = vpop.f32.mrf.mxu1 }
 0x613   : > { %v4127_v28 = vmul.f32 %v6655_v51, %v4110_v53  ;;  %v4217_v54 = vpop.f32.mrf.mxu0 }
 0x615   : > { %v4135_v9 = vadd.f32 %v4127_v28, %v7922_v22 }
 0x617   : > { %v4237_v42 = vadd.f32 %v4229_v50, %v4135_v9 }
 0x619   : > { %v7970_v1 = vpop.f32.mrf.mxu2 }
 0x61a   : > { %v4112_v17 = vpop.f32.mrf.mxu3  ;;  %v4314_v36 = vpop.f32.mrf.mxu1 }
 0x61b   : > { %v4128_v7 = vmul.f32 %v6772_v62, %v4112_v17  ;;  %v3738_v17 = vadd.f32 %v7883_v52, %v3636_v56 }
 0x621   : > { %v4403_v11 = vpop.f32.mrf.mxu2 }
 0x622   : > { %v4423_v43 = vmul.f32 %v6631_v35, %v4403_v11  ;;  %v3830_v35 = vmul.f32 %v6772_v62, %v7876_v46  ;;  %v4236_v11 = vadd.f32 %v4228_v30, %v4134_v14  ;;  %v4115_v58 = vpop.f32.mrf.mxu3  ;;  %v4230_v30 = vmul.f32 %v6764_v59, %v4214_v3 }
 0x623   : > { %v4129_v59 = vmul.f32 %v6682_v19, %v4115_v58 }
 0x624   : > { %v4431_v13 = vadd.f32 %v4423_v43, %v4329_v27  ;;  %v4330_v12 = vadd.f32 %v4311_v33, %v4236_v11  ;;  %v3838_v29 = vadd.f32 %v3830_v35, %v3736_v47  ;;  %v4316_v33 = vpop.f32.mrf.mxu1  ;;  %v3832_v35 = vmul.f32 %v6816_v25, %v7887_v40 }
 0x625   : > { %v4137_v40 = vadd.f32 %v4129_v59, %v7945_v31  ;;  %v3638_v31 = vmul.f32 %v6835_v41, %v7898_v23  ;;  %v3936_v23 = vmul.f32 %v6835_v41, %v7947_v37 }
 0x626   : > { %v4444_v27 = vmul.f32 %v7985_v45, %v4431_v13  ;;  %v3940_v15 = vadd.f32 %v3932_v16, %v3838_v29  ;;  %v4331_v13 = vadd.f32 %v4314_v36, %v4237_v42  ;;  %v4231_v29 = vmul.f32 %v6593_v8, %v4217_v54 }
 0x628   : > { %v4457_v34 = vadd.f32 %v7997_v39, %v4444_v27  ;;  %v4034_v55 = vadd.f32 %v7932_v6, %v3940_v15 }
 0x629   : > { %v4405_v61 = vpop.f32.mrf.mxu2 }
 0x62a   : > { %v4424_v38 = vmul.f32 %v6746_v26, %v4405_v61  ;;  %v4465_v43 = vmax.f32 %v4457_v34, 0.0  ;;  %v4136_v14 = vadd.f32 %v4128_v7, %v4034_v55  ;;  %v4117_v11 = vpop.f32.mrf.mxu3 }
 0x62b   : > { %v4130_v9 = vmul.f32 %v6816_v25, %v4117_v11 }
 0x62c   : > { %v4432_v46 = vadd.f32 %v4424_v38, %v4330_v12  ;;  %v4319_v16 = vpop.f32.mrf.mxu1  ;;  %v3840_v12 = vadd.f32 %v3832_v35, %v3738_v17  ;;  %v4219_v38 = vpop.f32.mrf.mxu0 }
 0x62e   : > { %v4445_v53 = vmul.f32 %v7985_v45, %v4432_v46  ;;  %v3942_v52 = vadd.f32 %v3934_v44, %v3840_v12 }
 0x630   : > { %v4458_v32 = vadd.f32 %v7997_v39, %v4445_v53  ;;  %v4036_v15 = vadd.f32 %v7949_v57, %v3942_v52 }
 0x631   : > { %v4408_v26 = vpop.f32.mrf.mxu2 }
 0x632   : > { %v4466_v20 = vmax.f32 %v4458_v32, 0.0  ;;  %v4425_v22 = vmul.f32 %v6655_v51, %v4408_v26  ;;  %v4238_v51 = vadd.f32 %v4230_v30, %v4136_v14  ;;  %v4120_v8 = vpop.f32.mrf.mxu3  ;;  %v4138_v7 = vadd.f32 %v4130_v9, %v4036_v15 }
 0x633   : > { %v4232_v32 = vmul.f32 %v6806_v4, %v4219_v38  ;;  %v4131_v4 = vmul.f32 %v6710_v49, %v4120_v8 }
 0x634   : > { %v4473_v47 = vpack.c.bf16 %v4466_v20, %v4465_v43  ;;  %v4433_v6 = vadd.f32 %v4425_v22, %v4331_v13  ;;  %v4332_v36 = vadd.f32 %v4316_v33, %v4238_v51  ;;  %v4321_v55 = vpop.f32.mrf.mxu1  ;;  %v3740_v43 = vadd.f32 %v7935_v18, %v3638_v31  ;;  %v4222_v20 = vpop.f32.mrf.mxu0 }
 0x635   : > { %v4240_v22 = vadd.f32 %v4232_v32, %v4138_v7  ;;  %v4233_v35 = vmul.f32 %v6611_v24, %v4222_v20  ;;  %v8279_v20 = vmax.f32 %v7527_v0, 0.0  ;;  %v8280_v0 = vmax.f32 %v7541_v63, 0.0  ;;  %v8282_v63 = vld [vmem:[#allocation4_spill] sm:$0xff] }
 0x636   : > { %5944 = vmatmul.msk.bf16.vlgmr.msrb.gmra.mxu3 %vm361_vm0, %v4473_v47  ;;  %5948 = vmatmul.msk.bf16.vlgmr.msrb.gmra.mxu0 %vm361_vm0, %v4473_v47  ;;  %v4446_v3 = vmul.f32 %v7985_v45, %v4433_v6 }
 0x637   : > { %v4334_v54 = vadd.f32 %v4321_v55, %v4240_v22 }
 0x638   : > { %v4459_v46 = vadd.f32 %v7997_v39, %v4446_v3 }
 0x639   : > { %v4410_v61 = vpop.f32.mrf.mxu2 }
 0x63a   : > { %v4426_v28 = vmul.f32 %v6772_v62, %v4410_v61  ;;  %v4239_v62 = vadd.f32 %v4231_v29, %v4137_v40  ;;  %v4467_v34 = vmax.f32 %v4459_v46, 0.0  ;;  %v4122_v18 = vpop.f32.mrf.mxu3 }
 0x63b   : > { %v4132_v44 = vmul.f32 %v6844_v2, %v4122_v18  ;;  %v8281_v18 = vmax.f32 %v7537_v10, 0.0  ;;  %v8284_v10 = vld [vmem:[#allocation3_spill] sm:$0xff] }
 0x63c   : > { %v4434_v27 = vadd.f32 %v4426_v28, %v4332_v36  ;;  %v4333_v26 = vadd.f32 %v4319_v16, %v4239_v62  ;;  %v4324_v17 = vpop.f32.mrf.mxu1 }
 0x63e   : > { %v4447_v5 = vmul.f32 %v7985_v45, %v4434_v27 }
 0x640   : > { %v4460_v50 = vadd.f32 %v7997_v39, %v4447_v5 }
 0x641   : > { %v4413_v58 = vpop.f32.mrf.mxu2 }
 0x642   : > { %v4468_v53 = vmax.f32 %v4460_v50, 0.0  ;;  %v4427_v33 = vmul.f32 %v6682_v19, %v4413_v58  ;;  %v3834_v19 = vmul.f32 %v6844_v2, %v7943_v48  ;;  %v4139_v48 = vadd.f32 %v4131_v4, %v7964_v60 }
 0x644   : > { %v4474_v57 = vpack.c.bf16 %v4468_v53, %v4467_v34  ;;  %v4435_v42 = vadd.f32 %v4427_v33, %v4333_v26  ;;  %v3842_v13 = vadd.f32 %v3834_v19, %v3740_v43  ;;  %v4241_v59 = vadd.f32 %v4233_v35, %v4139_v48  ;;  %v5952_v34 = vld [vmem:[%s8164_s8 + $0x4] sm:$0x3] }
 0x645   : > { %v8063_v53 = vperm.slane %v5952_v34, 1  ;;  %v8071_v31 = vperm.slane %v5952_v34, 0 }
 0x646   : > { %5945 = vmatmul.msk.bf16.gmra.mxu3 %vm361_vm0, %v4474_v57  ;;  %5949 = vmatmul.msk.bf16.gmra.mxu0 %vm361_vm0, %v4474_v57  ;;  %v4448_v14 = vmul.f32 %v7985_v45, %v4435_v42  ;;  %v3944_v6 = vadd.f32 %v3936_v23, %v3842_v13  ;;  %v4335_v12 = vadd.f32 %v4324_v17, %v4241_v59  ;;  %v8278_v57 = vmax.f32 %v7531_v21, 0.0 }
 0x648   : > { %v4461_v51 = vadd.f32 %v7997_v39, %v4448_v14  ;;  %v4038_v11 = vadd.f32 %v7970_v1, %v3944_v6  ;;  %v4326_v1 = vpop.f32.mrf.mxu1 }
 0x649   : > { %v4415_v56 = vpop.f32.mrf.mxu2 }
 0x64a   : > { %v4428_v30 = vmul.f32 %v6816_v25, %v4415_v56  ;;  %v4224_v25 = vpop.f32.mrf.mxu0  ;;  %v4469_v36 = vmax.f32 %v4461_v51, 0.0  ;;  %v4140_v60 = vadd.f32 %v4132_v44, %v4038_v11 }
 0x64b   : > { %v4234_v24 = vmul.f32 %v6835_v41, %v4224_v25  ;;  %v8283_v25 = vmax.f32 %v8282_v63, 0.0  ;;  %v8298_v63 = vld [vmem:[#allocation12_spill] sm:$0xff] }
 0x64c   : > { %v4436_v47 = vadd.f32 %v4428_v30, %v4334_v54 }
 0x64d   : > { %v4242_v38 = vadd.f32 %v4234_v24, %v4140_v60 }
 0x64e   : > { %v4449_v37 = vmul.f32 %v7985_v45, %v4436_v47 }
 0x64f   : > { %v4336_v29 = vadd.f32 %v4326_v1, %v4242_v38 }
 0x650   : > { %v4462_v16 = vadd.f32 %v7997_v39, %v4449_v37 }
 0x651   : > { %v4418_v61 = vpop.f32.mrf.mxu2 }
 0x652   : > { %v4470_v3 = vmax.f32 %v4462_v16, 0.0  ;;  %v4429_v28 = vmul.f32 %v6710_v49, %v4418_v61 }
 0x654   : > { %v4475_v27 = vpack.c.bf16 %v4470_v3, %v4469_v36  ;;  %v4437_v52 = vadd.f32 %v4429_v28, %v4335_v12  ;;  %v8285_v3 = vmax.f32 %v8284_v10, 0.0  ;;  %v8300_v10 = vld [vmem:[#allocation11_spill] sm:$0xff] }
 0x656   : > { %5946 = vmatmul.msk.bf16.gmra.mxu3 %vm361_vm0, %v4475_v27  ;;  %5950 = vmatmul.msk.bf16.gmra.mxu0 %vm361_vm0, %v4475_v27  ;;  %v4450_v46 = vmul.f32 %v7985_v45, %v4437_v52 }
 0x658   : > { %v4463_v49 = vadd.f32 %v7997_v39, %v4450_v46 }
 0x659   : > { %v4420_v40 = vpop.f32.mrf.mxu2 }
 0x65a   : > { %v4430_v5 = vmul.f32 %v6844_v2, %v4420_v40  ;;  %v4471_v50 = vmax.f32 %v4463_v49, 0.0  ;;  %v5953_v2 = vld [vmem:[%s8165_s9 + $0x4] sm:$0x3]  ;;  %v8286_v40 = vld [vmem:[#allocation5_spill] sm:$0xff] }
 0x65b   : > { %v8069_v33 = vperm.slane %v5953_v2, 1  ;;  %v8074_v55 = vperm.slane %v5953_v2, 0  ;;  %v8288_v49 = vld [vmem:[#allocation6_spill] sm:$0xff] }
 0x65c   : > { %v4438_v15 = vadd.f32 %v4430_v5, %v4336_v29  ;;  %v8287_v29 = vmax.f32 %v8286_v40, 0.0 }
 0x65e   : > { %v4451_v41 = vmul.f32 %v7985_v45, %v4438_v15 }
 0x660   : > { %v4464_v9 = vadd.f32 %v7997_v39, %v4451_v41  ;;  %v8289_v41 = vmax.f32 %v8288_v49, 0.0 }
 0x662   : > { %v4472_v58 = vmax.f32 %v4464_v9, 0.0 }
 0x664   : > { %v4476_v62 = vpack.c.bf16 %v4472_v58, %v4471_v50 }
 0x666   : > { %5947 = vmatmul.msk.bf16.gmra.mxu3 %vm361_vm0, %v4476_v62  ;;  %5951 = vmatmul.msk.bf16.gmra.mxu0 %vm361_vm0, %v4476_v62 }
 0x6b3   : > { %v4576_v45 = vpop.f32.mrf.mxu0 }
 0x6b4   : > { %v4604_v39 = vmul.f32 %v8063_v53, %v4576_v45 }
 0x6b6   : > { %v4627_v8 = vadd.f32 %v8069_v33, %v4604_v39 }
 0x6b8   : > { %v4643_v42 = vadd.f32 %v4627_v8, %v8278_v57  ;;  %v8290_v8 = vld [vmem:[#allocation8_spill] sm:$0xff] }
 0x6b9   : > { %v4547_v7 = vpop.f32.mrf.mxu3 }
 0x6ba   : > { %v4603_v32 = vmul.f32 %v8071_v31, %v4547_v7  ;;  %v4659_v23 = vmax.f32 %v4643_v42, 0.0  ;;  %v8291_v7 = vmax.f32 %v8290_v8, 0.0  ;;  %v8292_v42 = vld [vmem:[#allocation7_spill] sm:$0xff] }
 0x6bb   : > { %v4578_v26 = vpop.f32.mrf.mxu0 }
 0x6bc   : > { %v4626_v43 = vadd.f32 %v8074_v55, %v4603_v32  ;;  %v4606_v19 = vmul.f32 %v8063_v53, %v4578_v26 }
 0x6be   : > { %v4642_v22 = vadd.f32 %v4626_v43, %v8279_v20  ;;  %v4629_v4 = vadd.f32 %v8069_v33, %v4606_v19  ;;  %v8293_v43 = vmax.f32 %v8292_v42, 0.0 }
 0x6c0   : > { %v4658_v56 = vmax.f32 %v4642_v22, 0.0  ;;  %v4645_v13 = vadd.f32 %v4629_v4, %v8280_v0 }
 0x6c1   : > { %v4549_v21 = vpop.f32.mrf.mxu3 }
 0x6c2   : > { %v4674_v54 = vpack.c.bf16 %v4659_v23, %v4658_v56  ;;  %v4605_v14 = vmul.f32 %v8071_v31, %v4549_v21  ;;  %v4661_v48 = vmax.f32 %v4645_v13, 0.0 }
 0x6c3   : > { %v4581_v30 = vpop.f32.mrf.mxu0 }
 0x6c4   : > { %4682 = vst [vmem:[%s8089_s12] sm:$0xff] %v4674_v54  ;;  %v4628_v47 = vadd.f32 %v8074_v55, %v4605_v14  ;;  %v4608_v6 = vmul.f32 %v8063_v53, %v4581_v30  ;;  %v8294_v14 = vld [vmem:[#allocation9_spill] sm:$0xff] }
 0x6c5   : > { %v8295_v30 = vmax.f32 %v8294_v14, 0.0 }
 0x6c6   : > { %v4644_v17 = vadd.f32 %v4628_v47, %v8281_v18  ;;  %v4631_v51 = vadd.f32 %v8069_v33, %v4608_v6  ;;  %v8296_v6 = vld [vmem:[#allocation10_spill] sm:$0xff] }
 0x6c7   : > { %v8297_v18 = vmax.f32 %v8296_v6, 0.0 }
 0x6c8   : > { %v4660_v35 = vmax.f32 %v4644_v17, 0.0  ;;  %v4647_v61 = vadd.f32 %v4631_v51, %v8283_v25  ;;  %v8299_v25 = vmax.f32 %v8298_v63, 0.0 }
 0x6c9   : > { %v4552_v37 = vpop.f32.mrf.mxu3 }
 0x6ca   : > { %v4675_v11 = vpack.c.bf16 %v4661_v48, %v4660_v35  ;;  %v4607_v44 = vmul.f32 %v8071_v31, %v4552_v37  ;;  %v4663_v60 = vmax.f32 %v4647_v61, 0.0 }
 0x6cb   : > { %v4583_v16 = vpop.f32.mrf.mxu0 }
 0x6cc   : > { %4683 = vst [vmem:[%s8089_s12 + $0x8] sm:$0xff] %v4675_v11  ;;  %v4630_v59 = vadd.f32 %v8074_v55, %v4607_v44  ;;  %v4610_v36 = vmul.f32 %v8063_v53, %v4583_v16 }
 0x6ce   : > { %v4646_v28 = vadd.f32 %v4630_v59, %v8285_v3  ;;  %v4633_v12 = vadd.f32 %v8069_v33, %v4610_v36  ;;  %v8301_v3 = vmax.f32 %v8300_v10, 0.0 }
 0x6d0   : > { %v4662_v24 = vmax.f32 %v4646_v28, 0.0  ;;  %v4649_v46 = vadd.f32 %v4633_v12, %v8287_v29 }
 0x6d1   : > { %v4554_v27 = vpop.f32.mrf.mxu3 }
 0x6d2   : > { %v4676_v52 = vpack.c.bf16 %v4663_v60, %v4662_v24  ;;  %v4609_v1 = vmul.f32 %v8071_v31, %v4554_v27  ;;  %v4665_v50 = vmax.f32 %v4649_v46, 0.0 }
 0x6d3   : > { %v4586_v38 = vpop.f32.mrf.mxu0 }
 0x6d4   : > { %4684 = vst [vmem:[%s8089_s12 + $0x10] sm:$0xff] %v4676_v52  ;;  %v4632_v5 = vadd.f32 %v8074_v55, %v4609_v1  ;;  %v4612_v15 = vmul.f32 %v8063_v53, %v4586_v38  ;;  %v8302_v38 = vld [vmem:[#allocation13_spill] sm:$0xff] }
 0x6d5   : > { %v8303_v40 = vmax.f32 %v8302_v38, 0.0 }
 0x6d6   : > { %v4648_v9 = vadd.f32 %v4632_v5, %v8289_v41  ;;  %v4635_v62 = vadd.f32 %v8069_v33, %v4612_v15  ;;  %v8304_v5 = vld [vmem:[#allocation14_spill] sm:$0xff] }
 0x6d7   : > { %v8305_v15 = vmax.f32 %v8304_v5, 0.0 }
 0x6d8   : > { %v4664_v58 = vmax.f32 %v4648_v9, 0.0  ;;  %v4651_v32 = vadd.f32 %v4635_v62, %v8291_v7 }
 0x6d9   : > { %v4557_v34 = vpop.f32.mrf.mxu3 }
 0x6da   : > { %v4677_v2 = vpack.c.bf16 %v4665_v50, %v4664_v58  ;;  %v4611_v45 = vmul.f32 %v8071_v31, %v4557_v34  ;;  %v4667_v20 = vmax.f32 %v4651_v32, 0.0 }
 0x6db   : > { %v4588_v39 = vpop.f32.mrf.mxu0 }
 0x6dc   : > { %4685 = vst [vmem:[%s8089_s12 + $0x18] sm:$0xff] %v4677_v2  ;;  %v4634_v26 = vadd.f32 %v8074_v55, %v4611_v45  ;;  %v4614_v57 = vmul.f32 %v8063_v53, %v4588_v39 }
 0x6de   : > { %v4650_v19 = vadd.f32 %v4634_v26, %v8293_v43  ;;  %v4637_v23 = vadd.f32 %v8069_v33, %v4614_v57 }
 0x6e0   : > { %v4666_v22 = vmax.f32 %v4650_v19, 0.0  ;;  %v4653_v0 = vadd.f32 %v4637_v23, %v8295_v30 }
 0x6e1   : > { %v4559_v56 = vpop.f32.mrf.mxu3 }
 0x6e2   : > { %v4678_v4 = vpack.c.bf16 %v4667_v20, %v4666_v22  ;;  %v4613_v21 = vmul.f32 %v8071_v31, %v4559_v56  ;;  %v4669_v48 = vmax.f32 %v4653_v0, 0.0 }
 0x6e3   : > { %v4591_v54 = vpop.f32.mrf.mxu0 }
 0x6e4   : > { %4686 = vst [vmem:[%s8089_s12 + $0x20] sm:$0xff] %v4678_v4  ;;  %v4636_v13 = vadd.f32 %v8074_v55, %v4613_v21  ;;  %v4616_v47 = vmul.f32 %v8063_v53, %v4591_v54 }
 0x6e6   : > { %v4652_v17 = vadd.f32 %v4636_v13, %v8297_v18  ;;  %v4639_v51 = vadd.f32 %v8069_v33, %v4616_v47 }
 0x6e8   : > { %v4668_v35 = vmax.f32 %v4652_v17, 0.0  ;;  %v4655_v61 = vadd.f32 %v4639_v51, %v8299_v25 }
 0x6e9   : > { %v4562_v37 = vpop.f32.mrf.mxu3 }
 0x6ea   : > { %v4679_v11 = vpack.c.bf16 %v4669_v48, %v4668_v35  ;;  %v4615_v44 = vmul.f32 %v8071_v31, %v4562_v37  ;;  %v4671_v60 = vmax.f32 %v4655_v61, 0.0 }
 0x6eb   : > { %v4593_v16 = vpop.f32.mrf.mxu0 }
 0x6ec   : > { %4687 = vst [vmem:[%s8089_s12 + $0x28] sm:$0xff] %v4679_v11  ;;  %v4638_v59 = vadd.f32 %v8074_v55, %v4615_v44  ;;  %v4618_v36 = vmul.f32 %v8063_v53, %v4593_v16 }
 0x6ee   : > { %v4654_v28 = vadd.f32 %v4638_v59, %v8301_v3  ;;  %v4641_v12 = vadd.f32 %v8069_v33, %v4618_v36 }
 0x6f0   : > { %v4670_v24 = vmax.f32 %v4654_v28, 0.0  ;;  %v4657_v29 = vadd.f32 %v4641_v12, %v8303_v40 }
 0x6f1   : > { %v4564_v27 = vpop.f32.mrf.mxu3 }
 0x6f2   : > { %v4680_v52 = vpack.c.bf16 %v4671_v60, %v4670_v24  ;;  %v4617_v1 = vmul.f32 %v8071_v31, %v4564_v27  ;;  %v4673_v49 = vmax.f32 %v4657_v29, 0.0 }
 0x6f4   : > { %4688 = vst [vmem:[%s8089_s12 + $0x30] sm:$0xff] %v4680_v52  ;;  %v4640_v46 = vadd.f32 %v8074_v55, %v4617_v1 }
 0x6f6   : > { %v4656_v53 = vadd.f32 %v4640_v46, %v8305_v15 }
 0x6f8   : > { %v4672_v41 = vmax.f32 %v4656_v53, 0.0 }
 0x6fa   : > { %v4681_v9 = vpack.c.bf16 %v4673_v49, %v4672_v41 }
 0x6fc   : > { %4689 = vst [vmem:[%s8089_s12 + $0x38] sm:$0xff] %v4681_v9 }
 0x6fd PF: > { %s20_s13 = sadd.s32 1, %s6177_s13  }
 0x6fe   : > { %p17_p4 = scmp.ge.s32.totalorder %s20_s13, 4  }
 0x700   :  { %19 = sbr.rel (!%p17_p4) target bundleno = 1 (0x1), region = 132 }

// kernel: deeplabv3_forward.6
= control target key start
LH: loop header
LB: loop body
LE: loop exit
PB: predicated region body
PF: predicated region fallthrough
CT: control target
= control target key end

     0   :  { %s4763_s29 = smov 0   ;;  %s6219_s0 = inlined_call_operand.vmem [shape: bf16[2,64,256], index: 0, kind: input, shape index: {}]   ;;  %s6220_s1 = inlined_call_operand.vmem [shape: bf16[2,64,48], index: 1, kind: input, shape index: {}]   ;;  %s6221_s2 = inlined_call_operand.vmem [shape: bf16[256,64], index: 2, kind: input, shape index: {}]   ;;  %s6222_s3 = inlined_call_operand.vmem [shape: f32[1,64], index: 3, kind: input, shape index: {}]   ;;  %s6223_s4 = inlined_call_operand.vmem [shape: f32[1,64], index: 4, kind: input, shape index: {}]   ;;  %s6224_s5 = inlined_call_operand.vmem [shape: bf16[9,48,64], index: 5, kind: input, shape index: {}]   ;;  %s6225_s6 = inlined_call_operand.vmem [shape: bf16[9,64,64], index: 6, kind: input, shape index: {}]   ;;  %s6226_s7 = inlined_call_operand.vmem [shape: f32[1,64], index: 7, kind: input, shape index: {}]   ;;  %s6227_s8 = inlined_call_operand.vmem [shape: f32[1,64], index: 8, kind: input, shape index: {}]   ;;  %s6228_s9 = inlined_call_operand.vmem [shape: bf16[9,64,64], index: 9, kind: input, shape index: {}]   ;;  %s6229_s10 = inlined_call_operand.vmem [shape: f32[1,64], index: 10, kind: input, shape index: {}]   ;;  %s6230_s11 = inlined_call_operand.vmem [shape: f32[1,64], index: 11, kind: input, shape index: {}]   ;;  %s6231_s12 = inlined_call_operand.vmem [shape: bf16[64,5], index: 12, kind: input, shape index: {}]   ;;  %s6232_s13 = inlined_call_operand.vmem [shape: f32[1,5], index: 13, kind: input, shape index: {}]   ;;  %s6233_s14 = inlined_call_operand.vmem [shape: f32[2,64,5], index: 14, kind: output, shape index: {}]  }
   0x1 LB: > { %s3682_s30 = sadd.s32 4294967295, %s4685_s29   ;;  %p3686_p0 = scmp.ge.s32.totalorder %s4685_s29, 1  ;;  %s4685_s29 = sphi %s4763_s29, %s24_s29  }
   0x2   : > { %p422_p1 = scmp.lt.s32.totalorder %s4685_s29, 3 }
   0x4   : > { %p423_p2 = pnand %p3686_p0, %p422_p1 }
   0x6   : > { %426 = sbr.rel (%p423_p2) target bundleno = 1069 (0x42d), region = 76 }
   0xb   : > { %v4525_v0 = vld [vmem:[%s6221_s2 + $0x38] sm:$0xff]  ;;  %v4524_v2 = vld [vmem:[%s6221_s2 + $0x30] sm:$0xff]  ;;  %v4523_v4 = vld [vmem:[%s6221_s2 + $0x28] sm:$0xff]  ;;  %p473_p3 = scmp.lt.s32.totalorder %s3682_s30, 1  ;;  %vm489_vm0 = vcmask 392192   ;;  %v4687_v29 = vmov 0.0  }
   0xc   : > { %v4533_v1 = vld [vmem:[%s6221_s2 + $0x78] sm:$0xff]  ;;  %844 = vmatpush.bf16.msra.mxu0 %v4525_v0  ;;  %v4532_v3 = vld [vmem:[%s6221_s2 + $0x70] sm:$0xff]  ;;  %v4531_v5 = vld [vmem:[%s6221_s2 + $0x68] sm:$0xff]  ;;  %491 = vst.msk [vmem:[#allocation2 + $0x8] sm:$0xff] %vm489_vm0, %v4687_v29  ;;  %vm502_vm1 = vcmask 523264   ;;  %vm513_vm2 = vcmask 517120  }
   0xd   : > { %873 = vmatpush.bf16.msra.mxu1 %v4533_v1  ;;  %v4522_v6 = vld [vmem:[%s6221_s2 + $0x20] sm:$0xff]  ;;  %v4521_v8 = vld [vmem:[%s6221_s2 + $0x18] sm:$0xff]  ;;  %s6291_s30 = smov (!%p473_p3, %s3682_s30), 1  ;;  %v4520_v10 = vld [vmem:[%s6221_s2 + $0x10] sm:$0xff]  ;;  %492 = vst.msk [vmem:[#allocation2 + $0x10] sm:$0xff] %vm489_vm0, %v4687_v29  ;;  %vm500_vm10 = vcmask 386048  }
   0xe   : > { %v4530_v7 = vld [vmem:[%s6221_s2 + $0x60] sm:$0xff]  ;;  %v4529_v9 = vld [vmem:[%s6221_s2 + $0x58] sm:$0xff]  ;;  %v4528_v11 = vld [vmem:[%s6221_s2 + $0x50] sm:$0xff]  ;;  %s4507_s25 = sshll.u32 %s6291_s30, 6  ;;  %s4508_s23 = sshll.u32 %s6291_s30, 5  ;;  %493 = vst.msk [vmem:[#allocation2 + $0x18] sm:$0xff] %vm489_vm0, %v4687_v29 }
   0xf   : > { %v4519_v12 = vld [vmem:[%s6221_s2 + $0x8] sm:$0xff]  ;;  %s4821_s18 = scalar_lea.vmem %s6219_s0, %s4507_s25  ;;  %v4518_v14 = vld [vmem:[%s6221_s2] sm:$0xff]  ;;  %s4841_s27 = scalar_lea.vmem %s6220_s1, %s4508_s23  ;;  %v4536_v28 = vld [vmem:[%s6224_s5 + $0x10] sm:$0xff]  ;;  %494 = vst.msk [vmem:[#allocation2 + $0x20] sm:$0xff] %vm489_vm0, %v4687_v29 }
  0x10   : > { %845 = vmatpush.bf16.msra.mxu0 %v4524_v2  ;;  %v4527_v13 = vld [vmem:[%s6221_s2 + $0x48] sm:$0xff]  ;;  %v4526_v15 = vld [vmem:[%s6221_s2 + $0x40] sm:$0xff]  ;;  %v3719_v22 = vld [vmem:[%s4821_s18 + $0x10] sm:$0xf]  ;;  %4660 = vmatpush.bf16.msra.mxu3 %v4536_v28  ;;  %490 = vst.msk [vmem:[#allocation2] sm:$0xff] %vm489_vm0, %v4687_v29  ;;  %s487_s15 = scalar_lea.vmem %s6233_s14, %s4507_s25 }
  0x11   : > { %874 = vmatpush.bf16.msra.mxu1 %v4532_v3  ;;  %v3711_v16 = vld [vmem:[%s4821_s18] sm:$0xf]  ;;  %v4511_v17 = vld [vmem:[%s4821_s18 + $0x4] sm:$0xf0]  ;;  %v4510_v18 = vld [vmem:[%s4821_s18 + $0x4] sm:$0xf] }
  0x12   : > { %v3713_v19 = vld [vmem:[%s4821_s18 + $0x8] sm:$0xf0]  ;;  %v3712_v20 = vor.u32 %v4511_v17, %v3711_v16  ;;  %v4513_v23 = vld [vmem:[%s4821_s18 + $0x14] sm:$0xf0]  ;;  %v4512_v24 = vld [vmem:[%s4821_s18 + $0x14] sm:$0xf] }
  0x13   : > { %v3716_v21 = vor.u32 %v4510_v18, %v3713_v19  ;;  %v3721_v25 = vld [vmem:[%s4821_s18 + $0x18] sm:$0xf0]  ;;  %v3720_v26 = vor.u32 %v4513_v23, %v3719_v22  ;;  %v4638_v30 = vld [vmem:[%s4841_s27] sm:$0xff]   ;;  %v4653_v31 = vld [vmem:[%s4841_s27 + $0x8] sm:$0xff]   ;;  %495 = vst.msk [vmem:[#allocation2 + $0x28] sm:$0xff] %vm489_vm0, %v4687_v29 }
  0x14   : > { %846 = vmatpush.bf16.msra.mxu0 %v4523_v4  ;;  %v3724_v27 = vor.u32 %v4512_v24, %v3721_v25  ;;  %v4535_v32 = vld [vmem:[%s6224_s5 + $0x8] sm:$0xff]  ;;  %v4639_v33 = vunpack.c.l.bf16 %v4638_v30  ;;  %v4640_v34 = vunpack.c.h.bf16 %v4638_v30  ;;  %v4643_v35 = vunpack.c.l.bf16 %v4653_v31  ;;  %v4534_v36 = vld [vmem:[%s6224_s5] sm:$0xff]  ;;  %v4654_v39 = vld [vmem:[%s4841_s27 + $0x10] sm:$0xff]   ;;  %496 = vst.msk [vmem:[#allocation2 + $0x30] sm:$0xff] %vm489_vm0, %v4687_v29 }
  0x15   : > { %875 = vmatpush.bf16.msra.mxu1 %v4531_v5  ;;  %4661 = vmatpush.bf16.msra.mxu3 %v4535_v32  ;;  %v3727_v37 = vld [vmem:[%s4821_s18 + $0x20] sm:$0xf]  ;;  %v4515_v38 = vld [vmem:[%s4821_s18 + $0x24] sm:$0xf0]  ;;  %v4514_v40 = vld [vmem:[%s4821_s18 + $0x24] sm:$0xf]  ;;  %v4644_v42 = vunpack.c.h.bf16 %v4653_v31  ;;  %v4647_v43 = vunpack.c.l.bf16 %v4654_v39  ;;  %v4648_v59 = vunpack.c.h.bf16 %v4654_v39 }
  0x16   : > { %950 = vst.msk [vmem:[#allocation2 + $0x9] sm:$0xff] %vm489_vm0, %v4639_v33  ;;  %v3729_v41 = vld [vmem:[%s4821_s18 + $0x28] sm:$0xf0]  ;;  %v3728_v44 = vor.u32 %v4515_v38, %v3727_v37  ;;  %v3735_v49 = vld [vmem:[%s4821_s18 + $0x30] sm:$0xf]  ;;  %v4909_v58 = vld [vmem:[%s4841_s27 + $0x18] sm:$0xff]  }
  0x17   : > { %951 = vst.msk [vmem:[#allocation2 + $0x11] sm:$0xff] %vm489_vm0, %v4640_v34  ;;  %v3732_v45 = vor.u32 %v4514_v40, %v3729_v41  ;;  %v4517_v50 = vld [vmem:[%s4821_s18 + $0x34] sm:$0xf0]  ;;  %v4516_v51 = vld [vmem:[%s4821_s18 + $0x34] sm:$0xf]  ;;  %v4651_v60 = vunpack.c.l.bf16 %v4909_v58  ;;  %v4538_v4 = vld [vmem:[%s6225_s6 + $0x8] sm:$0xff] }
  0x18   : > { %847 = vmatpush.bf16.msra.mxu0 %v4522_v6  ;;  %952 = vst.msk [vmem:[#allocation2 + $0x19] sm:$0xff] %vm489_vm0, %v4643_v35  ;;  %v3737_v52 = vld [vmem:[%s4821_s18 + $0x38] sm:$0xf0]  ;;  %v3736_v55 = vor.u32 %v4517_v50, %v3735_v49  ;;  %v4539_v2 = vld [vmem:[%s6225_s6 + $0x10] sm:$0xff]  ;;  %v4545_v5 = vld [vmem:[%s6225_s6 + $0x28] sm:$0xff] }
  0x19   : > { %876 = vmatpush.bf16.msra.mxu1 %v4530_v7  ;;  %4662 = vmatpush.bf16.msra.mxu3 %v4534_v36  ;;  %497 = vst.msk [vmem:[#allocation2 + $0x38] sm:$0xff] %vm489_vm0, %v4687_v29  ;;  %v3740_v56 = vor.u32 %v4516_v51, %v3737_v52  ;;  %v4540_v0 = vld [vmem:[%s6225_s6 + $0x18] sm:$0xff]  ;;  %v4546_v3 = vld [vmem:[%s6225_s6 + $0x30] sm:$0xff]  ;;  %v4537_v6 = vld [vmem:[%s6225_s6] sm:$0xff] }
  0x1a   : > { %498 = vst.msk [vmem:[#allocation2 + $0x40] sm:$0xff] %vm489_vm0, %v4687_v29  ;;  %v4547_v1 = vld [vmem:[%s6225_s6 + $0x38] sm:$0xff]  ;;  %4656 = vmatpush.bf16.msra.mxu2 %v4540_v0  ;;  %v4544_v7 = vld [vmem:[%s6225_s6 + $0x20] sm:$0xff]  ;;  %v4548_v17 = vld [vmem:[%s6224_s5 + $0x30] sm:$0xff] }
  0x1b   : > { %499 = vst.msk [vmem:[#allocation2 + $0x48] sm:$0xff] %vm489_vm0, %v4687_v29  ;;  %v4551_v16 = vld [vmem:[%s6225_s6 + $0x40] sm:$0xff]  ;;  %v4543_v33 = vld [vmem:[%s6224_s5 + $0x28] sm:$0xff] }
  0x1c   : > { %848 = vmatpush.bf16.msra.mxu0 %v4521_v8  ;;  %953 = vst.msk [vmem:[#allocation2 + $0x21] sm:$0xff] %vm489_vm0, %v4644_v42  ;;  %v966_v8 = vld [vmem:[#allocation2] sm:$0xff] }
  0x1d   : > { %877 = vmatpush.bf16.msra.mxu1 %v4529_v9  ;;  %954 = vst.msk [vmem:[#allocation2 + $0x29] sm:$0xff] %vm489_vm0, %v4647_v43  ;;  %1224 = vmatpush.bf16.msrb.mxu3 %v4547_v1  ;;  %v4965_v9 = vld [vmem:[#allocation2 + $0x8] sm:$0xff]  ;;  %v4993_v18 = vld [vmem:[%s6222_s3] ss:$0 sm:$0xff] }
  0x1e   : > { %v4880_v46 = vld [vmem:[#allocation2 + $0x10] sm:$0xff]  ;;  %955 = vst.msk [vmem:[#allocation2 + $0x31] sm:$0xff] %vm489_vm0, %v4648_v59  ;;  %4657 = vmatpush.bf16.msra.mxu2 %v4539_v2  ;;  %v4998_v22 = vld [vmem:[%s6223_s4] ss:$0 sm:$0xff]  ;;  %v1316_v23 = vld [vmem:[#allocation2 + $0x2] sm:$0xff] }
  0x1f   : > { %v4884_v47 = vld [vmem:[#allocation2 + $0x18] sm:$0xff]  ;;  %956 = vst.msk [vmem:[#allocation2 + $0x39] sm:$0xff] %vm489_vm0, %v4651_v60  ;;  %v5000_v24 = vld [vmem:[#allocation2 + $0xa] sm:$0xff] }
  0x20   : > { %849 = vmatpush.bf16.msra.mxu0 %v4520_v10  ;;  %v4889_v48 = vpack.c.bf16 %v4884_v47, %v4880_v46  ;;  %504 = vst.msk [vmem:[#allocation3 + $0x8] sm:$0xff] %vm502_vm1, %v4687_v29  ;;  %v974_v10 = vpack.c.bf16 %v4965_v9, %v966_v8  ;;  %v1324_v25 = vpack.c.bf16 %v5000_v24, %v1316_v23  ;;  %v5019_v49 = vld [vmem:[#allocation2 + $0x12] sm:$0xff] }
  0x21   : > { %878 = vmatpush.bf16.msra.mxu1 %v4528_v11  ;;  %505 = vst.msk [vmem:[#allocation3 + $0x10] sm:$0xff] %vm502_vm1, %v4687_v29  ;;  %1225 = vmatpush.bf16.msrb.mxu3 %v4546_v3  ;;  %v4554_v11 = vld [vmem:[%s6225_s6 + $0x58] sm:$0xff] }
  0x22   : > { %3838 = vmatmul.msk.bf16.vlgmr.msra.gmra.mxu3 %vm489_vm0, %v4889_v48  ;;  %503 = vst.msk [vmem:[#allocation3] sm:$0xff] %vm502_vm1, %v4687_v29  ;;  %4658 = vmatpush.bf16.msra.mxu2 %v4538_v4  ;;  %v4541_v23 = vld [vmem:[%s6224_s5 + $0x18] sm:$0xff] }
  0x23   : > { %v4898_v53 = vld [vmem:[#allocation2 + $0x20] sm:$0xff]  ;;  %506 = vst.msk [vmem:[#allocation3 + $0x18] sm:$0xff] %vm502_vm1, %v4687_v29 }
  0x24   : > { %850 = vmatpush.bf16.msra.mxu0 %v4519_v12  ;;  %v4900_v54 = vld [vmem:[#allocation2 + $0x28] sm:$0xff]  ;;  %507 = vst.msk [vmem:[#allocation3 + $0x20] sm:$0xff] %vm502_vm1, %v4687_v29  ;;  %v4553_v12 = vld [vmem:[%s6225_s6 + $0x50] sm:$0xff]  ;;  %v5021_v50 = vld [vmem:[#allocation2 + $0x1a] sm:$0xff] }
  0x25   : > { %879 = vmatpush.bf16.msra.mxu1 %v4527_v13  ;;  %v4904_v57 = vpack.c.bf16 %v4900_v54, %v4898_v53  ;;  %v4914_v61 = vld [vmem:[#allocation2 + $0x30] sm:$0xff]  ;;  %508 = vst.msk [vmem:[#allocation3 + $0x28] sm:$0xff] %vm502_vm1, %v4687_v29  ;;  %1226 = vmatpush.bf16.msrb.mxu3 %v4545_v5  ;;  %v4550_v13 = vld [vmem:[%s6224_s5 + $0x40] sm:$0xff]  ;;  %v5025_v51 = vpack.c.bf16 %v5021_v50, %v5019_v49 }
  0x26   : > { %v4918_v62 = vld [vmem:[#allocation2 + $0x38] sm:$0xff]  ;;  %509 = vst.msk [vmem:[#allocation3 + $0x30] sm:$0xff] %vm502_vm1, %v4687_v29  ;;  %4659 = vmatpush.bf16.msra.mxu2 %v4537_v6 }
  0x27   : > { %v977_v63 = vpack.c.bf16 %v4918_v62, %v4914_v61  ;;  %510 = vst.msk [vmem:[#allocation3 + $0x38] sm:$0xff] %vm502_vm1, %v4687_v29 }
  0x28   : > { %851 = vmatpush.bf16.msra.mxu0 %v4518_v14  ;;  %511 = vst.msk [vmem:[#allocation3 + $0x40] sm:$0xff] %vm502_vm1, %v4687_v29  ;;  %v4552_v14 = vld [vmem:[%s6225_s6 + $0x48] sm:$0xff] }
  0x29   : > { %880 = vmatpush.bf16.msra.mxu1 %v4526_v15  ;;  %512 = vst.msk [vmem:[#allocation3 + $0x48] sm:$0xff] %vm502_vm1, %v4687_v29  ;;  %1227 = vmatpush.bf16.msrb.mxu3 %v4544_v7  ;;  %v4549_v15 = vld [vmem:[%s6224_s5 + $0x38] sm:$0xff] }
  0x2a   : > { %1284 = vmatpush.bf16.msrb.mxu2 %v4543_v33  ;;  %v1163_v37 = vld [vmem:[#allocation3 + $0x1] sm:$0xff]  ;;  %514 = vst.msk [vmem:[#allocation3 + $0x50] sm:$0x3] %vm513_vm2, %v4687_v29 }
  0x2b   : > { %852 = vmatmul.bf16.vlgmr.msra.gmra.mxu0 %v3712_v20  ;;  %501 = vst.msk [vmem:[#allocation2 + $0x50] sm:$0x3] %vm500_vm10, %v4687_v29 }
  0x2c   : > { %881 = vmatmul.bf16.vlgmr.msra.gmra.mxu1 %v3716_v21  ;;  %1044 = vmatpush.bf16.msrb.mxu0 %v4540_v0  ;;  %v4542_v0 = vld [vmem:[%s6224_s5 + $0x20] sm:$0xff] }
  0x2d   : > { %1104 = vmatpush.bf16.msrb.mxu1 %v4536_v28 }
  0x2e   : > { %1285 = vmatpush.bf16.msrb.mxu2 %v4542_v0 }
  0x30   : > { %1045 = vmatpush.bf16.msrb.mxu0 %v4539_v2 }
  0x31   : > { %1105 = vmatpush.bf16.msrb.mxu1 %v4535_v32 }
  0x32   : > { %3839 = vmatmul.msk.bf16.gmra.mxu3 %vm489_vm0, %v4904_v57  ;;  %1286 = vmatpush.bf16.msrb.mxu2 %v4541_v23 }
  0x34   : > { %1046 = vmatpush.bf16.msrb.mxu0 %v4538_v4 }
  0x35   : > { %1106 = vmatpush.bf16.msrb.mxu1 %v4534_v36  ;;  %v984_v36 = vld [vmem:[#allocation3] sm:$0xff] }
  0x38   : > { %1047 = vmatpush.bf16.msrb.mxu0 %v4537_v6 }
  0x39   : > { %1456 = vmatpush.bf16.msra.mxu1 %v4550_v13 }
  0x3b   : > { %857 = vmatmul.bf16.gmra.mxu0 %v3720_v26 }
  0x3c   : > { %886 = vmatmul.bf16.gmra.mxu1 %v3724_v27  ;;  %1396 = vmatpush.bf16.msra.mxu0 %v4554_v11 }
  0x3d   : > { %1457 = vmatpush.bf16.msra.mxu1 %v4549_v15 }
  0x40   : > { %1397 = vmatpush.bf16.msra.mxu0 %v4553_v12 }
  0x41   : > { %1458 = vmatpush.bf16.msra.mxu1 %v4548_v17  ;;  %v5060_v17 = vld [vmem:[#allocation2 + $0x2a] sm:$0xff] }
  0x42   : > { %3840 = vmatmul.msk.bf16.gmra.mxu3 %vm489_vm0, %v977_v63 }
  0x44   : > { %1398 = vmatpush.bf16.msra.mxu0 %v4552_v14 }
  0x48   : > { %1399 = vmatpush.bf16.msra.mxu0 %v4551_v16  ;;  %v5058_v16 = vld [vmem:[#allocation2 + $0x22] sm:$0xff] }
  0x4b   : > { %862 = vmatmul.bf16.gmra.mxu0 %v3728_v44 }
  0x4c   : > { %891 = vmatmul.bf16.gmra.mxu1 %v3732_v45 }
  0x5b   : > { %867 = vmatmul.bf16.gmra.mxu0 %v3736_v55 }
  0x5c   : > { %896 = vmatmul.bf16.gmra.mxu1 %v3740_v56 }
  0x6c   : > { %3837 = vmatmul.msk.bf16.vlgmr.msrb.gmra.mxu1 %vm489_vm0, %v974_v10 }
  0x7c   : > { %3937 = vmatmul.msk.bf16.vlgmr.msra.gmra.mxu1 %vm489_vm0, %v1324_v25  ;;  %v4561_v25 = vld [vmem:[%s6225_s6 + $0x78] sm:$0xff] }
  0x7d   : > { %1576 = vmatpush.bf16.msra.mxu3 %v4561_v25 }
  0x8c   : > { %3938 = vmatmul.msk.bf16.gmra.mxu1 %vm489_vm0, %v5025_v51 }
  0xa8   : > { %v853_v19 = vpop.f32.mrf.mxu0 }
  0xa9   : > { %v882_v20 = vpop.f32.mrf.mxu1 }
  0xaa   : > { %v883_v21 = vadd.f32 %v882_v20, %v853_v19  ;;  %v5065_v20 = vpack.c.bf16 %v5060_v17, %v5058_v16 }
  0xac   : > { %v906_v26 = vmul.f32 %v4993_v18, %v883_v21  ;;  %3939 = vmatmul.msk.bf16.gmra.mxu1 %vm489_vm0, %v5065_v20 }
  0xae   : > { %v918_v27 = vadd.f32 %v4998_v22, %v906_v26 }
  0xb0   : > { %v926_v28 = vmax.f32 %v918_v27, 0.0  ;;  %v855_v30 = vpop.f32.mrf.mxu0  ;;  %v4560_v27 = vld [vmem:[%s6225_s6 + $0x70] sm:$0xff] }
  0xb1   : > { %v884_v31 = vpop.f32.mrf.mxu1  ;;  %1577 = vmatpush.bf16.msra.mxu3 %v4560_v27 }
  0xb2   : > { %958 = vst.msk [vmem:[#allocation3 + $0x9] sm:$0xff] %vm502_vm1, %v926_v28  ;;  %v885_v32 = vadd.f32 %v884_v31, %v855_v30 }
  0xb4   : > { %v907_v34 = vmul.f32 %v4993_v18, %v885_v32  ;;  %v4652_v32 = vunpack.c.h.bf16 %v4909_v58 }
  0xb6   : > { %v919_v35 = vadd.f32 %v4998_v22, %v907_v34  ;;  %v4559_v34 = vld [vmem:[%s6225_s6 + $0x68] sm:$0xff]  ;;  %957 = vst.msk [vmem:[#allocation2 + $0x41] sm:$0xff] %vm489_vm0, %v4652_v32 }
  0xb7   : > { %1578 = vmatpush.bf16.msra.mxu3 %v4559_v34 }
  0xb8   : > { %v927_v38 = vmax.f32 %v919_v35, 0.0  ;;  %v858_v39 = vpop.f32.mrf.mxu0 }
  0xb9   : > { %v887_v40 = vpop.f32.mrf.mxu1  ;;  %v5012_v41 = vld [vmem:[#allocation3 + $0x8] sm:$0xff] }
  0xba   : > { %v5014_v42 = vld [vmem:[#allocation3 + $0x9] sm:$0xff]  ;;  %959 = vst.msk [vmem:[#allocation3 + $0x11] sm:$0xff] %vm502_vm1, %v927_v38  ;;  %v888_v43 = vadd.f32 %v887_v40, %v858_v39  ;;  %v992_v44 = vpack.c.bf16 %v5012_v41, %v984_v36 }
  0xbb   : > { %v1171_v45 = vpack.c.bf16 %v5014_v42, %v1163_v37  ;;  %v1335_v15 = vld [vmem:[#allocation3 + $0x2] sm:$0xff] }
  0xbc   : > { %v908_v52 = vmul.f32 %v4993_v18, %v888_v43  ;;  %3821 = vmatmul.msk.bf16.vlgmr.msrb.gmra.mxu0 %vm502_vm1, %v992_v44  ;;  %v4558_v37 = vld [vmem:[%s6225_s6 + $0x60] sm:$0xff] }
  0xbd   : > { %3871 = vmatmul.msk.bf16.vlgmr.msrb.gmra.mxu3 %vm502_vm1, %v1171_v45  ;;  %v5120_v0 = vld [vmem:[#allocation2 + $0x3a] sm:$0xff] }
  0xbe   : > { %v920_v55 = vadd.f32 %v4998_v22, %v908_v52  ;;  %1579 = vmatpush.bf16.msra.mxu3 %v4558_v37  ;;  %v1146_v37 = vld [vmem:[#allocation2 + $0x11] sm:$0xff] }
  0xc0   : > { %v928_v56 = vmax.f32 %v920_v55, 0.0  ;;  %v860_v59 = vpop.f32.mrf.mxu0 }
  0xc1   : > { %v889_v60 = vpop.f32.mrf.mxu1  ;;  %v5039_v4 = vld [vmem:[#allocation3 + $0x10] sm:$0xff] }
  0xc2   : > { %960 = vst.msk [vmem:[#allocation3 + $0x19] sm:$0xff] %vm502_vm1, %v928_v56  ;;  %v890_v63 = vadd.f32 %v889_v60, %v860_v59  ;;  %v5041_v5 = vld [vmem:[#allocation3 + $0xa] sm:$0xff] }
  0xc3   : > { %v5045_v10 = vld [vmem:[#allocation3 + $0x11] sm:$0xff]  ;;  %v1343_v19 = vpack.c.bf16 %v5041_v5, %v1335_v15 }
  0xc4   : > { %v909_v1 = vmul.f32 %v4993_v18, %v890_v63  ;;  %v5118_v63 = vld [vmem:[#allocation2 + $0x32] sm:$0xff] }
  0xc6   : > { %v921_v2 = vadd.f32 %v4998_v22, %v909_v1 }
  0xc8   : > { %v929_v3 = vmax.f32 %v921_v2, 0.0  ;;  %v863_v6 = vpop.f32.mrf.mxu0  ;;  %v5128_v2 = vpack.c.bf16 %v5120_v0, %v5118_v63 }
  0xc9   : > { %v892_v7 = vpop.f32.mrf.mxu1  ;;  %v5043_v8 = vld [vmem:[#allocation3 + $0x18] sm:$0xff] }
  0xca   : > { %v5047_v11 = vld [vmem:[#allocation3 + $0x19] sm:$0xff]  ;;  %961 = vst.msk [vmem:[#allocation3 + $0x21] sm:$0xff] %vm502_vm1, %v929_v3  ;;  %v893_v12 = vadd.f32 %v892_v7, %v863_v6  ;;  %v5052_v13 = vpack.c.bf16 %v5043_v8, %v5039_v4  ;;  %3940 = vmatmul.msk.bf16.gmra.mxu1 %vm489_vm0, %v5128_v2 }
  0xcb   : > { %v5056_v14 = vpack.c.bf16 %v5047_v11, %v5045_v10  ;;  %v5116_v60 = vld [vmem:[#allocation3 + $0x12] sm:$0xff]  ;;  %v4568_v6 = vld [vmem:[%s6225_s6 + $0x98] sm:$0xff] }
  0xcc   : > { %v910_v21 = vmul.f32 %v4993_v18, %v893_v12  ;;  %3822 = vmatmul.msk.bf16.vlgmr.msra.gmra.mxu2 %vm502_vm1, %v5052_v13  ;;  %3921 = vmatmul.msk.bf16.vlgmr.msra.gmra.mxu0 %vm502_vm1, %v1343_v19  ;;  %v4557_v7 = vld [vmem:[%s6224_s5 + $0x58] sm:$0xff]  ;;  %v4564_v12 = vld [vmem:[%s6224_s5 + $0x70] sm:$0xff] }
  0xcd   : > { %3872 = vmatmul.msk.bf16.gmra.mxu3 %vm502_vm1, %v5056_v14  ;;  %1756 = vmatpush.bf16.msrb.mxu0 %v4568_v6  ;;  %v4567_v19 = vld [vmem:[%s6225_s6 + $0x90] sm:$0xff] }
  0xce   : > { %v922_v26 = vadd.f32 %v4998_v22, %v910_v21  ;;  %1636 = vmatpush.bf16.msra.mxu2 %v4557_v7  ;;  %1816 = vmatpush.bf16.msrb.mxu1 %v4564_v12  ;;  %v4563_v21 = vld [vmem:[%s6224_s5 + $0x68] sm:$0xff]  ;;  %v4556_v12 = vld [vmem:[%s6224_s5 + $0x50] sm:$0xff] }
  0xd0   : > { %v930_v28 = vmax.f32 %v922_v26, 0.0  ;;  %v865_v30 = vpop.f32.mrf.mxu0 }
  0xd1   : > { %v894_v31 = vpop.f32.mrf.mxu1  ;;  %v5097_v38 = vld [vmem:[#allocation3 + $0x20] sm:$0xff]  ;;  %1757 = vmatpush.bf16.msrb.mxu0 %v4567_v19 }
  0xd2   : > { %962 = vst.msk [vmem:[#allocation3 + $0x29] sm:$0xff] %vm502_vm1, %v930_v28  ;;  %v895_v33 = vadd.f32 %v894_v31, %v865_v30  ;;  %v5099_v39 = vld [vmem:[#allocation3 + $0x1a] sm:$0xff]  ;;  %v4566_v28 = vld [vmem:[%s6225_s6 + $0x88] sm:$0xff]  ;;  %1817 = vmatpush.bf16.msrb.mxu1 %v4563_v21  ;;  %v4562_v30 = vld [vmem:[%s6224_s5 + $0x60] sm:$0xff]  ;;  %1637 = vmatpush.bf16.msra.mxu2 %v4556_v12 }
  0xd3   : > { %v5103_v45 = vld [vmem:[#allocation3 + $0x21] sm:$0xff]  ;;  %v5124_v1 = vpack.c.bf16 %v5099_v39, %v5116_v60 }
  0xd4   : > { %v911_v35 = vmul.f32 %v4993_v18, %v895_v33  ;;  %v4565_v33 = vld [vmem:[%s6225_s6 + $0x80] sm:$0xff]  ;;  %v4575_v12 = vld [vmem:[%s6225_s6 + $0xb8] sm:$0xff] }
  0xd5   : > { %1758 = vmatpush.bf16.msrb.mxu0 %v4566_v28  ;;  %1928 = vmatpush.bf16.msrb.mxu3 %v4575_v12 }
  0xd6   : > { %v923_v36 = vadd.f32 %v4998_v22, %v911_v35  ;;  %1818 = vmatpush.bf16.msrb.mxu1 %v4562_v30 }
  0xd8   : > { %v931_v58 = vmax.f32 %v923_v36, 0.0  ;;  %v868_v40 = vpop.f32.mrf.mxu0 }
  0xd9   : > { %v897_v43 = vpop.f32.mrf.mxu1  ;;  %v5101_v44 = vld [vmem:[#allocation3 + $0x28] sm:$0xff]  ;;  %1759 = vmatpush.bf16.msrb.mxu0 %v4565_v33  ;;  %v1524_v33 = vpack.c.bf16 %v5097_v38, %v5043_v8  ;;  %v4574_v8 = vld [vmem:[%s6225_s6 + $0xb0] sm:$0xff] }
  0xda   : > { %v5105_v52 = vld [vmem:[#allocation3 + $0x29] sm:$0xff]  ;;  %963 = vst.msk [vmem:[#allocation3 + $0x31] sm:$0xff] %vm502_vm1, %v931_v58  ;;  %v898_v55 = vadd.f32 %v897_v43, %v868_v40  ;;  %v5110_v56 = vpack.c.bf16 %v5101_v44, %v5097_v38  ;;  %1929 = vmatpush.bf16.msrb.mxu3 %v4574_v8 }
  0xdb   : > { %v5114_v59 = vpack.c.bf16 %v5105_v52, %v5103_v45 }
  0xdc   : > { %v912_v3 = vmul.f32 %v4993_v18, %v898_v55  ;;  %3823 = vmatmul.msk.bf16.gmra.mxu2 %vm502_vm1, %v5110_v56  ;;  %3922 = vmatmul.msk.bf16.gmra.mxu0 %vm502_vm1, %v5124_v1  ;;  %v5186_v55 = vld [vmem:[#allocation3 + $0x22] sm:$0xff] }
  0xdd   : > { %3873 = vmatmul.msk.bf16.gmra.mxu3 %vm502_vm1, %v5114_v59 }
  0xde   : > { %v924_v15 = vadd.f32 %v4998_v22, %v912_v3  ;;  %v1145_v3 = vld [vmem:[#allocation2 + $0x9] sm:$0xff] }
  0xdf   : > { %v1684_v7 = vpack.c.bf16 %v1146_v37, %v1145_v3 }
  0xe0   : > { %v932_v23 = vmax.f32 %v924_v15, 0.0  ;;  %v870_v25 = vpop.f32.mrf.mxu0  ;;  %v1144_v15 = vld [vmem:[#allocation2 + $0x1] sm:$0xff] }
  0xe1   : > { %v899_v26 = vpop.f32.mrf.mxu1  ;;  %v5167_v35 = vld [vmem:[#allocation3 + $0x30] sm:$0xff]  ;;  %4037 = vmatmul.msk.bf16.vlgmr.msrb.gmra.mxu1 %vm489_vm0, %v1684_v7  ;;  %v1152_v19 = vpack.c.bf16 %v1145_v3, %v1144_v15  ;;  %v1703_v3 = vpack.c.bf16 %v5045_v10, %v5014_v42 }
  0xe2   : > { %964 = vst.msk [vmem:[#allocation3 + $0x39] sm:$0xff] %vm502_vm1, %v932_v23  ;;  %v900_v27 = vadd.f32 %v899_v26, %v870_v25  ;;  %v5169_v36 = vld [vmem:[#allocation3 + $0x2a] sm:$0xff]  ;;  %v1523_v26 = vpack.c.bf16 %v5039_v4, %v5012_v41  ;;  %v5220_v41 = vpop.f32.mrf.mxu3 }
  0xe3   : > { %v5173_v40 = vld [vmem:[#allocation3 + $0x31] sm:$0xff]  ;;  %v5190_v6 = vpack.c.bf16 %v5169_v36, %v5186_v55  ;;  %v1148_v23 = vld [vmem:[#allocation2 + $0x21] sm:$0xff] }
  0xe4   : > { %v913_v31 = vmul.f32 %v4993_v18, %v900_v27  ;;  %v1147_v27 = vld [vmem:[#allocation2 + $0x19] sm:$0xff]  ;;  %v4573_v10 = vld [vmem:[%s6225_s6 + $0xa8] sm:$0xff] }
  0xe5   : > { %v1685_v30 = vpack.c.bf16 %v1148_v23, %v1147_v27  ;;  %v5222_v4 = vpack.c.bf16 %v1147_v27, %v1146_v37  ;;  %1930 = vmatpush.bf16.msrb.mxu3 %v4573_v10  ;;  %v4572_v37 = vld [vmem:[%s6225_s6 + $0xa0] sm:$0xff] }
  0xe6   : > { %v925_v32 = vadd.f32 %v4998_v22, %v913_v31  ;;  %v4555_v31 = vld [vmem:[%s6224_s5 + $0x48] sm:$0xff]  ;;  %v1151_v27 = vld [vmem:[#allocation2 + $0x39] sm:$0xff] }
  0xe7   : > { %1638 = vmatpush.bf16.msra.mxu2 %v4555_v31  ;;  %v1704_v31 = vpack.c.bf16 %v5103_v45, %v5047_v11  ;;  %v4581_v11 = vld [vmem:[%s6225_s6 + $0xd0] sm:$0xff]  ;;  %v4578_v45 = vld [vmem:[%s6224_s5 + $0xa0] sm:$0xff] }
  0xe8   : > { %v933_v34 = vmax.f32 %v925_v32, 0.0  ;;  %v1150_v32 = vld [vmem:[#allocation2 + $0x31] sm:$0xff]  ;;  %2168 = vmatpush.bf16.msra.mxu1 %v4578_v45  ;;  %v4579_v10 = vld [vmem:[%s6225_s6 + $0xc0] sm:$0xff]  ;;  %v1875_v45 = vpack.c.bf16 %v5116_v60, %v5041_v5  ;;  %v1505_v5 = vpack.c.bf16 %v4898_v53, %v4884_v47 }
  0xe9   : > { %v5171_v58 = vld [vmem:[#allocation3 + $0x38] sm:$0xff]  ;;  %1931 = vmatpush.bf16.msrb.mxu3 %v4572_v37  ;;  %v5285_v8 = vpack.c.bf16 %v1151_v27, %v1150_v32  ;;  %v4589_v53 = vld [vmem:[%s6225_s6 + $0xf8] sm:$0xff] }
  0xea   : > { %v5175_v43 = vld [vmem:[#allocation3 + $0x39] sm:$0xff]  ;;  %965 = vst.msk [vmem:[#allocation3 + $0x41] sm:$0xff] %vm502_vm1, %v933_v34  ;;  %v5180_v18 = vpack.c.bf16 %v5171_v58, %v5167_v35  ;;  %v1149_v34 = vld [vmem:[#allocation2 + $0x29] sm:$0xff]  ;;  %v5239_v42 = vpop.f32.mrf.mxu3 }
  0xeb   : > { %v5184_v22 = vpack.c.bf16 %v5175_v43, %v5173_v40  ;;  %v5204_v25 = vld [vmem:[#allocation3 + $0x32] sm:$0xff]  ;;  %v1686_v7 = vpack.c.bf16 %v1150_v32, %v1149_v34  ;;  %v5244_v38 = vpack.c.bf16 %v1149_v34, %v1148_v23 }
  0xec   : > { %3824 = vmatmul.msk.bf16.gmra.mxu2 %vm502_vm1, %v5180_v18  ;;  %3923 = vmatmul.msk.bf16.gmra.mxu0 %vm502_vm1, %v5190_v6  ;;  %v4576_v37 = vld [vmem:[%s6224_s5 + $0x90] sm:$0xff] }
  0xed   : > { %3874 = vmatmul.msk.bf16.gmra.mxu3 %vm502_vm1, %v5184_v22 }
  0xf1   : > { %v5202_v21 = vld [vmem:[#allocation3 + $0x3a] sm:$0xff]  ;;  %4038 = vmatmul.msk.bf16.gmra.mxu1 %vm489_vm0, %v1685_v30  ;;  %v5253_v30 = vld [vmem:[#allocation2 + $0x41] sm:$0xff] }
  0xf2   : > { %v5210_v28 = vpack.c.bf16 %v5202_v21, %v5204_v25  ;;  %v5249_v15 = vpop.f32.mrf.mxu3  ;;  %v1687_v23 = vpack.c.bf16 %v5253_v30, %v1151_v27  ;;  %v5283_v12 = vld [vmem:[#allocation3 + $0x40] sm:$0xff] }
  0xfa   : > { %v5275_v34 = vpop.f32.mrf.mxu3 }
  0xfc   : > { %3887 = vmatmul.msk.bf16.vlgmr.msrb.gmra.mxu2 %vm489_vm0, %v1152_v19  ;;  %3924 = vmatmul.msk.bf16.gmra.mxu0 %vm502_vm1, %v5210_v28  ;;  %v1108_v19 = vpop.f32.mrf.mxu1 }
  0xfd   : > { %3971 = vmatmul.msk.bf16.vlgmr.msra.gmra.mxu3 %vm502_vm1, %v1523_v26  ;;  %v1525_v26 = vpack.c.bf16 %v5167_v35, %v5101_v44  ;;  %v4571_v44 = vld [vmem:[%s6224_s5 + $0x88] sm:$0xff] }
  0xfe   : > { %1988 = vmatpush.bf16.msrb.mxu2 %v4571_v44  ;;  %2288 = vmatpush.bf16.msra.mxu3 %v4589_v53  ;;  %v4594_v53 = vld [vmem:[%s6225_s6 + $0x108] sm:$0xff] }
 0x101   : > { %4039 = vmatmul.msk.bf16.gmra.mxu1 %vm489_vm0, %v1686_v7  ;;  %v4577_v7 = vld [vmem:[%s6224_s5 + $0x98] sm:$0xff] }
 0x102   : > { %2169 = vmatpush.bf16.msra.mxu1 %v4577_v7  ;;  %v5301_v27 = vpop.f32.mrf.mxu3 }
 0x104   : > { %v1110_v35 = vpop.f32.mrf.mxu1 }
 0x106   : > { %2170 = vmatpush.bf16.msra.mxu1 %v4576_v37  ;;  %v2032_v37 = vld [vmem:[#allocation2 + $0x30] sm:$0xff] }
 0x10c   : > { %3888 = vmatmul.msk.bf16.gmra.mxu2 %vm489_vm0, %v5222_v4  ;;  %4021 = vmatmul.msk.bf16.vlgmr.msrb.gmra.mxu0 %vm502_vm1, %v1703_v3  ;;  %v4580_v3 = vld [vmem:[%s6225_s6 + $0xc8] sm:$0xff]  ;;  %v1460_v32 = vpop.f32.mrf.mxu1 }
 0x10d   : > { %3972 = vmatmul.msk.bf16.gmra.mxu3 %vm502_vm1, %v1524_v33  ;;  %v4582_v33 = vld [vmem:[%s6225_s6 + $0xd8] sm:$0xff] }
 0x10e   : > { %2108 = vmatpush.bf16.msra.mxu0 %v4582_v33  ;;  %v5308_v33 = vpop.f32.mrf.mxu3 }
 0x111   : > { %4040 = vmatmul.msk.bf16.gmra.mxu1 %vm489_vm0, %v1687_v23 }
 0x112   : > { %2109 = vmatpush.bf16.msra.mxu0 %v4581_v11 }
 0x114   : > { %v1462_v23 = vpop.f32.mrf.mxu1 }
 0x116   : > { %2110 = vmatpush.bf16.msra.mxu0 %v4580_v3 }
 0x11a   : > { %2111 = vmatpush.bf16.msra.mxu0 %v4579_v10  ;;  %v4569_v10 = vld [vmem:[%s6224_s5 + $0x78] sm:$0xff] }
 0x11c   : > { %3889 = vmatmul.msk.bf16.gmra.mxu2 %vm489_vm0, %v5244_v38  ;;  %4022 = vmatmul.msk.bf16.gmra.mxu0 %vm502_vm1, %v1704_v31  ;;  %v1705_v31 = vpack.c.bf16 %v5173_v40, %v5105_v52  ;;  %v1504_v52 = vpack.c.bf16 %v4880_v46, %v4965_v9  ;;  %v5312_v40 = vld [vmem:[#allocation3 + $0x41] sm:$0xff]  ;;  %v1465_v46 = vpop.f32.mrf.mxu1 }
 0x11d   : > { %3973 = vmatmul.msk.bf16.gmra.mxu3 %vm502_vm1, %v1525_v26  ;;  %v1526_v26 = vpack.c.bf16 %v5283_v12, %v5171_v58  ;;  %v4570_v58 = vld [vmem:[%s6224_s5 + $0x80] sm:$0xff] }
 0x11e   : > { %1989 = vmatpush.bf16.msrb.mxu2 %v4570_v58 }
 0x121   : > { %4137 = vmatmul.msk.bf16.vlgmr.msra.gmra.mxu1 %vm489_vm0, %v4889_v48  ;;  %v1706_v48 = vpack.c.bf16 %v5312_v40, %v5175_v43  ;;  %v1876_v43 = vpack.c.bf16 %v5186_v55, %v5099_v39  ;;  %v4588_v55 = vld [vmem:[%s6225_s6 + $0xf0] sm:$0xff] }
 0x122   : > { %1990 = vmatpush.bf16.msrb.mxu2 %v4569_v10  ;;  %2289 = vmatpush.bf16.msra.mxu3 %v4588_v55  ;;  %v4591_v55 = vld [vmem:[%s6224_s5 + $0xc8] sm:$0xff] }
 0x124   : > { %v1467_v7 = vpop.f32.mrf.mxu1 }
 0x12c   : > { %3890 = vmatmul.msk.bf16.gmra.mxu2 %vm489_vm0, %v5285_v8  ;;  %4023 = vmatmul.msk.bf16.gmra.mxu0 %vm502_vm1, %v1705_v31  ;;  %v2033_v31 = vld [vmem:[#allocation2 + $0x38] sm:$0xff]  ;;  %v1470_v58 = vpop.f32.mrf.mxu1 }
 0x12d   : > { %3974 = vmatmul.msk.bf16.gmra.mxu3 %vm502_vm1, %v1526_v26  ;;  %v2038_v47 = vpack.c.bf16 %v2033_v31, %v2032_v37  ;;  %v4595_v37 = vld [vmem:[%s6225_s6 + $0x110] sm:$0xff] }
 0x131   : > { %4138 = vmatmul.msk.bf16.gmra.mxu1 %vm489_vm0, %v4904_v57 }
 0x139   : > { %v1049_v44 = vpop.f32.mrf.mxu0 }
 0x13a   : > { %v5314_v11 = vadd.f32 %v1108_v19, %v1049_v44 }
 0x13c   : > { %3987 = vmatmul.msk.bf16.vlgmr.msra.gmra.mxu2 %vm489_vm0, %v1504_v52  ;;  %4024 = vmatmul.msk.bf16.gmra.mxu0 %vm502_vm1, %v1706_v48  ;;  %v4587_v52 = vld [vmem:[%s6225_s6 + $0xe8] sm:$0xff]  ;;  %v4586_v48 = vld [vmem:[%s6225_s6 + $0xe0] sm:$0xff] }
 0x13d   : > { %4071 = vmatmul.msk.bf16.vlgmr.msrb.gmra.mxu3 %vm502_vm1, %v1875_v45  ;;  %v1506_v45 = vpack.c.bf16 %v4914_v61, %v4900_v54  ;;  %v4596_v54 = vld [vmem:[%s6225_s6 + $0x118] sm:$0xff] }
 0x13e   : > { %2290 = vmatpush.bf16.msra.mxu3 %v4587_v52  ;;  %v4585_v61 = vld [vmem:[%s6224_s5 + $0xb8] sm:$0xff]  ;;  %2460 = vmatpush.bf16.msrb.mxu0 %v4596_v54 }
 0x13f   : > { %2348 = vmatpush.bf16.msra.mxu2 %v4585_v61  ;;  %v5402_v52 = vld [vmem:[#allocation3 + $0x42] sm:$0xff] }
 0x140   : > { %v5325_v9 = vpop.f32.mrf.mxu3 }
 0x141   : > { %v1051_v19 = vpop.f32.mrf.mxu0  ;;  %4139 = vmatmul.msk.bf16.gmra.mxu1 %vm489_vm0, %v2038_v47 }
 0x142   : > { %v5327_v3 = vadd.f32 %v1110_v35, %v1051_v19  ;;  %2291 = vmatpush.bf16.msra.mxu3 %v4586_v48  ;;  %2461 = vmatpush.bf16.msrb.mxu0 %v4595_v37 }
 0x146   : > { %2462 = vmatpush.bf16.msrb.mxu0 %v4594_v53 }
 0x148   : > { %v5336_v57 = vpop.f32.mrf.mxu3 }
 0x149   : > { %v1401_v60 = vpop.f32.mrf.mxu0 }
 0x14a   : > { %v5338_v26 = vadd.f32 %v1460_v32, %v1401_v60  ;;  %v2035_v60 = vld [vmem:[#allocation2 + $0x48] sm:$0xff] }
 0x14c   : > { %3988 = vmatmul.msk.bf16.gmra.mxu2 %vm489_vm0, %v1505_v5  ;;  %4121 = vmatmul.msk.bf16.vlgmr.msra.gmra.mxu0 %vm502_vm1, %v5052_v13  ;;  %v1503_v5 = vld [vmem:[#allocation2 + $0x40] sm:$0xff] }
 0x14d   : > { %4072 = vmatmul.msk.bf16.gmra.mxu3 %vm502_vm1, %v1876_v43  ;;  %v2039_v10 = vpack.c.bf16 %v2035_v60, %v1503_v5 }
 0x14f   : > { %v5348_v39 = vpop.f32.mrf.mxu2 }
 0x150   : > { %v5358_v13 = vpop.f32.mrf.mxu3 }
 0x151   : > { %v1403_v35 = vpop.f32.mrf.mxu0  ;;  %4140 = vmatmul.msk.bf16.gmra.mxu1 %vm489_vm0, %v2039_v10  ;;  %v1878_v10 = vpack.c.bf16 %v5402_v52, %v5202_v21 }
 0x152   : > { %v5353_v32 = vadd.f32 %v1462_v23, %v1403_v35  ;;  %v1877_v23 = vpack.c.bf16 %v5204_v25, %v5169_v36  ;;  %v1472_v36 = vpop.f32.mrf.mxu1 }
 0x157   : > { %v5360_v44 = vpop.f32.mrf.mxu2 }
 0x158   : > { %v5382_v25 = vpop.f32.mrf.mxu3 }
 0x159   : > { %v1406_v19 = vpop.f32.mrf.mxu0 }
 0x15a   : > { %v5369_v43 = vadd.f32 %v1465_v46, %v1406_v19  ;;  %v1475_v48 = vpop.f32.mrf.mxu1  ;;  %v4590_v19 = vld [vmem:[%s6224_s5 + $0xc0] sm:$0xff] }
 0x15c   : > { %3989 = vmatmul.msk.bf16.gmra.mxu2 %vm489_vm0, %v1506_v45  ;;  %4122 = vmatmul.msk.bf16.gmra.mxu0 %vm502_vm1, %v5110_v56  ;;  %v4592_v56 = vld [vmem:[%s6224_s5 + $0xd0] sm:$0xff]  ;;  %v1507_v45 = vpack.c.bf16 %v1503_v5, %v4918_v62  ;;  %v515_v62 = vlaneseq }
 0x15d   : > { %4073 = vmatmul.msk.bf16.gmra.mxu3 %vm502_vm1, %v1877_v23  ;;  %2520 = vmatpush.bf16.msrb.mxu1 %v4592_v56 }
 0x15e   : > { %v5425_v61 = vshrl.u32 %v515_v62, 7 }
 0x15f   : > { %v5384_v46 = vpop.f32.mrf.mxu2 }
 0x160   : > { %v5411_v23 = vpop.f32.mrf.mxu3 }
 0x161   : > { %v1408_v31 = vpop.f32.mrf.mxu0  ;;  %2521 = vmatpush.bf16.msrb.mxu1 %v4591_v55  ;;  %v1856_v55 = vpack.c.bf16 %v5019_v49, %v5000_v24 }
 0x162   : > { %v5392_v47 = vadd.f32 %v1467_v7, %v1408_v31  ;;  %v4593_v7 = vld [vmem:[%s6225_s6 + $0x100] sm:$0xff]  ;;  %v1477_v37 = vpop.f32.mrf.mxu1  ;;  %v4584_v31 = vld [vmem:[%s6224_s5 + $0xb0] sm:$0xff] }
 0x163   : > { %2463 = vmatpush.bf16.msrb.mxu0 %v4593_v7  ;;  %2349 = vmatpush.bf16.msra.mxu2 %v4584_v31  ;;  %v517_v7 = vadd.s32 8, %v5425_v61  ;;  %v518_v31 = vadd.s32 16, %v5425_v61 }
 0x165   : > { %2522 = vmatpush.bf16.msrb.mxu1 %v4590_v19  ;;  %v535_v49 = vand.u32 7, %v517_v7  ;;  %v542_v7 = vand.u32 7, %v518_v31 }
 0x167   : > { %v5400_v35 = vpop.f32.mrf.mxu2  ;;  %vm621_vm5 = vcmp.ge.s32.totalorder %v535_v49, 1  ;;  %vm645_vm6 = vcmp.lt.s32.totalorder %v535_v49, 7  ;;  %v1857_v49 = vpack.c.bf16 %v5058_v16, %v5021_v50  ;;  %vm622_vm7 = vcmp.ge.s32.totalorder %v542_v7, 1  ;;  %v4583_v50 = vld [vmem:[%s6224_s5 + $0xa8] sm:$0xff] }
 0x168   : > { %4237 = vmatmul.msk.bf16.vlgmr.msrb.gmra.mxu1 %vm489_vm0, %v5025_v51  ;;  %v5427_v56 = vpop.f32.mrf.mxu3  ;;  %vm646_vm8 = vcmp.lt.s32.totalorder %v542_v7, 7  ;;  %v5499_v16 = vsel %vm622_vm7, 1.0, %v4687_v29  ;;  %2350 = vmatpush.bf16.msra.mxu2 %v4583_v50 }
 0x169   : > { %v1411_v60 = vpop.f32.mrf.mxu0 }
 0x16a   : > { %v5415_v54 = vadd.f32 %v1470_v58, %v1411_v60 }
 0x16c   : > { %3990 = vmatmul.msk.bf16.gmra.mxu2 %vm489_vm0, %v1507_v45  ;;  %4123 = vmatmul.msk.bf16.gmra.mxu0 %vm502_vm1, %v5180_v18  ;;  %v528_v18 = vand.u32 7, %v5425_v61  ;;  %v2054_v45 = vld [vmem:[#allocation3 + $0x48] sm:$0xff] }
 0x16d   : > { %4074 = vmatmul.msk.bf16.gmra.mxu3 %vm502_vm1, %v1878_v10  ;;  %v2058_v60 = vpack.c.bf16 %v2054_v45, %v5283_v12  ;;  %v5469_v45 = vsel %vm621_vm5, 1.0, %v4687_v29 }
 0x16e   : > { %vm620_vm3 = vcmp.ge.s32.totalorder %v528_v18, 1  ;;  %vm644_vm4 = vcmp.lt.s32.totalorder %v528_v18, 7 }
 0x16f   : > { %v5423_v5 = vpop.f32.mrf.mxu2  ;;  %v5448_v10 = vsel %vm620_vm3, 1.0, %v4687_v29  ;;  %v5456_v12 = vsel %vm644_vm4, 1.0, %v4687_v29 }
 0x170   : > { %v5450_v24 = vpop.f32.mrf.mxu3  ;;  %v1128_v62 = vmul.f32 %v5448_v10, %v5314_v11 }
 0x171   : > { %v1413_v21 = vpop.f32.mrf.mxu0 }
 0x172   : > { %v5429_v58 = vadd.f32 %v1472_v36, %v1413_v21  ;;  %v1480_v21 = vmul.f32 %v5456_v12, %v5338_v26 }
 0x177   : > { %v1066_v53 = vpop.f32.mrf.mxu2 }
 0x178   : > { %v5436_v51 = vadd.f32 %v5308_v33, %v1066_v53  ;;  %v1820_v33 = vpop.f32.mrf.mxu1  ;;  %4238 = vmatmul.msk.bf16.gmra.mxu1 %vm489_vm0, %v5065_v20 }
 0x179   : > { %v1416_v36 = vpop.f32.mrf.mxu0 }
 0x17a   : > { %v5441_v19 = vadd.f32 %v1475_v48, %v1416_v36  ;;  %v5476_v36 = vpop.f32.mrf.mxu3 }
 0x17c   : > { %4087 = vmatmul.msk.bf16.vlgmr.msrb.gmra.mxu2 %vm489_vm0, %v1856_v55  ;;  %4124 = vmatmul.msk.bf16.gmra.mxu0 %vm502_vm1, %v2058_v60  ;;  %v1129_v60 = vmul.f32 %v5469_v45, %v5327_v3 }
 0x17d   : > { %4171 = vmatmul.msk.bf16.vlgmr.msra.gmra.mxu3 %vm502_vm1, %v5056_v14 }
 0x17f   : > { %v1288_v48 = vpop.f32.mrf.mxu2 }
 0x180   : > { %v1289_v14 = vadd.f32 %v1288_v48, %v5325_v9  ;;  %v5471_v11 = vpop.f32.mrf.mxu1  ;;  %v5474_v9 = vsel %vm645_vm6, 1.0, %v4687_v29  ;;  %v519_v48 = vadd.s32 24, %v5425_v61 }
 0x181   : > { %v1418_v53 = vpop.f32.mrf.mxu0 }
 0x182   : > { %v1308_v18 = vadd.f32 %v1289_v14, %v1128_v62  ;;  %v5464_v55 = vadd.f32 %v1477_v37, %v1418_v53  ;;  %v1481_v62 = vmul.f32 %v5474_v9, %v5353_v32  ;;  %v5510_v53 = vpop.f32.mrf.mxu3 }
 0x184   : > { %v5466_v20 = vadd.f32 %v1480_v21, %v1308_v18  ;;  %v1114_v18 = vadd.f32 %v5220_v41, %v5348_v39  ;;  %v5506_v41 = vsel %vm646_vm8, 1.0, %v4687_v29 }
 0x185   : > { %v1482_v7 = vmul.f32 %v5506_v41, %v5369_v43 }
 0x187   : > { %v1290_v26 = vpop.f32.mrf.mxu2 }
 0x188   : > { %v1291_v37 = vadd.f32 %v1290_v26, %v5336_v57  ;;  %v549_v57 = vand.u32 7, %v519_v48  ;;  %4239 = vmatmul.msk.bf16.gmra.mxu1 %vm489_vm0, %v5128_v2  ;;  %v1116_v2 = vadd.f32 %v5239_v42, %v5360_v44 }
 0x189   : > { %v1761_v21 = vpop.f32.mrf.mxu0 }
 0x18a   : > { %v1309_v14 = vadd.f32 %v1291_v37, %v1129_v60  ;;  %v5486_v31 = vadd.f32 %v1820_v33, %v1761_v21  ;;  %v1825_v33 = vpop.f32.mrf.mxu1  ;;  %vm623_vm9 = vcmp.ge.s32.totalorder %v549_v57, 1  ;;  %vm647_vm11 = vcmp.lt.s32.totalorder %v549_v57, 7 }
 0x18b   : > { %v5523_v37 = vsel %vm623_vm9, 1.0, %v4687_v29  ;;  %v5526_v43 = vsel %vm647_vm11, 1.0, %v4687_v29  ;;  %v1858_v21 = vpack.c.bf16 %v5118_v63, %v5060_v17  ;;  %v1119_v63 = vadd.f32 %v5249_v15, %v5384_v46 }
 0x18c   : > { %v5490_v3 = vadd.f32 %v1481_v62, %v1309_v14  ;;  %4088 = vmatmul.msk.bf16.gmra.mxu2 %vm489_vm0, %v1857_v49  ;;  %4221 = vmatmul.msk.bf16.vlgmr.msrb.gmra.mxu0 %vm502_vm1, %v5124_v1  ;;  %v520_v1 = vadd.s32 32, %v5425_v61  ;;  %v1131_v62 = vmul.f32 %v5523_v37, %v1116_v2  ;;  %v1483_v44 = vmul.f32 %v5526_v43, %v5392_v47 }
 0x18d   : > { %4172 = vmatmul.msk.bf16.gmra.mxu3 %vm502_vm1, %v5114_v59  ;;  %v1130_v59 = vmul.f32 %v5499_v16, %v1114_v18  ;;  %v521_v18 = vadd.s32 40, %v5425_v61 }
 0x18e   : > { %v556_v49 = vand.u32 7, %v520_v1 }
 0x18f   : > { %v1293_v39 = vpop.f32.mrf.mxu2 }
 0x190   : > { %v1294_v32 = vadd.f32 %v1293_v39, %v5358_v13  ;;  %vm5532_vm12 = vcmp.ge.s32.totalorder %v556_v49, 1  ;;  %vm648_vm13 = vcmp.lt.s32.totalorder %v556_v49, 7  ;;  %v522_v49 = vadd.s32 48, %v5425_v61 }
 0x191   : > { %v5515_v60 = vpop.f32.mrf.mxu0  ;;  %v5555_v47 = vsel %vm5532_vm12, 1.0, %v4687_v29  ;;  %v5561_v15 = vsel %vm648_vm13, 1.0, %v4687_v29 }
 0x192   : > { %v1310_v26 = vadd.f32 %v1294_v32, %v1130_v59  ;;  %v5539_v39 = vpop.f32.mrf.mxu1  ;;  %v1855_v59 = vld [vmem:[#allocation2 + $0x42] sm:$0xff]  ;;  %v2387_v32 = vld [vmem:[#allocation2 + $0x4a] sm:$0xff] }
 0x193   : > { %v2391_v17 = vpack.c.bf16 %v2387_v32, %v1855_v59 }
 0x194   : > { %v5520_v13 = vadd.f32 %v1482_v7, %v1310_v26  ;;  %v5541_v7 = vpop.f32.mrf.mxu3  ;;  %v1132_v26 = vmul.f32 %v5555_v47, %v1119_v63  ;;  %v523_v63 = vadd.s32 56, %v5425_v61 }
 0x197   : > { %v1295_v48 = vpop.f32.mrf.mxu2 }
 0x198   : > { %v1296_v14 = vadd.f32 %v1295_v48, %v5382_v25  ;;  %4240 = vmatmul.msk.bf16.gmra.mxu1 %vm489_vm0, %v2391_v17 }
 0x199   : > { %v1766_v57 = vpop.f32.mrf.mxu0 }
 0x19a   : > { %v1311_v50 = vadd.f32 %v1296_v14, %v1131_v62  ;;  %v5543_v25 = vadd.f32 %v1825_v33, %v1766_v57  ;;  %v563_v33 = vand.u32 7, %v521_v18  ;;  %v2234_v18 = vld [vmem:[#allocation3 + $0x49] sm:$0xff] }
 0x19c   : > { %v5547_v1 = vadd.f32 %v1483_v44, %v1311_v50  ;;  %4089 = vmatmul.msk.bf16.gmra.mxu2 %vm489_vm0, %v1858_v21  ;;  %4222 = vmatmul.msk.bf16.gmra.mxu0 %vm502_vm1, %v5190_v6  ;;  %vm625_vm14 = vcmp.ge.s32.totalorder %v563_v33, 1  ;;  %v1121_v6 = vadd.f32 %v5275_v34, %v5400_v35  ;;  %vm649_vm15 = vcmp.lt.s32.totalorder %v563_v33, 7  ;;  %v1830_v21 = vpop.f32.mrf.mxu1 }
 0x19d   : > { %4173 = vmatmul.msk.bf16.gmra.mxu3 %vm502_vm1, %v5184_v22  ;;  %v1484_v22 = vmul.f32 %v5561_v15, %v5415_v54  ;;  %v5575_v42 = vsel %vm625_vm14, 1.0, %v4687_v29  ;;  %v570_v44 = vand.u32 7, %v522_v49  ;;  %v5578_v54 = vsel %vm649_vm15, 1.0, %v4687_v29 }
 0x19e   : > { %6246 = vst [vmem:[#allocation4_spill] sm:$0xff] %v5578_v54  ;;  %v1133_v57 = vmul.f32 %v5575_v42, %v1121_v6  ;;  %v1859_v34 = vpack.c.bf16 %v1855_v59, %v5120_v0  ;;  %v2238_v35 = vpack.c.bf16 %v2234_v18, %v5312_v40  ;;  %v1485_v17 = vmul.f32 %v5578_v54, %v5429_v58 }
 0x19f   : > { %v1298_v46 = vpop.f32.mrf.mxu2  ;;  %vm626_vm2 = vcmp.ge.s32.totalorder %v570_v44, 1  ;;  %vm650_vm3 = vcmp.lt.s32.totalorder %v570_v44, 7  ;;  %v577_v40 = vand.u32 7, %v523_v63 }
 0x1a0   : > { %v1299_v2 = vadd.f32 %v1298_v46, %v5411_v23  ;;  %v1586_v23 = vpop.f32.mrf.mxu3  ;;  %v5596_v0 = vsel %vm626_vm2, 1.0, %v4687_v29 }
 0x1a1   : > { %v5568_v62 = vpop.f32.mrf.mxu0  ;;  %6247 = vst [vmem:[#allocation5_spill] sm:$0xff] %v5596_v0  ;;  %vm627_vm4 = vcmp.ge.s32.totalorder %v577_v40, 1  ;;  %vm651_vm5 = vcmp.lt.s32.totalorder %v577_v40, 7 }
 0x1a2   : > { %v1312_v48 = vadd.f32 %v1299_v2, %v1132_v26  ;;  %v1124_v2 = vadd.f32 %v5301_v27, %v5423_v5  ;;  %v5617_v44 = vsel %vm651_vm5, 1.0, %v4687_v29 }
 0x1a3   : > { %6251 = vst [vmem:[#allocation9_spill] sm:$0xff] %v5617_v44 }
 0x1a4   : > { %v5572_v14 = vadd.f32 %v1484_v22, %v1312_v48  ;;  %v5600_v61 = vpop.f32.mrf.mxu1  ;;  %v1134_v58 = vmul.f32 %v5596_v0, %v1124_v2 }
 0x1a5   : > { %6248 = vst [vmem:[#allocation6_spill] sm:$0xff] %v5600_v61 }
 0x1a7   : > { %v1300_v50 = vpop.f32.mrf.mxu2 }
 0x1a8   : > { %v1301_v32 = vadd.f32 %v1300_v50, %v5427_v56  ;;  %v5603_v56 = vsel %vm650_vm3, 1.0, %v4687_v29  ;;  %v5605_v27 = vpop.f32.mrf.mxu3 }
 0x1a9   : > { %v1771_v46 = vpop.f32.mrf.mxu0  ;;  %6249 = vst [vmem:[#allocation7_spill] sm:$0xff] %v5603_v56  ;;  %v1486_v49 = vmul.f32 %v5603_v56, %v5441_v19 }
 0x1aa   : > { %v1313_v33 = vadd.f32 %v1301_v32, %v1133_v57  ;;  %v5587_v26 = vadd.f32 %v1830_v21, %v1771_v46  ;;  %v5614_v21 = vsel %vm627_vm4, 1.0, %v4687_v29  ;;  %v2406_v32 = vld [vmem:[#allocation3 + $0x4a] sm:$0xff] }
 0x1ab   : > { %6250 = vst [vmem:[#allocation8_spill] sm:$0xff] %v5614_v21  ;;  %v1135_v50 = vmul.f32 %v5614_v21, %v5436_v51 }
 0x1ac   : > { %v5591_v22 = vadd.f32 %v1485_v17, %v1313_v33  ;;  %4090 = vmatmul.msk.bf16.gmra.mxu2 %vm489_vm0, %v1859_v34  ;;  %4223 = vmatmul.msk.bf16.gmra.mxu0 %vm502_vm1, %v5210_v28  ;;  %v1835_v57 = vpop.f32.mrf.mxu1  ;;  %v1487_v34 = vmul.f32 %v5617_v44, %v5464_v55  ;;  %v2410_v33 = vpack.c.bf16 %v2406_v32, %v5402_v52  ;;  %v2215_v32 = vld [vmem:[#allocation2 + $0x49] sm:$0xff] }
 0x1ad   : > { %4174 = vmatmul.msk.bf16.gmra.mxu3 %vm502_vm1, %v2238_v35 }
 0x1af   : > { %v1303_v5 = vpop.f32.mrf.mxu2 }
 0x1b0   : > { %v1304_v59 = vadd.f32 %v1303_v5, %v5450_v24  ;;  %v1591_v19 = vpop.f32.mrf.mxu3 }
 0x1b1   : > { %v5611_v6 = vpop.f32.mrf.mxu0 }
 0x1b2   : > { %v1314_v48 = vadd.f32 %v1304_v59, %v1134_v58 }
 0x1b4   : > { %v1494_v28 = vadd.f32 %v1486_v49, %v1314_v48  ;;  %v5642_v59 = vpop.f32.mrf.mxu1 }
 0x1b5   : > { %6253 = vst [vmem:[#allocation11_spill] sm:$0xff] %v5642_v59 }
 0x1b7   : > { %v1305_v18 = vpop.f32.mrf.mxu2 }
 0x1b8   : > { %v1306_v24 = vadd.f32 %v1305_v18, %v5476_v36  ;;  %v5632_v2 = vpop.f32.mrf.mxu3 }
 0x1b9   : > { %v1776_v17 = vpop.f32.mrf.mxu0 }
 0x1ba   : > { %v1315_v35 = vadd.f32 %v1306_v24, %v1135_v50  ;;  %v1836_v63 = vadd.f32 %v1835_v57, %v1776_v17 }
 0x1bc   : > { %v5625_v46 = vadd.f32 %v1487_v34, %v1315_v35  ;;  %4187 = vmatmul.msk.bf16.vlgmr.msra.gmra.mxu2 %vm489_vm0, %v5222_v4  ;;  %4224 = vmatmul.msk.bf16.gmra.mxu0 %vm502_vm1, %v2410_v33  ;;  %v5655_v50 = vpop.f32.mrf.mxu1 }
 0x1be   : > { %6252 = vst [vmem:[#allocation10_spill] sm:$0xff] %v5625_v46 }
 0x1bf   : > { %v1640_v29 = vpop.f32.mrf.mxu2 }
 0x1c0   : > { %v1641_v51 = vadd.f32 %v1640_v29, %v5510_v53  ;;  %v1596_v4 = vpop.f32.mrf.mxu3 }
 0x1c1   : > { %v5645_v49 = vpop.f32.mrf.mxu0 }
 0x1c2   : > { %v1660_v36 = vmul.f32 %v5448_v10, %v1641_v51  ;;  %6254 = vst [vmem:[#allocation12_spill] sm:$0xff] %v5645_v49 }
 0x1c4   : > { %v1668_v55 = vadd.f32 %v1660_v36, %v5466_v20  ;;  %v5665_v34 = vpop.f32.mrf.mxu1 }
 0x1c6   : > { %v5636_v40 = vadd.f32 %v5486_v31, %v1668_v55 }
 0x1c7   : > { %v5638_v52 = vpop.f32.mrf.mxu2 }
 0x1c8   : > { %v5651_v31 = vpop.f32.mrf.mxu3 }
 0x1c9   : > { %6255 = vst [vmem:[#allocation13_spill] sm:$0xff] %v5651_v31 }
 0x1cc   : > { %4188 = vmatmul.msk.bf16.gmra.mxu2 %vm489_vm0, %v5244_v38  ;;  %v5659_v38 = vpop.f32.mrf.mxu0  ;;  %v5678_v51 = vpop.f32.mrf.mxu1 }
 0x1cf   : > { %v1645_v5 = vpop.f32.mrf.mxu2 }
 0x1d0   : > { %v1646_v58 = vadd.f32 %v1645_v5, %v1586_v23  ;;  %v5661_v57 = vpop.f32.mrf.mxu3 }
 0x1d2   : > { %v1662_v53 = vmul.f32 %v5499_v16, %v1646_v58  ;;  %v4600_v58 = vld [vmem:[%s6228_s9 + $0x18] sm:$0xff] }
 0x1d3   : > { %2660 = vmatpush.bf16.msrb.mxu3 %v4600_v58 }
 0x1d4   : > { %v1670_v48 = vadd.f32 %v1662_v53, %v5520_v13  ;;  %v5670_v17 = vpop.f32.mrf.mxu0 }
 0x1d6   : > { %v5649_v20 = vadd.f32 %v5543_v25, %v1670_v48  ;;  %v5692_v48 = vpop.f32.mrf.mxu1 }
 0x1d7   : > { %v5653_v18 = vpop.f32.mrf.mxu2 }
 0x1d8   : > { %v5675_v29 = vpop.f32.mrf.mxu3 }
 0x1dc   : > { %4189 = vmatmul.msk.bf16.gmra.mxu2 %vm489_vm0, %v5285_v8  ;;  %v2219_v8 = vpack.c.bf16 %v2215_v32, %v5253_v30  ;;  %v5680_v36 = vpop.f32.mrf.mxu0 }
 0x1df   : > { %v1650_v23 = vpop.f32.mrf.mxu2 }
 0x1e0   : > { %v1651_v24 = vadd.f32 %v1650_v23, %v1591_v19  ;;  %v5683_v5 = vpop.f32.mrf.mxu3 }
 0x1e2   : > { %v1664_v13 = vmul.f32 %v5555_v47, %v1651_v24 }
 0x1e4   : > { %v1672_v25 = vadd.f32 %v1664_v13, %v5572_v14  ;;  %v5694_v23 = vpop.f32.mrf.mxu0  ;;  %v5698_v13 = vpop.f32.mrf.mxu1 }
 0x1e6   : > { %v5668_v35 = vadd.f32 %v5587_v26, %v1672_v25  ;;  %v4599_v25 = vld [vmem:[%s6228_s9 + $0x10] sm:$0xff] }
 0x1e7   : > { %v5672_v33 = vpop.f32.mrf.mxu2  ;;  %2661 = vmatpush.bf16.msrb.mxu3 %v4599_v25 }
 0x1ec   : > { %4190 = vmatmul.msk.bf16.gmra.mxu2 %vm489_vm0, %v2219_v8  ;;  %v5707_v8 = vpop.f32.mrf.mxu1  ;;  %vm3606_vm0 = vcmask 39936  }
 0x1ed   : > { %6258 = vst [vmem:[#allocation16_spill] sm:$0xff] %v5707_v8 }
 0x1ef   : > { %v1655_v19 = vpop.f32.mrf.mxu2 }
 0x1f0   : > { %v1656_v14 = vadd.f32 %v1655_v19, %v1596_v4  ;;  %v5696_v4 = vpop.f32.mrf.mxu3 }
 0x1f2   : > { %v1666_v55 = vmul.f32 %v5596_v0, %v1656_v14 }
 0x1f4   : > { %v1674_v26 = vadd.f32 %v1666_v55, %v1494_v28  ;;  %v5700_v28 = vpop.f32.mrf.mxu0  ;;  %v5720_v44 = vpop.f32.mrf.mxu1 }
 0x1f5   : > { %6260 = vst [vmem:[#allocation18_spill] sm:$0xff] %v5720_v44 }
 0x1f6   : > { %v5688_v30 = vadd.f32 %v1836_v63, %v1674_v26  ;;  %v4598_v26 = vld [vmem:[%s6228_s9 + $0x8] sm:$0xff] }
 0x1f7   : > { %v5690_v53 = vpop.f32.mrf.mxu2  ;;  %2662 = vmatpush.bf16.msrb.mxu3 %v4598_v26  ;;  %v4603_v26 = vld [vmem:[%s6228_s9 + $0x30] sm:$0xff] }
 0x1f8   : > { %6256 = vst [vmem:[#allocation14_spill] sm:$0xff] %v5688_v30  ;;  %v5705_v32 = vpop.f32.mrf.mxu3  ;;  %v4604_v30 = vld [vmem:[%s6228_s9 + $0x38] sm:$0xff] }
 0x1f9   : > { %6257 = vst [vmem:[#allocation15_spill] sm:$0xff] %v5690_v53  ;;  %2762 = vmatpush.bf16.msrb.mxu2 %v4604_v30  ;;  %v4608_v30 = vld [vmem:[%s6228_s9 + $0x58] sm:$0xff] }
 0x1fa   : > { %2856 = vmatpush.bf16.msra.mxu0 %v4608_v30  ;;  %v4606_v30 = vld [vmem:[%s6228_s9 + $0x48] sm:$0xff] }
 0x1fc   : > { %v5709_v19 = vpop.f32.mrf.mxu0  ;;  %v5728_v0 = vpop.f32.mrf.mxu1 }
 0x1fd   : > { %6259 = vst [vmem:[#allocation17_spill] sm:$0xff] %v5709_v19  ;;  %2763 = vmatpush.bf16.msrb.mxu2 %v4603_v26  ;;  %v4607_v26 = vld [vmem:[%s6228_s9 + $0x50] sm:$0xff] }
 0x1fe   : > { %6263 = vst [vmem:[#allocation21_spill] sm:$0xff] %v5728_v0  ;;  %v4597_v0 = vld [vmem:[%s6228_s9] sm:$0xff]  ;;  %2857 = vmatpush.bf16.msra.mxu0 %v4607_v26 }
 0x1ff   : > { %v1992_v24 = vpop.f32.mrf.mxu2  ;;  %2663 = vmatpush.bf16.msrb.mxu3 %v4597_v0  ;;  %v4601_v0 = vld [vmem:[%s6228_s9 + $0x20] sm:$0xff] }
 0x200   : > { %v5713_v55 = vpop.f32.mrf.mxu3  ;;  %v1993_v8 = vadd.f32 %v1992_v24, %v5661_v57  ;;  %v4609_v24 = vld [vmem:[%s6228_s9 + $0x60] sm:$0xff] }
 0x202   : > { %v2012_v57 = vmul.f32 %v5456_v12, %v1993_v8  ;;  %2858 = vmatpush.bf16.msra.mxu0 %v4606_v30 }
 0x204   : > { %v5722_v25 = vpop.f32.mrf.mxu0  ;;  %v2524_v44 = vpop.f32.mrf.mxu1  ;;  %v2020_v26 = vadd.f32 %v2012_v57, %v5636_v40 }
 0x205   : > { %6261 = vst [vmem:[#allocation19_spill] sm:$0xff] %v5722_v25  ;;  %v4602_v25 = vld [vmem:[%s6228_s9 + $0x28] sm:$0xff] }
 0x206   : > { %2764 = vmatpush.bf16.msrb.mxu2 %v4602_v25 }
 0x207   : > { %v1994_v63 = vpop.f32.mrf.mxu2 }
 0x208   : > { %v5724_v59 = vpop.f32.mrf.mxu3  ;;  %v1995_v8 = vadd.f32 %v1994_v63, %v5675_v29 }
 0x209   : > { %6262 = vst [vmem:[#allocation20_spill] sm:$0xff] %v5724_v59  ;;  %v4611_v59 = vld [vmem:[%s6228_s9 + $0x70] sm:$0xff] }
 0x20a   : > { %2765 = vmatpush.bf16.msrb.mxu2 %v4601_v0  ;;  %v2013_v40 = vmul.f32 %v5474_v9, %v1995_v8 }
 0x20c   : > { %v5730_v46 = vpop.f32.mrf.mxu0  ;;  %v2526_v25 = vpop.f32.mrf.mxu1 }
 0x20d   : > { %6264 = vst [vmem:[#allocation22_spill] sm:$0xff] %v5730_v46 }
 0x20f   : > { %v5711_v14 = vpop.f32.mrf.mxu2 }
 0x210   : > { %v5735_v21 = vpop.f32.mrf.mxu3 }
 0x211   : > { %6265 = vst [vmem:[#allocation23_spill] sm:$0xff] %v5735_v21  ;;  %v4612_v21 = vld [vmem:[%s6228_s9 + $0x78] sm:$0xff] }
 0x212   : > { %2958 = vmatpush.bf16.msra.mxu1 %v4612_v21  ;;  %v1643_v21 = vadd.f32 %v5638_v52, %v5541_v7  ;;  %v2173_v7 = vadd.f32 %v5655_v50, %v5659_v38  ;;  %v4605_v52 = vld [vmem:[%s6228_s9 + $0x40] sm:$0xff] }
 0x213   : > { %2859 = vmatpush.bf16.msra.mxu0 %v4605_v52  ;;  %v2175_v52 = vadd.f32 %v5665_v34, %v5670_v17 }
 0x214   : > { %v2465_v46 = vpop.f32.mrf.mxu0  ;;  %v2192_v38 = vmul.f32 %v5448_v10, %v2173_v7  ;;  %v2529_v57 = vpop.f32.mrf.mxu1 }
 0x215   : > { %v2193_v17 = vmul.f32 %v5469_v45, %v2175_v52 }
 0x216   : > { %2959 = vmatpush.bf16.msra.mxu1 %v4611_v59  ;;  %v1661_v59 = vmul.f32 %v5469_v45, %v1643_v21  ;;  %v2525_v21 = vadd.f32 %v2524_v44, %v2465_v46  ;;  %v2200_v29 = vadd.f32 %v2192_v38, %v2020_v26  ;;  %v5802_v44 = vld [vmem:[%s6226_s7] ss:$0 sm:$0xff] }
 0x217   : > { %v5718_v58 = vpop.f32.mrf.mxu2 }
 0x218   : > { %v2293_v31 = vpop.f32.mrf.mxu3  ;;  %v1669_v50 = vadd.f32 %v1661_v59, %v5490_v3  ;;  %v2544_v3 = vmul.f32 %v5456_v12, %v2525_v21  ;;  %v2178_v21 = vadd.f32 %v5678_v51, %v5680_v36 }
 0x21a   : > { %v2194_v36 = vmul.f32 %v5499_v16, %v2178_v21 }
 0x21c   : > { %v2467_v19 = vpop.f32.mrf.mxu0 }
 0x21d   : > { %v2527_v7 = vadd.f32 %v2526_v25, %v2467_v19 }
 0x21f   : > { %v5726_v49 = vpop.f32.mrf.mxu2 }
 0x220   : > { %v2295_v0 = vpop.f32.mrf.mxu3 }
 0x224   : > { %v2470_v61 = vpop.f32.mrf.mxu0 }
 0x225   : > { %v2530_v52 = vadd.f32 %v2529_v57, %v2470_v61  ;;  %v2180_v61 = vadd.f32 %v5692_v48, %v5694_v23  ;;  %v1653_v48 = vadd.f32 %v5672_v33, %v5632_v2  ;;  %v2183_v33 = vadd.f32 %v5698_v13, %v5700_v28  ;;  %v4614_v13 = vld [vmem:[%s6228_s9 + $0x88] sm:$0xff] }
 0x227   : > { %v5737_v56 = vpop.f32.mrf.mxu2  ;;  %v2546_v57 = vmul.f32 %v5506_v41, %v2530_v52 }
 0x228   : > { %v2298_v34 = vpop.f32.mrf.mxu3  ;;  %v2005_v52 = vadd.f32 %v5737_v56, %v5713_v55  ;;  %v6268_v56 = vld [vmem:[#allocation6_spill] sm:$0xff] }
 0x229   : > { %v1833_v55 = vadd.f32 %v6268_v56, %v5611_v6 }
 0x22c   : > { %v2472_v19 = vpop.f32.mrf.mxu0 }
 0x22f   : > { %v5754_v53 = vpop.f32.mrf.mxu2 }
 0x230   : > { %6266 = vst [vmem:[#allocation24_spill] sm:$0xff] %v5754_v53  ;;  %v4610_v53 = vld [vmem:[%s6228_s9 + $0x68] sm:$0xff] }
 0x231   : > { %2960 = vmatpush.bf16.msra.mxu1 %v4610_v53  ;;  %v4616_v53 = vld [vmem:[%s6228_s9 + $0x98] sm:$0xff] }
 0x232   : > { %3060 = vmatpush.bf16.msra.mxu3 %v4616_v53 }
 0x234   : > { %v2475_v23 = vpop.f32.mrf.mxu0 }
 0x235   : > { %2961 = vmatpush.bf16.msra.mxu1 %v4609_v24 }
 0x237   : > { %v5774_v54 = vpop.f32.mrf.mxu2  ;;  %v6273_v6 = vld [vmem:[#allocation24_spill] sm:$0xff] }
 0x238   : > { %6267 = vst [vmem:[#allocation25_spill] sm:$0xff] %v5774_v54  ;;  %v1823_v54 = vadd.f32 %v5471_v11, %v5515_v60  ;;  %v1998_v11 = vadd.f32 %v5711_v14, %v5683_v5 }
 0x23a   : > { %v1841_v24 = vadd.f32 %v1823_v54, %v1669_v50  ;;  %v1648_v54 = vadd.f32 %v5653_v18, %v5605_v27  ;;  %v2014_v53 = vmul.f32 %v5506_v41, %v1998_v11  ;;  %v2545_v27 = vmul.f32 %v5474_v9, %v2527_v7  ;;  %v2531_v18 = vpop.f32.mrf.mxu1 }
 0x23c   : > { %v2021_v46 = vadd.f32 %v2013_v40, %v1841_v24  ;;  %v1663_v38 = vmul.f32 %v5523_v37, %v1648_v54  ;;  %v2022_v25 = vadd.f32 %v2014_v53, %v5649_v20  ;;  %v1828_v20 = vadd.f32 %v5539_v39, %v5568_v62  ;;  %v2600_v54 = vld [vmem:[#allocation3] sm:$0xff] }
 0x23d   : > { %v2003_v39 = vadd.f32 %v5726_v49, %v5705_v32 }
 0x23e   : > { %v2201_v14 = vadd.f32 %v2193_v17, %v2021_v46  ;;  %v1671_v51 = vadd.f32 %v1663_v38, %v5547_v1  ;;  %v2202_v46 = vadd.f32 %v2194_v36, %v2022_v25  ;;  %v2701_v1 = vld [vmem:[#allocation3 + $0x1] sm:$0xff]  ;;  %v2532_v38 = vadd.f32 %v2531_v18, %v2472_v19 }
 0x23f   : > { %v2352_v30 = vpop.f32.mrf.mxu2  ;;  %v2016_v32 = vmul.f32 %v5561_v15, %v2003_v39  ;;  %v1665_v25 = vmul.f32 %v5575_v42, %v1653_v48 }
 0x240   : > { %v2353_v63 = vadd.f32 %v2352_v30, %v2293_v31  ;;  %v5809_v31 = vld [vmem:[%s6227_s8] ss:$0 sm:$0xff]  ;;  %v2547_v18 = vmul.f32 %v5526_v43, %v2532_v38 }
 0x241   : > { %v1673_v28 = vadd.f32 %v1665_v25, %v5591_v22 }
 0x242   : > { %v2372_v59 = vadd.f32 %v2353_v63, %v2200_v29  ;;  %v2000_v29 = vadd.f32 %v5718_v58, %v5696_v4  ;;  %v2534_v53 = vpop.f32.mrf.mxu1 }
 0x244   : > { %v2552_v60 = vadd.f32 %v2544_v3, %v2372_v59  ;;  %v2300_v3 = vpop.f32.mrf.mxu3  ;;  %v2015_v58 = vmul.f32 %v5526_v43, %v2000_v29 }
 0x246   : > { %v2564_v26 = vmul.f32 %v5802_v44, %v2552_v60  ;;  %v1843_v60 = vadd.f32 %v1828_v20, %v1671_v51 }
 0x247   : > { %v2354_v8 = vpop.f32.mrf.mxu2 }
 0x248   : > { %v2576_v5 = vadd.f32 %v5809_v31, %v2564_v26  ;;  %v2355_v50 = vadd.f32 %v2354_v8, %v2295_v0  ;;  %v4615_v0 = vld [vmem:[%s6228_s9 + $0x90] sm:$0xff]  ;;  %v2023_v8 = vadd.f32 %v2015_v58, %v1843_v60 }
 0x249   : > { %3061 = vmatpush.bf16.msra.mxu3 %v4615_v0  ;;  %v6269_v60 = vld [vmem:[#allocation4_spill] sm:$0xff] }
 0x24a   : > { %v2584_v30 = vmax.f32 %v2576_v5, 0.0  ;;  %v2373_v40 = vadd.f32 %v2355_v50, %v2201_v14  ;;  %v2195_v50 = vmul.f32 %v5523_v37, %v2180_v61  ;;  %v2536_v58 = vpop.f32.mrf.mxu1 }
 0x24c   : > { %2592 = vst.msk [vmem:[#allocation3 + $0x9] sm:$0xff] %vm502_vm1, %v2584_v30  ;;  %v2553_v63 = vadd.f32 %v2545_v27, %v2373_v40  ;;  %v2203_v30 = vadd.f32 %v2195_v50, %v2023_v8  ;;  %v2303_v2 = vpop.f32.mrf.mxu3 }
 0x24d   : > { %3062 = vmatpush.bf16.msra.mxu3 %v4614_v13 }
 0x24e   : > { %v2565_v24 = vmul.f32 %v5802_v44, %v2553_v63  ;;  %v2024_v63 = vadd.f32 %v2016_v32, %v5668_v35  ;;  %v2196_v35 = vmul.f32 %v5555_v47, %v2183_v33 }
 0x24f   : > { %v2357_v4 = vpop.f32.mrf.mxu2 }
 0x250   : > { %v2577_v59 = vadd.f32 %v5809_v31, %v2565_v24  ;;  %v2358_v11 = vadd.f32 %v2357_v4, %v2298_v34  ;;  %v2535_v4 = vadd.f32 %v2534_v53, %v2475_v23 }
 0x252   : > { %v2585_v17 = vmax.f32 %v2577_v59, 0.0  ;;  %v2374_v7 = vadd.f32 %v2358_v11, %v2202_v46  ;;  %v2477_v46 = vpop.f32.mrf.mxu0 }
 0x253   : > { %v2601_v62 = vld [vmem:[#allocation3 + $0x8] sm:$0xff] }
 0x254   : > { %v5840_v26 = vld [vmem:[#allocation3 + $0x9] sm:$0xff]  ;;  %2593 = vst.msk [vmem:[#allocation3 + $0x11] sm:$0xff] %vm502_vm1, %v2585_v17  ;;  %v2554_v34 = vadd.f32 %v2546_v57, %v2374_v7  ;;  %v2608_v5 = vpack.c.bf16 %v2601_v62, %v2600_v54  ;;  %v2017_v54 = vmul.f32 %v6269_v60, %v2005_v52  ;;  %v1845_v57 = vadd.f32 %v1833_v55, %v1673_v28  ;;  %v6270_v17 = vld [vmem:[#allocation17_spill] sm:$0xff]  ;;  %v6271_v7 = vld [vmem:[#allocation16_spill] sm:$0xff] }
 0x255   : > { %v2709_v14 = vpack.c.bf16 %v5840_v26, %v2701_v1  ;;  %v2795_v0 = vld [vmem:[#allocation3 + $0x2] sm:$0xff]  ;;  %v2204_v1 = vadd.f32 %v2196_v35, %v2024_v63  ;;  %v2185_v39 = vadd.f32 %v6271_v7, %v6270_v17  ;;  %v2539_v35 = vpop.f32.mrf.mxu1 }
 0x256   : > { %v2566_v49 = vmul.f32 %v5802_v44, %v2554_v34  ;;  %4257 = vmatmul.msk.bf16.vlgmr.msrb.gmra.mxu3 %vm502_vm1, %v2608_v5  ;;  %v2305_v34 = vpop.f32.mrf.mxu3  ;;  %v6272_v5 = vld [vmem:[#allocation20_spill] sm:$0xff]  ;;  %v2025_v38 = vadd.f32 %v2017_v54, %v1845_v57 }
 0x257   : > { %4285 = vmatmul.msk.bf16.vlgmr.msrb.gmra.mxu2 %vm502_vm1, %v2709_v14  ;;  %v2359_v21 = vpop.f32.mrf.mxu2  ;;  %v2008_v14 = vadd.f32 %v6273_v6, %v6272_v5  ;;  %v2197_v25 = vmul.f32 %v5575_v42, %v2185_v39  ;;  %v6284_v6 = vld [vmem:[#allocation5_spill] sm:$0xff] }
 0x258   : > { %v2578_v27 = vadd.f32 %v5809_v31, %v2566_v49  ;;  %v2360_v40 = vadd.f32 %v2359_v21, %v2300_v3 }
 0x259   : > { %v2205_v52 = vadd.f32 %v2197_v25, %v2025_v38  ;;  %v6286_v25 = vld [vmem:[#allocation11_spill] sm:$0xff] }
 0x25a   : > { %v2586_v19 = vmax.f32 %v2578_v27, 0.0  ;;  %v2375_v29 = vadd.f32 %v2360_v40, %v2203_v30  ;;  %v6274_v27 = vld [vmem:[#allocation13_spill] sm:$0xff]  ;;  %v6275_v30 = vld [vmem:[#allocation15_spill] sm:$0xff]  ;;  %v2480_v28 = vpop.f32.mrf.mxu0 }
 0x25b   : > { %v5857_v51 = vld [vmem:[#allocation3 + $0xa] sm:$0xff]  ;;  %v1658_v40 = vadd.f32 %v6275_v30, %v6274_v27  ;;  %v2540_v38 = vadd.f32 %v2539_v35, %v2480_v28  ;;  %v4628_v30 = vld [vmem:[%s6228_s9 + $0xf8] sm:$0xff] }
 0x25c   : > { %v2898_v36 = vld [vmem:[#allocation3 + $0x10] sm:$0xff]  ;;  %2594 = vst.msk [vmem:[#allocation3 + $0x19] sm:$0xff] %vm502_vm1, %v2586_v19  ;;  %v2555_v24 = vadd.f32 %v2547_v18, %v2375_v29  ;;  %v2803_v20 = vpack.c.bf16 %v5857_v51, %v2795_v0  ;;  %v4613_v18 = vld [vmem:[%s6228_s9 + $0x80] sm:$0xff]  ;;  %v4620_v19 = vld [vmem:[%s6228_s9 + $0xb8] sm:$0xff]  ;;  %3358 = vmatpush.bf16.msrb.mxu1 %v4628_v30 }
 0x25d   : > { %v2905_v3 = vpack.c.bf16 %v2898_v36, %v2601_v62  ;;  %v2548_v62 = vmul.f32 %v5561_v15, %v2535_v4  ;;  %v5880_v23 = vld [vmem:[#allocation3 + $0x11] sm:$0xff]  ;;  %3063 = vmatpush.bf16.msra.mxu3 %v4613_v18  ;;  %3154 = vmatpush.bf16.msra.mxu2 %v4620_v19  ;;  %v6288_v28 = vld [vmem:[#allocation22_spill] sm:$0xff]  ;;  %v6289_v35 = vld [vmem:[#allocation21_spill] sm:$0xff] }
 0x25e   : > { %v2567_v59 = vmul.f32 %v5802_v44, %v2555_v24  ;;  %4313 = vmatmul.msk.bf16.vlgmr.msra.gmra.mxu0 %vm502_vm1, %v2803_v20  ;;  %v6276_v29 = vld [vmem:[#allocation7_spill] sm:$0xff]  ;;  %v4619_v20 = vld [vmem:[%s6228_s9 + $0xb0] sm:$0xff]  ;;  %v2308_v5 = vpop.f32.mrf.mxu3 }
 0x25f   : > { %4341 = vmatmul.msk.bf16.vlgmr.msra.gmra.mxu1 %vm502_vm1, %v2905_v3  ;;  %v2362_v11 = vpop.f32.mrf.mxu2  ;;  %v2018_v63 = vmul.f32 %v6276_v29, %v2008_v14  ;;  %v6277_v3 = vld [vmem:[#allocation8_spill] sm:$0xff]  ;;  %v6278_v4 = vld [vmem:[#allocation19_spill] sm:$0xff] }
 0x260   : > { %v2579_v22 = vadd.f32 %v5809_v31, %v2567_v59  ;;  %v2363_v61 = vadd.f32 %v2362_v11, %v2303_v2  ;;  %v2537_v2 = vadd.f32 %v2536_v58, %v2477_v46  ;;  %v1667_v13 = vmul.f32 %v6277_v3, %v1658_v40  ;;  %v6279_v58 = vld [vmem:[#allocation18_spill] sm:$0xff]  ;;  %v4618_v27 = vld [vmem:[%s6228_s9 + $0xa8] sm:$0xff]  ;;  %v6285_v40 = vld [vmem:[#allocation12_spill] sm:$0xff] }
 0x261   : > { %v2188_v59 = vadd.f32 %v6279_v58, %v6278_v4  ;;  %v6280_v11 = vld [vmem:[#allocation14_spill] sm:$0xff]  ;;  %3155 = vmatpush.bf16.msra.mxu2 %v4619_v20  ;;  %v2190_v4 = vadd.f32 %v6289_v35, %v6288_v28  ;;  %v2550_v58 = vmul.f32 %v6276_v29, %v2540_v38  ;;  %v4626_v38 = vld [vmem:[%s6228_s9 + $0xe8] sm:$0xff] }
 0x262   : > { %v2587_v8 = vmax.f32 %v2579_v22, 0.0  ;;  %v2376_v53 = vadd.f32 %v2363_v61, %v2204_v1  ;;  %v2549_v56 = vmul.f32 %v6269_v60, %v2537_v2  ;;  %v2026_v54 = vadd.f32 %v2018_v63, %v6280_v11  ;;  %v6281_v22 = vld [vmem:[#allocation23_spill] sm:$0xff]  ;;  %v6282_v1 = vld [vmem:[#allocation25_spill] sm:$0xff]  ;;  %v2541_v11 = vpop.f32.mrf.mxu1 }
 0x263   : > { %v2603_v48 = vld [vmem:[#allocation3 + $0x18] sm:$0xff]  ;;  %v2010_v61 = vadd.f32 %v6282_v1, %v6281_v22  ;;  %v2198_v14 = vmul.f32 %v6284_v6, %v2188_v59  ;;  %v1838_v2 = vadd.f32 %v6286_v25, %v6285_v40  ;;  %v4621_v25 = vld [vmem:[%s6228_s9 + $0xc0] sm:$0xff] }
 0x264   : > { %v5882_v50 = vld [vmem:[#allocation3 + $0x19] sm:$0xff]  ;;  %2595 = vst.msk [vmem:[#allocation3 + $0x21] sm:$0xff] %vm502_vm1, %v2587_v8  ;;  %v2556_v49 = vadd.f32 %v2548_v62, %v2376_v53  ;;  %v5885_v32 = vpack.c.bf16 %v2603_v48, %v2898_v36  ;;  %v6283_v53 = vld [vmem:[#allocation10_spill] sm:$0xff] }
 0x265   : > { %v5889_v21 = vpack.c.bf16 %v5882_v50, %v5880_v23  ;;  %v5917_v57 = vld [vmem:[#allocation3 + $0x12] sm:$0xff]  ;;  %3156 = vmatpush.bf16.msra.mxu2 %v4618_v27 }
 0x266   : > { %v2568_v33 = vmul.f32 %v5802_v44, %v2556_v49  ;;  %4258 = vmatmul.msk.bf16.gmra.mxu3 %vm502_vm1, %v5885_v32 }
 0x267   : > { %4286 = vmatmul.msk.bf16.gmra.mxu2 %vm502_vm1, %v5889_v21  ;;  %v2364_v0 = vpop.f32.mrf.mxu2 }
 0x268   : > { %v2580_v36 = vadd.f32 %v5809_v31, %v2568_v33  ;;  %v2365_v24 = vadd.f32 %v2364_v0, %v2305_v34  ;;  %v1675_v34 = vadd.f32 %v1667_v13, %v6283_v53  ;;  %v6287_v33 = vld [vmem:[#allocation9_spill] sm:$0xff]  ;;  %v2206_v0 = vadd.f32 %v2198_v14, %v2026_v54  ;;  %v4627_v13 = vld [vmem:[%s6228_s9 + $0xf0] sm:$0xff]  ;;  %v4622_v14 = vld [vmem:[%s6228_s9 + $0xc8] sm:$0xff] }
 0x269   : > { %v2019_v18 = vmul.f32 %v6287_v33, %v2010_v61  ;;  %3359 = vmatpush.bf16.msrb.mxu1 %v4627_v13  ;;  %v2199_v53 = vmul.f32 %v6277_v3, %v2190_v4 }
 0x26a   : > { %v2588_v55 = vmax.f32 %v2580_v36, 0.0  ;;  %v2377_v46 = vadd.f32 %v2365_v24, %v2205_v52  ;;  %v4617_v52 = vld [vmem:[%s6228_s9 + $0xa0] sm:$0xff]  ;;  %v4623_v24 = vld [vmem:[%s6228_s9 + $0xd0] sm:$0xff]  ;;  %v1847_v20 = vadd.f32 %v1838_v2, %v1675_v34 }
 0x26b   : > { %v5919_v17 = vld [vmem:[#allocation3 + $0x1a] sm:$0xff]  ;;  %3157 = vmatpush.bf16.msra.mxu2 %v4617_v52  ;;  %v4625_v2 = vld [vmem:[%s6228_s9 + $0xe0] sm:$0xff] }
 0x26c   : > { %v2900_v7 = vld [vmem:[#allocation3 + $0x20] sm:$0xff]  ;;  %2596 = vst.msk [vmem:[#allocation3 + $0x29] sm:$0xff] %vm502_vm1, %v2588_v55  ;;  %v2557_v39 = vadd.f32 %v2549_v56, %v2377_v46  ;;  %v5924_v62 = vpack.c.bf16 %v5919_v17, %v5917_v57  ;;  %v2027_v55 = vadd.f32 %v2019_v18, %v1847_v20  ;;  %v2482_v46 = vpop.f32.mrf.mxu0 }
 0x26d   : > { %v2906_v8 = vpack.c.bf16 %v2900_v7, %v2603_v48  ;;  %v4624_v48 = vld [vmem:[%s6228_s9 + $0xd8] sm:$0xff]  ;;  %v2542_v34 = vadd.f32 %v2541_v11, %v2482_v46  ;;  %3360 = vmatpush.bf16.msrb.mxu1 %v4626_v38 }
 0x26e   : > { %v2569_v49 = vmul.f32 %v5802_v44, %v2557_v39  ;;  %4314 = vmatmul.msk.bf16.gmra.mxu0 %vm502_vm1, %v5924_v62  ;;  %v5957_v22 = vld [vmem:[#allocation3 + $0x21] sm:$0xff]  ;;  %v2207_v30 = vadd.f32 %v2199_v53, %v2027_v55 }
 0x26f   : > { %4342 = vmatmul.msk.bf16.gmra.mxu1 %vm502_vm1, %v2906_v8  ;;  %v2367_v19 = vpop.f32.mrf.mxu2  ;;  %3256 = vmatpush.bf16.msrb.mxu0 %v4624_v48  ;;  %v2551_v18 = vmul.f32 %v6287_v33, %v2542_v34  ;;  %v3007_v34 = vpack.c.bf16 %v5880_v23, %v5840_v26  ;;  %v3008_v26 = vpack.c.bf16 %v5957_v22, %v5882_v50  ;;  %v4629_v23 = vld [vmem:[%s6228_s9 + $0x100] sm:$0xff] }
 0x270   : > { %v2581_v63 = vadd.f32 %v5809_v31, %v2569_v49  ;;  %v2368_v36 = vadd.f32 %v2367_v19, %v2308_v5  ;;  %v2310_v49 = vpop.f32.mrf.mxu3 }
 0x271   : > { %3361 = vmatpush.bf16.msrb.mxu1 %v4625_v2 }
 0x272   : > { %v2589_v59 = vmax.f32 %v2581_v63, 0.0  ;;  %v2378_v56 = vadd.f32 %v2368_v36, %v2206_v0 }
 0x273   : > { %v2605_v54 = vld [vmem:[#allocation3 + $0x28] sm:$0xff]  ;;  %3257 = vmatpush.bf16.msrb.mxu0 %v4623_v24 }
 0x274   : > { %v5959_v1 = vld [vmem:[#allocation3 + $0x29] sm:$0xff]  ;;  %2597 = vst.msk [vmem:[#allocation3 + $0x31] sm:$0xff] %vm502_vm1, %v2589_v59  ;;  %v2558_v61 = vadd.f32 %v2550_v58, %v2378_v56  ;;  %v5962_v39 = vpack.c.bf16 %v2605_v54, %v2900_v7  ;;  %v4632_v7 = vld [vmem:[%s6228_s9 + $0x118] sm:$0xff] }
 0x275   : > { %v5966_v8 = vpack.c.bf16 %v5959_v1, %v5957_v22  ;;  %3452 = vmatpush.bf16.msrb.mxu3 %v4632_v7  ;;  %v2799_v0 = vld [vmem:[#allocation3 + $0x22] sm:$0xff]  ;;  %v4630_v7 = vld [vmem:[%s6228_s9 + $0x108] sm:$0xff] }
 0x276   : > { %v2570_v5 = vmul.f32 %v5802_v44, %v2558_v61  ;;  %4259 = vmatmul.msk.bf16.gmra.mxu3 %vm502_vm1, %v5962_v39 }
 0x277   : > { %4287 = vmatmul.msk.bf16.gmra.mxu2 %vm502_vm1, %v5966_v8  ;;  %v2369_v27 = vpop.f32.mrf.mxu2  ;;  %3258 = vmatpush.bf16.msrb.mxu0 %v4622_v14 }
 0x278   : > { %v2582_v48 = vadd.f32 %v5809_v31, %v2570_v5  ;;  %v2370_v40 = vadd.f32 %v2369_v27, %v2310_v49  ;;  %v3101_v5 = vpack.c.bf16 %v5917_v57, %v5857_v51  ;;  %v3102_v51 = vpack.c.bf16 %v2799_v0, %v5919_v17 }
 0x27a   : > { %v2590_v19 = vmax.f32 %v2582_v48, 0.0  ;;  %v2379_v63 = vadd.f32 %v2370_v40, %v2207_v30 }
 0x27b   : > { %v2800_v36 = vld [vmem:[#allocation3 + $0x2a] sm:$0xff]  ;;  %3259 = vmatpush.bf16.msrb.mxu0 %v4621_v25 }
 0x27c   : > { %v2902_v52 = vld [vmem:[#allocation3 + $0x30] sm:$0xff]  ;;  %2598 = vst.msk [vmem:[#allocation3 + $0x39] sm:$0xff] %vm502_vm1, %v2590_v19  ;;  %v2559_v24 = vadd.f32 %v2551_v18, %v2379_v63  ;;  %v5992_v20 = vpack.c.bf16 %v2800_v36, %v2799_v0 }
 0x27d   : > { %v2907_v13 = vpack.c.bf16 %v2902_v52, %v2605_v54  ;;  %v2707_v59 = vld [vmem:[#allocation3 + $0x31] sm:$0xff] }
 0x27e   : > { %v2571_v28 = vmul.f32 %v5802_v44, %v2559_v24  ;;  %4315 = vmatmul.msk.bf16.gmra.mxu0 %vm502_vm1, %v5992_v20  ;;  %v4631_v44 = vld [vmem:[%s6228_s9 + $0x110] sm:$0xff] }
 0x27f   : > { %4343 = vmatmul.msk.bf16.gmra.mxu1 %vm502_vm1, %v2907_v13  ;;  %3453 = vmatpush.bf16.msrb.mxu3 %v4631_v44 }
 0x280   : > { %v2583_v35 = vadd.f32 %v5809_v31, %v2571_v28 }
 0x282   : > { %v2591_v4 = vmax.f32 %v2583_v35, 0.0 }
 0x283   : > { %v2607_v58 = vld [vmem:[#allocation3 + $0x38] sm:$0xff]  ;;  %3454 = vmatpush.bf16.msrb.mxu3 %v4630_v7 }
 0x284   : > { %v2708_v56 = vld [vmem:[#allocation3 + $0x39] sm:$0xff]  ;;  %2599 = vst.msk [vmem:[#allocation3 + $0x41] sm:$0xff] %vm502_vm1, %v2591_v4  ;;  %v2611_v55 = vpack.c.bf16 %v2607_v58, %v2902_v52 }
 0x285   : > { %v2712_v46 = vpack.c.bf16 %v2708_v56, %v2707_v59  ;;  %v2801_v11 = vld [vmem:[#allocation3 + $0x32] sm:$0xff] }
 0x286   : > { %4260 = vmatmul.msk.bf16.gmra.mxu3 %vm502_vm1, %v2611_v55  ;;  %v3103_v50 = vpack.c.bf16 %v2801_v11, %v2800_v36 }
 0x287   : > { %4288 = vmatmul.msk.bf16.gmra.mxu2 %vm502_vm1, %v2712_v46  ;;  %3455 = vmatpush.bf16.msrb.mxu3 %v4629_v23 }
 0x28b   : > { %v2802_v54 = vld [vmem:[#allocation3 + $0x3a] sm:$0xff]  ;;  %v3100_v57 = vld [vmem:[#allocation3 + $0x42] sm:$0xff] }
 0x28c   : > { %v2904_v31 = vld [vmem:[#allocation3 + $0x40] sm:$0xff]  ;;  %v2806_v61 = vpack.c.bf16 %v2802_v54, %v2801_v11  ;;  %v3104_v22 = vpack.c.bf16 %v3100_v57, %v2802_v54 }
 0x28d   : > { %v2908_v53 = vpack.c.bf16 %v2904_v31, %v2607_v58 }
 0x28e   : > { %4316 = vmatmul.msk.bf16.gmra.mxu0 %vm502_vm1, %v2806_v61 }
 0x28f   : > { %4344 = vmatmul.msk.bf16.gmra.mxu1 %vm502_vm1, %v2908_v53  ;;  %v3398_v53 = vld [vmem:[#allocation3 + $0x4a] sm:$0xff] }
 0x290   : > { %v3402_v7 = vpack.c.bf16 %v3398_v53, %v3100_v57 }
 0x296   : > { %4369 = vmatmul.msk.bf16.vlgmr.msra.gmra.mxu3 %vm502_vm1, %v3007_v34 }
 0x297   : > { %4397 = vmatmul.msk.bf16.vlgmr.msra.gmra.mxu2 %vm502_vm1, %v3101_v5 }
 0x29e   : > { %4425 = vmatmul.msk.bf16.vlgmr.msrb.gmra.mxu0 %vm502_vm1, %v5885_v32  ;;  %v3009_v32 = vpack.c.bf16 %v2707_v59, %v5959_v1 }
 0x29f   : > { %4453 = vmatmul.msk.bf16.vlgmr.msrb.gmra.mxu1 %vm502_vm1, %v5889_v21  ;;  %v3006_v21 = vld [vmem:[#allocation3 + $0x41] sm:$0xff] }
 0x2a0   : > { %v3010_v17 = vpack.c.bf16 %v3006_v21, %v2708_v56 }
 0x2a6   : > { %4370 = vmatmul.msk.bf16.gmra.mxu3 %vm502_vm1, %v3008_v26 }
 0x2a7   : > { %4398 = vmatmul.msk.bf16.gmra.mxu2 %vm502_vm1, %v3102_v51 }
 0x2ae   : > { %4426 = vmatmul.msk.bf16.gmra.mxu0 %vm502_vm1, %v5962_v39  ;;  %v3202_v39 = vld [vmem:[#allocation3 + $0x48] sm:$0xff] }
 0x2af   : > { %4454 = vmatmul.msk.bf16.gmra.mxu1 %vm502_vm1, %v5966_v8  ;;  %v3304_v8 = vld [vmem:[#allocation3 + $0x49] sm:$0xff]  ;;  %v3206_v1 = vpack.c.bf16 %v3202_v39, %v2904_v31 }
 0x2b0   : > { %v3308_v14 = vpack.c.bf16 %v3304_v8, %v3006_v21 }
 0x2b6   : > { %4371 = vmatmul.msk.bf16.gmra.mxu3 %vm502_vm1, %v3009_v32 }
 0x2b7   : > { %4399 = vmatmul.msk.bf16.gmra.mxu2 %vm502_vm1, %v3103_v50 }
 0x2be   : > { %4427 = vmatmul.msk.bf16.gmra.mxu0 %vm502_vm1, %v2611_v55 }
 0x2bf   : > { %4455 = vmatmul.msk.bf16.gmra.mxu1 %vm502_vm1, %v2712_v46 }
 0x2c6   : > { %4372 = vmatmul.msk.bf16.gmra.mxu3 %vm502_vm1, %v3010_v17 }
 0x2c7   : > { %4400 = vmatmul.msk.bf16.gmra.mxu2 %vm502_vm1, %v3104_v22  ;;  %v4636_v22 = vld [vmem:[%s6231_s12 + $0x18] sm:$0xff] }
 0x2c8   : > { %3581 = vmatpush.bf16.msrb.mxu2 %v4636_v22 }
 0x2ce   : > { %4428 = vmatmul.msk.bf16.gmra.mxu0 %vm502_vm1, %v3206_v1 }
 0x2cf   : > { %4456 = vmatmul.msk.bf16.gmra.mxu1 %vm502_vm1, %v3308_v14 }
 0x2d6   : > { %4481 = vmatmul.msk.bf16.vlgmr.msrb.gmra.mxu3 %vm502_vm1, %v5924_v62 }
 0x2d9   : > { %v2665_v38 = vpop.f32.mrf.mxu3 }
 0x2da   : > { %v2767_v49 = vpop.f32.mrf.mxu2  ;;  %v2685_v27 = vmul.f32 %v5448_v10, %v2665_v38 }
 0x2db   : > { %v2861_v48 = vpop.f32.mrf.mxu0 }
 0x2dc   : > { %v2787_v30 = vadd.f32 %v2767_v49, %v2685_v27  ;;  %v2881_v40 = vmul.f32 %v5456_v12, %v2861_v48  ;;  %v4635_v49 = vld [vmem:[%s6231_s12 + $0x10] sm:$0xff] }
 0x2dd   : > { %3582 = vmatpush.bf16.msrb.mxu2 %v4635_v49 }
 0x2de   : > { %v2889_v25 = vadd.f32 %v2881_v40, %v2787_v30 }
 0x2e1   : > { %v6045_v2 = vpop.f32.mrf.mxu3 }
 0x2e2   : > { %v6047_v18 = vpop.f32.mrf.mxu2 }
 0x2e3   : > { %v6049_v19 = vpop.f32.mrf.mxu0 }
 0x2e6   : > { %4482 = vmatmul.msk.bf16.gmra.mxu3 %vm502_vm1, %v5992_v20  ;;  %v2963_v20 = vpop.f32.mrf.mxu1 }
 0x2e7   : > { %v2983_v57 = vmul.f32 %v5448_v10, %v2963_v20 }
 0x2e9   : > { %v2670_v63 = vpop.f32.mrf.mxu3  ;;  %v2991_v1 = vadd.f32 %v2983_v57, %v2889_v25  ;;  %v4634_v25 = vld [vmem:[%s6231_s12 + $0x8] sm:$0xff]  ;;  %v2882_v57 = vmul.f32 %v5474_v9, %v6049_v19 }
 0x2ea   : > { %v2772_v62 = vpop.f32.mrf.mxu2  ;;  %v2687_v0 = vmul.f32 %v5499_v16, %v2670_v63  ;;  %3583 = vmatpush.bf16.msrb.mxu2 %v4634_v25 }
 0x2eb   : > { %v2866_v36 = vpop.f32.mrf.mxu0 }
 0x2ec   : > { %v2789_v52 = vadd.f32 %v2772_v62, %v2687_v0  ;;  %v2883_v24 = vmul.f32 %v5506_v41, %v2866_v36 }
 0x2ee   : > { %v2891_v13 = vadd.f32 %v2883_v24, %v2789_v52  ;;  %v2965_v5 = vpop.f32.mrf.mxu1 }
 0x2f1   : > { %v6055_v28 = vpop.f32.mrf.mxu3 }
 0x2f2   : > { %v6057_v35 = vpop.f32.mrf.mxu2  ;;  %v2688_v19 = vmul.f32 %v5523_v37, %v6055_v28  ;;  %v6132_v28 = vld [vmem:[%s6229_s10] ss:$0 sm:$0xff] }
 0x2f3   : > { %v6059_v4 = vpop.f32.mrf.mxu0 }
 0x2f6   : > { %4483 = vmatmul.msk.bf16.gmra.mxu3 %vm502_vm1, %v2806_v61  ;;  %v2968_v21 = vpop.f32.mrf.mxu1 }
 0x2f7   : > { %v2985_v30 = vmul.f32 %v5499_v16, %v2968_v21 }
 0x2f9   : > { %v2675_v58 = vpop.f32.mrf.mxu3  ;;  %v2993_v40 = vadd.f32 %v2985_v30, %v2891_v13  ;;  %v2984_v30 = vmul.f32 %v5469_v45, %v2965_v5 }
 0x2fa   : > { %v2777_v59 = vpop.f32.mrf.mxu2  ;;  %v2689_v56 = vmul.f32 %v5555_v47, %v2675_v58 }
 0x2fb   : > { %v2871_v55 = vpop.f32.mrf.mxu0 }
 0x2fc   : > { %v2791_v46 = vadd.f32 %v2777_v59, %v2689_v56  ;;  %v2885_v44 = vmul.f32 %v5561_v15, %v2871_v55 }
 0x2fe   : > { %v2893_v11 = vadd.f32 %v2885_v44, %v2791_v46  ;;  %v6079_v8 = vpop.f32.mrf.mxu1 }
 0x301   : > { %v6064_v54 = vpop.f32.mrf.mxu3 }
 0x302   : > { %v6066_v31 = vpop.f32.mrf.mxu2 }
 0x303   : > { %v6068_v34 = vpop.f32.mrf.mxu0 }
 0x306   : > { %4484 = vmatmul.msk.bf16.gmra.mxu3 %vm502_vm1, %v3402_v7  ;;  %v2973_v48 = vpop.f32.mrf.mxu1  ;;  %v4633_v7 = vld [vmem:[%s6231_s12] sm:$0xff] }
 0x307   : > { %v2987_v24 = vmul.f32 %v5555_v47, %v2973_v48  ;;  %3584 = vmatpush.bf16.msrb.mxu2 %v4633_v7 }
 0x309   : > { %v2680_v61 = vpop.f32.mrf.mxu3  ;;  %v2995_v13 = vadd.f32 %v2987_v24, %v2893_v11  ;;  %v2686_v11 = vmul.f32 %v5469_v45, %v6045_v2 }
 0x30a   : > { %v2691_v26 = vmul.f32 %v6284_v6, %v2680_v61  ;;  %v2782_v51 = vpop.f32.mrf.mxu2 }
 0x30b   : > { %v2876_v23 = vpop.f32.mrf.mxu0  ;;  %v2788_v22 = vadd.f32 %v6047_v18, %v2686_v11 }
 0x30c   : > { %v2793_v32 = vadd.f32 %v2782_v51, %v2691_v26  ;;  %v2887_v50 = vmul.f32 %v6276_v29, %v2876_v23 }
 0x30e   : > { %v2895_v17 = vadd.f32 %v2887_v50, %v2793_v32  ;;  %v6087_v0 = vpop.f32.mrf.mxu1 }
 0x311   : > { %v6076_v39 = vpop.f32.mrf.mxu3 }
 0x312   : > { %v6094_v52 = vpop.f32.mrf.mxu2 }
 0x313   : > { %v6097_v59 = vpop.f32.mrf.mxu0 }
 0x316   : > { %v2978_v58 = vpop.f32.mrf.mxu1 }
 0x317   : > { %v2989_v61 = vmul.f32 %v6284_v6, %v2978_v58 }
 0x319   : > { %v3065_v14 = vpop.f32.mrf.mxu3  ;;  %v2997_v51 = vadd.f32 %v2989_v61, %v2895_v17 }
 0x31a   : > { %v3085_v38 = vadd.f32 %v3065_v14, %v2991_v1  ;;  %v3159_v55 = vpop.f32.mrf.mxu2  ;;  %v2890_v1 = vadd.f32 %v2882_v57, %v2788_v22 }
 0x31b   : > { %v3261_v44 = vpop.f32.mrf.mxu0  ;;  %v3179_v14 = vmul.f32 %v5456_v12, %v3159_v55 }
 0x31c   : > { %v3281_v17 = vmul.f32 %v5448_v10, %v3261_v44  ;;  %v2884_v10 = vmul.f32 %v5526_v43, %v6059_v4 }
 0x31d   : > { %v3187_v2 = vadd.f32 %v3179_v14, %v3085_v38  ;;  %v2790_v38 = vadd.f32 %v6057_v35, %v2688_v19 }
 0x31e   : > { %v6101_v46 = vpop.f32.mrf.mxu1 }
 0x31f   : > { %v3289_v58 = vadd.f32 %v3281_v17, %v3187_v2  ;;  %v2892_v11 = vadd.f32 %v2884_v10, %v2790_v38 }
 0x321   : > { %v3067_v27 = vpop.f32.mrf.mxu3 }
 0x322   : > { %v3161_v26 = vpop.f32.mrf.mxu2 }
 0x323   : > { %v3263_v21 = vpop.f32.mrf.mxu0  ;;  %v3180_v18 = vmul.f32 %v5474_v9, %v3161_v26 }
 0x324   : > { %v3282_v55 = vmul.f32 %v5469_v45, %v3263_v21 }
 0x326   : > { %v3363_v32 = vpop.f32.mrf.mxu1 }
 0x327   : > { %v3383_v44 = vadd.f32 %v3363_v32, %v3289_v58  ;;  %v6141_v32 = vld [vmem:[%s6230_s11] ss:$0 sm:$0xff] }
 0x329   : > { %v3070_v63 = vpop.f32.mrf.mxu3 }
 0x32a   : > { %v6085_v62 = vadd.f32 %v3070_v63, %v2993_v40  ;;  %v3164_v49 = vpop.f32.mrf.mxu2  ;;  %v2992_v40 = vadd.f32 %v2984_v30, %v2890_v1 }
 0x32b   : > { %v3266_v25 = vpop.f32.mrf.mxu0  ;;  %v3181_v45 = vmul.f32 %v5506_v41, %v3164_v49 }
 0x32c   : > { %v3086_v24 = vadd.f32 %v3067_v27, %v2992_v40  ;;  %v3283_v1 = vmul.f32 %v5499_v16, %v3266_v25  ;;  %v2690_v40 = vmul.f32 %v5575_v42, %v6064_v54 }
 0x32d   : > { %v3189_v57 = vadd.f32 %v3181_v45, %v6085_v62 }
 0x32e   : > { %v3365_v63 = vpop.f32.mrf.mxu1 }
 0x331   : > { %v6092_v36 = vpop.f32.mrf.mxu3 }
 0x332   : > { %v3166_v7 = vpop.f32.mrf.mxu2 }
 0x333   : > { %v3182_v30 = vmul.f32 %v5526_v43, %v3166_v7 }
 0x336   : > { %v3368_v61 = vpop.f32.mrf.mxu1 }
 0x339   : > { %v3075_v20 = vpop.f32.mrf.mxu3 }
 0x33a   : > { %v6099_v56 = vadd.f32 %v3075_v20, %v2995_v13  ;;  %v3188_v20 = vadd.f32 %v3180_v18, %v3086_v24  ;;  %v3169_v14 = vpop.f32.mrf.mxu2 }
 0x33c   : > { %v3290_v27 = vadd.f32 %v3282_v55, %v3188_v20  ;;  %v2886_v20 = vmul.f32 %v6269_v60, %v6068_v34 }
 0x341   : > { %v6103_v53 = vpop.f32.mrf.mxu3 }
 0x349   : > { %v3080_v23 = vpop.f32.mrf.mxu3 }
 0x34a   : > { %v6111_v50 = vadd.f32 %v3080_v23, %v2997_v51  ;;  %v3268_v51 = vpop.f32.mrf.mxu0  ;;  %v3384_v23 = vadd.f32 %v3365_v63, %v3290_v27  ;;  %v3291_v63 = vadd.f32 %v3283_v1, %v3189_v57 }
 0x34b   : > { %v3284_v25 = vmul.f32 %v5523_v37, %v3268_v51 }
 0x34c   : > { %v3385_v55 = vadd.f32 %v3368_v61, %v3291_v63 }
 0x351   : > { %v6117_v48 = vpop.f32.mrf.mxu3 }
 0x352   : > { %v3271_v18 = vpop.f32.mrf.mxu0 }
 0x353   : > { %v3285_v45 = vmul.f32 %v5555_v47, %v3271_v18 }
 0x359   : > { %v3457_v13 = vpop.f32.mrf.mxu3 }
 0x35a   : > { %v3477_v5 = vmul.f32 %v5456_v12, %v3457_v13  ;;  %v2986_v12 = vmul.f32 %v5523_v37, %v6079_v8  ;;  %v2792_v13 = vadd.f32 %v6066_v31, %v2690_v40  ;;  %v2988_v37 = vmul.f32 %v5575_v42, %v6087_v0 }
 0x35c   : > { %v3485_v26 = vadd.f32 %v3477_v5, %v3383_v44  ;;  %v2994_v22 = vadd.f32 %v2986_v12, %v2892_v11  ;;  %v3171_v5 = vpop.f32.mrf.mxu2  ;;  %v2894_v10 = vadd.f32 %v2886_v20, %v2792_v13  ;;  %v3183_v44 = vmul.f32 %v5561_v15, %v3169_v14  ;;  %v3273_v11 = vpop.f32.mrf.mxu0 }
 0x35d   : > { %v3286_v47 = vmul.f32 %v5575_v42, %v3273_v11 }
 0x35e   : > { %v3497_v4 = vmul.f32 %v6132_v28, %v3485_v26  ;;  %v3088_v8 = vadd.f32 %v6092_v36, %v2994_v22  ;;  %v2996_v61 = vadd.f32 %v2988_v37, %v2894_v10  ;;  %v3191_v51 = vadd.f32 %v3183_v44, %v6099_v56 }
 0x360   : > { %v3509_v2 = vadd.f32 %v6141_v32, %v3497_v4  ;;  %v3190_v62 = vadd.f32 %v3182_v30, %v3088_v8  ;;  %v2888_v30 = vmul.f32 %v6287_v33, %v6097_v59 }
 0x361   : > { %v3459_v35 = vpop.f32.mrf.mxu3 }
 0x362   : > { %v3478_v21 = vmul.f32 %v5474_v9, %v3459_v35  ;;  %v3370_v9 = vpop.f32.mrf.mxu1  ;;  %v3517_v19 = vmax.f32 %v3509_v2, 0.0  ;;  %v3292_v7 = vadd.f32 %v3284_v25, %v3190_v62  ;;  %v3090_v35 = vadd.f32 %v6103_v53, %v2996_v61 }
 0x363   : > { %v2990_v62 = vmul.f32 %v6277_v3, %v6101_v46 }
 0x364   : > { %v3486_v49 = vadd.f32 %v3478_v21, %v3384_v23  ;;  %v3184_v23 = vmul.f32 %v6269_v60, %v3171_v5  ;;  %v2692_v21 = vmul.f32 %v6277_v3, %v6076_v39  ;;  %v3174_v22 = vpop.f32.mrf.mxu2  ;;  %v3276_v40 = vpop.f32.mrf.mxu0 }
 0x365   : > { %v3185_v42 = vmul.f32 %v6276_v29, %v3174_v22 }
 0x366   : > { %v3498_v17 = vmul.f32 %v6132_v28, %v3486_v49  ;;  %v3192_v1 = vadd.f32 %v3184_v23, %v3090_v35  ;;  %v2794_v8 = vadd.f32 %v6094_v52, %v2692_v21 }
 0x368   : > { %v3510_v24 = vadd.f32 %v6141_v32, %v3498_v17  ;;  %v3294_v63 = vadd.f32 %v3286_v47, %v3192_v1 }
 0x369   : > { %v3462_v16 = vpop.f32.mrf.mxu3 }
 0x36a   : > { %v3518_v36 = vmax.f32 %v3510_v24, 0.0  ;;  %v3479_v58 = vmul.f32 %v5506_v41, %v3462_v16  ;;  %v3386_v41 = vadd.f32 %v3370_v9, %v3292_v7  ;;  %v3373_v34 = vpop.f32.mrf.mxu1  ;;  %v2896_v24 = vadd.f32 %v2888_v30, %v2794_v8 }
 0x36c   : > { %v3525_v54 = vpack.c.bf16 %v3518_v36, %v3517_v19  ;;  %v3487_v38 = vadd.f32 %v3479_v58, %v3385_v55  ;;  %v3176_v52 = vpop.f32.mrf.mxu2  ;;  %v2998_v25 = vadd.f32 %v2990_v62, %v2896_v24  ;;  %v3193_v19 = vadd.f32 %v3185_v42, %v6111_v50  ;;  %v3278_v7 = vpop.f32.mrf.mxu0 }
 0x36d   : > { %v3287_v36 = vmul.f32 %v6284_v6, %v3276_v40  ;;  %v3186_v20 = vmul.f32 %v6287_v33, %v3176_v52  ;;  %v3288_v50 = vmul.f32 %v6277_v3, %v3278_v7 }
 0x36e   : > { %4501 = vmatmul.msk.bf16.vlgmr.msrb.gmra.mxu2 %vm502_vm1, %v3525_v54  ;;  %v3499_v31 = vmul.f32 %v6132_v28, %v3487_v38  ;;  %v3092_v13 = vadd.f32 %v6117_v48, %v2998_v25 }
 0x36f   : > { %v3295_v5 = vadd.f32 %v3287_v36, %v3193_v19 }
 0x370   : > { %v3511_v0 = vadd.f32 %v6141_v32, %v3499_v31 }
 0x371   : > { %v3464_v27 = vpop.f32.mrf.mxu3 }
 0x372   : > { %v3480_v26 = vmul.f32 %v5526_v43, %v3464_v27  ;;  %v3293_v43 = vadd.f32 %v3285_v45, %v3191_v51  ;;  %v3519_v14 = vmax.f32 %v3511_v0, 0.0  ;;  %v3375_v39 = vpop.f32.mrf.mxu1 }
 0x373   : > { %v3388_v18 = vadd.f32 %v3375_v39, %v3294_v63 }
 0x374   : > { %v3488_v12 = vadd.f32 %v3480_v26, %v3386_v41  ;;  %v3387_v2 = vadd.f32 %v3373_v34, %v3293_v43 }
 0x376   : > { %v3500_v4 = vmul.f32 %v6132_v28, %v3488_v12 }
 0x378   : > { %v3512_v57 = vadd.f32 %v6141_v32, %v3500_v4  ;;  %v4678_v4 = vld [vmem:[%s6232_s13] ss:$0 sm:$0xff] }
 0x379   : > { %v3467_v56 = vpop.f32.mrf.mxu3 }
 0x37a   : > { %v3520_v49 = vmax.f32 %v3512_v57, 0.0  ;;  %v3481_v53 = vmul.f32 %v5561_v15, %v3467_v56  ;;  %v3378_v54 = vpop.f32.mrf.mxu1 }
 0x37b   : > { %v3389_v48 = vadd.f32 %v3378_v54, %v3295_v5 }
 0x37c   : > { %v3526_v17 = vpack.c.bf16 %v3520_v49, %v3519_v14  ;;  %v3489_v9 = vadd.f32 %v3481_v53, %v3387_v2 }
 0x37e   : > { %4502 = vmatmul.msk.bf16.gmra.mxu2 %vm502_vm1, %v3526_v17  ;;  %v3501_v16 = vmul.f32 %v6132_v28, %v3489_v9 }
 0x380   : > { %v3513_v55 = vadd.f32 %v6141_v32, %v3501_v16 }
 0x381   : > { %v3469_v15 = vpop.f32.mrf.mxu3 }
 0x382   : > { %v3482_v59 = vmul.f32 %v6269_v60, %v3469_v15  ;;  %v3194_v60 = vadd.f32 %v3186_v20, %v3092_v13  ;;  %v3521_v44 = vmax.f32 %v3513_v55, 0.0  ;;  %v3380_v26 = vpop.f32.mrf.mxu1 }
 0x384   : > { %v3490_v58 = vadd.f32 %v3482_v59, %v3388_v18  ;;  %v3296_v41 = vadd.f32 %v3288_v50, %v3194_v60 }
 0x386   : > { %v3502_v46 = vmul.f32 %v6132_v28, %v3490_v58  ;;  %v3390_v61 = vadd.f32 %v3380_v26, %v3296_v41 }
 0x388   : > { %v3514_v38 = vadd.f32 %v6141_v32, %v3502_v46 }
 0x389   : > { %v3472_v10 = vpop.f32.mrf.mxu3 }
 0x38a   : > { %v3522_v6 = vmax.f32 %v3514_v38, 0.0  ;;  %v3483_v37 = vmul.f32 %v6276_v29, %v3472_v10 }
 0x38c   : > { %v3527_v27 = vpack.c.bf16 %v3522_v6, %v3521_v44  ;;  %v3491_v31 = vadd.f32 %v3483_v37, %v3389_v48 }
 0x38e   : > { %4503 = vmatmul.msk.bf16.gmra.mxu2 %vm502_vm1, %v3527_v27  ;;  %v3503_v11 = vmul.f32 %v6132_v28, %v3491_v31 }
 0x390   : > { %v3515_v3 = vadd.f32 %v6141_v32, %v3503_v11 }
 0x391   : > { %v3474_v34 = vpop.f32.mrf.mxu3 }
 0x392   : > { %v3484_v51 = vmul.f32 %v6287_v33, %v3474_v34  ;;  %v3523_v35 = vmax.f32 %v3515_v3, 0.0 }
 0x394   : > { %v3492_v45 = vadd.f32 %v3484_v51, %v3390_v61 }
 0x396   : > { %v3504_v12 = vmul.f32 %v6132_v28, %v3492_v45 }
 0x398   : > { %v3516_v29 = vadd.f32 %v6141_v32, %v3504_v12 }
 0x39a   : > { %v3524_v23 = vmax.f32 %v3516_v29, 0.0 }
 0x39c   : > { %v3528_v0 = vpack.c.bf16 %v3524_v23, %v3523_v35 }
 0x39e   : > { %4504 = vmatmul.msk.bf16.gmra.mxu2 %vm502_vm1, %v3528_v0 }
 0x3f1   : > { %v3586_v33 = vpop.f32.mrf.mxu2 }
 0x3f2   : > { %v3587_v21 = vadd.f32 %v4678_v4, %v3586_v33 }
 0x3f4   : > { %3607 = vst.msk [vmem:[%s487_s15] sm:$0xff] %vm3606_vm0, %v3587_v21 }
 0x3f9   : > { %v3588_v28 = vpop.f32.mrf.mxu2 }
 0x3fa   : > { %v3589_v32 = vadd.f32 %v4678_v4, %v3588_v28 }
 0x3fc   : > { %3608 = vst.msk [vmem:[%s487_s15 + $0x8] sm:$0xff] %vm3606_vm0, %v3589_v32 }
 0x401   : > { %v3591_v43 = vpop.f32.mrf.mxu2 }
 0x402   : > { %v3592_v22 = vadd.f32 %v4678_v4, %v3591_v43 }
 0x404   : > { %3609 = vst.msk [vmem:[%s487_s15 + $0x10] sm:$0xff] %vm3606_vm0, %v3592_v22 }
 0x409   : > { %v3593_v57 = vpop.f32.mrf.mxu2 }
 0x40a   : > { %v3594_v1 = vadd.f32 %v4678_v4, %v3593_v57 }
 0x40c   : > { %3610 = vst.msk [vmem:[%s487_s15 + $0x18] sm:$0xff] %vm3606_vm0, %v3594_v1 }
 0x411   : > { %v3596_v56 = vpop.f32.mrf.mxu2 }
 0x412   : > { %v3597_v47 = vadd.f32 %v4678_v4, %v3596_v56 }
 0x414   : > { %3611 = vst.msk [vmem:[%s487_s15 + $0x20] sm:$0xff] %vm3606_vm0, %v3597_v47 }
 0x419   : > { %v3598_v14 = vpop.f32.mrf.mxu2 }
 0x41a   : > { %v3599_v49 = vadd.f32 %v4678_v4, %v3598_v14 }
 0x41c   : > { %3612 = vst.msk [vmem:[%s487_s15 + $0x28] sm:$0xff] %vm3606_vm0, %v3599_v49 }
 0x421   : > { %v3601_v53 = vpop.f32.mrf.mxu2 }
 0x422   : > { %v3602_v8 = vadd.f32 %v4678_v4, %v3601_v53 }
 0x424   : > { %3613 = vst.msk [vmem:[%s487_s15 + $0x30] sm:$0xff] %vm3606_vm0, %v3602_v8 }
 0x429   : > { %v3603_v30 = vpop.f32.mrf.mxu2 }
 0x42a   : > { %v3604_v2 = vadd.f32 %v4678_v4, %v3603_v30 }
 0x42c   : > { %3614 = vst.msk [vmem:[%s487_s15 + $0x38] sm:$0xff] %vm3606_vm0, %v3604_v2 }
 0x42d PF: > { %s24_s29 = sadd.s32 1, %s4685_s29  }
 0x42e   : > { %p21_p4 = scmp.ge.s32.totalorder %s24_s29, 4  }
 0x430   :  { %23 = sbr.rel (!%p21_p4) target bundleno = 1 (0x1), region = 133 }

</bundles_post_ra>
